<compile_context>
chip_gen: v7x
topology: tpu7x:2x2x1
jax: 0.10.0
libtpu: 0.0.40
codegen_flags: <defaults>
</compile_context>

<pallas_src>
import itertools

import numpy as np
import jax
import jax.numpy as jnp
from jax.experimental import pallas as pl
from jax.experimental.pallas import tpu as pltpu


# ----------------------------------------------------------------------------
# Static shape bookkeeping / constant pooling matrices
# ----------------------------------------------------------------------------
def _tail_dims(T1):
    """Tower dims after the stage-1 conv (stage-1 output length T1)."""
    P1 = T1 // 3          # MaxPool1d(3), floor (ceil_mode=False)
    T2 = P1 - 2           # Conv1d(64->128, 3)
    P2 = T2 // 3          # MaxPool1d(3)
    T3 = P2 - 2           # Conv1d(128->256, 3)
    assert T3 >= 1, f"sequence too short for the VirusCNN tower (T1={T1})"
    return P1, T2, P2, T3


def _pool_select(T, P):
    """Constant 0/1 selection matrices: sel[o] @ v == v[o::3][:P]  (o in 0..2)."""
    sel = np.zeros((3, P, T), np.float32)
    for o in range(3):
        sel[o, np.arange(P), 3 * np.arange(P) + o] = 1.0
    return jnp.asarray(sel)


# ----------------------------------------------------------------------------
# In-kernel helpers
# ----------------------------------------------------------------------------
def _maxpool3(v, sel_ref):
    """MaxPool1d(kernel=3, stride=3) over the row (time) axis of (T, C)."""
    m = jnp.dot(sel_ref[0], v, preferred_element_type=jnp.float32)
    m = jnp.maximum(m, jnp.dot(sel_ref[1], v, preferred_element_type=jnp.float32))
    return jnp.maximum(m, jnp.dot(sel_ref[2], v, preferred_element_type=jnp.float32))


def _tower_tail(h1, w1_ref, w2_ref, aff_ref, sel1_ref, sel2_ref, p1_ref, p2_ref):
    """Pool+BN -> Conv1d(64->128,3)+ReLU -> Pool+BN -> Conv1d(128->256,3)+ReLU
    -> AdaptiveAvgPool1d(1).  h1: (T1, 64) post-ReLU stage-1 activation.

    aff rows: 0 conv2d bias(64), 1/2 bn1 scale/shift(64), 3 conv1 bias(128),
              4/5 bn2 scale/shift(128), 6 conv2 bias(256).
    Returns (1, 256) pooled features.
    """
    P1 = p1_ref.shape[0]
    P2 = p2_ref.shape[0]
    T2, T3 = P1 - 2, P2 - 2

    # MaxPool1d(3) + BatchNorm1d(64) (inference affine)
    p1_ref[...] = _maxpool3(h1, sel1_ref) * aff_ref[1:2, :64] + aff_ref[2:3, :64]

    # Conv1d(64->128, k=3) + bias + ReLU  (3 shifted dots from VMEM scratch)
    acc = jnp.zeros((T2, 128), jnp.float32) + aff_ref[3:4, :128]
    for j in range(3):
        acc = acc + jnp.dot(p1_ref[pl.ds(j, T2), :], w1_ref[j],
                            preferred_element_type=jnp.float32)
    h2 = jnp.maximum(acc, 0.0)

    # MaxPool1d(3) + BatchNorm1d(128)
    p2_ref[...] = _maxpool3(h2, sel2_ref) * aff_ref[4:5, :128] + aff_ref[5:6, :128]

    # Conv1d(128->256, k=3) + bias + ReLU
    acc = jnp.zeros((T3, 256), jnp.float32) + aff_ref[6:7, :256]
    for j in range(3):
        acc = acc + jnp.dot(p2_ref[pl.ds(j, T3), :], w2_ref[j],
                            preferred_element_type=jnp.float32)
    h3 = jnp.maximum(acc, 0.0)

    # AdaptiveAvgPool1d(1)
    return jnp.mean(h3, axis=0, keepdims=True)      # (1, 256)


# ----------------------------------------------------------------------------
# Kernel bodies
# ----------------------------------------------------------------------------
def _base_channel_kernel(pat_ref, w2d_ref, w1_ref, w2_ref, aff_ref,
                         sel1_ref, sel2_ref, out_ref, p1_ref, p2_ref):
    tile_n = pat_ref.shape[0]
    for s in range(tile_n):                         # static unroll over samples
        # Conv2d(6,4) as one im2col dot: (T1, 24) x (24, 64) + bias + ReLU
        h1 = jnp.maximum(
            jnp.dot(pat_ref[s], w2d_ref[...], preferred_element_type=jnp.float32)
            + aff_ref[0:1, :64], 0.0)
        out_ref[pl.ds(s, 1), :] = _tower_tail(h1, w1_ref, w2_ref, aff_ref,
                                              sel1_ref, sel2_ref, p1_ref, p2_ref)


def _codon_channel_kernel(pat_ref, cw_ref, w2d_ref, w1_ref, w2_ref, aff_ref,
                          sel1_ref, sel2_ref, out_ref, img_ref, p1_ref, p2_ref):
    tile_n, M, _ = pat_ref.shape
    T1 = M - 5
    for s in range(tile_n):                         # static unroll over samples
        # CodonTransformer: relu(one-hot codon conv - 2), rows already frame-major.
        img_ref[...] = jnp.maximum(
            jnp.dot(pat_ref[s], cw_ref[...], preferred_element_type=jnp.float32)
            - 2.0, 0.0)
        # Conv2d(6, 64) + bias + ReLU  (6 shifted K=64 dots from the image scratch)
        acc = jnp.zeros((T1, 64), jnp.float32) + aff_ref[0:1, :64]
        for h in range(6):
            acc = acc + jnp.dot(img_ref[pl.ds(h, T1), :], w2d_ref[h],
                                preferred_element_type=jnp.float32)
        h1 = jnp.maximum(acc, 0.0)
        out_ref[pl.ds(s, 1), :] = _tower_tail(h1, w1_ref, w2_ref, aff_ref,
                                              sel1_ref, sel2_ref, p1_ref, p2_ref)


def _fc_kernel(codon_ref, base_ref, w1_ref, b1_ref, w2_ref, b2_ref, out_ref):
    n = out_ref.shape[0]
    # z = concat([codon(x), base(x), codon(y), base(y)]); fc1 as 4 partial dots.
    parts = (codon_ref[pl.ds(0, n), :], base_ref[pl.ds(0, n), :],
             codon_ref[pl.ds(n, n), :], base_ref[pl.ds(n, n), :])
    h = b1_ref[...]
    for i, p in enumerate(parts):
        h = h + jnp.dot(p, w1_ref[pl.ds(256 * i, 256), :],
                        preferred_element_type=jnp.float32)
    h = jnp.maximum(h, 0.0)
    # Dropout(p=0.5) is identity at inference.
    out_ref[...] = (jnp.dot(h, w2_ref[...], preferred_element_type=jnp.float32)
                    + b2_ref[...])


# ----------------------------------------------------------------------------
# pallas_call wrappers
# ----------------------------------------------------------------------------
def _run_base_channels(pat, w2d, w1, w2, aff, *, tile_n):
    B, Np, T1, K = pat.shape
    nb = Np // tile_n
    P1, T2, P2, _ = _tail_dims(T1)
    sel1 = _pool_select(T1, P1)
    sel2 = _pool_select(T2, P2)
    return pl.pallas_call(
        _base_channel_kernel,
        grid=(B, nb),
        out_shape=jax.ShapeDtypeStruct((B, Np, 256), jnp.float32),
        in_specs=[
            pl.BlockSpec((None, tile_n, T1, K), lambda b, n: (b, n, 0, 0)),
            pl.BlockSpec((None, K, 64), lambda b, n: (b, 0, 0)),
            pl.BlockSpec((None, 3, 64, 128), lambda b, n: (b, 0, 0, 0)),
            pl.BlockSpec((None, 3, 128, 256), lambda b, n: (b, 0, 0, 0)),
            pl.BlockSpec((None, 8, 256), lambda b, n: (b, 0, 0)),
            pl.BlockSpec((3, P1, T1), lambda b, n: (0, 0, 0)),
            pl.BlockSpec((3, P2, T2), lambda b, n: (0, 0, 0)),
        ],
        out_specs=pl.BlockSpec((None, tile_n, 256), lambda b, n: (b, n, 0)),
        scratch_shapes=[pltpu.VMEM((P1, 64), jnp.float32),
                        pltpu.VMEM((P2, 128), jnp.float32)],
        compiler_params=pltpu.CompilerParams(
            dimension_semantics=("parallel", "parallel")),
    )(pat, w2d, w1, w2, aff, sel1, sel2)


def _run_codon_channels(pat, cw, w2d, w1, w2, aff, *, tile_n):
    B, Np, M, K = pat.shape
    nb = Np // tile_n
    T1 = M - 5
    P1, T2, P2, _ = _tail_dims(T1)
    sel1 = _pool_select(T1, P1)
    sel2 = _pool_select(T2, P2)
    return pl.pallas_call(
        _codon_channel_kernel,
        grid=(B, nb),
        out_shape=jax.ShapeDtypeStruct((B, Np, 256), jnp.float32),
        in_specs=[
            pl.BlockSpec((None, tile_n, M, K), lambda b, n: (b, n, 0, 0)),
            pl.BlockSpec((K, 64), lambda b, n: (0, 0)),
            pl.BlockSpec((None, 6, 64, 64), lambda b, n: (b, 0, 0, 0)),
            pl.BlockSpec((None, 3, 64, 128), lambda b, n: (b, 0, 0, 0)),
            pl.BlockSpec((None, 3, 128, 256), lambda b, n: (b, 0, 0, 0)),
            pl.BlockSpec((None, 8, 256), lambda b, n: (b, 0, 0)),
            pl.BlockSpec((3, P1, T1), lambda b, n: (0, 0, 0)),
            pl.BlockSpec((3, P2, T2), lambda b, n: (0, 0, 0)),
        ],
        out_specs=pl.BlockSpec((None, tile_n, 256), lambda b, n: (b, n, 0)),
        scratch_shapes=[pltpu.VMEM((M, 64), jnp.float32),
                        pltpu.VMEM((P1, 64), jnp.float32),
                        pltpu.VMEM((P2, 128), jnp.float32)],
        compiler_params=pltpu.CompilerParams(
            dimension_semantics=("parallel", "parallel")),
    )(pat, cw, w2d, w1, w2, aff, sel1, sel2)


def _run_fc(codon_flat, base_flat, fc):
    R = codon_flat.shape[0]            # 2 * N
    N = R // 2
    out = pl.pallas_call(
        _fc_kernel,
        grid=(1,),
        out_shape=jax.ShapeDtypeStruct((N, 128), jnp.float32),
        in_specs=[
            pl.BlockSpec((R, 256), lambda i: (0, 0)),
            pl.BlockSpec((R, 256), lambda i: (0, 0)),
            pl.BlockSpec((1024, 128), lambda i: (0, 0)),
            pl.BlockSpec((1, 128), lambda i: (0, 0)),
            pl.BlockSpec((128, 128), lambda i: (0, 0)),
            pl.BlockSpec((1, 128), lambda i: (0, 0)),
        ],
        out_specs=pl.BlockSpec((N, 128), lambda i: (0, 0)),
    )(codon_flat, base_flat, fc["w1"], fc["b1"], fc["w2"], fc["b2"])
    return out[:, :1]                   # real fc2 column (padded to 128 lanes in kernel)


# ----------------------------------------------------------------------------
# Host-side glue (one-time parameter packing, patch gathers)
# ----------------------------------------------------------------------------
def _pack_channel(p, flatten_conv2d):
    """Re-pack one channel's torch-layout params into kernel layout."""
    cw = p["conv2d_w"][:, 0]                                  # (64, 6, kw)
    if flatten_conv2d:                                        # base: im2col (24, 64)
        w2d = jnp.transpose(cw.reshape(64, -1), (1, 0))
    else:                                                     # codon: (6, 64, 64)
        w2d = jnp.transpose(cw, (1, 2, 0))
    w1 = jnp.transpose(p["conv1_w"], (2, 1, 0))               # (3, 64, 128)
    w2 = jnp.transpose(p["conv2_w"], (2, 1, 0))               # (3, 128, 256)
    aff = jnp.zeros((8, 256), jnp.float32)
    aff = aff.at[0, :64].set(p["conv2d_b"])
    aff = aff.at[1, :64].set(p["bn1_scale"])
    aff = aff.at[2, :64].set(p["bn1_shift"])
    aff = aff.at[3, :128].set(p["conv1_b"])
    aff = aff.at[4, :128].set(p["bn2_scale"])
    aff = aff.at[5, :128].set(p["bn2_shift"])
    aff = aff.at[6, :256].set(p["conv2_b"])
    return w2d, w1, w2, aff


def _stack_branch_params(pa, pb):
    return tuple(jnp.stack([a, b]) for a, b in zip(pa, pb))


def pack_params(params):
    """One-time packing of all weights into kernel layouts (fc transpose/pad included)."""
    base = _stack_branch_params(_pack_channel(params["base1"], True),
                                _pack_channel(params["base2"], True))
    codon = _stack_branch_params(_pack_channel(params["codon1"], False),
                                 _pack_channel(params["codon2"], False))
    fc = {
        "w1": jnp.asarray(params["fc1_w"]).T,                             # (1024, 128)
        "b1": jnp.asarray(params["fc1_b"]).reshape(1, 128),
        "w2": jnp.zeros((128, 128), jnp.float32).at[:, :1].set(params["fc2_w"].T),
        "b2": jnp.zeros((1, 128), jnp.float32).at[:, :1].set(
            params["fc2_b"].reshape(1, -1)),
    }
    return {"base": base, "codon": codon,
            "codon_cw": jnp.asarray(params["codon_w"]).reshape(64, 12).T,  # (12, 64)
            "fc": fc}


def _base_patches(x):
    """x: (N,1,L,4) one-hot -> Conv2d(6,4) im2col patches (N, T1, 24)."""
    N, _, L, A = x.shape
    T1 = L - 5
    idx = np.arange(T1)[:, None] + np.arange(6)[None, :]      # (T1, 6), static
    patches = x[:, 0][:, idx, :]                              # (N, T1, 6, 4)
    return patches.reshape(N, T1, 6 * A)


def _codon_patches(x):
    """x: (N,1,L,4) one-hot -> frame-major codon im2col patches (N, M, 12)."""
    N, _, L, A = x.shape
    pad = (2 - (L % 3)) % 3            # same zero-padding rule as CodonTransformer
    xp = x[:, 0]
    if pad:
        xp = jnp.pad(xp, ((0, 0), (0, pad), (0, 0)))
    Lp = L + pad
    M = Lp - 2
    assert M % 3 == 0, "codon image length must be a multiple of 3"
    Q = M // 3
    q = np.arange(Q)
    r = np.arange(3)
    base_pos = (3 * q[None, :] + r[:, None]).reshape(-1)      # row r*Q+q -> pos 3q+r
    idx = base_pos[:, None] + np.arange(3)[None, :]           # (M, 3), static
    patches = xp[:, idx, :]                                   # (N, M, 3, 4)
    return patches.reshape(N, M, 3 * A)


# ----------------------------------------------------------------------------
# Forward pass (channel='both', rev_comp=False, share_weight=False, eval mode)
# ----------------------------------------------------------------------------
def virus_cnn_forward(packed, x, y, tile_n=8):
    assert x.shape == y.shape, "fused branch kernel expects equal-length x and y"
    N = x.shape[0]
    tn = max(1, min(tile_n, N))
    nb = -(-N // tn)
    n_pad = nb * tn

    # branch 0 = x (base1/codon1), branch 1 = y (base2/codon2)
    bp = jnp.stack([_base_patches(x), _base_patches(y)], axis=0)     # (2, N, T1, 24)
    cp = jnp.stack([_codon_patches(x), _codon_patches(y)], axis=0)   # (2, N, M, 12)
    if n_pad != N:
        bp = jnp.pad(bp, ((0, 0), (0, n_pad - N), (0, 0), (0, 0)))
        cp = jnp.pad(cp, ((0, 0), (0, n_pad - N), (0, 0), (0, 0)))

    base_feats = _run_base_channels(bp, *packed["base"], tile_n=tn)         # (2,n_pad,256)
    codon_feats = _run_codon_channels(cp, packed["codon_cw"], *packed["codon"],
                                      tile_n=tn)                            # (2,n_pad,256)

    base_flat = base_feats[:, :N, :].reshape(2 * N, 256)
    codon_flat = codon_feats[:, :N, :].reshape(2 * N, 256)
    return _run_fc(codon_flat, base_flat, packed["fc"])


# ----------------------------------------------------------------------------
# Deterministic parameter init (matches the torch module's layout / eval stats)
# ----------------------------------------------------------------------------
def make_codon_transformer():
    w = np.zeros((64, 1, 3, 4), np.float32)
    for i, idx in enumerate(itertools.product(range(4), repeat=3)):
        for j in range(3):
            w[i, 0, j, idx[j]] = 1.0
    return jnp.asarray(w)


def _bn_scale_shift(gamma, beta, mean, var, eps=1e-5):
    scale = gamma / jnp.sqrt(var + eps)
    shift = beta - mean * scale
    return scale, shift


def init_cnn_channel(key, kw):
    ks = jax.random.split(key, 10)
    p = {}
    p["conv2d_w"] = 0.1 * jax.random.normal(ks[0], (64, 1, 6, kw), jnp.float32)
    p["conv2d_b"] = 0.01 * jax.random.normal(ks[1], (64,), jnp.float32)
    g1 = 1.0 + 0.1 * jax.random.normal(ks[2], (64,), jnp.float32)
    b1 = 0.1 * jax.random.normal(ks[3], (64,), jnp.float32)
    p["bn1_scale"], p["bn1_shift"] = _bn_scale_shift(
        g1, b1, jnp.zeros((64,), jnp.float32), jnp.ones((64,), jnp.float32))
    p["conv1_w"] = 0.1 * jax.random.normal(ks[4], (128, 64, 3), jnp.float32)
    p["conv1_b"] = 0.01 * jax.random.normal(ks[5], (128,), jnp.float32)
    g2 = 1.0 + 0.1 * jax.random.normal(ks[6], (128,), jnp.float32)
    b2 = 0.1 * jax.random.normal(ks[7], (128,), jnp.float32)
    p["bn2_scale"], p["bn2_shift"] = _bn_scale_shift(
        g2, b2, jnp.zeros((128,), jnp.float32), jnp.ones((128,), jnp.float32))
    p["conv2_w"] = 0.1 * jax.random.normal(ks[8], (256, 128, 3), jnp.float32)
    p["conv2_b"] = 0.01 * jax.random.normal(ks[9], (256,), jnp.float32)
    return p


def init_params(key):
    kb1, kb2, kc1, kc2, kf1, kf2, kf3, kf4 = jax.random.split(key, 8)
    return {
        "base1": init_cnn_channel(kb1, 4),
        "base2": init_cnn_channel(kb2, 4),
        "codon1": init_cnn_channel(kc1, 64),
        "codon2": init_cnn_channel(kc2, 64),
        "fc1_w": 0.05 * jax.random.normal(kf1, (128, 1024), jnp.float32),
        "fc1_b": 0.01 * jax.random.normal(kf2, (128,), jnp.float32),
        "fc2_w": 0.05 * jax.random.normal(kf3, (1, 128), jnp.float32),
        "fc2_b": 0.01 * jax.random.normal(kf4, (1,), jnp.float32),
        "codon_w": make_codon_transformer(),
    }


# ----------------------------------------------------------------------------
if __name__ == "__main__":
    key = jax.random.PRNGKey(0)
    kx, ky, kp = jax.random.split(key, 3)
    N, L = 2, 64  # small one-hot DNA sequences, NCHW: (N, 1, L, 4)
    x = jax.nn.one_hot(jax.random.randint(kx, (N, 1, L), 0, 4), 4, dtype=jnp.float32)
    y = jax.nn.one_hot(jax.random.randint(ky, (N, 1, L), 0, 4), 4, dtype=jnp.float32)
    params = init_params(kp)
    packed = pack_params(params)   # one-time weight packing (fc transpose/pad included)

    fwd = jax.jit(virus_cnn_forward, static_argnames=("tile_n",))
    out = fwd(packed, x, y)
    jax.block_until_ready(out)
    assert out.shape == (N, 1) and out.dtype == jnp.float32
    print("KERNEL_OK")
</pallas_src>

<mosaic_0001>
module attributes {stable_mosaic.version = 11 : i64} {
  func.func @_codon_channel_kernel(%arg0: i32, %arg1: i32, %arg2: memref<1x2x63x12xf32, #tpu.memory_space<vmem>>, %arg3: memref<12x64xf32, #tpu.memory_space<vmem>>, %arg4: memref<1x6x64x64xf32, #tpu.memory_space<vmem>>, %arg5: memref<1x3x64x128xf32, #tpu.memory_space<vmem>>, %arg6: memref<1x3x128x256xf32, #tpu.memory_space<vmem>>, %arg7: memref<1x8x256xf32, #tpu.memory_space<vmem>>, %arg8: memref<3x19x58xf32, #tpu.memory_space<vmem>>, %arg9: memref<3x5x17xf32, #tpu.memory_space<vmem>>, %arg10: memref<1x2x256xf32, #tpu.memory_space<vmem>>, %arg11: memref<63x64xf32, #tpu.memory_space<vmem>>, %arg12: memref<19x64xf32, #tpu.memory_space<vmem>>, %arg13: memref<5x128xf32, #tpu.memory_space<vmem>>) attributes {dimension_semantics = [#tpu.dimension_semantics<parallel>, #tpu.dimension_semantics<parallel>], iteration_bounds = array<i64: 2, 1>, scalar_prefetch = 0 : i64, scratch_operands = 3 : i64, tpu.core_type = #tpu.core_type<tc>, window_params = [{transform_indices = @transform_0, window_bounds = array<i64: 1, 2, 63, 12>}, {pipeline_mode = #tpu.pipeline_mode<synchronous>, transform_indices = @transform_1, window_bounds = array<i64: 12, 64>}, {transform_indices = @transform_2, window_bounds = array<i64: 1, 6, 64, 64>}, {transform_indices = @transform_3, window_bounds = array<i64: 1, 3, 64, 128>}, {transform_indices = @transform_4, window_bounds = array<i64: 1, 3, 128, 256>}, {transform_indices = @transform_5, window_bounds = array<i64: 1, 8, 256>}, {pipeline_mode = #tpu.pipeline_mode<synchronous>, transform_indices = @transform_6, window_bounds = array<i64: 3, 19, 58>}, {pipeline_mode = #tpu.pipeline_mode<synchronous>, transform_indices = @transform_7, window_bounds = array<i64: 3, 5, 17>}, {transform_indices = @transform_8, window_bounds = array<i64: 1, 2, 256>}]} {
    %c0 = arith.constant 0 : index
    %c0_0 = arith.constant 0 : index
    %c0_1 = arith.constant 0 : index
    %c0_2 = arith.constant 0 : index
    %0 = vector.load %arg2[%c0, %c0_0, %c0_1, %c0_2] : memref<1x2x63x12xf32, #tpu.memory_space<vmem>>, vector<1x1x63x12xf32>
    %1 = vector.shape_cast %0 : vector<1x1x63x12xf32> to vector<63x12xf32>
    %c0_3 = arith.constant 0 : index
    %c0_4 = arith.constant 0 : index
    %2 = vector.load %arg3[%c0_3, %c0_4] : memref<12x64xf32, #tpu.memory_space<vmem>>, vector<12x64xf32>
    %cst = arith.constant dense<0.000000e+00> : vector<63x64xf32>
    %3 = tpu.matmul %1, %2, %cst {dimension_numbers = #tpu.dot_dimension_numbers<[1], [0], [0], [1], [0, 0, 1, 1], [], []>} : vector<63x12xf32>, vector<12x64xf32>, vector<63x64xf32> -> vector<63x64xf32>
    %cst_5 = arith.constant 2.000000e+00 : f32
    %4 = vector.broadcast %cst_5 : f32 to vector<63x64xf32>
    %5 = arith.subf %3, %4 : vector<63x64xf32>
    %cst_6 = arith.constant 0.000000e+00 : f32
    %6 = vector.broadcast %cst_6 : f32 to vector<63x64xf32>
    %7 = arith.maximumf %5, %6 : vector<63x64xf32>
    %c0_7 = arith.constant 0 : index
    %c0_8 = arith.constant 0 : index
    %8 = vector.load %arg11[%c0_7, %c0_8] : memref<63x64xf32, #tpu.memory_space<vmem>>, vector<63x64xf32>
    tpu.vector_store %arg11[%c0_7, %c0_8], %7 {strides = array<i32>} : memref<63x64xf32, #tpu.memory_space<vmem>>, vector<63x64xf32>,
    %cst_9 = arith.constant 0.000000e+00 : f32
    %9 = vector.broadcast %cst_9 : f32 to vector<58x64xf32>
    %c0_10 = arith.constant 0 : index
    %c0_11 = arith.constant 0 : index
    %c0_12 = arith.constant 0 : index
    %10 = vector.load %arg7[%c0_10, %c0_11, %c0_12] : memref<1x8x256xf32, #tpu.memory_space<vmem>>, vector<1x1x64xf32>
    %11 = vector.shape_cast %10 : vector<1x1x64xf32> to vector<1x64xf32>
    %12 = vector.broadcast %11 : vector<1x64xf32> to vector<58x64xf32>
    %13 = arith.addf %9, %12 : vector<58x64xf32>
    %c0_13 = arith.constant 0 : index
    %c0_14 = arith.constant 0 : index
    %14 = vector.load %arg11[%c0_13, %c0_14] : memref<63x64xf32, #tpu.memory_space<vmem>>, vector<58x64xf32>
    %c0_15 = arith.constant 0 : index
    %c0_16 = arith.constant 0 : index
    %c0_17 = arith.constant 0 : index
    %c0_18 = arith.constant 0 : index
    %15 = vector.load %arg4[%c0_15, %c0_16, %c0_17, %c0_18] : memref<1x6x64x64xf32, #tpu.memory_space<vmem>>, vector<1x1x64x64xf32>
    %16 = vector.shape_cast %15 : vector<1x1x64x64xf32> to vector<64x64xf32>
    %cst_19 = arith.constant dense<0.000000e+00> : vector<58x64xf32>
    %17 = tpu.matmul %14, %16, %cst_19 {dimension_numbers = #tpu.dot_dimension_numbers<[1], [0], [0], [1], [0, 0, 1, 1], [], []>} : vector<58x64xf32>, vector<64x64xf32>, vector<58x64xf32> -> vector<58x64xf32>
    %18 = arith.addf %13, %17 : vector<58x64xf32>
    %c1 = arith.constant 1 : index
    %c0_20 = arith.constant 0 : index
    %19 = vector.load %arg11[%c1, %c0_20] : memref<63x64xf32, #tpu.memory_space<vmem>>, vector<58x64xf32>
    %c0_21 = arith.constant 0 : index
    %c1_22 = arith.constant 1 : index
    %c0_23 = arith.constant 0 : index
    %c0_24 = arith.constant 0 : index
    %20 = vector.load %arg4[%c0_21, %c1_22, %c0_23, %c0_24] : memref<1x6x64x64xf32, #tpu.memory_space<vmem>>, vector<1x1x64x64xf32>
    %21 = vector.shape_cast %20 : vector<1x1x64x64xf32> to vector<64x64xf32>
    %cst_25 = arith.constant dense<0.000000e+00> : vector<58x64xf32>
    %22 = tpu.matmul %19, %21, %cst_25 {dimension_numbers = #tpu.dot_dimension_numbers<[1], [0], [0], [1], [0, 0, 1, 1], [], []>} : vector<58x64xf32>, vector<64x64xf32>, vector<58x64xf32> -> vector<58x64xf32>
    %23 = arith.addf %18, %22 : vector<58x64xf32>
    %c2 = arith.constant 2 : index
    %c0_26 = arith.constant 0 : index
    %24 = vector.load %arg11[%c2, %c0_26] : memref<63x64xf32, #tpu.memory_space<vmem>>, vector<58x64xf32>
    %c0_27 = arith.constant 0 : index
    %c2_28 = arith.constant 2 : index
    %c0_29 = arith.constant 0 : index
    %c0_30 = arith.constant 0 : index
    %25 = vector.load %arg4[%c0_27, %c2_28, %c0_29, %c0_30] : memref<1x6x64x64xf32, #tpu.memory_space<vmem>>, vector<1x1x64x64xf32>
    %26 = vector.shape_cast %25 : vector<1x1x64x64xf32> to vector<64x64xf32>
    %cst_31 = arith.constant dense<0.000000e+00> : vector<58x64xf32>
    %27 = tpu.matmul %24, %26, %cst_31 {dimension_numbers = #tpu.dot_dimension_numbers<[1], [0], [0], [1], [0, 0, 1, 1], [], []>} : vector<58x64xf32>, vector<64x64xf32>, vector<58x64xf32> -> vector<58x64xf32>
    %28 = arith.addf %23, %27 : vector<58x64xf32>
    %c3 = arith.constant 3 : index
    %c0_32 = arith.constant 0 : index
    %29 = vector.load %arg11[%c3, %c0_32] : memref<63x64xf32, #tpu.memory_space<vmem>>, vector<58x64xf32>
    %c0_33 = arith.constant 0 : index
    %c3_34 = arith.constant 3 : index
    %c0_35 = arith.constant 0 : index
    %c0_36 = arith.constant 0 : index
    %30 = vector.load %arg4[%c0_33, %c3_34, %c0_35, %c0_36] : memref<1x6x64x64xf32, #tpu.memory_space<vmem>>, vector<1x1x64x64xf32>
    %31 = vector.shape_cast %30 : vector<1x1x64x64xf32> to vector<64x64xf32>
    %cst_37 = arith.constant dense<0.000000e+00> : vector<58x64xf32>
    %32 = tpu.matmul %29, %31, %cst_37 {dimension_numbers = #tpu.dot_dimension_numbers<[1], [0], [0], [1], [0, 0, 1, 1], [], []>} : vector<58x64xf32>, vector<64x64xf32>, vector<58x64xf32> -> vector<58x64xf32>
    %33 = arith.addf %28, %32 : vector<58x64xf32>
    %c4 = arith.constant 4 : index
    %c0_38 = arith.constant 0 : index
    %34 = vector.load %arg11[%c4, %c0_38] : memref<63x64xf32, #tpu.memory_space<vmem>>, vector<58x64xf32>
    %c0_39 = arith.constant 0 : index
    %c4_40 = arith.constant 4 : index
    %c0_41 = arith.constant 0 : index
    %c0_42 = arith.constant 0 : index
    %35 = vector.load %arg4[%c0_39, %c4_40, %c0_41, %c0_42] : memref<1x6x64x64xf32, #tpu.memory_space<vmem>>, vector<1x1x64x64xf32>
    %36 = vector.shape_cast %35 : vector<1x1x64x64xf32> to vector<64x64xf32>
    %cst_43 = arith.constant dense<0.000000e+00> : vector<58x64xf32>
    %37 = tpu.matmul %34, %36, %cst_43 {dimension_numbers = #tpu.dot_dimension_numbers<[1], [0], [0], [1], [0, 0, 1, 1], [], []>} : vector<58x64xf32>, vector<64x64xf32>, vector<58x64xf32> -> vector<58x64xf32>
    %38 = arith.addf %33, %37 : vector<58x64xf32>
    %c5 = arith.constant 5 : index
    %c0_44 = arith.constant 0 : index
    %39 = vector.load %arg11[%c5, %c0_44] : memref<63x64xf32, #tpu.memory_space<vmem>>, vector<58x64xf32>
    %c0_45 = arith.constant 0 : index
    %c5_46 = arith.constant 5 : index
    %c0_47 = arith.constant 0 : index
    %c0_48 = arith.constant 0 : index
    %40 = vector.load %arg4[%c0_45, %c5_46, %c0_47, %c0_48] : memref<1x6x64x64xf32, #tpu.memory_space<vmem>>, vector<1x1x64x64xf32>
    %41 = vector.shape_cast %40 : vector<1x1x64x64xf32> to vector<64x64xf32>
    %cst_49 = arith.constant dense<0.000000e+00> : vector<58x64xf32>
    %42 = tpu.matmul %39, %41, %cst_49 {dimension_numbers = #tpu.dot_dimension_numbers<[1], [0], [0], [1], [0, 0, 1, 1], [], []>} : vector<58x64xf32>, vector<64x64xf32>, vector<58x64xf32> -> vector<58x64xf32>
    %43 = arith.addf %38, %42 : vector<58x64xf32>
    %cst_50 = arith.constant 0.000000e+00 : f32
    %44 = vector.broadcast %cst_50 : f32 to vector<58x64xf32>
    %45 = arith.maximumf %43, %44 : vector<58x64xf32>
    %c0_51 = arith.constant 0 : index
    %c0_52 = arith.constant 0 : index
    %c0_53 = arith.constant 0 : index
    %46 = vector.load %arg8[%c0_51, %c0_52, %c0_53] : memref<3x19x58xf32, #tpu.memory_space<vmem>>, vector<1x19x58xf32>
    %47 = vector.shape_cast %46 : vector<1x19x58xf32> to vector<19x58xf32>
    %cst_54 = arith.constant dense<0.000000e+00> : vector<19x64xf32>
    %48 = tpu.matmul %47, %45, %cst_54 {dimension_numbers = #tpu.dot_dimension_numbers<[1], [0], [0], [1], [0, 0, 1, 1], [], []>} : vector<19x58xf32>, vector<58x64xf32>, vector<19x64xf32> -> vector<19x64xf32>
    %c1_55 = arith.constant 1 : index
    %c0_56 = arith.constant 0 : index
    %c0_57 = arith.constant 0 : index
    %49 = vector.load %arg8[%c1_55, %c0_56, %c0_57] : memref<3x19x58xf32, #tpu.memory_space<vmem>>, vector<1x19x58xf32>
    %50 = vector.shape_cast %49 : vector<1x19x58xf32> to vector<19x58xf32>
    %cst_58 = arith.constant dense<0.000000e+00> : vector<19x64xf32>
    %51 = tpu.matmul %50, %45, %cst_58 {dimension_numbers = #tpu.dot_dimension_numbers<[1], [0], [0], [1], [0, 0, 1, 1], [], []>} : vector<19x58xf32>, vector<58x64xf32>, vector<19x64xf32> -> vector<19x64xf32>
    %52 = arith.maximumf %48, %51 : vector<19x64xf32>
    %c2_59 = arith.constant 2 : index
    %c0_60 = arith.constant 0 : index
    %c0_61 = arith.constant 0 : index
    %53 = vector.load %arg8[%c2_59, %c0_60, %c0_61] : memref<3x19x58xf32, #tpu.memory_space<vmem>>, vector<1x19x58xf32>
    %54 = vector.shape_cast %53 : vector<1x19x58xf32> to vector<19x58xf32>
    %cst_62 = arith.constant dense<0.000000e+00> : vector<19x64xf32>
    %55 = tpu.matmul %54, %45, %cst_62 {dimension_numbers = #tpu.dot_dimension_numbers<[1], [0], [0], [1], [0, 0, 1, 1], [], []>} : vector<19x58xf32>, vector<58x64xf32>, vector<19x64xf32> -> vector<19x64xf32>
    %56 = arith.maximumf %52, %55 : vector<19x64xf32>
    %c0_63 = arith.constant 0 : index
    %c1_64 = arith.constant 1 : index
    %c0_65 = arith.constant 0 : index
    %57 = vector.load %arg7[%c0_63, %c1_64, %c0_65] : memref<1x8x256xf32, #tpu.memory_space<vmem>>, vector<1x1x64xf32>
    %58 = vector.shape_cast %57 : vector<1x1x64xf32> to vector<1x64xf32>
    %59 = vector.broadcast %58 : vector<1x64xf32> to vector<19x64xf32>
    %60 = arith.mulf %56, %59 : vector<19x64xf32>
    %c0_66 = arith.constant 0 : index
    %c2_67 = arith.constant 2 : index
    %c0_68 = arith.constant 0 : index
    %61 = vector.load %arg7[%c0_66, %c2_67, %c0_68] : memref<1x8x256xf32, #tpu.memory_space<vmem>>, vector<1x1x64xf32>
    %62 = vector.shape_cast %61 : vector<1x1x64xf32> to vector<1x64xf32>
    %63 = vector.broadcast %62 : vector<1x64xf32> to vector<19x64xf32>
    %64 = arith.addf %60, %63 : vector<19x64xf32>
    %c0_69 = arith.constant 0 : index
    %c0_70 = arith.constant 0 : index
    %65 = vector.load %arg12[%c0_69, %c0_70] : memref<19x64xf32, #tpu.memory_space<vmem>>, vector<19x64xf32>
    tpu.vector_store %arg12[%c0_69, %c0_70], %64 {strides = array<i32>} : memref<19x64xf32, #tpu.memory_space<vmem>>, vector<19x64xf32>,
    %cst_71 = arith.constant 0.000000e+00 : f32
    %66 = vector.broadcast %cst_71 : f32 to vector<17x128xf32>
    %c0_72 = arith.constant 0 : index
    %c3_73 = arith.constant 3 : index
    %c0_74 = arith.constant 0 : index
    %67 = vector.load %arg7[%c0_72, %c3_73, %c0_74] : memref<1x8x256xf32, #tpu.memory_space<vmem>>, vector<1x1x128xf32>
    %68 = vector.shape_cast %67 : vector<1x1x128xf32> to vector<1x128xf32>
    %69 = vector.broadcast %68 : vector<1x128xf32> to vector<17x128xf32>
    %70 = arith.addf %66, %69 : vector<17x128xf32>
    %c0_75 = arith.constant 0 : index
    %c0_76 = arith.constant 0 : index
    %71 = vector.load %arg12[%c0_75, %c0_76] : memref<19x64xf32, #tpu.memory_space<vmem>>, vector<17x64xf32>
    %c0_77 = arith.constant 0 : index
    %c0_78 = arith.constant 0 : index
    %c0_79 = arith.constant 0 : index
    %c0_80 = arith.constant 0 : index
    %72 = vector.load %arg5[%c0_77, %c0_78, %c0_79, %c0_80] : memref<1x3x64x128xf32, #tpu.memory_space<vmem>>, vector<1x1x64x128xf32>
    %73 = vector.shape_cast %72 : vector<1x1x64x128xf32> to vector<64x128xf32>
    %cst_81 = arith.constant dense<0.000000e+00> : vector<17x128xf32>
    %74 = tpu.matmul %71, %73, %cst_81 {dimension_numbers = #tpu.dot_dimension_numbers<[1], [0], [0], [1], [0, 0, 1, 1], [], []>} : vector<17x64xf32>, vector<64x128xf32>, vector<17x128xf32> -> vector<17x128xf32>
    %75 = arith.addf %70, %74 : vector<17x128xf32>
    %c1_82 = arith.constant 1 : index
    %c0_83 = arith.constant 0 : index
    %76 = vector.load %arg12[%c1_82, %c0_83] : memref<19x64xf32, #tpu.memory_space<vmem>>, vector<17x64xf32>
    %c0_84 = arith.constant 0 : index
    %c1_85 = arith.constant 1 : index
    %c0_86 = arith.constant 0 : index
    %c0_87 = arith.constant 0 : index
    %77 = vector.load %arg5[%c0_84, %c1_85, %c0_86, %c0_87] : memref<1x3x64x128xf32, #tpu.memory_space<vmem>>, vector<1x1x64x128xf32>
    %78 = vector.shape_cast %77 : vector<1x1x64x128xf32> to vector<64x128xf32>
    %cst_88 = arith.constant dense<0.000000e+00> : vector<17x128xf32>
    %79 = tpu.matmul %76, %78, %cst_88 {dimension_numbers = #tpu.dot_dimension_numbers<[1], [0], [0], [1], [0, 0, 1, 1], [], []>} : vector<17x64xf32>, vector<64x128xf32>, vector<17x128xf32> -> vector<17x128xf32>
    %80 = arith.addf %75, %79 : vector<17x128xf32>
    %c2_89 = arith.constant 2 : index
    %c0_90 = arith.constant 0 : index
    %81 = vector.load %arg12[%c2_89, %c0_90] : memref<19x64xf32, #tpu.memory_space<vmem>>, vector<17x64xf32>
    %c0_91 = arith.constant 0 : index
    %c2_92 = arith.constant 2 : index
    %c0_93 = arith.constant 0 : index
    %c0_94 = arith.constant 0 : index
    %82 = vector.load %arg5[%c0_91, %c2_92, %c0_93, %c0_94] : memref<1x3x64x128xf32, #tpu.memory_space<vmem>>, vector<1x1x64x128xf32>
    %83 = vector.shape_cast %82 : vector<1x1x64x128xf32> to vector<64x128xf32>
    %cst_95 = arith.constant dense<0.000000e+00> : vector<17x128xf32>
    %84 = tpu.matmul %81, %83, %cst_95 {dimension_numbers = #tpu.dot_dimension_numbers<[1], [0], [0], [1], [0, 0, 1, 1], [], []>} : vector<17x64xf32>, vector<64x128xf32>, vector<17x128xf32> -> vector<17x128xf32>
    %85 = arith.addf %80, %84 : vector<17x128xf32>
    %cst_96 = arith.constant 0.000000e+00 : f32
    %86 = vector.broadcast %cst_96 : f32 to vector<17x128xf32>
    %87 = arith.maximumf %85, %86 : vector<17x128xf32>
    %c0_97 = arith.constant 0 : index
    %c0_98 = arith.constant 0 : index
    %c0_99 = arith.constant 0 : index
    %88 = vector.load %arg9[%c0_97, %c0_98, %c0_99] : memref<3x5x17xf32, #tpu.memory_space<vmem>>, vector<1x5x17xf32>
    %89 = vector.shape_cast %88 : vector<1x5x17xf32> to vector<5x17xf32>
    %cst_100 = arith.constant dense<0.000000e+00> : vector<5x128xf32>
    %90 = tpu.matmul %89, %87, %cst_100 {dimension_numbers = #tpu.dot_dimension_numbers<[1], [0], [0], [1], [0, 0, 1, 1], [], []>} : vector<5x17xf32>, vector<17x128xf32>, vector<5x128xf32> -> vector<5x128xf32>
    %c1_101 = arith.constant 1 : index
    %c0_102 = arith.constant 0 : index
    %c0_103 = arith.constant 0 : index
    %91 = vector.load %arg9[%c1_101, %c0_102, %c0_103] : memref<3x5x17xf32, #tpu.memory_space<vmem>>, vector<1x5x17xf32>
    %92 = vector.shape_cast %91 : vector<1x5x17xf32> to vector<5x17xf32>
    %cst_104 = arith.constant dense<0.000000e+00> : vector<5x128xf32>
    %93 = tpu.matmul %92, %87, %cst_104 {dimension_numbers = #tpu.dot_dimension_numbers<[1], [0], [0], [1], [0, 0, 1, 1], [], []>} : vector<5x17xf32>, vector<17x128xf32>, vector<5x128xf32> -> vector<5x128xf32>
    %94 = arith.maximumf %90, %93 : vector<5x128xf32>
    %c2_105 = arith.constant 2 : index
    %c0_106 = arith.constant 0 : index
    %c0_107 = arith.constant 0 : index
    %95 = vector.load %arg9[%c2_105, %c0_106, %c0_107] : memref<3x5x17xf32, #tpu.memory_space<vmem>>, vector<1x5x17xf32>
    %96 = vector.shape_cast %95 : vector<1x5x17xf32> to vector<5x17xf32>
    %cst_108 = arith.constant dense<0.000000e+00> : vector<5x128xf32>
    %97 = tpu.matmul %96, %87, %cst_108 {dimension_numbers = #tpu.dot_dimension_numbers<[1], [0], [0], [1], [0, 0, 1, 1], [], []>} : vector<5x17xf32>, vector<17x128xf32>, vector<5x128xf32> -> vector<5x128xf32>
    %98 = arith.maximumf %94, %97 : vector<5x128xf32>
    %c0_109 = arith.constant 0 : index
    %c4_110 = arith.constant 4 : index
    %c0_111 = arith.constant 0 : index
    %99 = vector.load %arg7[%c0_109, %c4_110, %c0_111] : memref<1x8x256xf32, #tpu.memory_space<vmem>>, vector<1x1x128xf32>
    %100 = vector.shape_cast %99 : vector<1x1x128xf32> to vector<1x128xf32>
    %101 = vector.broadcast %100 : vector<1x128xf32> to vector<5x128xf32>
    %102 = arith.mulf %98, %101 : vector<5x128xf32>
    %c0_112 = arith.constant 0 : index
    %c5_113 = arith.constant 5 : index
    %c0_114 = arith.constant 0 : index
    %103 = vector.load %arg7[%c0_112, %c5_113, %c0_114] : memref<1x8x256xf32, #tpu.memory_space<vmem>>, vector<1x1x128xf32>
    %104 = vector.shape_cast %103 : vector<1x1x128xf32> to vector<1x128xf32>
    %105 = vector.broadcast %104 : vector<1x128xf32> to vector<5x128xf32>
    %106 = arith.addf %102, %105 : vector<5x128xf32>
    %c0_115 = arith.constant 0 : index
    %c0_116 = arith.constant 0 : index
    %107 = vector.load %arg13[%c0_115, %c0_116] : memref<5x128xf32, #tpu.memory_space<vmem>>, vector<5x128xf32>
    tpu.vector_store %arg13[%c0_115, %c0_116], %106 {strides = array<i32>} : memref<5x128xf32, #tpu.memory_space<vmem>>, vector<5x128xf32>,
    %cst_117 = arith.constant 0.000000e+00 : f32
    %108 = vector.broadcast %cst_117 : f32 to vector<3x256xf32>
    %c0_118 = arith.constant 0 : index
    %c6 = arith.constant 6 : index
    %c0_119 = arith.constant 0 : index
    %109 = vector.load %arg7[%c0_118, %c6, %c0_119] : memref<1x8x256xf32, #tpu.memory_space<vmem>>, vector<1x1x256xf32>
    %110 = vector.shape_cast %109 : vector<1x1x256xf32> to vector<1x256xf32>
    %111 = vector.broadcast %110 : vector<1x256xf32> to vector<3x256xf32>
    %112 = arith.addf %108, %111 : vector<3x256xf32>
    %c0_120 = arith.constant 0 : index
    %c0_121 = arith.constant 0 : index
    %113 = vector.load %arg13[%c0_120, %c0_121] : memref<5x128xf32, #tpu.memory_space<vmem>>, vector<3x128xf32>
    %c0_122 = arith.constant 0 : index
    %c0_123 = arith.constant 0 : index
    %c0_124 = arith.constant 0 : index
    %c0_125 = arith.constant 0 : index
    %114 = vector.load %arg6[%c0_122, %c0_123, %c0_124, %c0_125] : memref<1x3x128x256xf32, #tpu.memory_space<vmem>>, vector<1x1x128x256xf32>
    %115 = vector.shape_cast %114 : vector<1x1x128x256xf32> to vector<128x256xf32>
    %cst_126 = arith.constant dense<0.000000e+00> : vector<3x256xf32>
    %116 = tpu.matmul %113, %115, %cst_126 {dimension_numbers = #tpu.dot_dimension_numbers<[1], [0], [0], [1], [0, 0, 1, 1], [], []>} : vector<3x128xf32>, vector<128x256xf32>, vector<3x256xf32> -> vector<3x256xf32>
    %117 = arith.addf %112, %116 : vector<3x256xf32>
    %c1_127 = arith.constant 1 : index
    %c0_128 = arith.constant 0 : index
    %118 = vector.load %arg13[%c1_127, %c0_128] : memref<5x128xf32, #tpu.memory_space<vmem>>, vector<3x128xf32>
    %c0_129 = arith.constant 0 : index
    %c1_130 = arith.constant 1 : index
    %c0_131 = arith.constant 0 : index
    %c0_132 = arith.constant 0 : index
    %119 = vector.load %arg6[%c0_129, %c1_130, %c0_131, %c0_132] : memref<1x3x128x256xf32, #tpu.memory_space<vmem>>, vector<1x1x128x256xf32>
    %120 = vector.shape_cast %119 : vector<1x1x128x256xf32> to vector<128x256xf32>
    %cst_133 = arith.constant dense<0.000000e+00> : vector<3x256xf32>
    %121 = tpu.matmul %118, %120, %cst_133 {dimension_numbers = #tpu.dot_dimension_numbers<[1], [0], [0], [1], [0, 0, 1, 1], [], []>} : vector<3x128xf32>, vector<128x256xf32>, vector<3x256xf32> -> vector<3x256xf32>
    %122 = arith.addf %117, %121 : vector<3x256xf32>
    %c2_134 = arith.constant 2 : index
    %c0_135 = arith.constant 0 : index
    %123 = vector.load %arg13[%c2_134, %c0_135] : memref<5x128xf32, #tpu.memory_space<vmem>>, vector<3x128xf32>
    %c0_136 = arith.constant 0 : index
    %c2_137 = arith.constant 2 : index
    %c0_138 = arith.constant 0 : index
    %c0_139 = arith.constant 0 : index
    %124 = vector.load %arg6[%c0_136, %c2_137, %c0_138, %c0_139] : memref<1x3x128x256xf32, #tpu.memory_space<vmem>>, vector<1x1x128x256xf32>
    %125 = vector.shape_cast %124 : vector<1x1x128x256xf32> to vector<128x256xf32>
    %cst_140 = arith.constant dense<0.000000e+00> : vector<3x256xf32>
    %126 = tpu.matmul %123, %125, %cst_140 {dimension_numbers = #tpu.dot_dimension_numbers<[1], [0], [0], [1], [0, 0, 1, 1], [], []>} : vector<3x128xf32>, vector<128x256xf32>, vector<3x256xf32> -> vector<3x256xf32>
    %127 = arith.addf %122, %126 : vector<3x256xf32>
    %cst_141 = arith.constant 0.000000e+00 : f32
    %128 = vector.broadcast %cst_141 : f32 to vector<3x256xf32>
    %129 = arith.maximumf %127, %128 : vector<3x256xf32>
    %cst_142 = arith.constant dense<0.000000e+00> : vector<256xf32>
    %130 = vector.multi_reduction <add>, %129, %cst_142 [0] : vector<3x256xf32> to vector<256xf32>
    %131 = vector.shape_cast %130 : vector<256xf32> to vector<1x256xf32>
    %cst_143 = arith.constant 3.000000e+00 : f32
    %132 = vector.broadcast %cst_143 : f32 to vector<1x256xf32>
    %133 = arith.divf %131, %132 : vector<1x256xf32>
    %c0_144 = arith.constant 0 : index
    %c0_145 = arith.constant 0 : index
    %c0_146 = arith.constant 0 : index
    %134 = vector.load %arg10[%c0_144, %c0_145, %c0_146] : memref<1x2x256xf32, #tpu.memory_space<vmem>>, vector<1x1x256xf32>
    %135 = vector.shape_cast %134 : vector<1x1x256xf32> to vector<1x256xf32>
    %136 = vector.shape_cast %133 : vector<1x256xf32> to vector<1x1x256xf32>
    tpu.vector_store %arg10[%c0_144, %c0_145, %c0_146], %136 {strides = array<i32>} : memref<1x2x256xf32, #tpu.memory_space<vmem>>, vector<1x1x256xf32>,
    %c0_147 = arith.constant 0 : index
    %c1_148 = arith.constant 1 : index
    %c0_149 = arith.constant 0 : index
    %c0_150 = arith.constant 0 : index
    %137 = vector.load %arg2[%c0_147, %c1_148, %c0_149, %c0_150] : memref<1x2x63x12xf32, #tpu.memory_space<vmem>>, vector<1x1x63x12xf32>
    %138 = vector.shape_cast %137 : vector<1x1x63x12xf32> to vector<63x12xf32>
    %c0_151 = arith.constant 0 : index
    %c0_152 = arith.constant 0 : index
    %139 = vector.load %arg3[%c0_151, %c0_152] : memref<12x64xf32, #tpu.memory_space<vmem>>, vector<12x64xf32>
    %cst_153 = arith.constant dense<0.000000e+00> : vector<63x64xf32>
    %140 = tpu.matmul %138, %139, %cst_153 {dimension_numbers = #tpu.dot_dimension_numbers<[1], [0], [0], [1], [0, 0, 1, 1], [], []>} : vector<63x12xf32>, vector<12x64xf32>, vector<63x64xf32> -> vector<63x64xf32>
    %cst_154 = arith.constant 2.000000e+00 : f32
    %141 = vector.broadcast %cst_154 : f32 to vector<63x64xf32>
    %142 = arith.subf %140, %141 : vector<63x64xf32>
    %cst_155 = arith.constant 0.000000e+00 : f32
    %143 = vector.broadcast %cst_155 : f32 to vector<63x64xf32>
    %144 = arith.maximumf %142, %143 : vector<63x64xf32>
    %c0_156 = arith.constant 0 : index
    %c0_157 = arith.constant 0 : index
    %145 = vector.load %arg11[%c0_156, %c0_157] : memref<63x64xf32, #tpu.memory_space<vmem>>, vector<63x64xf32>
    tpu.vector_store %arg11[%c0_156, %c0_157], %144 {strides = array<i32>} : memref<63x64xf32, #tpu.memory_space<vmem>>, vector<63x64xf32>,
    %cst_158 = arith.constant 0.000000e+00 : f32
    %146 = vector.broadcast %cst_158 : f32 to vector<58x64xf32>
    %c0_159 = arith.constant 0 : index
    %c0_160 = arith.constant 0 : index
    %c0_161 = arith.constant 0 : index
    %147 = vector.load %arg7[%c0_159, %c0_160, %c0_161] : memref<1x8x256xf32, #tpu.memory_space<vmem>>, vector<1x1x64xf32>
    %148 = vector.shape_cast %147 : vector<1x1x64xf32> to vector<1x64xf32>
    %149 = vector.broadcast %148 : vector<1x64xf32> to vector<58x64xf32>
    %150 = arith.addf %146, %149 : vector<58x64xf32>
    %c0_162 = arith.constant 0 : index
    %c0_163 = arith.constant 0 : index
    %151 = vector.load %arg11[%c0_162, %c0_163] : memref<63x64xf32, #tpu.memory_space<vmem>>, vector<58x64xf32>
    %c0_164 = arith.constant 0 : index
    %c0_165 = arith.constant 0 : index
    %c0_166 = arith.constant 0 : index
    %c0_167 = arith.constant 0 : index
    %152 = vector.load %arg4[%c0_164, %c0_165, %c0_166, %c0_167] : memref<1x6x64x64xf32, #tpu.memory_space<vmem>>, vector<1x1x64x64xf32>
    %153 = vector.shape_cast %152 : vector<1x1x64x64xf32> to vector<64x64xf32>
    %cst_168 = arith.constant dense<0.000000e+00> : vector<58x64xf32>
    %154 = tpu.matmul %151, %153, %cst_168 {dimension_numbers = #tpu.dot_dimension_numbers<[1], [0], [0], [1], [0, 0, 1, 1], [], []>} : vector<58x64xf32>, vector<64x64xf32>, vector<58x64xf32> -> vector<58x64xf32>
    %155 = arith.addf %150, %154 : vector<58x64xf32>
    %c1_169 = arith.constant 1 : index
    %c0_170 = arith.constant 0 : index
    %156 = vector.load %arg11[%c1_169, %c0_170] : memref<63x64xf32, #tpu.memory_space<vmem>>, vector<58x64xf32>
    %c0_171 = arith.constant 0 : index
    %c1_172 = arith.constant 1 : index
    %c0_173 = arith.constant 0 : index
    %c0_174 = arith.constant 0 : index
    %157 = vector.load %arg4[%c0_171, %c1_172, %c0_173, %c0_174] : memref<1x6x64x64xf32, #tpu.memory_space<vmem>>, vector<1x1x64x64xf32>
    %158 = vector.shape_cast %157 : vector<1x1x64x64xf32> to vector<64x64xf32>
    %cst_175 = arith.constant dense<0.000000e+00> : vector<58x64xf32>
    %159 = tpu.matmul %156, %158, %cst_175 {dimension_numbers = #tpu.dot_dimension_numbers<[1], [0], [0], [1], [0, 0, 1, 1], [], []>} : vector<58x64xf32>, vector<64x64xf32>, vector<58x64xf32> -> vector<58x64xf32>
    %160 = arith.addf %155, %159 : vector<58x64xf32>
    %c2_176 = arith.constant 2 : index
    %c0_177 = arith.constant 0 : index
    %161 = vector.load %arg11[%c2_176, %c0_177] : memref<63x64xf32, #tpu.memory_space<vmem>>, vector<58x64xf32>
    %c0_178 = arith.constant 0 : index
    %c2_179 = arith.constant 2 : index
    %c0_180 = arith.constant 0 : index
    %c0_181 = arith.constant 0 : index
    %162 = vector.load %arg4[%c0_178, %c2_179, %c0_180, %c0_181] : memref<1x6x64x64xf32, #tpu.memory_space<vmem>>, vector<1x1x64x64xf32>
    %163 = vector.shape_cast %162 : vector<1x1x64x64xf32> to vector<64x64xf32>
    %cst_182 = arith.constant dense<0.000000e+00> : vector<58x64xf32>
    %164 = tpu.matmul %161, %163, %cst_182 {dimension_numbers = #tpu.dot_dimension_numbers<[1], [0], [0], [1], [0, 0, 1, 1], [], []>} : vector<58x64xf32>, vector<64x64xf32>, vector<58x64xf32> -> vector<58x64xf32>
    %165 = arith.addf %160, %164 : vector<58x64xf32>
    %c3_183 = arith.constant 3 : index
    %c0_184 = arith.constant 0 : index
    %166 = vector.load %arg11[%c3_183, %c0_184] : memref<63x64xf32, #tpu.memory_space<vmem>>, vector<58x64xf32>
    %c0_185 = arith.constant 0 : index
    %c3_186 = arith.constant 3 : index
    %c0_187 = arith.constant 0 : index
    %c0_188 = arith.constant 0 : index
    %167 = vector.load %arg4[%c0_185, %c3_186, %c0_187, %c0_188] : memref<1x6x64x64xf32, #tpu.memory_space<vmem>>, vector<1x1x64x64xf32>
    %168 = vector.shape_cast %167 : vector<1x1x64x64xf32> to vector<64x64xf32>
    %cst_189 = arith.constant dense<0.000000e+00> : vector<58x64xf32>
    %169 = tpu.matmul %166, %168, %cst_189 {dimension_numbers = #tpu.dot_dimension_numbers<[1], [0], [0], [1], [0, 0, 1, 1], [], []>} : vector<58x64xf32>, vector<64x64xf32>, vector<58x64xf32> -> vector<58x64xf32>
    %170 = arith.addf %165, %169 : vector<58x64xf32>
    %c4_190 = arith.constant 4 : index
    %c0_191 = arith.constant 0 : index
    %171 = vector.load %arg11[%c4_190, %c0_191] : memref<63x64xf32, #tpu.memory_space<vmem>>, vector<58x64xf32>
    %c0_192 = arith.constant 0 : index
    %c4_193 = arith.constant 4 : index
    %c0_194 = arith.constant 0 : index
    %c0_195 = arith.constant 0 : index
    %172 = vector.load %arg4[%c0_192, %c4_193, %c0_194, %c0_195] : memref<1x6x64x64xf32, #tpu.memory_space<vmem>>, vector<1x1x64x64xf32>
    %173 = vector.shape_cast %172 : vector<1x1x64x64xf32> to vector<64x64xf32>
    %cst_196 = arith.constant dense<0.000000e+00> : vector<58x64xf32>
    %174 = tpu.matmul %171, %173, %cst_196 {dimension_numbers = #tpu.dot_dimension_numbers<[1], [0], [0], [1], [0, 0, 1, 1], [], []>} : vector<58x64xf32>, vector<64x64xf32>, vector<58x64xf32> -> vector<58x64xf32>
    %175 = arith.addf %170, %174 : vector<58x64xf32>
    %c5_197 = arith.constant 5 : index
    %c0_198 = arith.constant 0 : index
    %176 = vector.load %arg11[%c5_197, %c0_198] : memref<63x64xf32, #tpu.memory_space<vmem>>, vector<58x64xf32>
    %c0_199 = arith.constant 0 : index
    %c5_200 = arith.constant 5 : index
    %c0_201 = arith.constant 0 : index
    %c0_202 = arith.constant 0 : index
    %177 = vector.load %arg4[%c0_199, %c5_200, %c0_201, %c0_202] : memref<1x6x64x64xf32, #tpu.memory_space<vmem>>, vector<1x1x64x64xf32>
    %178 = vector.shape_cast %177 : vector<1x1x64x64xf32> to vector<64x64xf32>
    %cst_203 = arith.constant dense<0.000000e+00> : vector<58x64xf32>
    %179 = tpu.matmul %176, %178, %cst_203 {dimension_numbers = #tpu.dot_dimension_numbers<[1], [0], [0], [1], [0, 0, 1, 1], [], []>} : vector<58x64xf32>, vector<64x64xf32>, vector<58x64xf32> -> vector<58x64xf32>
    %180 = arith.addf %175, %179 : vector<58x64xf32>
    %cst_204 = arith.constant 0.000000e+00 : f32
    %181 = vector.broadcast %cst_204 : f32 to vector<58x64xf32>
    %182 = arith.maximumf %180, %181 : vector<58x64xf32>
    %c0_205 = arith.constant 0 : index
    %c0_206 = arith.constant 0 : index
    %c0_207 = arith.constant 0 : index
    %183 = vector.load %arg8[%c0_205, %c0_206, %c0_207] : memref<3x19x58xf32, #tpu.memory_space<vmem>>, vector<1x19x58xf32>
    %184 = vector.shape_cast %183 : vector<1x19x58xf32> to vector<19x58xf32>
    %cst_208 = arith.constant dense<0.000000e+00> : vector<19x64xf32>
    %185 = tpu.matmul %184, %182, %cst_208 {dimension_numbers = #tpu.dot_dimension_numbers<[1], [0], [0], [1], [0, 0, 1, 1], [], []>} : vector<19x58xf32>, vector<58x64xf32>, vector<19x64xf32> -> vector<19x64xf32>
    %c1_209 = arith.constant 1 : index
    %c0_210 = arith.constant 0 : index
    %c0_211 = arith.constant 0 : index
    %186 = vector.load %arg8[%c1_209, %c0_210, %c0_211] : memref<3x19x58xf32, #tpu.memory_space<vmem>>, vector<1x19x58xf32>
    %187 = vector.shape_cast %186 : vector<1x19x58xf32> to vector<19x58xf32>
    %cst_212 = arith.constant dense<0.000000e+00> : vector<19x64xf32>
    %188 = tpu.matmul %187, %182, %cst_212 {dimension_numbers = #tpu.dot_dimension_numbers<[1], [0], [0], [1], [0, 0, 1, 1], [], []>} : vector<19x58xf32>, vector<58x64xf32>, vector<19x64xf32> -> vector<19x64xf32>
    %189 = arith.maximumf %185, %188 : vector<19x64xf32>
    %c2_213 = arith.constant 2 : index
    %c0_214 = arith.constant 0 : index
    %c0_215 = arith.constant 0 : index
    %190 = vector.load %arg8[%c2_213, %c0_214, %c0_215] : memref<3x19x58xf32, #tpu.memory_space<vmem>>, vector<1x19x58xf32>
    %191 = vector.shape_cast %190 : vector<1x19x58xf32> to vector<19x58xf32>
    %cst_216 = arith.constant dense<0.000000e+00> : vector<19x64xf32>
    %192 = tpu.matmul %191, %182, %cst_216 {dimension_numbers = #tpu.dot_dimension_numbers<[1], [0], [0], [1], [0, 0, 1, 1], [], []>} : vector<19x58xf32>, vector<58x64xf32>, vector<19x64xf32> -> vector<19x64xf32>
    %193 = arith.maximumf %189, %192 : vector<19x64xf32>
    %c0_217 = arith.constant 0 : index
    %c1_218 = arith.constant 1 : index
    %c0_219 = arith.constant 0 : index
    %194 = vector.load %arg7[%c0_217, %c1_218, %c0_219] : memref<1x8x256xf32, #tpu.memory_space<vmem>>, vector<1x1x64xf32>
    %195 = vector.shape_cast %194 : vector<1x1x64xf32> to vector<1x64xf32>
    %196 = vector.broadcast %195 : vector<1x64xf32> to vector<19x64xf32>
    %197 = arith.mulf %193, %196 : vector<19x64xf32>
    %c0_220 = arith.constant 0 : index
    %c2_221 = arith.constant 2 : index
    %c0_222 = arith.constant 0 : index
    %198 = vector.load %arg7[%c0_220, %c2_221, %c0_222] : memref<1x8x256xf32, #tpu.memory_space<vmem>>, vector<1x1x64xf32>
    %199 = vector.shape_cast %198 : vector<1x1x64xf32> to vector<1x64xf32>
    %200 = vector.broadcast %199 : vector<1x64xf32> to vector<19x64xf32>
    %201 = arith.addf %197, %200 : vector<19x64xf32>
    %c0_223 = arith.constant 0 : index
    %c0_224 = arith.constant 0 : index
    %202 = vector.load %arg12[%c0_223, %c0_224] : memref<19x64xf32, #tpu.memory_space<vmem>>, vector<19x64xf32>
    tpu.vector_store %arg12[%c0_223, %c0_224], %201 {strides = array<i32>} : memref<19x64xf32, #tpu.memory_space<vmem>>, vector<19x64xf32>,
    %cst_225 = arith.constant 0.000000e+00 : f32
    %203 = vector.broadcast %cst_225 : f32 to vector<17x128xf32>
    %c0_226 = arith.constant 0 : index
    %c3_227 = arith.constant 3 : index
    %c0_228 = arith.constant 0 : index
    %204 = vector.load %arg7[%c0_226, %c3_227, %c0_228] : memref<1x8x256xf32, #tpu.memory_space<vmem>>, vector<1x1x128xf32>
    %205 = vector.shape_cast %204 : vector<1x1x128xf32> to vector<1x128xf32>
    %206 = vector.broadcast %205 : vector<1x128xf32> to vector<17x128xf32>
    %207 = arith.addf %203, %206 : vector<17x128xf32>
    %c0_229 = arith.constant 0 : index
    %c0_230 = arith.constant 0 : index
    %208 = vector.load %arg12[%c0_229, %c0_230] : memref<19x64xf32, #tpu.memory_space<vmem>>, vector<17x64xf32>
    %c0_231 = arith.constant 0 : index
    %c0_232 = arith.constant 0 : index
    %c0_233 = arith.constant 0 : index
    %c0_234 = arith.constant 0 : index
    %209 = vector.load %arg5[%c0_231, %c0_232, %c0_233, %c0_234] : memref<1x3x64x128xf32, #tpu.memory_space<vmem>>, vector<1x1x64x128xf32>
    %210 = vector.shape_cast %209 : vector<1x1x64x128xf32> to vector<64x128xf32>
    %cst_235 = arith.constant dense<0.000000e+00> : vector<17x128xf32>
    %211 = tpu.matmul %208, %210, %cst_235 {dimension_numbers = #tpu.dot_dimension_numbers<[1], [0], [0], [1], [0, 0, 1, 1], [], []>} : vector<17x64xf32>, vector<64x128xf32>, vector<17x128xf32> -> vector<17x128xf32>
    %212 = arith.addf %207, %211 : vector<17x128xf32>
    %c1_236 = arith.constant 1 : index
    %c0_237 = arith.constant 0 : index
    %213 = vector.load %arg12[%c1_236, %c0_237] : memref<19x64xf32, #tpu.memory_space<vmem>>, vector<17x64xf32>
    %c0_238 = arith.constant 0 : index
    %c1_239 = arith.constant 1 : index
    %c0_240 = arith.constant 0 : index
    %c0_241 = arith.constant 0 : index
    %214 = vector.load %arg5[%c0_238, %c1_239, %c0_240, %c0_241] : memref<1x3x64x128xf32, #tpu.memory_space<vmem>>, vector<1x1x64x128xf32>
    %215 = vector.shape_cast %214 : vector<1x1x64x128xf32> to vector<64x128xf32>
    %cst_242 = arith.constant dense<0.000000e+00> : vector<17x128xf32>
    %216 = tpu.matmul %213, %215, %cst_242 {dimension_numbers = #tpu.dot_dimension_numbers<[1], [0], [0], [1], [0, 0, 1, 1], [], []>} : vector<17x64xf32>, vector<64x128xf32>, vector<17x128xf32> -> vector<17x128xf32>
    %217 = arith.addf %212, %216 : vector<17x128xf32>
    %c2_243 = arith.constant 2 : index
    %c0_244 = arith.constant 0 : index
    %218 = vector.load %arg12[%c2_243, %c0_244] : memref<19x64xf32, #tpu.memory_space<vmem>>, vector<17x64xf32>
    %c0_245 = arith.constant 0 : index
    %c2_246 = arith.constant 2 : index
    %c0_247 = arith.constant 0 : index
    %c0_248 = arith.constant 0 : index
    %219 = vector.load %arg5[%c0_245, %c2_246, %c0_247, %c0_248] : memref<1x3x64x128xf32, #tpu.memory_space<vmem>>, vector<1x1x64x128xf32>
    %220 = vector.shape_cast %219 : vector<1x1x64x128xf32> to vector<64x128xf32>
    %cst_249 = arith.constant dense<0.000000e+00> : vector<17x128xf32>
    %221 = tpu.matmul %218, %220, %cst_249 {dimension_numbers = #tpu.dot_dimension_numbers<[1], [0], [0], [1], [0, 0, 1, 1], [], []>} : vector<17x64xf32>, vector<64x128xf32>, vector<17x128xf32> -> vector<17x128xf32>
    %222 = arith.addf %217, %221 : vector<17x128xf32>
    %cst_250 = arith.constant 0.000000e+00 : f32
    %223 = vector.broadcast %cst_250 : f32 to vector<17x128xf32>
    %224 = arith.maximumf %222, %223 : vector<17x128xf32>
    %c0_251 = arith.constant 0 : index
    %c0_252 = arith.constant 0 : index
    %c0_253 = arith.constant 0 : index
    %225 = vector.load %arg9[%c0_251, %c0_252, %c0_253] : memref<3x5x17xf32, #tpu.memory_space<vmem>>, vector<1x5x17xf32>
    %226 = vector.shape_cast %225 : vector<1x5x17xf32> to vector<5x17xf32>
    %cst_254 = arith.constant dense<0.000000e+00> : vector<5x128xf32>
    %227 = tpu.matmul %226, %224, %cst_254 {dimension_numbers = #tpu.dot_dimension_numbers<[1], [0], [0], [1], [0, 0, 1, 1], [], []>} : vector<5x17xf32>, vector<17x128xf32>, vector<5x128xf32> -> vector<5x128xf32>
    %c1_255 = arith.constant 1 : index
    %c0_256 = arith.constant 0 : index
    %c0_257 = arith.constant 0 : index
    %228 = vector.load %arg9[%c1_255, %c0_256, %c0_257] : memref<3x5x17xf32, #tpu.memory_space<vmem>>, vector<1x5x17xf32>
    %229 = vector.shape_cast %228 : vector<1x5x17xf32> to vector<5x17xf32>
    %cst_258 = arith.constant dense<0.000000e+00> : vector<5x128xf32>
    %230 = tpu.matmul %229, %224, %cst_258 {dimension_numbers = #tpu.dot_dimension_numbers<[1], [0], [0], [1], [0, 0, 1, 1], [], []>} : vector<5x17xf32>, vector<17x128xf32>, vector<5x128xf32> -> vector<5x128xf32>
    %231 = arith.maximumf %227, %230 : vector<5x128xf32>
    %c2_259 = arith.constant 2 : index
    %c0_260 = arith.constant 0 : index
    %c0_261 = arith.constant 0 : index
    %232 = vector.load %arg9[%c2_259, %c0_260, %c0_261] : memref<3x5x17xf32, #tpu.memory_space<vmem>>, vector<1x5x17xf32>
    %233 = vector.shape_cast %232 : vector<1x5x17xf32> to vector<5x17xf32>
    %cst_262 = arith.constant dense<0.000000e+00> : vector<5x128xf32>
    %234 = tpu.matmul %233, %224, %cst_262 {dimension_numbers = #tpu.dot_dimension_numbers<[1], [0], [0], [1], [0, 0, 1, 1], [], []>} : vector<5x17xf32>, vector<17x128xf32>, vector<5x128xf32> -> vector<5x128xf32>
    %235 = arith.maximumf %231, %234 : vector<5x128xf32>
    %c0_263 = arith.constant 0 : index
    %c4_264 = arith.constant 4 : index
    %c0_265 = arith.constant 0 : index
    %236 = vector.load %arg7[%c0_263, %c4_264, %c0_265] : memref<1x8x256xf32, #tpu.memory_space<vmem>>, vector<1x1x128xf32>
    %237 = vector.shape_cast %236 : vector<1x1x128xf32> to vector<1x128xf32>
    %238 = vector.broadcast %237 : vector<1x128xf32> to vector<5x128xf32>
    %239 = arith.mulf %235, %238 : vector<5x128xf32>
    %c0_266 = arith.constant 0 : index
    %c5_267 = arith.constant 5 : index
    %c0_268 = arith.constant 0 : index
    %240 = vector.load %arg7[%c0_266, %c5_267, %c0_268] : memref<1x8x256xf32, #tpu.memory_space<vmem>>, vector<1x1x128xf32>
    %241 = vector.shape_cast %240 : vector<1x1x128xf32> to vector<1x128xf32>
    %242 = vector.broadcast %241 : vector<1x128xf32> to vector<5x128xf32>
    %243 = arith.addf %239, %242 : vector<5x128xf32>
    %c0_269 = arith.constant 0 : index
    %c0_270 = arith.constant 0 : index
    %244 = vector.load %arg13[%c0_269, %c0_270] : memref<5x128xf32, #tpu.memory_space<vmem>>, vector<5x128xf32>
    tpu.vector_store %arg13[%c0_269, %c0_270], %243 {strides = array<i32>} : memref<5x128xf32, #tpu.memory_space<vmem>>, vector<5x128xf32>,
    %cst_271 = arith.constant 0.000000e+00 : f32
    %245 = vector.broadcast %cst_271 : f32 to vector<3x256xf32>
    %c0_272 = arith.constant 0 : index
    %c6_273 = arith.constant 6 : index
    %c0_274 = arith.constant 0 : index
    %246 = vector.load %arg7[%c0_272, %c6_273, %c0_274] : memref<1x8x256xf32, #tpu.memory_space<vmem>>, vector<1x1x256xf32>
    %247 = vector.shape_cast %246 : vector<1x1x256xf32> to vector<1x256xf32>
    %248 = vector.broadcast %247 : vector<1x256xf32> to vector<3x256xf32>
    %249 = arith.addf %245, %248 : vector<3x256xf32>
    %c0_275 = arith.constant 0 : index
    %c0_276 = arith.constant 0 : index
    %250 = vector.load %arg13[%c0_275, %c0_276] : memref<5x128xf32, #tpu.memory_space<vmem>>, vector<3x128xf32>
    %c0_277 = arith.constant 0 : index
    %c0_278 = arith.constant 0 : index
    %c0_279 = arith.constant 0 : index
    %c0_280 = arith.constant 0 : index
    %251 = vector.load %arg6[%c0_277, %c0_278, %c0_279, %c0_280] : memref<1x3x128x256xf32, #tpu.memory_space<vmem>>, vector<1x1x128x256xf32>
    %252 = vector.shape_cast %251 : vector<1x1x128x256xf32> to vector<128x256xf32>
    %cst_281 = arith.constant dense<0.000000e+00> : vector<3x256xf32>
    %253 = tpu.matmul %250, %252, %cst_281 {dimension_numbers = #tpu.dot_dimension_numbers<[1], [0], [0], [1], [0, 0, 1, 1], [], []>} : vector<3x128xf32>, vector<128x256xf32>, vector<3x256xf32> -> vector<3x256xf32>
    %254 = arith.addf %249, %253 : vector<3x256xf32>
    %c1_282 = arith.constant 1 : index
    %c0_283 = arith.constant 0 : index
    %255 = vector.load %arg13[%c1_282, %c0_283] : memref<5x128xf32, #tpu.memory_space<vmem>>, vector<3x128xf32>
    %c0_284 = arith.constant 0 : index
    %c1_285 = arith.constant 1 : index
    %c0_286 = arith.constant 0 : index
    %c0_287 = arith.constant 0 : index
    %256 = vector.load %arg6[%c0_284, %c1_285, %c0_286, %c0_287] : memref<1x3x128x256xf32, #tpu.memory_space<vmem>>, vector<1x1x128x256xf32>
    %257 = vector.shape_cast %256 : vector<1x1x128x256xf32> to vector<128x256xf32>
    %cst_288 = arith.constant dense<0.000000e+00> : vector<3x256xf32>
    %258 = tpu.matmul %255, %257, %cst_288 {dimension_numbers = #tpu.dot_dimension_numbers<[1], [0], [0], [1], [0, 0, 1, 1], [], []>} : vector<3x128xf32>, vector<128x256xf32>, vector<3x256xf32> -> vector<3x256xf32>
    %259 = arith.addf %254, %258 : vector<3x256xf32>
    %c2_289 = arith.constant 2 : index
    %c0_290 = arith.constant 0 : index
    %260 = vector.load %arg13[%c2_289, %c0_290] : memref<5x128xf32, #tpu.memory_space<vmem>>, vector<3x128xf32>
    %c0_291 = arith.constant 0 : index
    %c2_292 = arith.constant 2 : index
    %c0_293 = arith.constant 0 : index
    %c0_294 = arith.constant 0 : index
    %261 = vector.load %arg6[%c0_291, %c2_292, %c0_293, %c0_294] : memref<1x3x128x256xf32, #tpu.memory_space<vmem>>, vector<1x1x128x256xf32>
    %262 = vector.shape_cast %261 : vector<1x1x128x256xf32> to vector<128x256xf32>
    %cst_295 = arith.constant dense<0.000000e+00> : vector<3x256xf32>
    %263 = tpu.matmul %260, %262, %cst_295 {dimension_numbers = #tpu.dot_dimension_numbers<[1], [0], [0], [1], [0, 0, 1, 1], [], []>} : vector<3x128xf32>, vector<128x256xf32>, vector<3x256xf32> -> vector<3x256xf32>
    %264 = arith.addf %259, %263 : vector<3x256xf32>
    %cst_296 = arith.constant 0.000000e+00 : f32
    %265 = vector.broadcast %cst_296 : f32 to vector<3x256xf32>
    %266 = arith.maximumf %264, %265 : vector<3x256xf32>
    %cst_297 = arith.constant dense<0.000000e+00> : vector<256xf32>
    %267 = vector.multi_reduction <add>, %266, %cst_297 [0] : vector<3x256xf32> to vector<256xf32>
    %268 = vector.shape_cast %267 : vector<256xf32> to vector<1x256xf32>
    %cst_298 = arith.constant 3.000000e+00 : f32
    %269 = vector.broadcast %cst_298 : f32 to vector<1x256xf32>
    %270 = arith.divf %268, %269 : vector<1x256xf32>
    %c0_299 = arith.constant 0 : index
    %c1_300 = arith.constant 1 : index
    %c0_301 = arith.constant 0 : index
    %271 = vector.load %arg10[%c0_299, %c1_300, %c0_301] : memref<1x2x256xf32, #tpu.memory_space<vmem>>, vector<1x1x256xf32>
    %272 = vector.shape_cast %271 : vector<1x1x256xf32> to vector<1x256xf32>
    %273 = vector.shape_cast %270 : vector<1x256xf32> to vector<1x1x256xf32>
    tpu.vector_store %arg10[%c0_299, %c1_300, %c0_301], %273 {strides = array<i32>} : memref<1x2x256xf32, #tpu.memory_space<vmem>>, vector<1x1x256xf32>,
    return
  }
  func.func @transform_0(%arg0: i32, %arg1: i32) -> (i32, i32, i32, i32) {
    %c0_i32 = arith.constant 0 : i32
    %c0_i32_0 = arith.constant 0 : i32
    %c0_i32_1 = arith.constant 0 : i32
    return %arg0, %arg1, %c0_i32, %c0_i32_0 : i32, i32, i32, i32
  }
  func.func @transform_1(%arg0: i32, %arg1: i32) -> (i32, i32) {
    %c0_i32 = arith.constant 0 : i32
    %c0_i32_0 = arith.constant 0 : i32
    %c0_i32_1 = arith.constant 0 : i32
    return %c0_i32, %c0_i32_0 : i32, i32
  }
  func.func @transform_2(%arg0: i32, %arg1: i32) -> (i32, i32, i32, i32) {
    %c0_i32 = arith.constant 0 : i32
    %c0_i32_0 = arith.constant 0 : i32
    %c0_i32_1 = arith.constant 0 : i32
    %c0_i32_2 = arith.constant 0 : i32
    return %arg0, %c0_i32, %c0_i32_0, %c0_i32_1 : i32, i32, i32, i32
  }
  func.func @transform_3(%arg0: i32, %arg1: i32) -> (i32, i32, i32, i32) {
    %c0_i32 = arith.constant 0 : i32
    %c0_i32_0 = arith.constant 0 : i32
    %c0_i32_1 = arith.constant 0 : i32
    %c0_i32_2 = arith.constant 0 : i32
    return %arg0, %c0_i32, %c0_i32_0, %c0_i32_1 : i32, i32, i32, i32
  }
  func.func @transform_4(%arg0: i32, %arg1: i32) -> (i32, i32, i32, i32) {
    %c0_i32 = arith.constant 0 : i32
    %c0_i32_0 = arith.constant 0 : i32
    %c0_i32_1 = arith.constant 0 : i32
    %c0_i32_2 = arith.constant 0 : i32
    return %arg0, %c0_i32, %c0_i32_0, %c0_i32_1 : i32, i32, i32, i32
  }
  func.func @transform_5(%arg0: i32, %arg1: i32) -> (i32, i32, i32) {
    %c0_i32 = arith.constant 0 : i32
    %c0_i32_0 = arith.constant 0 : i32
    %c0_i32_1 = arith.constant 0 : i32
    return %arg0, %c0_i32, %c0_i32_0 : i32, i32, i32
  }
  func.func @transform_6(%arg0: i32, %arg1: i32) -> (i32, i32, i32) {
    %c0_i32 = arith.constant 0 : i32
    %c0_i32_0 = arith.constant 0 : i32
    %c0_i32_1 = arith.constant 0 : i32
    %c0_i32_2 = arith.constant 0 : i32
    return %c0_i32, %c0_i32_0, %c0_i32_1 : i32, i32, i32
  }
  func.func @transform_7(%arg0: i32, %arg1: i32) -> (i32, i32, i32) {
    %c0_i32 = arith.constant 0 : i32
    %c0_i32_0 = arith.constant 0 : i32
    %c0_i32_1 = arith.constant 0 : i32
    %c0_i32_2 = arith.constant 0 : i32
    return %c0_i32, %c0_i32_0, %c0_i32_1 : i32, i32, i32
  }
  func.func @transform_8(%arg0: i32, %arg1: i32) -> (i32, i32, i32) {
    %c0_i32 = arith.constant 0 : i32
    %c0_i32_0 = arith.constant 0 : i32
    return %arg0, %arg1, %c0_i32 : i32, i32, i32
  }
}

module attributes {stable_mosaic.version = 11 : i64} {
  func.func @_fc_kernel(%arg0: i32, %arg1: memref<4x256xf32, #tpu.memory_space<vmem>>, %arg2: memref<4x256xf32, #tpu.memory_space<vmem>>, %arg3: memref<1024x128xf32, #tpu.memory_space<vmem>>, %arg4: memref<1x128xf32, #tpu.memory_space<vmem>>, %arg5: memref<128x128xf32, #tpu.memory_space<vmem>>, %arg6: memref<1x128xf32, #tpu.memory_space<vmem>>, %arg7: memref<2x128xf32, #tpu.memory_space<vmem>>) attributes {dimension_semantics = [#tpu.dimension_semantics<arbitrary>], iteration_bounds = array<i64: 1>, scalar_prefetch = 0 : i64, scratch_operands = 0 : i64, tpu.core_type = #tpu.core_type<tc>, window_params = [{pipeline_mode = #tpu.pipeline_mode<synchronous>, transform_indices = @transform_0, window_bounds = array<i64: 4, 256>}, {pipeline_mode = #tpu.pipeline_mode<synchronous>, transform_indices = @transform_1, window_bounds = array<i64: 4, 256>}, {pipeline_mode = #tpu.pipeline_mode<synchronous>, transform_indices = @transform_2, window_bounds = array<i64: 1024, 128>}, {pipeline_mode = #tpu.pipeline_mode<synchronous>, transform_indices = @transform_3, window_bounds = array<i64: 1, 128>}, {pipeline_mode = #tpu.pipeline_mode<synchronous>, transform_indices = @transform_4, window_bounds = array<i64: 128, 128>}, {pipeline_mode = #tpu.pipeline_mode<synchronous>, transform_indices = @transform_5, window_bounds = array<i64: 1, 128>}, {pipeline_mode = #tpu.pipeline_mode<synchronous>, transform_indices = @transform_6, window_bounds = array<i64: 2, 128>}]} {
    %c0 = arith.constant 0 : index
    %c0_0 = arith.constant 0 : index
    %0 = vector.load %arg1[%c0, %c0_0] : memref<4x256xf32, #tpu.memory_space<vmem>>, vector<2x256xf32>
    %c0_1 = arith.constant 0 : index
    %c0_2 = arith.constant 0 : index
    %1 = vector.load %arg2[%c0_1, %c0_2] : memref<4x256xf32, #tpu.memory_space<vmem>>, vector<2x256xf32>
    %c2 = arith.constant 2 : index
    %c0_3 = arith.constant 0 : index
    %2 = vector.load %arg1[%c2, %c0_3] : memref<4x256xf32, #tpu.memory_space<vmem>>, vector<2x256xf32>
    %c2_4 = arith.constant 2 : index
    %c0_5 = arith.constant 0 : index
    %3 = vector.load %arg2[%c2_4, %c0_5] : memref<4x256xf32, #tpu.memory_space<vmem>>, vector<2x256xf32>
    %c0_6 = arith.constant 0 : index
    %c0_7 = arith.constant 0 : index
    %4 = vector.load %arg4[%c0_6, %c0_7] : memref<1x128xf32, #tpu.memory_space<vmem>>, vector<1x128xf32>
    %c0_8 = arith.constant 0 : index
    %c0_9 = arith.constant 0 : index
    %5 = vector.load %arg3[%c0_8, %c0_9] : memref<1024x128xf32, #tpu.memory_space<vmem>>, vector<256x128xf32>
    %cst = arith.constant dense<0.000000e+00> : vector<2x128xf32>
    %6 = tpu.matmul %0, %5, %cst {dimension_numbers = #tpu.dot_dimension_numbers<[1], [0], [0], [1], [0, 0, 1, 1], [], []>} : vector<2x256xf32>, vector<256x128xf32>, vector<2x128xf32> -> vector<2x128xf32>
    %7 = vector.broadcast %4 : vector<1x128xf32> to vector<2x128xf32>
    %8 = arith.addf %7, %6 : vector<2x128xf32>
    %c256 = arith.constant 256 : index
    %c0_10 = arith.constant 0 : index
    %9 = vector.load %arg3[%c256, %c0_10] : memref<1024x128xf32, #tpu.memory_space<vmem>>, vector<256x128xf32>
    %cst_11 = arith.constant dense<0.000000e+00> : vector<2x128xf32>
    %10 = tpu.matmul %1, %9, %cst_11 {dimension_numbers = #tpu.dot_dimension_numbers<[1], [0], [0], [1], [0, 0, 1, 1], [], []>} : vector<2x256xf32>, vector<256x128xf32>, vector<2x128xf32> -> vector<2x128xf32>
    %11 = arith.addf %8, %10 : vector<2x128xf32>
    %c512 = arith.constant 512 : index
    %c0_12 = arith.constant 0 : index
    %12 = vector.load %arg3[%c512, %c0_12] : memref<1024x128xf32, #tpu.memory_space<vmem>>, vector<256x128xf32>
    %cst_13 = arith.constant dense<0.000000e+00> : vector<2x128xf32>
    %13 = tpu.matmul %2, %12, %cst_13 {dimension_numbers = #tpu.dot_dimension_numbers<[1], [0], [0], [1], [0, 0, 1, 1], [], []>} : vector<2x256xf32>, vector<256x128xf32>, vector<2x128xf32> -> vector<2x128xf32>
    %14 = arith.addf %11, %13 : vector<2x128xf32>
    %c768 = arith.constant 768 : index
    %c0_14 = arith.constant 0 : index
    %15 = vector.load %arg3[%c768, %c0_14] : memref<1024x128xf32, #tpu.memory_space<vmem>>, vector<256x128xf32>
    %cst_15 = arith.constant dense<0.000000e+00> : vector<2x128xf32>
    %16 = tpu.matmul %3, %15, %cst_15 {dimension_numbers = #tpu.dot_dimension_numbers<[1], [0], [0], [1], [0, 0, 1, 1], [], []>} : vector<2x256xf32>, vector<256x128xf32>, vector<2x128xf32> -> vector<2x128xf32>
    %17 = arith.addf %14, %16 : vector<2x128xf32>
    %cst_16 = arith.constant 0.000000e+00 : f32
    %18 = vector.broadcast %cst_16 : f32 to vector<2x128xf32>
    %19 = arith.maximumf %17, %18 : vector<2x128xf32>
    %c0_17 = arith.constant 0 : index
    %c0_18 = arith.constant 0 : index
    %20 = vector.load %arg5[%c0_17, %c0_18] : memref<128x128xf32, #tpu.memory_space<vmem>>, vector<128x128xf32>
    %cst_19 = arith.constant dense<0.000000e+00> : vector<2x128xf32>
    %21 = tpu.matmul %19, %20, %cst_19 {dimension_numbers = #tpu.dot_dimension_numbers<[1], [0], [0], [1], [0, 0, 1, 1], [], []>} : vector<2x128xf32>, vector<128x128xf32>, vector<2x128xf32> -> vector<2x128xf32>
    %c0_20 = arith.constant 0 : index
    %c0_21 = arith.constant 0 : index
    %22 = vector.load %arg6[%c0_20, %c0_21] : memref<1x128xf32, #tpu.memory_space<vmem>>, vector<1x128xf32>
    %23 = vector.broadcast %22 : vector<1x128xf32> to vector<2x128xf32>
    %24 = arith.addf %21, %23 : vector<2x128xf32>
    %c0_22 = arith.constant 0 : index
    %c0_23 = arith.constant 0 : index
    %25 = vector.load %arg7[%c0_22, %c0_23] : memref<2x128xf32, #tpu.memory_space<vmem>>, vector<2x128xf32>
    tpu.vector_store %arg7[%c0_22, %c0_23], %24 {strides = array<i32>} : memref<2x128xf32, #tpu.memory_space<vmem>>, vector<2x128xf32>,
    return
  }
  func.func @transform_0(%arg0: i32) -> (i32, i32) {
    %c0_i32 = arith.constant 0 : i32
    %c0_i32_0 = arith.constant 0 : i32
    %c0_i32_1 = arith.constant 0 : i32
    return %c0_i32, %c0_i32_0 : i32, i32
  }
  func.func @transform_1(%arg0: i32) -> (i32, i32) {
    %c0_i32 = arith.constant 0 : i32
    %c0_i32_0 = arith.constant 0 : i32
    %c0_i32_1 = arith.constant 0 : i32
    return %c0_i32, %c0_i32_0 : i32, i32
  }
  func.func @transform_2(%arg0: i32) -> (i32, i32) {
    %c0_i32 = arith.constant 0 : i32
    %c0_i32_0 = arith.constant 0 : i32
    %c0_i32_1 = arith.constant 0 : i32
    return %c0_i32, %c0_i32_0 : i32, i32
  }
  func.func @transform_3(%arg0: i32) -> (i32, i32) {
    %c0_i32 = arith.constant 0 : i32
    %c0_i32_0 = arith.constant 0 : i32
    %c0_i32_1 = arith.constant 0 : i32
    return %c0_i32, %c0_i32_0 : i32, i32
  }
  func.func @transform_4(%arg0: i32) -> (i32, i32) {
    %c0_i32 = arith.constant 0 : i32
    %c0_i32_0 = arith.constant 0 : i32
    %c0_i32_1 = arith.constant 0 : i32
    return %c0_i32, %c0_i32_0 : i32, i32
  }
  func.func @transform_5(%arg0: i32) -> (i32, i32) {
    %c0_i32 = arith.constant 0 : i32
    %c0_i32_0 = arith.constant 0 : i32
    %c0_i32_1 = arith.constant 0 : i32
    return %c0_i32, %c0_i32_0 : i32, i32
  }
  func.func @transform_6(%arg0: i32) -> (i32, i32) {
    %c0_i32 = arith.constant 0 : i32
    %c0_i32_0 = arith.constant 0 : i32
    %c0_i32_1 = arith.constant 0 : i32
    return %c0_i32, %c0_i32_0 : i32, i32
  }
}

module attributes {stable_mosaic.version = 11 : i64} {
  func.func @_base_channel_kernel(%arg0: i32, %arg1: i32, %arg2: memref<1x2x59x24xf32, #tpu.memory_space<vmem>>, %arg3: memref<1x24x64xf32, #tpu.memory_space<vmem>>, %arg4: memref<1x3x64x128xf32, #tpu.memory_space<vmem>>, %arg5: memref<1x3x128x256xf32, #tpu.memory_space<vmem>>, %arg6: memref<1x8x256xf32, #tpu.memory_space<vmem>>, %arg7: memref<3x19x59xf32, #tpu.memory_space<vmem>>, %arg8: memref<3x5x17xf32, #tpu.memory_space<vmem>>, %arg9: memref<1x2x256xf32, #tpu.memory_space<vmem>>, %arg10: memref<19x64xf32, #tpu.memory_space<vmem>>, %arg11: memref<5x128xf32, #tpu.memory_space<vmem>>) attributes {dimension_semantics = [#tpu.dimension_semantics<parallel>, #tpu.dimension_semantics<parallel>], iteration_bounds = array<i64: 2, 1>, scalar_prefetch = 0 : i64, scratch_operands = 2 : i64, tpu.core_type = #tpu.core_type<tc>, window_params = [{transform_indices = @transform_0, window_bounds = array<i64: 1, 2, 59, 24>}, {transform_indices = @transform_1, window_bounds = array<i64: 1, 24, 64>}, {transform_indices = @transform_2, window_bounds = array<i64: 1, 3, 64, 128>}, {transform_indices = @transform_3, window_bounds = array<i64: 1, 3, 128, 256>}, {transform_indices = @transform_4, window_bounds = array<i64: 1, 8, 256>}, {pipeline_mode = #tpu.pipeline_mode<synchronous>, transform_indices = @transform_5, window_bounds = array<i64: 3, 19, 59>}, {pipeline_mode = #tpu.pipeline_mode<synchronous>, transform_indices = @transform_6, window_bounds = array<i64: 3, 5, 17>}, {transform_indices = @transform_7, window_bounds = array<i64: 1, 2, 256>}]} {
    %c0 = arith.constant 0 : index
    %c0_0 = arith.constant 0 : index
    %c0_1 = arith.constant 0 : index
    %c0_2 = arith.constant 0 : index
    %0 = vector.load %arg2[%c0, %c0_0, %c0_1, %c0_2] : memref<1x2x59x24xf32, #tpu.memory_space<vmem>>, vector<1x1x59x24xf32>
    %1 = vector.shape_cast %0 : vector<1x1x59x24xf32> to vector<59x24xf32>
    %c0_3 = arith.constant 0 : index
    %c0_4 = arith.constant 0 : index
    %c0_5 = arith.constant 0 : index
    %2 = vector.load %arg3[%c0_3, %c0_4, %c0_5] : memref<1x24x64xf32, #tpu.memory_space<vmem>>, vector<1x24x64xf32>
    %3 = vector.shape_cast %2 : vector<1x24x64xf32> to vector<24x64xf32>
    %cst = arith.constant dense<0.000000e+00> : vector<59x64xf32>
    %4 = tpu.matmul %1, %3, %cst {dimension_numbers = #tpu.dot_dimension_numbers<[1], [0], [0], [1], [0, 0, 1, 1], [], []>} : vector<59x24xf32>, vector<24x64xf32>, vector<59x64xf32> -> vector<59x64xf32>
    %c0_6 = arith.constant 0 : index
    %c0_7 = arith.constant 0 : index
    %c0_8 = arith.constant 0 : index
    %5 = vector.load %arg6[%c0_6, %c0_7, %c0_8] : memref<1x8x256xf32, #tpu.memory_space<vmem>>, vector<1x1x64xf32>
    %6 = vector.shape_cast %5 : vector<1x1x64xf32> to vector<1x64xf32>
    %7 = vector.broadcast %6 : vector<1x64xf32> to vector<59x64xf32>
    %8 = arith.addf %4, %7 : vector<59x64xf32>
    %cst_9 = arith.constant 0.000000e+00 : f32
    %9 = vector.broadcast %cst_9 : f32 to vector<59x64xf32>
    %10 = arith.maximumf %8, %9 : vector<59x64xf32>
    %c0_10 = arith.constant 0 : index
    %c0_11 = arith.constant 0 : index
    %c0_12 = arith.constant 0 : index
    %11 = vector.load %arg7[%c0_10, %c0_11, %c0_12] : memref<3x19x59xf32, #tpu.memory_space<vmem>>, vector<1x19x59xf32>
    %12 = vector.shape_cast %11 : vector<1x19x59xf32> to vector<19x59xf32>
    %cst_13 = arith.constant dense<0.000000e+00> : vector<19x64xf32>
    %13 = tpu.matmul %12, %10, %cst_13 {dimension_numbers = #tpu.dot_dimension_numbers<[1], [0], [0], [1], [0, 0, 1, 1], [], []>} : vector<19x59xf32>, vector<59x64xf32>, vector<19x64xf32> -> vector<19x64xf32>
    %c1 = arith.constant 1 : index
    %c0_14 = arith.constant 0 : index
    %c0_15 = arith.constant 0 : index
    %14 = vector.load %arg7[%c1, %c0_14, %c0_15] : memref<3x19x59xf32, #tpu.memory_space<vmem>>, vector<1x19x59xf32>
    %15 = vector.shape_cast %14 : vector<1x19x59xf32> to vector<19x59xf32>
    %cst_16 = arith.constant dense<0.000000e+00> : vector<19x64xf32>
    %16 = tpu.matmul %15, %10, %cst_16 {dimension_numbers = #tpu.dot_dimension_numbers<[1], [0], [0], [1], [0, 0, 1, 1], [], []>} : vector<19x59xf32>, vector<59x64xf32>, vector<19x64xf32> -> vector<19x64xf32>
    %17 = arith.maximumf %13, %16 : vector<19x64xf32>
    %c2 = arith.constant 2 : index
    %c0_17 = arith.constant 0 : index
    %c0_18 = arith.constant 0 : index
    %18 = vector.load %arg7[%c2, %c0_17, %c0_18] : memref<3x19x59xf32, #tpu.memory_space<vmem>>, vector<1x19x59xf32>
    %19 = vector.shape_cast %18 : vector<1x19x59xf32> to vector<19x59xf32>
    %cst_19 = arith.constant dense<0.000000e+00> : vector<19x64xf32>
    %20 = tpu.matmul %19, %10, %cst_19 {dimension_numbers = #tpu.dot_dimension_numbers<[1], [0], [0], [1], [0, 0, 1, 1], [], []>} : vector<19x59xf32>, vector<59x64xf32>, vector<19x64xf32> -> vector<19x64xf32>
    %21 = arith.maximumf %17, %20 : vector<19x64xf32>
    %c0_20 = arith.constant 0 : index
    %c1_21 = arith.constant 1 : index
    %c0_22 = arith.constant 0 : index
    %22 = vector.load %arg6[%c0_20, %c1_21, %c0_22] : memref<1x8x256xf32, #tpu.memory_space<vmem>>, vector<1x1x64xf32>
    %23 = vector.shape_cast %22 : vector<1x1x64xf32> to vector<1x64xf32>
    %24 = vector.broadcast %23 : vector<1x64xf32> to vector<19x64xf32>
    %25 = arith.mulf %21, %24 : vector<19x64xf32>
    %c0_23 = arith.constant 0 : index
    %c2_24 = arith.constant 2 : index
    %c0_25 = arith.constant 0 : index
    %26 = vector.load %arg6[%c0_23, %c2_24, %c0_25] : memref<1x8x256xf32, #tpu.memory_space<vmem>>, vector<1x1x64xf32>
    %27 = vector.shape_cast %26 : vector<1x1x64xf32> to vector<1x64xf32>
    %28 = vector.broadcast %27 : vector<1x64xf32> to vector<19x64xf32>
    %29 = arith.addf %25, %28 : vector<19x64xf32>
    %c0_26 = arith.constant 0 : index
    %c0_27 = arith.constant 0 : index
    %30 = vector.load %arg10[%c0_26, %c0_27] : memref<19x64xf32, #tpu.memory_space<vmem>>, vector<19x64xf32>
    tpu.vector_store %arg10[%c0_26, %c0_27], %29 {strides = array<i32>} : memref<19x64xf32, #tpu.memory_space<vmem>>, vector<19x64xf32>,
    %cst_28 = arith.constant 0.000000e+00 : f32
    %31 = vector.broadcast %cst_28 : f32 to vector<17x128xf32>
    %c0_29 = arith.constant 0 : index
    %c3 = arith.constant 3 : index
    %c0_30 = arith.constant 0 : index
    %32 = vector.load %arg6[%c0_29, %c3, %c0_30] : memref<1x8x256xf32, #tpu.memory_space<vmem>>, vector<1x1x128xf32>
    %33 = vector.shape_cast %32 : vector<1x1x128xf32> to vector<1x128xf32>
    %34 = vector.broadcast %33 : vector<1x128xf32> to vector<17x128xf32>
    %35 = arith.addf %31, %34 : vector<17x128xf32>
    %c0_31 = arith.constant 0 : index
    %c0_32 = arith.constant 0 : index
    %36 = vector.load %arg10[%c0_31, %c0_32] : memref<19x64xf32, #tpu.memory_space<vmem>>, vector<17x64xf32>
    %c0_33 = arith.constant 0 : index
    %c0_34 = arith.constant 0 : index
    %c0_35 = arith.constant 0 : index
    %c0_36 = arith.constant 0 : index
    %37 = vector.load %arg4[%c0_33, %c0_34, %c0_35, %c0_36] : memref<1x3x64x128xf32, #tpu.memory_space<vmem>>, vector<1x1x64x128xf32>
    %38 = vector.shape_cast %37 : vector<1x1x64x128xf32> to vector<64x128xf32>
    %cst_37 = arith.constant dense<0.000000e+00> : vector<17x128xf32>
    %39 = tpu.matmul %36, %38, %cst_37 {dimension_numbers = #tpu.dot_dimension_numbers<[1], [0], [0], [1], [0, 0, 1, 1], [], []>} : vector<17x64xf32>, vector<64x128xf32>, vector<17x128xf32> -> vector<17x128xf32>
    %40 = arith.addf %35, %39 : vector<17x128xf32>
    %c1_38 = arith.constant 1 : index
    %c0_39 = arith.constant 0 : index
    %41 = vector.load %arg10[%c1_38, %c0_39] : memref<19x64xf32, #tpu.memory_space<vmem>>, vector<17x64xf32>
    %c0_40 = arith.constant 0 : index
    %c1_41 = arith.constant 1 : index
    %c0_42 = arith.constant 0 : index
    %c0_43 = arith.constant 0 : index
    %42 = vector.load %arg4[%c0_40, %c1_41, %c0_42, %c0_43] : memref<1x3x64x128xf32, #tpu.memory_space<vmem>>, vector<1x1x64x128xf32>
    %43 = vector.shape_cast %42 : vector<1x1x64x128xf32> to vector<64x128xf32>
    %cst_44 = arith.constant dense<0.000000e+00> : vector<17x128xf32>
    %44 = tpu.matmul %41, %43, %cst_44 {dimension_numbers = #tpu.dot_dimension_numbers<[1], [0], [0], [1], [0, 0, 1, 1], [], []>} : vector<17x64xf32>, vector<64x128xf32>, vector<17x128xf32> -> vector<17x128xf32>
    %45 = arith.addf %40, %44 : vector<17x128xf32>
    %c2_45 = arith.constant 2 : index
    %c0_46 = arith.constant 0 : index
    %46 = vector.load %arg10[%c2_45, %c0_46] : memref<19x64xf32, #tpu.memory_space<vmem>>, vector<17x64xf32>
    %c0_47 = arith.constant 0 : index
    %c2_48 = arith.constant 2 : index
    %c0_49 = arith.constant 0 : index
    %c0_50 = arith.constant 0 : index
    %47 = vector.load %arg4[%c0_47, %c2_48, %c0_49, %c0_50] : memref<1x3x64x128xf32, #tpu.memory_space<vmem>>, vector<1x1x64x128xf32>
    %48 = vector.shape_cast %47 : vector<1x1x64x128xf32> to vector<64x128xf32>
    %cst_51 = arith.constant dense<0.000000e+00> : vector<17x128xf32>
    %49 = tpu.matmul %46, %48, %cst_51 {dimension_numbers = #tpu.dot_dimension_numbers<[1], [0], [0], [1], [0, 0, 1, 1], [], []>} : vector<17x64xf32>, vector<64x128xf32>, vector<17x128xf32> -> vector<17x128xf32>
    %50 = arith.addf %45, %49 : vector<17x128xf32>
    %cst_52 = arith.constant 0.000000e+00 : f32
    %51 = vector.broadcast %cst_52 : f32 to vector<17x128xf32>
    %52 = arith.maximumf %50, %51 : vector<17x128xf32>
    %c0_53 = arith.constant 0 : index
    %c0_54 = arith.constant 0 : index
    %c0_55 = arith.constant 0 : index
    %53 = vector.load %arg8[%c0_53, %c0_54, %c0_55] : memref<3x5x17xf32, #tpu.memory_space<vmem>>, vector<1x5x17xf32>
    %54 = vector.shape_cast %53 : vector<1x5x17xf32> to vector<5x17xf32>
    %cst_56 = arith.constant dense<0.000000e+00> : vector<5x128xf32>
    %55 = tpu.matmul %54, %52, %cst_56 {dimension_numbers = #tpu.dot_dimension_numbers<[1], [0], [0], [1], [0, 0, 1, 1], [], []>} : vector<5x17xf32>, vector<17x128xf32>, vector<5x128xf32> -> vector<5x128xf32>
    %c1_57 = arith.constant 1 : index
    %c0_58 = arith.constant 0 : index
    %c0_59 = arith.constant 0 : index
    %56 = vector.load %arg8[%c1_57, %c0_58, %c0_59] : memref<3x5x17xf32, #tpu.memory_space<vmem>>, vector<1x5x17xf32>
    %57 = vector.shape_cast %56 : vector<1x5x17xf32> to vector<5x17xf32>
    %cst_60 = arith.constant dense<0.000000e+00> : vector<5x128xf32>
    %58 = tpu.matmul %57, %52, %cst_60 {dimension_numbers = #tpu.dot_dimension_numbers<[1], [0], [0], [1], [0, 0, 1, 1], [], []>} : vector<5x17xf32>, vector<17x128xf32>, vector<5x128xf32> -> vector<5x128xf32>
    %59 = arith.maximumf %55, %58 : vector<5x128xf32>
    %c2_61 = arith.constant 2 : index
    %c0_62 = arith.constant 0 : index
    %c0_63 = arith.constant 0 : index
    %60 = vector.load %arg8[%c2_61, %c0_62, %c0_63] : memref<3x5x17xf32, #tpu.memory_space<vmem>>, vector<1x5x17xf32>
    %61 = vector.shape_cast %60 : vector<1x5x17xf32> to vector<5x17xf32>
    %cst_64 = arith.constant dense<0.000000e+00> : vector<5x128xf32>
    %62 = tpu.matmul %61, %52, %cst_64 {dimension_numbers = #tpu.dot_dimension_numbers<[1], [0], [0], [1], [0, 0, 1, 1], [], []>} : vector<5x17xf32>, vector<17x128xf32>, vector<5x128xf32> -> vector<5x128xf32>
    %63 = arith.maximumf %59, %62 : vector<5x128xf32>
    %c0_65 = arith.constant 0 : index
    %c4 = arith.constant 4 : index
    %c0_66 = arith.constant 0 : index
    %64 = vector.load %arg6[%c0_65, %c4, %c0_66] : memref<1x8x256xf32, #tpu.memory_space<vmem>>, vector<1x1x128xf32>
    %65 = vector.shape_cast %64 : vector<1x1x128xf32> to vector<1x128xf32>
    %66 = vector.broadcast %65 : vector<1x128xf32> to vector<5x128xf32>
    %67 = arith.mulf %63, %66 : vector<5x128xf32>
    %c0_67 = arith.constant 0 : index
    %c5 = arith.constant 5 : index
    %c0_68 = arith.constant 0 : index
    %68 = vector.load %arg6[%c0_67, %c5, %c0_68] : memref<1x8x256xf32, #tpu.memory_space<vmem>>, vector<1x1x128xf32>
    %69 = vector.shape_cast %68 : vector<1x1x128xf32> to vector<1x128xf32>
    %70 = vector.broadcast %69 : vector<1x128xf32> to vector<5x128xf32>
    %71 = arith.addf %67, %70 : vector<5x128xf32>
    %c0_69 = arith.constant 0 : index
    %c0_70 = arith.constant 0 : index
    %72 = vector.load %arg11[%c0_69, %c0_70] : memref<5x128xf32, #tpu.memory_space<vmem>>, vector<5x128xf32>
    tpu.vector_store %arg11[%c0_69, %c0_70], %71 {strides = array<i32>} : memref<5x128xf32, #tpu.memory_space<vmem>>, vector<5x128xf32>,
    %cst_71 = arith.constant 0.000000e+00 : f32
    %73 = vector.broadcast %cst_71 : f32 to vector<3x256xf32>
    %c0_72 = arith.constant 0 : index
    %c6 = arith.constant 6 : index
    %c0_73 = arith.constant 0 : index
    %74 = vector.load %arg6[%c0_72, %c6, %c0_73] : memref<1x8x256xf32, #tpu.memory_space<vmem>>, vector<1x1x256xf32>
    %75 = vector.shape_cast %74 : vector<1x1x256xf32> to vector<1x256xf32>
    %76 = vector.broadcast %75 : vector<1x256xf32> to vector<3x256xf32>
    %77 = arith.addf %73, %76 : vector<3x256xf32>
    %c0_74 = arith.constant 0 : index
    %c0_75 = arith.constant 0 : index
    %78 = vector.load %arg11[%c0_74, %c0_75] : memref<5x128xf32, #tpu.memory_space<vmem>>, vector<3x128xf32>
    %c0_76 = arith.constant 0 : index
    %c0_77 = arith.constant 0 : index
    %c0_78 = arith.constant 0 : index
    %c0_79 = arith.constant 0 : index
    %79 = vector.load %arg5[%c0_76, %c0_77, %c0_78, %c0_79] : memref<1x3x128x256xf32, #tpu.memory_space<vmem>>, vector<1x1x128x256xf32>
    %80 = vector.shape_cast %79 : vector<1x1x128x256xf32> to vector<128x256xf32>
    %cst_80 = arith.constant dense<0.000000e+00> : vector<3x256xf32>
    %81 = tpu.matmul %78, %80, %cst_80 {dimension_numbers = #tpu.dot_dimension_numbers<[1], [0], [0], [1], [0, 0, 1, 1], [], []>} : vector<3x128xf32>, vector<128x256xf32>, vector<3x256xf32> -> vector<3x256xf32>
    %82 = arith.addf %77, %81 : vector<3x256xf32>
    %c1_81 = arith.constant 1 : index
    %c0_82 = arith.constant 0 : index
    %83 = vector.load %arg11[%c1_81, %c0_82] : memref<5x128xf32, #tpu.memory_space<vmem>>, vector<3x128xf32>
    %c0_83 = arith.constant 0 : index
    %c1_84 = arith.constant 1 : index
    %c0_85 = arith.constant 0 : index
    %c0_86 = arith.constant 0 : index
    %84 = vector.load %arg5[%c0_83, %c1_84, %c0_85, %c0_86] : memref<1x3x128x256xf32, #tpu.memory_space<vmem>>, vector<1x1x128x256xf32>
    %85 = vector.shape_cast %84 : vector<1x1x128x256xf32> to vector<128x256xf32>
    %cst_87 = arith.constant dense<0.000000e+00> : vector<3x256xf32>
    %86 = tpu.matmul %83, %85, %cst_87 {dimension_numbers = #tpu.dot_dimension_numbers<[1], [0], [0], [1], [0, 0, 1, 1], [], []>} : vector<3x128xf32>, vector<128x256xf32>, vector<3x256xf32> -> vector<3x256xf32>
    %87 = arith.addf %82, %86 : vector<3x256xf32>
    %c2_88 = arith.constant 2 : index
    %c0_89 = arith.constant 0 : index
    %88 = vector.load %arg11[%c2_88, %c0_89] : memref<5x128xf32, #tpu.memory_space<vmem>>, vector<3x128xf32>
    %c0_90 = arith.constant 0 : index
    %c2_91 = arith.constant 2 : index
    %c0_92 = arith.constant 0 : index
    %c0_93 = arith.constant 0 : index
    %89 = vector.load %arg5[%c0_90, %c2_91, %c0_92, %c0_93] : memref<1x3x128x256xf32, #tpu.memory_space<vmem>>, vector<1x1x128x256xf32>
    %90 = vector.shape_cast %89 : vector<1x1x128x256xf32> to vector<128x256xf32>
    %cst_94 = arith.constant dense<0.000000e+00> : vector<3x256xf32>
    %91 = tpu.matmul %88, %90, %cst_94 {dimension_numbers = #tpu.dot_dimension_numbers<[1], [0], [0], [1], [0, 0, 1, 1], [], []>} : vector<3x128xf32>, vector<128x256xf32>, vector<3x256xf32> -> vector<3x256xf32>
    %92 = arith.addf %87, %91 : vector<3x256xf32>
    %cst_95 = arith.constant 0.000000e+00 : f32
    %93 = vector.broadcast %cst_95 : f32 to vector<3x256xf32>
    %94 = arith.maximumf %92, %93 : vector<3x256xf32>
    %cst_96 = arith.constant dense<0.000000e+00> : vector<256xf32>
    %95 = vector.multi_reduction <add>, %94, %cst_96 [0] : vector<3x256xf32> to vector<256xf32>
    %96 = vector.shape_cast %95 : vector<256xf32> to vector<1x256xf32>
    %cst_97 = arith.constant 3.000000e+00 : f32
    %97 = vector.broadcast %cst_97 : f32 to vector<1x256xf32>
    %98 = arith.divf %96, %97 : vector<1x256xf32>
    %c0_98 = arith.constant 0 : index
    %c0_99 = arith.constant 0 : index
    %c0_100 = arith.constant 0 : index
    %99 = vector.load %arg9[%c0_98, %c0_99, %c0_100] : memref<1x2x256xf32, #tpu.memory_space<vmem>>, vector<1x1x256xf32>
    %100 = vector.shape_cast %99 : vector<1x1x256xf32> to vector<1x256xf32>
    %101 = vector.shape_cast %98 : vector<1x256xf32> to vector<1x1x256xf32>
    tpu.vector_store %arg9[%c0_98, %c0_99, %c0_100], %101 {strides = array<i32>} : memref<1x2x256xf32, #tpu.memory_space<vmem>>, vector<1x1x256xf32>,
    %c0_101 = arith.constant 0 : index
    %c1_102 = arith.constant 1 : index
    %c0_103 = arith.constant 0 : index
    %c0_104 = arith.constant 0 : index
    %102 = vector.load %arg2[%c0_101, %c1_102, %c0_103, %c0_104] : memref<1x2x59x24xf32, #tpu.memory_space<vmem>>, vector<1x1x59x24xf32>
    %103 = vector.shape_cast %102 : vector<1x1x59x24xf32> to vector<59x24xf32>
    %c0_105 = arith.constant 0 : index
    %c0_106 = arith.constant 0 : index
    %c0_107 = arith.constant 0 : index
    %104 = vector.load %arg3[%c0_105, %c0_106, %c0_107] : memref<1x24x64xf32, #tpu.memory_space<vmem>>, vector<1x24x64xf32>
    %105 = vector.shape_cast %104 : vector<1x24x64xf32> to vector<24x64xf32>
    %cst_108 = arith.constant dense<0.000000e+00> : vector<59x64xf32>
    %106 = tpu.matmul %103, %105, %cst_108 {dimension_numbers = #tpu.dot_dimension_numbers<[1], [0], [0], [1], [0, 0, 1, 1], [], []>} : vector<59x24xf32>, vector<24x64xf32>, vector<59x64xf32> -> vector<59x64xf32>
    %c0_109 = arith.constant 0 : index
    %c0_110 = arith.constant 0 : index
    %c0_111 = arith.constant 0 : index
    %107 = vector.load %arg6[%c0_109, %c0_110, %c0_111] : memref<1x8x256xf32, #tpu.memory_space<vmem>>, vector<1x1x64xf32>
    %108 = vector.shape_cast %107 : vector<1x1x64xf32> to vector<1x64xf32>
    %109 = vector.broadcast %108 : vector<1x64xf32> to vector<59x64xf32>
    %110 = arith.addf %106, %109 : vector<59x64xf32>
    %cst_112 = arith.constant 0.000000e+00 : f32
    %111 = vector.broadcast %cst_112 : f32 to vector<59x64xf32>
    %112 = arith.maximumf %110, %111 : vector<59x64xf32>
    %c0_113 = arith.constant 0 : index
    %c0_114 = arith.constant 0 : index
    %c0_115 = arith.constant 0 : index
    %113 = vector.load %arg7[%c0_113, %c0_114, %c0_115] : memref<3x19x59xf32, #tpu.memory_space<vmem>>, vector<1x19x59xf32>
    %114 = vector.shape_cast %113 : vector<1x19x59xf32> to vector<19x59xf32>
    %cst_116 = arith.constant dense<0.000000e+00> : vector<19x64xf32>
    %115 = tpu.matmul %114, %112, %cst_116 {dimension_numbers = #tpu.dot_dimension_numbers<[1], [0], [0], [1], [0, 0, 1, 1], [], []>} : vector<19x59xf32>, vector<59x64xf32>, vector<19x64xf32> -> vector<19x64xf32>
    %c1_117 = arith.constant 1 : index
    %c0_118 = arith.constant 0 : index
    %c0_119 = arith.constant 0 : index
    %116 = vector.load %arg7[%c1_117, %c0_118, %c0_119] : memref<3x19x59xf32, #tpu.memory_space<vmem>>, vector<1x19x59xf32>
    %117 = vector.shape_cast %116 : vector<1x19x59xf32> to vector<19x59xf32>
    %cst_120 = arith.constant dense<0.000000e+00> : vector<19x64xf32>
    %118 = tpu.matmul %117, %112, %cst_120 {dimension_numbers = #tpu.dot_dimension_numbers<[1], [0], [0], [1], [0, 0, 1, 1], [], []>} : vector<19x59xf32>, vector<59x64xf32>, vector<19x64xf32> -> vector<19x64xf32>
    %119 = arith.maximumf %115, %118 : vector<19x64xf32>
    %c2_121 = arith.constant 2 : index
    %c0_122 = arith.constant 0 : index
    %c0_123 = arith.constant 0 : index
    %120 = vector.load %arg7[%c2_121, %c0_122, %c0_123] : memref<3x19x59xf32, #tpu.memory_space<vmem>>, vector<1x19x59xf32>
    %121 = vector.shape_cast %120 : vector<1x19x59xf32> to vector<19x59xf32>
    %cst_124 = arith.constant dense<0.000000e+00> : vector<19x64xf32>
    %122 = tpu.matmul %121, %112, %cst_124 {dimension_numbers = #tpu.dot_dimension_numbers<[1], [0], [0], [1], [0, 0, 1, 1], [], []>} : vector<19x59xf32>, vector<59x64xf32>, vector<19x64xf32> -> vector<19x64xf32>
    %123 = arith.maximumf %119, %122 : vector<19x64xf32>
    %c0_125 = arith.constant 0 : index
    %c1_126 = arith.constant 1 : index
    %c0_127 = arith.constant 0 : index
    %124 = vector.load %arg6[%c0_125, %c1_126, %c0_127] : memref<1x8x256xf32, #tpu.memory_space<vmem>>, vector<1x1x64xf32>
    %125 = vector.shape_cast %124 : vector<1x1x64xf32> to vector<1x64xf32>
    %126 = vector.broadcast %125 : vector<1x64xf32> to vector<19x64xf32>
    %127 = arith.mulf %123, %126 : vector<19x64xf32>
    %c0_128 = arith.constant 0 : index
    %c2_129 = arith.constant 2 : index
    %c0_130 = arith.constant 0 : index
    %128 = vector.load %arg6[%c0_128, %c2_129, %c0_130] : memref<1x8x256xf32, #tpu.memory_space<vmem>>, vector<1x1x64xf32>
    %129 = vector.shape_cast %128 : vector<1x1x64xf32> to vector<1x64xf32>
    %130 = vector.broadcast %129 : vector<1x64xf32> to vector<19x64xf32>
    %131 = arith.addf %127, %130 : vector<19x64xf32>
    %c0_131 = arith.constant 0 : index
    %c0_132 = arith.constant 0 : index
    %132 = vector.load %arg10[%c0_131, %c0_132] : memref<19x64xf32, #tpu.memory_space<vmem>>, vector<19x64xf32>
    tpu.vector_store %arg10[%c0_131, %c0_132], %131 {strides = array<i32>} : memref<19x64xf32, #tpu.memory_space<vmem>>, vector<19x64xf32>,
    %cst_133 = arith.constant 0.000000e+00 : f32
    %133 = vector.broadcast %cst_133 : f32 to vector<17x128xf32>
    %c0_134 = arith.constant 0 : index
    %c3_135 = arith.constant 3 : index
    %c0_136 = arith.constant 0 : index
    %134 = vector.load %arg6[%c0_134, %c3_135, %c0_136] : memref<1x8x256xf32, #tpu.memory_space<vmem>>, vector<1x1x128xf32>
    %135 = vector.shape_cast %134 : vector<1x1x128xf32> to vector<1x128xf32>
    %136 = vector.broadcast %135 : vector<1x128xf32> to vector<17x128xf32>
    %137 = arith.addf %133, %136 : vector<17x128xf32>
    %c0_137 = arith.constant 0 : index
    %c0_138 = arith.constant 0 : index
    %138 = vector.load %arg10[%c0_137, %c0_138] : memref<19x64xf32, #tpu.memory_space<vmem>>, vector<17x64xf32>
    %c0_139 = arith.constant 0 : index
    %c0_140 = arith.constant 0 : index
    %c0_141 = arith.constant 0 : index
    %c0_142 = arith.constant 0 : index
    %139 = vector.load %arg4[%c0_139, %c0_140, %c0_141, %c0_142] : memref<1x3x64x128xf32, #tpu.memory_space<vmem>>, vector<1x1x64x128xf32>
    %140 = vector.shape_cast %139 : vector<1x1x64x128xf32> to vector<64x128xf32>
    %cst_143 = arith.constant dense<0.000000e+00> : vector<17x128xf32>
    %141 = tpu.matmul %138, %140, %cst_143 {dimension_numbers = #tpu.dot_dimension_numbers<[1], [0], [0], [1], [0, 0, 1, 1], [], []>} : vector<17x64xf32>, vector<64x128xf32>, vector<17x128xf32> -> vector<17x128xf32>
    %142 = arith.addf %137, %141 : vector<17x128xf32>
    %c1_144 = arith.constant 1 : index
    %c0_145 = arith.constant 0 : index
    %143 = vector.load %arg10[%c1_144, %c0_145] : memref<19x64xf32, #tpu.memory_space<vmem>>, vector<17x64xf32>
    %c0_146 = arith.constant 0 : index
    %c1_147 = arith.constant 1 : index
    %c0_148 = arith.constant 0 : index
    %c0_149 = arith.constant 0 : index
    %144 = vector.load %arg4[%c0_146, %c1_147, %c0_148, %c0_149] : memref<1x3x64x128xf32, #tpu.memory_space<vmem>>, vector<1x1x64x128xf32>
    %145 = vector.shape_cast %144 : vector<1x1x64x128xf32> to vector<64x128xf32>
    %cst_150 = arith.constant dense<0.000000e+00> : vector<17x128xf32>
    %146 = tpu.matmul %143, %145, %cst_150 {dimension_numbers = #tpu.dot_dimension_numbers<[1], [0], [0], [1], [0, 0, 1, 1], [], []>} : vector<17x64xf32>, vector<64x128xf32>, vector<17x128xf32> -> vector<17x128xf32>
    %147 = arith.addf %142, %146 : vector<17x128xf32>
    %c2_151 = arith.constant 2 : index
    %c0_152 = arith.constant 0 : index
    %148 = vector.load %arg10[%c2_151, %c0_152] : memref<19x64xf32, #tpu.memory_space<vmem>>, vector<17x64xf32>
    %c0_153 = arith.constant 0 : index
    %c2_154 = arith.constant 2 : index
    %c0_155 = arith.constant 0 : index
    %c0_156 = arith.constant 0 : index
    %149 = vector.load %arg4[%c0_153, %c2_154, %c0_155, %c0_156] : memref<1x3x64x128xf32, #tpu.memory_space<vmem>>, vector<1x1x64x128xf32>
    %150 = vector.shape_cast %149 : vector<1x1x64x128xf32> to vector<64x128xf32>
    %cst_157 = arith.constant dense<0.000000e+00> : vector<17x128xf32>
    %151 = tpu.matmul %148, %150, %cst_157 {dimension_numbers = #tpu.dot_dimension_numbers<[1], [0], [0], [1], [0, 0, 1, 1], [], []>} : vector<17x64xf32>, vector<64x128xf32>, vector<17x128xf32> -> vector<17x128xf32>
    %152 = arith.addf %147, %151 : vector<17x128xf32>
    %cst_158 = arith.constant 0.000000e+00 : f32
    %153 = vector.broadcast %cst_158 : f32 to vector<17x128xf32>
    %154 = arith.maximumf %152, %153 : vector<17x128xf32>
    %c0_159 = arith.constant 0 : index
    %c0_160 = arith.constant 0 : index
    %c0_161 = arith.constant 0 : index
    %155 = vector.load %arg8[%c0_159, %c0_160, %c0_161] : memref<3x5x17xf32, #tpu.memory_space<vmem>>, vector<1x5x17xf32>
    %156 = vector.shape_cast %155 : vector<1x5x17xf32> to vector<5x17xf32>
    %cst_162 = arith.constant dense<0.000000e+00> : vector<5x128xf32>
    %157 = tpu.matmul %156, %154, %cst_162 {dimension_numbers = #tpu.dot_dimension_numbers<[1], [0], [0], [1], [0, 0, 1, 1], [], []>} : vector<5x17xf32>, vector<17x128xf32>, vector<5x128xf32> -> vector<5x128xf32>
    %c1_163 = arith.constant 1 : index
    %c0_164 = arith.constant 0 : index
    %c0_165 = arith.constant 0 : index
    %158 = vector.load %arg8[%c1_163, %c0_164, %c0_165] : memref<3x5x17xf32, #tpu.memory_space<vmem>>, vector<1x5x17xf32>
    %159 = vector.shape_cast %158 : vector<1x5x17xf32> to vector<5x17xf32>
    %cst_166 = arith.constant dense<0.000000e+00> : vector<5x128xf32>
    %160 = tpu.matmul %159, %154, %cst_166 {dimension_numbers = #tpu.dot_dimension_numbers<[1], [0], [0], [1], [0, 0, 1, 1], [], []>} : vector<5x17xf32>, vector<17x128xf32>, vector<5x128xf32> -> vector<5x128xf32>
    %161 = arith.maximumf %157, %160 : vector<5x128xf32>
    %c2_167 = arith.constant 2 : index
    %c0_168 = arith.constant 0 : index
    %c0_169 = arith.constant 0 : index
    %162 = vector.load %arg8[%c2_167, %c0_168, %c0_169] : memref<3x5x17xf32, #tpu.memory_space<vmem>>, vector<1x5x17xf32>
    %163 = vector.shape_cast %162 : vector<1x5x17xf32> to vector<5x17xf32>
    %cst_170 = arith.constant dense<0.000000e+00> : vector<5x128xf32>
    %164 = tpu.matmul %163, %154, %cst_170 {dimension_numbers = #tpu.dot_dimension_numbers<[1], [0], [0], [1], [0, 0, 1, 1], [], []>} : vector<5x17xf32>, vector<17x128xf32>, vector<5x128xf32> -> vector<5x128xf32>
    %165 = arith.maximumf %161, %164 : vector<5x128xf32>
    %c0_171 = arith.constant 0 : index
    %c4_172 = arith.constant 4 : index
    %c0_173 = arith.constant 0 : index
    %166 = vector.load %arg6[%c0_171, %c4_172, %c0_173] : memref<1x8x256xf32, #tpu.memory_space<vmem>>, vector<1x1x128xf32>
    %167 = vector.shape_cast %166 : vector<1x1x128xf32> to vector<1x128xf32>
    %168 = vector.broadcast %167 : vector<1x128xf32> to vector<5x128xf32>
    %169 = arith.mulf %165, %168 : vector<5x128xf32>
    %c0_174 = arith.constant 0 : index
    %c5_175 = arith.constant 5 : index
    %c0_176 = arith.constant 0 : index
    %170 = vector.load %arg6[%c0_174, %c5_175, %c0_176] : memref<1x8x256xf32, #tpu.memory_space<vmem>>, vector<1x1x128xf32>
    %171 = vector.shape_cast %170 : vector<1x1x128xf32> to vector<1x128xf32>
    %172 = vector.broadcast %171 : vector<1x128xf32> to vector<5x128xf32>
    %173 = arith.addf %169, %172 : vector<5x128xf32>
    %c0_177 = arith.constant 0 : index
    %c0_178 = arith.constant 0 : index
    %174 = vector.load %arg11[%c0_177, %c0_178] : memref<5x128xf32, #tpu.memory_space<vmem>>, vector<5x128xf32>
    tpu.vector_store %arg11[%c0_177, %c0_178], %173 {strides = array<i32>} : memref<5x128xf32, #tpu.memory_space<vmem>>, vector<5x128xf32>,
    %cst_179 = arith.constant 0.000000e+00 : f32
    %175 = vector.broadcast %cst_179 : f32 to vector<3x256xf32>
    %c0_180 = arith.constant 0 : index
    %c6_181 = arith.constant 6 : index
    %c0_182 = arith.constant 0 : index
    %176 = vector.load %arg6[%c0_180, %c6_181, %c0_182] : memref<1x8x256xf32, #tpu.memory_space<vmem>>, vector<1x1x256xf32>
    %177 = vector.shape_cast %176 : vector<1x1x256xf32> to vector<1x256xf32>
    %178 = vector.broadcast %177 : vector<1x256xf32> to vector<3x256xf32>
    %179 = arith.addf %175, %178 : vector<3x256xf32>
    %c0_183 = arith.constant 0 : index
    %c0_184 = arith.constant 0 : index
    %180 = vector.load %arg11[%c0_183, %c0_184] : memref<5x128xf32, #tpu.memory_space<vmem>>, vector<3x128xf32>
    %c0_185 = arith.constant 0 : index
    %c0_186 = arith.constant 0 : index
    %c0_187 = arith.constant 0 : index
    %c0_188 = arith.constant 0 : index
    %181 = vector.load %arg5[%c0_185, %c0_186, %c0_187, %c0_188] : memref<1x3x128x256xf32, #tpu.memory_space<vmem>>, vector<1x1x128x256xf32>
    %182 = vector.shape_cast %181 : vector<1x1x128x256xf32> to vector<128x256xf32>
    %cst_189 = arith.constant dense<0.000000e+00> : vector<3x256xf32>
    %183 = tpu.matmul %180, %182, %cst_189 {dimension_numbers = #tpu.dot_dimension_numbers<[1], [0], [0], [1], [0, 0, 1, 1], [], []>} : vector<3x128xf32>, vector<128x256xf32>, vector<3x256xf32> -> vector<3x256xf32>
    %184 = arith.addf %179, %183 : vector<3x256xf32>
    %c1_190 = arith.constant 1 : index
    %c0_191 = arith.constant 0 : index
    %185 = vector.load %arg11[%c1_190, %c0_191] : memref<5x128xf32, #tpu.memory_space<vmem>>, vector<3x128xf32>
    %c0_192 = arith.constant 0 : index
    %c1_193 = arith.constant 1 : index
    %c0_194 = arith.constant 0 : index
    %c0_195 = arith.constant 0 : index
    %186 = vector.load %arg5[%c0_192, %c1_193, %c0_194, %c0_195] : memref<1x3x128x256xf32, #tpu.memory_space<vmem>>, vector<1x1x128x256xf32>
    %187 = vector.shape_cast %186 : vector<1x1x128x256xf32> to vector<128x256xf32>
    %cst_196 = arith.constant dense<0.000000e+00> : vector<3x256xf32>
    %188 = tpu.matmul %185, %187, %cst_196 {dimension_numbers = #tpu.dot_dimension_numbers<[1], [0], [0], [1], [0, 0, 1, 1], [], []>} : vector<3x128xf32>, vector<128x256xf32>, vector<3x256xf32> -> vector<3x256xf32>
    %189 = arith.addf %184, %188 : vector<3x256xf32>
    %c2_197 = arith.constant 2 : index
    %c0_198 = arith.constant 0 : index
    %190 = vector.load %arg11[%c2_197, %c0_198] : memref<5x128xf32, #tpu.memory_space<vmem>>, vector<3x128xf32>
    %c0_199 = arith.constant 0 : index
    %c2_200 = arith.constant 2 : index
    %c0_201 = arith.constant 0 : index
    %c0_202 = arith.constant 0 : index
    %191 = vector.load %arg5[%c0_199, %c2_200, %c0_201, %c0_202] : memref<1x3x128x256xf32, #tpu.memory_space<vmem>>, vector<1x1x128x256xf32>
    %192 = vector.shape_cast %191 : vector<1x1x128x256xf32> to vector<128x256xf32>
    %cst_203 = arith.constant dense<0.000000e+00> : vector<3x256xf32>
    %193 = tpu.matmul %190, %192, %cst_203 {dimension_numbers = #tpu.dot_dimension_numbers<[1], [0], [0], [1], [0, 0, 1, 1], [], []>} : vector<3x128xf32>, vector<128x256xf32>, vector<3x256xf32> -> vector<3x256xf32>
    %194 = arith.addf %189, %193 : vector<3x256xf32>
    %cst_204 = arith.constant 0.000000e+00 : f32
    %195 = vector.broadcast %cst_204 : f32 to vector<3x256xf32>
    %196 = arith.maximumf %194, %195 : vector<3x256xf32>
    %cst_205 = arith.constant dense<0.000000e+00> : vector<256xf32>
    %197 = vector.multi_reduction <add>, %196, %cst_205 [0] : vector<3x256xf32> to vector<256xf32>
    %198 = vector.shape_cast %197 : vector<256xf32> to vector<1x256xf32>
    %cst_206 = arith.constant 3.000000e+00 : f32
    %199 = vector.broadcast %cst_206 : f32 to vector<1x256xf32>
    %200 = arith.divf %198, %199 : vector<1x256xf32>
    %c0_207 = arith.constant 0 : index
    %c1_208 = arith.constant 1 : index
    %c0_209 = arith.constant 0 : index
    %201 = vector.load %arg9[%c0_207, %c1_208, %c0_209] : memref<1x2x256xf32, #tpu.memory_space<vmem>>, vector<1x1x256xf32>
    %202 = vector.shape_cast %201 : vector<1x1x256xf32> to vector<1x256xf32>
    %203 = vector.shape_cast %200 : vector<1x256xf32> to vector<1x1x256xf32>
    tpu.vector_store %arg9[%c0_207, %c1_208, %c0_209], %203 {strides = array<i32>} : memref<1x2x256xf32, #tpu.memory_space<vmem>>, vector<1x1x256xf32>,
    return
  }
  func.func @transform_0(%arg0: i32, %arg1: i32) -> (i32, i32, i32, i32) {
    %c0_i32 = arith.constant 0 : i32
    %c0_i32_0 = arith.constant 0 : i32
    %c0_i32_1 = arith.constant 0 : i32
    return %arg0, %arg1, %c0_i32, %c0_i32_0 : i32, i32, i32, i32
  }
  func.func @transform_1(%arg0: i32, %arg1: i32) -> (i32, i32, i32) {
    %c0_i32 = arith.constant 0 : i32
    %c0_i32_0 = arith.constant 0 : i32
    %c0_i32_1 = arith.constant 0 : i32
    return %arg0, %c0_i32, %c0_i32_0 : i32, i32, i32
  }
  func.func @transform_2(%arg0: i32, %arg1: i32) -> (i32, i32, i32, i32) {
    %c0_i32 = arith.constant 0 : i32
    %c0_i32_0 = arith.constant 0 : i32
    %c0_i32_1 = arith.constant 0 : i32
    %c0_i32_2 = arith.constant 0 : i32
    return %arg0, %c0_i32, %c0_i32_0, %c0_i32_1 : i32, i32, i32, i32
  }
  func.func @transform_3(%arg0: i32, %arg1: i32) -> (i32, i32, i32, i32) {
    %c0_i32 = arith.constant 0 : i32
    %c0_i32_0 = arith.constant 0 : i32
    %c0_i32_1 = arith.constant 0 : i32
    %c0_i32_2 = arith.constant 0 : i32
    return %arg0, %c0_i32, %c0_i32_0, %c0_i32_1 : i32, i32, i32, i32
  }
  func.func @transform_4(%arg0: i32, %arg1: i32) -> (i32, i32, i32) {
    %c0_i32 = arith.constant 0 : i32
    %c0_i32_0 = arith.constant 0 : i32
    %c0_i32_1 = arith.constant 0 : i32
    return %arg0, %c0_i32, %c0_i32_0 : i32, i32, i32
  }
  func.func @transform_5(%arg0: i32, %arg1: i32) -> (i32, i32, i32) {
    %c0_i32 = arith.constant 0 : i32
    %c0_i32_0 = arith.constant 0 : i32
    %c0_i32_1 = arith.constant 0 : i32
    %c0_i32_2 = arith.constant 0 : i32
    return %c0_i32, %c0_i32_0, %c0_i32_1 : i32, i32, i32
  }
  func.func @transform_6(%arg0: i32, %arg1: i32) -> (i32, i32, i32) {
    %c0_i32 = arith.constant 0 : i32
    %c0_i32_0 = arith.constant 0 : i32
    %c0_i32_1 = arith.constant 0 : i32
    %c0_i32_2 = arith.constant 0 : i32
    return %c0_i32, %c0_i32_0, %c0_i32_1 : i32, i32, i32
  }
  func.func @transform_7(%arg0: i32, %arg1: i32) -> (i32, i32, i32) {
    %c0_i32 = arith.constant 0 : i32
    %c0_i32_0 = arith.constant 0 : i32
    return %arg0, %arg1, %c0_i32 : i32, i32, i32
  }
}

</mosaic_0001>

<bundles_post_ra>
// kernel: virus_cnn_forward.4
= control target key start
LH: loop header
LB: loop body
LE: loop exit
PB: predicated region body
PF: predicated region fallthrough
CT: control target
= control target key end

     0   :  { %s7576_s27 = smov 0   ;;  %s7578_s28 = smov 0   ;;  %s8494_s0 = inlined_call_operand.vmem [shape: f32[2,2,63,12], index: 0, kind: input, shape index: {}]   ;;  %s8495_s1 = inlined_call_operand.vmem [shape: f32[12,64], index: 1, kind: input, shape index: {}]   ;;  %s8496_s2 = inlined_call_operand.vmem [shape: f32[2,6,64,64], index: 2, kind: input, shape index: {}]   ;;  %s8497_s3 = inlined_call_operand.vmem [shape: f32[2,3,64,128], index: 3, kind: input, shape index: {}]   ;;  %s8498_s4 = inlined_call_operand.vmem [shape: f32[2,3,128,256], index: 4, kind: input, shape index: {}]   ;;  %s8499_s5 = inlined_call_operand.vmem [shape: f32[2,8,256], index: 5, kind: input, shape index: {}]   ;;  %s8500_s6 = inlined_call_operand.vmem [shape: f32[3,19,58], index: 6, kind: input, shape index: {}]   ;;  %s8501_s7 = inlined_call_operand.vmem [shape: f32[3,5,17], index: 7, kind: input, shape index: {}]   ;;  %s8502_s8 = inlined_call_operand.vmem [shape: f32[2,2,256], index: 8, kind: output, shape index: {}]  }
   0x1   :  { %s7580_s29 = smov 0  }
   0x2 LB: > { %s30_s30 = sadd.s32 1, %s7520_s28  ;;  %p5212_p0 = scmp.ge.s32.totalorder %s7524_s29, 1  ;;  %s7524_s29 = sphi %s7580_s29, %s18_s29   ;;  %s7520_s28 = sphi %s7578_s28, %s8510_s28   ;;  %s7516_s27 = sphi %s7576_s27, %s8509_s27  }
   0x3   : > { %p32_p1 = scmp.ge.s32.totalorder %s30_s30, 2  ;;  %p324_p2 = scmp.lt.s32.totalorder %s7524_s29, 3 }
   0x5   : > { %s8512_s30 = smov (%p32_p1, %s30_s30), 0  ;;  %p325_p3 = pnand %p5212_p0, %p324_p2 }
   0x6   : > { %v435_v0 = vld [vmem:[%s8495_s1] sm:$0xff] (!%p325_p3)  ;;  %v436_v1 = vld [vmem:[%s8495_s1 + $0x8] sm:$0xf] (!%p325_p3)  ;;  %vm462_vm0 = vcmask (!%p325_p3), 1043456   ;;  %vm7526_vm1 = vmmov (!%p325_p3), 1   ;;  %p388_p4 = scmp.lt.s32.totalorder (!%p325_p3), %s7516_s27, 1 }
   0x7   : > { %328 = sbr.rel (%p325_p3) target bundleno = 2888 (0xb48), region = 52  ;;  %v6768_v2 = vpack.c.bf16 (!%p325_p3), %v436_v1, %v435_v0  ;;  %vm7601_vm2 = vmpackc.low (!%p325_p3), %vm462_vm0, %vm7526_vm1  ;;  %vm437_vm3 = vcmask (!%p325_p3), 97280   ;;  %vm587_vm4 = vcmask (!%p325_p3), 523264   ;;  %vm595_vm5 = vcmask (!%p325_p3), 522240  }
   0x8   : > { %vm7528_vm6 = vmmov (!%p325_p3), 0   ;;  %vm1543_vm7 = vcmask (!%p325_p3), 1041408   ;;  %vm1533_vm9 = vcmask (!%p325_p3), 474112   ;;  %vm1829_vm10 = vcmask (!%p325_p3), 518144  }
   0x9   : > { %6770 = vmatprep.subr.msk.bf16.mxu0 (!%p325_p3), %vm7601_vm2, %v6768_v2  ;;  %vm7759_vm8 = vmpackc.low (!%p325_p3), %vm1543_vm7, %vm7526_vm1  ;;  %vm2152_vm11 = vcmask (!%p325_p3), 1040384   ;;  %vm2148_vm12 = vcmask (!%p325_p3), 138240   ;;  %vm2720_vm13 = vcmask (!%p325_p3), 1042432  }
   0xa   : > { %6773 = vmatpush3.bf16.msk.msra.mxu0 (!%p325_p3), %vm7601_vm2, %v6768_v2 }
   0xe   : > { %s8514_s27 = smov (!%p388_p4, %s7516_s27), 1 }
   0xf   : > { %s5675_s13 = sshll.u32 %s8514_s27, 7  ;;  %s7470_s14 = smul.u32 384, %s8514_s27 }
  0x10   : > { %s7616_s17 = scalar_lea.vmem %s8494_s0, %s5675_s13  ;;  %s5676_s21 = sshll.u32 %s8514_s27, 4 }
  0x11   : > { %s7621_s20 = scalar_lea.vmem %s8496_s2, %s7470_s14  ;;  %v427_v4 = vld [vmem:[%s7616_s17] sm:$0xff]  ;;  %v428_v5 = vld [vmem:[%s7616_s17 + $0x8] sm:$0xff]  ;;  %v429_v6 = vld [vmem:[%s7616_s17 + $0x10] sm:$0xff]  ;;  %s7753_s24 = scalar_lea.vmem %s8499_s5, %s5676_s21 }
  0x12   : > { %6050 = vmatprep.mubr.msk.f32.mxu0 %vm437_vm3, %v427_v4  ;;  %v607_v7 = vld [vmem:[%s7621_s20] sm:$0xff]  ;;  %v430_v8 = vld [vmem:[%s7616_s17 + $0x18] sm:$0xff]  ;;  %v608_v9 = vld [vmem:[%s7621_s20 + $0x8] sm:$0xff]  ;;  %s7471_s10 = smul.u32 192, %s8514_s27 }
  0x13   : > { %6051 = vmatmul.mubr.msk.f32.vlgmr.msra.gmra.mrb[0].mxu0 %vm437_vm3, %v428_v5  ;;  %v431_v10 = vld [vmem:[%s7616_s17 + $0x20] sm:$0xff]  ;;  %v6774_v11 = vpack.c.bf16 %v608_v9, %v607_v7  ;;  %v432_v12 = vld [vmem:[%s7616_s17 + $0x28] sm:$0xff]  ;;  %v433_v13 = vld [vmem:[%s7616_s17 + $0x30] sm:$0xff]  ;;  %s7472_s14 = smul.u32 768, %s8514_s27 }
  0x14   : > { %6053 = vmatprep.mubr.msk.f32.mxu0 %vm437_vm3, %v429_v6  ;;  %v434_v14 = vld [vmem:[%s7616_s17 + $0x38] sm:$0x7f]  ;;  %v609_v15 = vld [vmem:[%s7621_s20 + $0x10] sm:$0xff]  ;;  %v611_v18 = vld [vmem:[%s7621_s20 + $0x20] sm:$0xff]  ;;  %s7837_s13 = scalar_lea.vmem %s8497_s3, %s7471_s10 }
  0x15   : > { %6775 = vmatprep.subr.bf16.mxu1 %v6774_v11  ;;  %v610_v16 = vld [vmem:[%s7621_s20 + $0x18] sm:$0xff]  ;;  %v612_v19 = vld [vmem:[%s7621_s20 + $0x28] sm:$0xff]  ;;  %v613_v21 = vld [vmem:[%s7621_s20 + $0x30] sm:$0xff]  ;;  %s7912_s18 = scalar_lea.vmem %s8498_s4, %s7472_s14 }
  0x16   : > { %6777 = vmatpush3.bf16.msra.mxu1 %v6774_v11  ;;  %v6778_v17 = vpack.c.bf16 %v610_v16, %v609_v15  ;;  %v6782_v20 = vpack.c.bf16 %v612_v19, %v611_v18  ;;  %v614_v22 = vld [vmem:[%s7621_s20 + $0x38] sm:$0xff]  ;;  %v5247_v24 = vld [vmem:[%s7621_s20 + $0x40] sm:$0xff]  ;;  %v5248_v25 = vld [vmem:[%s7621_s20 + $0x48] sm:$0xff] }
  0x17   : > { %6054 = vmatmul.mubr.msk.f32.gmra.mrb[2].mxu0 %vm437_vm3, %v430_v8  ;;  %v6786_v23 = vpack.c.bf16 %v614_v22, %v613_v21  ;;  %v6790_v26 = vpack.c.bf16 %v5248_v25, %v5247_v24  ;;  %v5249_v43 = vld [vmem:[%s7621_s20 + $0x50] sm:$0xff]  ;;  %v5250_v44 = vld [vmem:[%s7621_s20 + $0x58] sm:$0xff]  ;;  %v5251_v54 = vld [vmem:[%s7621_s20 + $0x60] sm:$0xff] }
  0x18   : > { %6056 = vmatprep.mubr.msk.f32.mxu0 %vm437_vm3, %v431_v10  ;;  %6779 = vmatprep.subr.bf16.mxu1 %v6778_v17  ;;  %v6794_v51 = vpack.c.bf16 %v5250_v44, %v5249_v43  ;;  %v5252_v55 = vld [vmem:[%s7621_s20 + $0x68] sm:$0xff]  ;;  %v5253_v61 = vld [vmem:[%s7621_s20 + $0x70] sm:$0xff]  ;;  %v5254_v62 = vld [vmem:[%s7621_s20 + $0x78] sm:$0xff] }
  0x19   : > { %v6798_v59 = vpack.c.bf16 %v5252_v55, %v5251_v54  ;;  %v6802_v0 = vpack.c.bf16 %v5254_v62, %v5253_v61  ;;  %v5263_v2 = vld [vmem:[%s7621_s20 + $0x80] sm:$0xff]  ;;  %v5264_v4 = vld [vmem:[%s7621_s20 + $0x88] sm:$0xff]  ;;  %v5265_v8 = vld [vmem:[%s7621_s20 + $0x90] sm:$0xff] }
  0x1a   : > { %6781 = vmatpush3.bf16.msra.mxu1 %v6778_v17  ;;  %v6806_v6 = vpack.c.bf16 %v5264_v4, %v5263_v2  ;;  %v5266_v9 = vld [vmem:[%s7621_s20 + $0x98] sm:$0xff]  ;;  %v5269_v18 = vld [vmem:[%s7621_s20 + $0xb0] sm:$0xff]  ;;  %v5280_v24 = vld [vmem:[%s7621_s20 + $0xc8] sm:$0xff] }
  0x1b   : > { %6057 = vmatmul.mubr.msk.f32.gmra.mrb[4].mxu0 %vm437_vm3, %v432_v12  ;;  %6783 = vmatprep.subr.bf16.mxu1 %v6782_v20  ;;  %v6810_v11 = vpack.c.bf16 %v5266_v9, %v5265_v8  ;;  %v5270_v19 = vld [vmem:[%s7621_s20 + $0xb8] sm:$0xff]  ;;  %v5295_v43 = vld [vmem:[%s7621_s20 + $0x100] sm:$0xff]  ;;  %v5296_v44 = vld [vmem:[%s7621_s20 + $0x108] sm:$0xff] }
  0x1c   : > { %6059 = vmatprep.mubr.msk.f32.mxu0 %vm437_vm3, %v433_v13  ;;  %v5267_v13 = vld [vmem:[%s7621_s20 + $0xa0] sm:$0xff]  ;;  %v6818_v21 = vpack.c.bf16 %v5270_v19, %v5269_v18  ;;  %v5300_v54 = vld [vmem:[%s7621_s20 + $0x128] sm:$0xff] }
  0x1e   : > { %6785 = vmatpush3.bf16.msra.mxu1 %v6782_v20 }
  0x1f   : > { %6060 = vmatmul.mubr.msk.f32.gmra.mrb[6].mxu0 %vm437_vm3, %v434_v14  ;;  %6787 = vmatprep.subr.bf16.mxu1 %v6786_v23  ;;  %v5268_v14 = vld [vmem:[%s7621_s20 + $0xa8] sm:$0xff] }
  0x20   : > { %v6814_v16 = vpack.c.bf16 %v5268_v14, %v5267_v13 }
  0x22   : > { %6789 = vmatpush3.bf16.msra.mxu1 %v6786_v23  ;;  %v5279_v23 = vld [vmem:[%s7621_s20 + $0xc0] sm:$0xff] }
  0x23   : > { %6791 = vmatprep.subr.bf16.mxu1 %v6790_v26 }
  0xe6   : > { %v6052_v27 = vpop.f32.mrb[0].mxu0 }
  0xe7   : > { %v5232_v28 = vadd.f32 -2.0, %v6052_v27  ;;  %v532_v29 = vpop.f32.mrb[1].mxu0 }
  0xe8   : > { %v5231_v30 = vadd.f32 -2.0, %v532_v29  ;;  %v5282_v29 = vld [vmem:[%s7621_s20 + $0xd8] sm:$0xff] }
  0xe9   : > { %v580_v31 = vmax.f32 %v5232_v28, 0.0  ;;  %v5281_v28 = vld [vmem:[%s7621_s20 + $0xd0] sm:$0xff] }
  0xea   : > { %v579_v32 = vmax.f32 %v5231_v30, 0.0  ;;  %v6055_v33 = vpop.f32.mrb[2].mxu0 }
  0xeb   : > { %589 = vst.msk [vmem:[#allocation2 + $0x8] sm:$0xff] %vm587_vm4, %v580_v31  ;;  %v5234_v34 = vadd.f32 -2.0, %v6055_v33  ;;  %v542_v35 = vpop.f32.mrb[3].mxu0  ;;  %v6826_v31 = vpack.c.bf16 %v5282_v29, %v5281_v28  ;;  %v5283_v33 = vld [vmem:[%s7621_s20 + $0xe0] sm:$0xff] }
  0xec   : > { %588 = vst.msk [vmem:[#allocation2] sm:$0xff] %vm587_vm4, %v579_v32  ;;  %v5233_v36 = vadd.f32 -2.0, %v542_v35 }
  0xed   : > { %v582_v37 = vmax.f32 %v5234_v34, 0.0  ;;  %v5284_v34 = vld [vmem:[%s7621_s20 + $0xe8] sm:$0xff] }
  0xee   : > { %v581_v38 = vmax.f32 %v5233_v36, 0.0  ;;  %v6058_v39 = vpop.f32.mrb[4].mxu0  ;;  %v6830_v36 = vpack.c.bf16 %v5284_v34, %v5283_v33 }
  0xef   : > { %591 = vst.msk [vmem:[#allocation2 + $0x18] sm:$0xff] %vm587_vm4, %v582_v37  ;;  %v5236_v40 = vadd.f32 -2.0, %v6058_v39  ;;  %v552_v41 = vpop.f32.mrb[5].mxu0  ;;  %v5286_v39 = vld [vmem:[%s7621_s20 + $0xf8] sm:$0xff] }
  0xf0   : > { %590 = vst.msk [vmem:[#allocation2 + $0x10] sm:$0xff] %vm587_vm4, %v581_v38  ;;  %v5235_v42 = vadd.f32 -2.0, %v552_v41  ;;  %v5285_v38 = vld [vmem:[%s7621_s20 + $0xf0] sm:$0xff] }
  0xf1   : > { %v584_v45 = vmax.f32 %v5236_v40, 0.0  ;;  %v6834_v41 = vpack.c.bf16 %v5286_v39, %v5285_v38 }
  0xf2   : > { %v583_v46 = vmax.f32 %v5235_v42, 0.0  ;;  %v6061_v47 = vpop.f32.mrb[6].mxu0  ;;  %v600_v53 = vld [vmem:[#allocation2 + $0x8] sm:$0xff] }
  0xf3   : > { %593 = vst.msk [vmem:[#allocation2 + $0x28] sm:$0xff] %vm587_vm4, %v584_v45  ;;  %v5238_v48 = vadd.f32 -2.0, %v6061_v47  ;;  %v562_v49 = vpop.f32.mrb[7].mxu0  ;;  %v599_v50 = vld [vmem:[#allocation2] sm:$0xff] }
  0xf4   : > { %592 = vst.msk [vmem:[#allocation2 + $0x20] sm:$0xff] %vm587_vm4, %v583_v46  ;;  %v5237_v52 = vadd.f32 -2.0, %v562_v49  ;;  %6078 = vmatprep.mubr.msk.f32.mxu1 %vm587_vm4, %v599_v50  ;;  %v752_v10 = vld [vmem:[#allocation2 + $0x1] sm:$0xff]  ;;  %v6838_v46 = vpack.c.bf16 %v5296_v44, %v5295_v43  ;;  %v5298_v49 = vld [vmem:[%s7621_s20 + $0x118] sm:$0xff] }
  0xf5   : > { %v586_v56 = vmax.f32 %v5238_v48, 0.0  ;;  %6079 = vmatmul.mubr.msk.f32.vlgmr.msra.gmra.mrb[0].mxu1 %vm587_vm4, %v600_v53  ;;  %v906_v30 = vld [vmem:[#allocation2 + $0x2] sm:$0xff]  ;;  %v5297_v48 = vld [vmem:[%s7621_s20 + $0x110] sm:$0xff] }
  0xf6   : > { %v585_v57 = vmax.f32 %v5237_v52, 0.0  ;;  %6793 = vmatpush3.bf16.msra.mxu1 %v6790_v26  ;;  %v602_v60 = vld [vmem:[#allocation2 + $0x18] sm:$0xff]  ;;  %v6822_v26 = vpack.c.bf16 %v5280_v24, %v5279_v23  ;;  %v1060_v50 = vld [vmem:[#allocation2 + $0x3] sm:$0xff] }
  0xf7   : > { %596 = vst.msk [vmem:[#allocation2 + $0x38] sm:$0x7f] %vm595_vm5, %v586_v56  ;;  %v601_v58 = vld [vmem:[#allocation2 + $0x10] sm:$0xff]  ;;  %6795 = vmatprep.subr.bf16.mxu1 %v6794_v51  ;;  %v5299_v53 = vld [vmem:[%s7621_s20 + $0x120] sm:$0xff] }
  0xf8   : > { %594 = vst.msk [vmem:[#allocation2 + $0x30] sm:$0xff] %vm587_vm4, %v585_v57  ;;  %6081 = vmatprep.mubr.msk.f32.mxu1 %vm587_vm4, %v601_v58  ;;  %v753_v12 = vld [vmem:[#allocation2 + $0x9] sm:$0xff]  ;;  %v754_v15 = vld [vmem:[#allocation2 + $0x11] sm:$0xff]  ;;  %v6846_v56 = vpack.c.bf16 %v5300_v54, %v5299_v53 }
  0xf9   : > { %6082 = vmatmul.mubr.msk.f32.gmra.mrb[2].mxu1 %vm587_vm4, %v602_v60  ;;  %v907_v32 = vld [vmem:[#allocation2 + $0xa] sm:$0xff]  ;;  %v908_v35 = vld [vmem:[#allocation2 + $0x12] sm:$0xff] }
  0xfa   : > { %6797 = vmatpush3.bf16.msra.mxu1 %v6794_v51  ;;  %v604_v1 = vld [vmem:[#allocation2 + $0x28] sm:$0xff]  ;;  %v6842_v51 = vpack.c.bf16 %v5298_v49, %v5297_v48  ;;  %v1062_v55 = vld [vmem:[#allocation2 + $0x13] sm:$0xff] }
  0xfb   : > { %v603_v63 = vld [vmem:[#allocation2 + $0x20] sm:$0xff]  ;;  %6799 = vmatprep.subr.bf16.mxu1 %v6798_v59  ;;  %v1061_v52 = vld [vmem:[#allocation2 + $0xb] sm:$0xff]  ;;  %v1370_v24 = vld [vmem:[#allocation2 + $0x15] sm:$0xff] }
  0xfc   : > { %6084 = vmatprep.mubr.msk.f32.mxu1 %vm587_vm4, %v603_v63  ;;  %v755_v17 = vld [vmem:[#allocation2 + $0x19] sm:$0xff]  ;;  %v756_v20 = vld [vmem:[#allocation2 + $0x21] sm:$0xff]  ;;  %v5301_v58 = vld [vmem:[%s7621_s20 + $0x130] sm:$0xff] }
  0xfd   : > { %6085 = vmatmul.mubr.msk.f32.gmra.mrb[4].mxu1 %vm587_vm4, %v604_v1  ;;  %v909_v37 = vld [vmem:[#allocation2 + $0x1a] sm:$0xff]  ;;  %v910_v40 = vld [vmem:[#allocation2 + $0x22] sm:$0xff]  ;;  %v1215_v9 = vld [vmem:[#allocation2 + $0xc] sm:$0xff] }
  0xfe   : > { %6801 = vmatpush3.bf16.msra.mxu1 %v6798_v59  ;;  %v606_v7 = vld [vmem:[#allocation2 + $0x38] sm:$0x3]  ;;  %v913_v47 = vld [vmem:[#allocation2 + $0x3a] sm:$0x3]  ;;  %v1064_v60 = vld [vmem:[#allocation2 + $0x23] sm:$0xff] }
  0xff   : > { %v605_v5 = vld [vmem:[#allocation2 + $0x30] sm:$0xff]  ;;  %6803 = vmatprep.subr.bf16.mxu1 %v6802_v0  ;;  %v759_v27 = vld [vmem:[#allocation2 + $0x39] sm:$0x3]  ;;  %v1063_v57 = vld [vmem:[#allocation2 + $0x1b] sm:$0xff] }
 0x100   : > { %6087 = vmatprep.mubr.msk.f32.mxu1 %vm587_vm4, %v605_v5  ;;  %v757_v22 = vld [vmem:[#allocation2 + $0x29] sm:$0xff]  ;;  %v758_v25 = vld [vmem:[#allocation2 + $0x31] sm:$0xff]  ;;  %v5311_v63 = vld [vmem:[%s7621_s20 + $0x140] sm:$0xff] }
 0x101   : > { %6088 = vmatmul.mubr.msk.f32.gmra.mrb[6].mxu1 %vm587_vm4, %v606_v7  ;;  %v911_v42 = vld [vmem:[#allocation2 + $0x2a] sm:$0xff]  ;;  %v912_v45 = vld [vmem:[#allocation2 + $0x32] sm:$0xff]  ;;  %v1067_v4 = vld [vmem:[#allocation2 + $0x3b] sm:$0x3] }
 0x102   : > { %6805 = vmatpush3.bf16.msra.mxu1 %v6802_v0  ;;  %6106 = vmatprep.mubr.msk.f32.mxu1 %vm587_vm4, %v752_v10  ;;  %v5302_v59 = vld [vmem:[%s7621_s20 + $0x138] sm:$0xff]  ;;  %v1065_v62 = vld [vmem:[#allocation2 + $0x2b] sm:$0xff]  ;;  %v5315_v10 = vld [vmem:[%s7621_s20 + $0x160] sm:$0xff] }
 0x103   : > { %6807 = vmatprep.subr.bf16.mxu1 %v6806_v6  ;;  %v6850_v61 = vpack.c.bf16 %v5302_v59, %v5301_v58  ;;  %v5312_v0 = vld [vmem:[%s7621_s20 + $0x148] sm:$0xff]  ;;  %v1066_v1 = vld [vmem:[#allocation2 + $0x33] sm:$0xff]  ;;  %v1217_v14 = vld [vmem:[#allocation2 + $0x1c] sm:$0xff] }
 0x104   : > { %v6854_v2 = vpack.c.bf16 %v5312_v0, %v5311_v63  ;;  %v5313_v5 = vld [vmem:[%s7621_s20 + $0x150] sm:$0xff]  ;;  %v1214_v7 = vld [vmem:[#allocation2 + $0x4] sm:$0xff]  ;;  %v1375_v29 = vld [vmem:[#allocation2 + $0x3d] sm:$0x3] }
 0x105   : > { %6107 = vmatmul.mubr.msk.f32.vlgmr.msra.gmra.mrb[0].mxu1 %vm587_vm4, %v753_v12  ;;  %v1216_v12 = vld [vmem:[#allocation2 + $0x14] sm:$0xff]  ;;  %v1219_v19 = vld [vmem:[#allocation2 + $0x2c] sm:$0xff] }
 0x106   : > { %6109 = vmatprep.mubr.msk.f32.mxu1 %vm587_vm4, %v754_v15  ;;  %6809 = vmatpush3.bf16.msra.mxu1 %v6806_v6  ;;  %v5314_v6 = vld [vmem:[%s7621_s20 + $0x158] sm:$0xff]  ;;  %v5317_v15 = vld [vmem:[%s7621_s20 + $0x170] sm:$0xff]  ;;  %v1531_v63 = vld [vmem:[%s8500_s6 + $0x8] sm:$0xff] }
 0x107   : > { %6811 = vmatprep.subr.bf16.mxu1 %v6810_v11  ;;  %v6858_v8 = vpack.c.bf16 %v5314_v6, %v5313_v5  ;;  %v1369_v23 = vld [vmem:[#allocation2 + $0xd] sm:$0xff]  ;;  %v1374_v28 = vld [vmem:[#allocation2 + $0x35] sm:$0xff] }
 0x108   : > { %v1532_v0 = vld [vmem:[%s8500_s6 + $0x10] sm:$0x7]  ;;  %v5339_v6 = vld [vmem:[%s8500_s6 + $0x38] sm:$0xff] }
 0x109   : > { %6110 = vmatmul.mubr.msk.f32.gmra.mrb[2].mxu1 %vm587_vm4, %v755_v17  ;;  %v1218_v17 = vld [vmem:[#allocation2 + $0x24] sm:$0xff]  ;;  %v5338_v5 = vld [vmem:[%s8500_s6 + $0x30] sm:$0xff] }
 0x10a   : > { %6112 = vmatprep.mubr.msk.f32.mxu1 %vm587_vm4, %v756_v20  ;;  %6813 = vmatpush3.bf16.msra.mxu1 %v6810_v11  ;;  %v5316_v11 = vld [vmem:[%s7621_s20 + $0x168] sm:$0xff]  ;;  %v1220_v20 = vld [vmem:[#allocation2 + $0x34] sm:$0xff] }
 0x10b   : > { %6815 = vmatprep.subr.bf16.mxu1 %v6814_v16  ;;  %v6862_v13 = vpack.c.bf16 %v5316_v11, %v5315_v10  ;;  %v1838_v11 = vld [vmem:[%s7837_s13 + $0x10] sm:$0xff] }
 0x10d   : > { %6113 = vmatmul.mubr.msk.f32.gmra.mrb[4].mxu1 %vm587_vm4, %v757_v22  ;;  %v1368_v22 = vld [vmem:[#allocation2 + $0x5] sm:$0xff] }
 0x10e   : > { %6115 = vmatprep.mubr.msk.f32.mxu1 %vm587_vm4, %v758_v25  ;;  %6817 = vmatpush3.bf16.msra.mxu1 %v6814_v16  ;;  %v5318_v16 = vld [vmem:[%s7621_s20 + $0x178] sm:$0xff] }
 0x10f   : > { %6819 = vmatprep.subr.bf16.mxu1 %v6818_v21  ;;  %v6866_v18 = vpack.c.bf16 %v5318_v16, %v5317_v15  ;;  %v1371_v25 = vld [vmem:[#allocation2 + $0x1d] sm:$0xff]  ;;  %v1841_v15 = vld [vmem:[%s7837_s13 + $0x28] sm:$0xff] }
 0x111   : > { %6116 = vmatmul.mubr.msk.f32.gmra.mrb[6].mxu1 %vm587_vm4, %v759_v27  ;;  %v1373_v27 = vld [vmem:[#allocation2 + $0x2d] sm:$0xff] }
 0x112   : > { %6821 = vmatpush3.bf16.msra.mxu1 %v6818_v21  ;;  %6134 = vmatprep.mubr.msk.f32.mxu1 %vm587_vm4, %v906_v30  ;;  %v1221_v21 = vld [vmem:[#allocation2 + $0x3c] sm:$0x3]  ;;  %v7527_v30 = vmov 0.0|0.0  }
 0x113   : > { %6823 = vmatprep.subr.bf16.mxu1 %v6822_v26  ;;  %6870 = vmatprep.subr.bf16.mxu0 %v7527_v30 }
 0x115   : > { %6135 = vmatmul.mubr.msk.f32.vlgmr.msra.gmra.mrb[0].mxu1 %vm587_vm4, %v907_v32  ;;  %v597_v32 = vld [vmem:[%s7753_s24] ss:$0 sm:$0xff] }
 0x116   : > { %6137 = vmatprep.mubr.msk.f32.mxu1 %vm587_vm4, %v908_v35  ;;  %6825 = vmatpush3.bf16.msra.mxu1 %v6822_v26  ;;  %v1372_v26 = vld [vmem:[#allocation2 + $0x25] sm:$0xff] }
 0x117   : > { %6827 = vmatprep.subr.bf16.mxu1 %v6826_v31 }
 0x119   : > { %6138 = vmatmul.mubr.msk.f32.gmra.mrb[2].mxu1 %vm587_vm4, %v909_v37 }
 0x11a   : > { %6140 = vmatprep.mubr.msk.f32.mxu1 %vm587_vm4, %v910_v40  ;;  %6829 = vmatpush3.bf16.msra.mxu1 %v6826_v31  ;;  %v7529_v31 = vmov 0.0  }
 0x11b   : > { %6831 = vmatprep.subr.bf16.mxu1 %v6830_v36  ;;  %6246 = vmatprep.mubr.msk.f32.mxu0 %vm7528_vm6, %v7529_v31 }
 0x11d   : > { %6141 = vmatmul.mubr.msk.f32.gmra.mrb[4].mxu1 %vm587_vm4, %v911_v42 }
 0x11e   : > { %6143 = vmatprep.mubr.msk.f32.mxu1 %vm587_vm4, %v912_v45  ;;  %6833 = vmatpush3.bf16.msra.mxu1 %v6830_v36 }
 0x11f   : > { %6835 = vmatprep.subr.bf16.mxu1 %v6834_v41 }
 0x121   : > { %6144 = vmatmul.mubr.msk.f32.gmra.mrb[6].mxu1 %vm587_vm4, %v913_v47 }
 0x122   : > { %6837 = vmatpush3.bf16.msra.mxu1 %v6834_v41  ;;  %6162 = vmatprep.mubr.msk.f32.mxu1 %vm587_vm4, %v1060_v50 }
 0x123   : > { %6839 = vmatprep.subr.bf16.mxu1 %v6838_v46 }
 0x125   : > { %6163 = vmatmul.mubr.msk.f32.vlgmr.msra.gmra.mrb[0].mxu1 %vm587_vm4, %v1061_v52 }
 0x126   : > { %6165 = vmatprep.mubr.msk.f32.mxu1 %vm587_vm4, %v1062_v55  ;;  %6841 = vmatpush3.bf16.msra.mxu1 %v6838_v46 }
 0x127   : > { %6843 = vmatprep.subr.bf16.mxu1 %v6842_v51 }
 0x129   : > { %6166 = vmatmul.mubr.msk.f32.gmra.mrb[2].mxu1 %vm587_vm4, %v1063_v57 }
 0x12a   : > { %6168 = vmatprep.mubr.msk.f32.mxu1 %vm587_vm4, %v1064_v60  ;;  %6845 = vmatpush3.bf16.msra.mxu1 %v6842_v51  ;;  %v5569_v60 = vld [vmem:[%s8500_s6 + $0x40] sm:$0x7] }
 0x12b   : > { %6847 = vmatprep.subr.bf16.mxu1 %v6846_v56 }
 0x12d   : > { %6169 = vmatmul.mubr.msk.f32.gmra.mrb[4].mxu1 %vm587_vm4, %v1065_v62  ;;  %v1530_v62 = vld [vmem:[%s8500_s6] sm:$0xff] }
 0x12e   : > { %6171 = vmatprep.mubr.msk.f32.mxu1 %vm587_vm4, %v1066_v1  ;;  %6849 = vmatpush3.bf16.msra.mxu1 %v6846_v56  ;;  %v5331_v1 = vld [vmem:[%s8500_s6 + $0x18] sm:$0xff] }
 0x12f   : > { %6851 = vmatprep.subr.bf16.mxu1 %v6850_v61 }
 0x131   : > { %6172 = vmatmul.mubr.msk.f32.gmra.mrb[6].mxu1 %vm587_vm4, %v1067_v4  ;;  %v5333_v4 = vld [vmem:[%s8500_s6 + $0x28] sm:$0x7] }
 0x132   : > { %6853 = vmatpush3.bf16.msra.mxu1 %v6850_v61  ;;  %6190 = vmatprep.mubr.msk.f32.mxu1 %vm587_vm4, %v1214_v7  ;;  %v5340_v7 = vld [vmem:[%s8500_s6 + $0x40] sm:$0x7] }
 0x133   : > { %6855 = vmatprep.subr.bf16.mxu1 %v6854_v2 }
 0x135   : > { %6191 = vmatmul.mubr.msk.f32.vlgmr.msra.gmra.mrb[0].mxu1 %vm587_vm4, %v1215_v9  ;;  %v1837_v9 = vld [vmem:[%s7837_s13 + $0x8] sm:$0xff] }
 0x136   : > { %6193 = vmatprep.mubr.msk.f32.mxu1 %vm587_vm4, %v1216_v12  ;;  %6857 = vmatpush3.bf16.msra.mxu1 %v6854_v2  ;;  %v5332_v2 = vld [vmem:[%s8500_s6 + $0x20] sm:$0xff]  ;;  %v1839_v12 = vld [vmem:[%s7837_s13 + $0x18] sm:$0xff] }
 0x137   : > { %6859 = vmatprep.subr.bf16.mxu1 %v6858_v8 }
 0x139   : > { %6194 = vmatmul.mubr.msk.f32.gmra.mrb[2].mxu1 %vm587_vm4, %v1217_v14  ;;  %v1840_v14 = vld [vmem:[%s7837_s13 + $0x20] sm:$0xff] }
 0x13a   : > { %6196 = vmatprep.mubr.msk.f32.mxu1 %vm587_vm4, %v1218_v17  ;;  %6861 = vmatpush3.bf16.msra.mxu1 %v6858_v8  ;;  %v1836_v8 = vld [vmem:[%s7837_s13] sm:$0xff]  ;;  %v6916_v16 = vpack.c.bf16 %v1841_v15, %v1840_v14  ;;  %v1842_v17 = vld [vmem:[%s7837_s13 + $0x30] sm:$0xff]  ;;  %v5364_v15 = vld [vmem:[%s7837_s13 + $0xa8] sm:$0xff] }
 0x13b   : > { %6863 = vmatprep.subr.bf16.mxu1 %v6862_v13  ;;  %v6910_v10 = vpack.c.bf16 %v1837_v9, %v1836_v8  ;;  %v5360_v8 = vld [vmem:[%s7837_s13 + $0x88] sm:$0xff]  ;;  %v5363_v14 = vld [vmem:[%s7837_s13 + $0xa0] sm:$0xff] }
 0x13d   : > { %6197 = vmatmul.mubr.msk.f32.gmra.mrb[4].mxu1 %vm587_vm4, %v1219_v19 }
 0x13e   : > { %6199 = vmatprep.mubr.msk.f32.mxu1 %vm587_vm4, %v1220_v20  ;;  %6865 = vmatpush3.bf16.msra.mxu1 %v6862_v13  ;;  %v6913_v13 = vpack.c.bf16 %v1839_v12, %v1838_v11  ;;  %v5362_v11 = vld [vmem:[%s7837_s13 + $0x98] sm:$0xff] }
 0x13f   : > { %6867 = vmatprep.subr.bf16.mxu1 %v6866_v18 }
 0x141   : > { %6200 = vmatmul.mubr.msk.f32.gmra.mrb[6].mxu1 %vm587_vm4, %v1221_v21 }
 0x142   : > { %6869 = vmatpush3.bf16.msra.mxu1 %v6866_v18  ;;  %6218 = vmatprep.mubr.msk.f32.mxu1 %vm587_vm4, %v1368_v22  ;;  %v1843_v18 = vld [vmem:[%s7837_s13 + $0x38] sm:$0xff] }
 0x143   : > { %6948 = vmatprep.subr.bf16.mxu1 %v7527_v30  ;;  %v6919_v19 = vpack.c.bf16 %v1843_v18, %v1842_v17  ;;  %v6940_v17 = vpack.c.bf16 %v5364_v15, %v5363_v14  ;;  %v5365_v18 = vld [vmem:[%s7837_s13 + $0xb0] sm:$0xff] }
 0x145   : > { %6219 = vmatmul.mubr.msk.f32.vlgmr.msra.gmra.mrb[0].mxu1 %vm587_vm4, %v1369_v23 }
 0x146   : > { %6221 = vmatprep.mubr.msk.f32.mxu1 %vm587_vm4, %v1370_v24 }
 0x149   : > { %6222 = vmatmul.mubr.msk.f32.gmra.mrb[2].mxu1 %vm587_vm4, %v1371_v25 }
 0x14a   : > { %6224 = vmatprep.mubr.msk.f32.mxu1 %vm587_vm4, %v1372_v26 }
 0x14d   : > { %6225 = vmatmul.mubr.msk.f32.gmra.mrb[4].mxu1 %vm587_vm4, %v1373_v27 }
 0x14e   : > { %6227 = vmatprep.mubr.msk.f32.mxu1 %vm587_vm4, %v1374_v28 }
 0x151   : > { %6228 = vmatmul.mubr.msk.f32.gmra.mrb[6].mxu1 %vm587_vm4, %v1375_v29 }
 0x152   : > { %6395 = vmatprep.mubr.msk.f32.mxu1 %vm7528_vm6, %v7529_v31 }
 0x218   : > { %v6220_v33 = vpop.f32.mrb[0].mxu1 }
 0x219   : > { %v7332_v34 = vadd.f32 %v6220_v33, %v597_v32  ;;  %v1475_v35 = vpop.f32.mrb[1].mxu1 }
 0x21a   : > { %v7333_v36 = vadd.f32 %v1475_v35, %v597_v32 }
 0x21b   : > { %v1523_v37 = vmax.f32 %v7332_v34, 0.0 }
 0x21c   : > { %v1522_v38 = vmax.f32 %v7333_v36, 0.0  ;;  %v6223_v39 = vpop.f32.mrb[2].mxu1 }
 0x21d   : > { %v7334_v40 = vadd.f32 %v6223_v39, %v597_v32  ;;  %v1485_v41 = vpop.f32.mrb[3].mxu1 }
 0x21e   : > { %v6871_v42 = vpack.c.bf16 %v1523_v37, %v1522_v38  ;;  %v7335_v43 = vadd.f32 %v1485_v41, %v597_v32  ;;  %v1819_v38 = vld [vmem:[%s7753_s24 + $0x1] ss:$0 sm:$0xff]  ;;  %v1823_v41 = vld [vmem:[%s7753_s24 + $0x2] ss:$0 sm:$0xff] }
 0x21f   : > { %v1525_v44 = vmax.f32 %v7334_v40, 0.0 }
 0x220   : > { %v1524_v45 = vmax.f32 %v7335_v43, 0.0  ;;  %v6226_v46 = vpop.f32.mrb[4].mxu1  ;;  %6872 = vmatpush3.bf16.msra.mxu0 %v6871_v42 }
 0x221   : > { %v7336_v47 = vadd.f32 %v6226_v46, %v597_v32  ;;  %v1495_v48 = vpop.f32.mrb[5].mxu1  ;;  %6873 = vmatprep.subr.bf16.mxu0 %v7527_v30 }
 0x222   : > { %v6874_v49 = vpack.c.bf16 %v1525_v44, %v1524_v45  ;;  %v7337_v50 = vadd.f32 %v1495_v48, %v597_v32 }
 0x223   : > { %v1527_v51 = vmax.f32 %v7336_v47, 0.0 }
 0x224   : > { %v1526_v52 = vmax.f32 %v7337_v50, 0.0  ;;  %v6229_v53 = vpop.f32.mrb[6].mxu1  ;;  %6875 = vmatpush3.bf16.msra.mxu0 %v6874_v49 }
 0x225   : > { %v7338_v54 = vadd.f32 %v6229_v53, %v597_v32  ;;  %v1505_v55 = vpop.f32.mrb[7].mxu1  ;;  %6876 = vmatprep.subr.bf16.mxu0 %v7527_v30  ;;  %v5349_v53 = vld [vmem:[%s7837_s13 + $0x48] sm:$0xff] }
 0x226   : > { %v6877_v56 = vpack.c.bf16 %v1527_v51, %v1526_v52  ;;  %v7339_v57 = vadd.f32 %v1505_v55, %v597_v32  ;;  %v5348_v52 = vld [vmem:[%s7837_s13 + $0x40] sm:$0xff] }
 0x227   : > { %v1529_v58 = vmax.f32 %v7338_v54, 0.0  ;;  %v6922_v55 = vpack.c.bf16 %v5349_v53, %v5348_v52  ;;  %v2399_v53 = vld [vmem:[%s7912_s18] sm:$0xff] }
 0x228   : > { %v1528_v59 = vmax.f32 %v7339_v57, 0.0  ;;  %6878 = vmatpush3.bf16.msra.mxu0 %v6877_v56  ;;  %v5350_v57 = vld [vmem:[%s7837_s13 + $0x50] sm:$0xff] }
 0x229   : > { %6879 = vmatprep.subr.bf16.mxu0 %v7527_v30 }
 0x22a   : > { %v6880_v61 = vpack.c.bf16 %v1529_v58, %v1528_v59  ;;  %v5351_v58 = vld [vmem:[%s7837_s13 + $0x58] sm:$0xff] }
 0x22c   : > { %6882 = vmatpush3.bf16.msk.msra.mxu0 %vm7759_vm8, %v6880_v61 }
 0x22d   : > { %6883 = vmatprep.subr.bf16.mxu0 %v7527_v30 }
 0x22f   : > { %6247 = vmatmul.mubr.msk.f32.vlgmr.msra.gmra.mrb[8].mxu0 %vm1533_vm9, %v1530_v62  ;;  %v5352_v62 = vld [vmem:[%s7837_s13 + $0x60] sm:$0xff] }
 0x230   : > { %6885 = vmatpush3.bf16.msra.mxu0 %v6871_v42  ;;  %6249 = vmatprep.mubr.msk.f32.mxu0 %vm7528_vm6, %v7529_v31 }
 0x231   : > { %6886 = vmatprep.subr.bf16.mxu0 %v7527_v30 }
 0x233   : > { %6250 = vmatmul.mubr.msk.f32.gmra.mrb[10].mxu0 %vm1533_vm9, %v1531_v63  ;;  %v5353_v63 = vld [vmem:[%s7837_s13 + $0x68] sm:$0xff] }
 0x234   : > { %6888 = vmatpush3.bf16.msra.mxu0 %v6874_v49  ;;  %6252 = vmatprep.mubr.msk.f32.mxu0 %vm7528_vm6, %v7529_v31 }
 0x235   : > { %6889 = vmatprep.subr.bf16.mxu0 %v7527_v30 }
 0x237   : > { %6253 = vmatmul.mubr.msk.f32.gmra.mrb[12].mxu0 %vm1533_vm9, %v1532_v0 }
 0x238   : > { %6891 = vmatpush3.bf16.msra.mxu0 %v6877_v56  ;;  %6271 = vmatprep.mubr.msk.f32.mxu0 %vm7528_vm6, %v7529_v31 }
 0x239   : > { %6892 = vmatprep.subr.bf16.mxu0 %v7527_v30 }
 0x23c   : > { %6895 = vmatpush3.bf16.msk.msra.mxu0 %vm7759_vm8, %v6880_v61 }
 0x23d   : > { %6896 = vmatprep.subr.bf16.mxu0 %v7527_v30 }
 0x23f   : > { %6272 = vmatmul.mubr.msk.f32.vlgmr.msra.gmra.mrb[14].mxu0 %vm1533_vm9, %v5331_v1  ;;  %v6928_v1 = vpack.c.bf16 %v5353_v63, %v5352_v62  ;;  %v5388_v62 = vld [vmem:[%s7912_s18 + $0x148] sm:$0xff]  ;;  %v5390_v63 = vld [vmem:[%s7912_s18 + $0x158] sm:$0xff] }
 0x240   : > { %6898 = vmatpush3.bf16.msra.mxu0 %v6871_v42  ;;  %6274 = vmatprep.mubr.msk.f32.mxu0 %vm7528_vm6, %v7529_v31 }
 0x241   : > { %6899 = vmatprep.subr.bf16.mxu0 %v7527_v30 }
 0x243   : > { %6275 = vmatmul.mubr.msk.f32.gmra.mrb[16].mxu0 %vm1533_vm9, %v5332_v2  ;;  %v5354_v2 = vld [vmem:[%s7837_s13 + $0x70] sm:$0xff] }
 0x244   : > { %6901 = vmatpush3.bf16.msra.mxu0 %v6874_v49  ;;  %6277 = vmatprep.mubr.msk.f32.mxu0 %vm7528_vm6, %v7529_v31 }
 0x245   : > { %6902 = vmatprep.subr.bf16.mxu0 %v7527_v30 }
 0x247   : > { %6278 = vmatmul.mubr.msk.f32.gmra.mrb[18].mxu0 %vm1533_vm9, %v5333_v4  ;;  %v5355_v4 = vld [vmem:[%s7837_s13 + $0x78] sm:$0xff] }
 0x248   : > { %6904 = vmatpush3.bf16.msra.mxu0 %v6877_v56  ;;  %6296 = vmatprep.mubr.msk.f32.mxu0 %vm7528_vm6, %v7529_v31 }
 0x249   : > { %6905 = vmatprep.subr.bf16.mxu0 %v7527_v30 }
 0x24c   : > { %6908 = vmatpush3.bf16.msk.msra.mxu0 %vm7759_vm8, %v6880_v61  ;;  %v6925_v61 = vpack.c.bf16 %v5351_v58, %v5350_v57  ;;  %v2406_v57 = vld [vmem:[%s7912_s18 + $0x38] sm:$0xff]  ;;  %v5383_v58 = vld [vmem:[%s7912_s18 + $0x120] sm:$0xff] }
 0x24d   : > { %6909 = vmatprep.subr.bf16.mxu0 %v7527_v30 }
 0x24f   : > { %6297 = vmatmul.mubr.msk.f32.vlgmr.msra.gmra.mrb[20].mxu0 %vm1533_vm9, %v5338_v5 }
 0x250   : > { %6299 = vmatprep.mubr.msk.f32.mxu0 %vm7528_vm6, %v7529_v31  ;;  %6911 = vmatpush3.bf16.msra.mxu0 %v6910_v10  ;;  %v5361_v10 = vld [vmem:[%s7837_s13 + $0x90] sm:$0xff] }
 0x251   : > { %6912 = vmatprep.subr.bf16.mxu0 %v7527_v30 }
 0x253   : > { %6300 = vmatmul.mubr.msk.f32.gmra.mrb[22].mxu0 %vm1533_vm9, %v5339_v6  ;;  %v6931_v6 = vpack.c.bf16 %v5355_v4, %v5354_v2 }
 0x254   : > { %6302 = vmatprep.mubr.msk.f32.mxu0 %vm7528_vm6, %v7529_v31  ;;  %6914 = vmatpush3.bf16.msra.mxu0 %v6913_v13  ;;  %v6937_v13 = vpack.c.bf16 %v5362_v11, %v5361_v10  ;;  %v5387_v10 = vld [vmem:[%s7912_s18 + $0x140] sm:$0xff]  ;;  %v5389_v11 = vld [vmem:[%s7912_s18 + $0x150] sm:$0xff] }
 0x255   : > { %6915 = vmatprep.subr.bf16.mxu0 %v7527_v30 }
 0x257   : > { %6303 = vmatmul.mubr.msk.f32.gmra.mrb[24].mxu0 %vm1533_vm9, %v5340_v7  ;;  %v5359_v7 = vld [vmem:[%s7837_s13 + $0x80] sm:$0xff] }
 0x258   : > { %6321 = vmatprep.mubr.msk.f32.mxu0 %vm7528_vm6, %v7529_v31  ;;  %6917 = vmatpush3.bf16.msra.mxu0 %v6916_v16  ;;  %v6934_v9 = vpack.c.bf16 %v5360_v8, %v5359_v7  ;;  %v2408_v7 = vld [vmem:[%s7912_s18 + $0x48] sm:$0xff]  ;;  %v6994_v8 = vpack.c.bf16 %v5390_v63, %v5388_v62  ;;  %v5403_v62 = vld [vmem:[%s7912_s18 + $0x1c0] sm:$0xff]  ;;  %v5405_v63 = vld [vmem:[%s7912_s18 + $0x1d0] sm:$0xff] }
 0x259   : > { %6918 = vmatprep.subr.bf16.mxu0 %v7527_v30 }
 0x25c   : > { %6920 = vmatpush3.bf16.msra.mxu0 %v6919_v19  ;;  %v5366_v19 = vld [vmem:[%s7837_s13 + $0xb8] sm:$0xff] }
 0x25d   : > { %6921 = vmatprep.subr.bf16.mxu0 %v7527_v30 }
 0x302   : > { %v1613_v20 = vpop.f32.mrb[8].mxu0 }
 0x303   : > { %v6248_v21 = vpop.f32.mrb[9].mxu0 }
 0x304   : > { %v6943_v21 = vpack.c.bf16 %v5366_v19, %v5365_v18  ;;  %v2409_v18 = vld [vmem:[%s7912_s18 + $0x50] sm:$0xff] }
 0x306   : > { %v1618_v22 = vpop.f32.mrb[10].mxu0 }
 0x307   : > { %v6251_v23 = vpop.f32.mrb[11].mxu0 }
 0x30a   : > { %v1623_v24 = vpop.f32.mrb[12].mxu0 }
 0x30b   : > { %v6254_v25 = vpop.f32.mrb[13].mxu0 }
 0x30c   : > { %v1831_v25 = vld [vmem:[%s7753_s24 + $0x3] ss:$0 sm:$0xff] }
 0x312   : > { %v1706_v26 = vpop.f32.mrb[14].mxu0 }
 0x313   : > { %v1720_v27 = vmax.f32 %v1613_v20, %v1706_v26  ;;  %v6273_v28 = vpop.f32.mrb[15].mxu0 }
 0x316   : > { %v1711_v29 = vpop.f32.mrb[16].mxu0 }
 0x317   : > { %v1721_v32 = vmax.f32 %v1618_v22, %v1711_v29  ;;  %v6276_v33 = vpop.f32.mrb[17].mxu0 }
 0x31a   : > { %v1716_v34 = vpop.f32.mrb[18].mxu0 }
 0x31b   : > { %v1722_v35 = vmax.f32 %v1623_v24, %v1716_v34  ;;  %v6279_v36 = vpop.f32.mrb[19].mxu0 }
 0x322   : > { %v1802_v37 = vpop.f32.mrb[20].mxu0 }
 0x323   : > { %v1816_v39 = vmax.f32 %v1720_v27, %v1802_v37  ;;  %v6298_v40 = vpop.f32.mrb[21].mxu0 }
 0x324   : > { %v5380_v40 = vld [vmem:[%s7912_s18 + $0x108] sm:$0xff] }
 0x325   : > { %v1820_v42 = vmul.f32 %v1819_v38, %v1816_v39 }
 0x326   : > { %v1807_v43 = vpop.f32.mrb[22].mxu0 }
 0x327   : > { %v1824_v44 = vadd.f32 %v1823_v41, %v1820_v42  ;;  %v1817_v45 = vmax.f32 %v1721_v32, %v1807_v43  ;;  %v6301_v46 = vpop.f32.mrb[23].mxu0  ;;  %v2147_v43 = vld [vmem:[%s8501_s7] sm:$0x1f] }
 0x328   : > { %v5372_v46 = vld [vmem:[%s8501_s7 + $0x8] sm:$0x1f] }
 0x329   : > { %1827 = vst.msk [vmem:[#allocation3] sm:$0xff] %vm587_vm4, %v1824_v44  ;;  %v1821_v47 = vmul.f32 %v1819_v38, %v1817_v45  ;;  %v5379_v44 = vld [vmem:[%s7912_s18 + $0x100] sm:$0xff]  ;;  %v5381_v45 = vld [vmem:[%s7912_s18 + $0x110] sm:$0xff] }
 0x32a   : > { %v1812_v48 = vpop.f32.mrb[24].mxu0  ;;  %v6988_v52 = vpack.c.bf16 %v5381_v45, %v5379_v44  ;;  %v5400_v44 = vld [vmem:[%s7912_s18 + $0x1a8] sm:$0xff]  ;;  %v5402_v45 = vld [vmem:[%s7912_s18 + $0x1b8] sm:$0xff] }
 0x32b   : > { %v1825_v49 = vadd.f32 %v1823_v41, %v1821_v47  ;;  %v1818_v50 = vmax.f32 %v1722_v35, %v1812_v48  ;;  %v6304_v51 = vpop.f32.mrb[25].mxu0  ;;  %v5384_v47 = vld [vmem:[%s7912_s18 + $0x128] sm:$0xff]  ;;  %v5386_v48 = vld [vmem:[%s7912_s18 + $0x138] sm:$0xff] }
 0x32c   : > { %v2402_v51 = vld [vmem:[%s7912_s18 + $0x18] sm:$0xff] }
 0x32d   : > { %1828 = vst.msk [vmem:[#allocation3 + $0x8] sm:$0xff] %vm587_vm4, %v1825_v49  ;;  %v1822_v54 = vmul.f32 %v1819_v38, %v1818_v50  ;;  %v2400_v50 = vld [vmem:[%s7912_s18 + $0x8] sm:$0xff] }
 0x32f   : > { %v1826_v56 = vadd.f32 %v1823_v41, %v1822_v54  ;;  %v5382_v41 = vld [vmem:[%s7912_s18 + $0x118] sm:$0xff]  ;;  %v2401_v54 = vld [vmem:[%s7912_s18 + $0x10] sm:$0xff] }
 0x330   : > { %v1833_v59 = vld [vmem:[#allocation3] sm:$0xff]  ;;  %v6986_v49 = vpack.c.bf16 %v5382_v41, %v5380_v40 }
 0x331   : > { %1830 = vst.msk [vmem:[#allocation3 + $0x10] sm:$0x7] %vm1829_vm10, %v1826_v56  ;;  %6322 = vmatmul.mubr.msk.f32.vlgmr.msra.gmra.mrb[26].mxu0 %vm587_vm4, %v1833_v59  ;;  %v6990_v56 = vpack.c.bf16 %v5386_v48, %v5384_v47  ;;  %v5385_v59 = vld [vmem:[%s7912_s18 + $0x130] sm:$0xff]  ;;  %v2415_v41 = vld [vmem:[%s7912_s18 + $0x80] sm:$0xff]  ;;  %v2420_v47 = vld [vmem:[%s7912_s18 + $0xa8] sm:$0xff] }
 0x332   : > { %6923 = vmatpush3.bf16.msra.mxu0 %v6922_v55  ;;  %6324 = vmatprep.mubr.msk.f32.mxu0 %vm7528_vm6, %v7529_v31  ;;  %v2404_v55 = vld [vmem:[%s7912_s18 + $0x28] sm:$0xff]  ;;  %v6992_v4 = vpack.c.bf16 %v5385_v59, %v5383_v58  ;;  %v2422_v48 = vld [vmem:[%s7912_s18 + $0xb8] sm:$0xff] }
 0x333   : > { %6924 = vmatprep.subr.bf16.mxu0 %v7527_v30  ;;  %v6958_v2 = vpack.c.bf16 %v2406_v57, %v2404_v55  ;;  %v5406_v57 = vld [vmem:[%s7912_s18 + $0x1d8] sm:$0xff]  ;;  %v2424_v58 = vld [vmem:[%s7912_s18 + $0xc8] sm:$0xff] }
 0x334   : > { %v1834_v0 = vld [vmem:[#allocation3 + $0x8] sm:$0xff] }
 0x335   : > { %6325 = vmatmul.mubr.msk.f32.gmra.mrb[28].mxu0 %vm587_vm4, %v1834_v0  ;;  %v1936_v12 = vld [vmem:[#allocation3 + $0x1] sm:$0xff]  ;;  %v5375_v0 = vld [vmem:[%s8501_s7 + $0x10] sm:$0x1f] }
 0x336   : > { %6926 = vmatpush3.bf16.msra.mxu0 %v6925_v61  ;;  %6327 = vmatprep.mubr.msk.f32.mxu0 %vm7528_vm6, %v7529_v31  ;;  %v2040_v22 = vld [vmem:[#allocation3 + $0x2] sm:$0xff]  ;;  %v6954_v61 = vpack.c.bf16 %v2402_v51, %v2400_v50  ;;  %v6974_v50 = vpack.c.bf16 %v2422_v48, %v2420_v47  ;;  %v5401_v51 = vld [vmem:[%s7912_s18 + $0x1b0] sm:$0xff] }
 0x337   : > { %6927 = vmatprep.subr.bf16.mxu0 %v7527_v30  ;;  %v5420_v47 = vld [vmem:[%s7912_s18 + $0x248] sm:$0xff] }
 0x338   : > { %v1835_v5 = vld [vmem:[#allocation3 + $0x10] sm:$0x1]  ;;  %v1938_v20 = vld [vmem:[#allocation3 + $0x11] sm:$0x1]  ;;  %v2042_v24 = vld [vmem:[#allocation3 + $0x12] sm:$0x1] }
 0x339   : > { %6328 = vmatmul.mubr.msk.f32.gmra.mrb[30].mxu0 %vm587_vm4, %v1835_v5  ;;  %v1937_v16 = vld [vmem:[#allocation3 + $0x9] sm:$0xff]  ;;  %v2403_v5 = vld [vmem:[%s7912_s18 + $0x20] sm:$0xff] }
 0x33a   : > { %6929 = vmatpush3.bf16.msra.mxu0 %v6928_v1  ;;  %6346 = vmatprep.mubr.msk.f32.mxu0 %vm7528_vm6, %v7529_v31  ;;  %v2041_v23 = vld [vmem:[#allocation3 + $0xa] sm:$0xff]  ;;  %v6956_v1 = vpack.c.bf16 %v2401_v54, %v2399_v53 }
 0x33b   : > { %6930 = vmatprep.subr.bf16.mxu0 %v7527_v30  ;;  %v2421_v53 = vld [vmem:[%s7912_s18 + $0xb0] sm:$0xff] }
 0x33e   : > { %6932 = vmatpush3.bf16.msra.mxu0 %v6931_v6  ;;  %v2405_v6 = vld [vmem:[%s7912_s18 + $0x30] sm:$0xff] }
 0x33f   : > { %6933 = vmatprep.subr.bf16.mxu0 %v7527_v30  ;;  %v6960_v14 = vpack.c.bf16 %v2405_v6, %v2403_v5  ;;  %v5408_v5 = vld [vmem:[%s7912_s18 + $0x1e8] sm:$0xff] }
 0x341   : > { %6347 = vmatmul.mubr.msk.f32.vlgmr.msra.gmra.mrb[26].mxu0 %vm587_vm4, %v1936_v12  ;;  %v5392_v12 = vld [vmem:[%s7912_s18 + $0x168] sm:$0xff] }
 0x342   : > { %6935 = vmatpush3.bf16.msra.mxu0 %v6934_v9  ;;  %6349 = vmatprep.mubr.msk.f32.mxu0 %vm7528_vm6, %v7529_v31  ;;  %v2410_v9 = vld [vmem:[%s7912_s18 + $0x58] sm:$0xff] }
 0x343   : > { %6936 = vmatprep.subr.bf16.mxu0 %v7527_v30  ;;  %v6962_v15 = vpack.c.bf16 %v2410_v9, %v2408_v7  ;;  %v5410_v7 = vld [vmem:[%s7912_s18 + $0x1f8] sm:$0xff] }
 0x344   : > { %v2430_v9 = vld [vmem:[%s7912_s18 + $0xf8] sm:$0xff] }
 0x345   : > { %6350 = vmatmul.mubr.msk.f32.gmra.mrb[28].mxu0 %vm587_vm4, %v1937_v16  ;;  %v6996_v16 = vpack.c.bf16 %v5389_v11, %v5387_v10  ;;  %v7014_v10 = vpack.c.bf16 %v5410_v7, %v5408_v5  ;;  %v5448_v5 = vld [vmem:[%s7616_s17 + $0x68] sm:$0xff]  ;;  %v5449_v7 = vld [vmem:[%s7616_s17 + $0x70] sm:$0xff] }
 0x346   : > { %6938 = vmatpush3.bf16.msra.mxu0 %v6937_v13  ;;  %6352 = vmatprep.mubr.msk.f32.mxu0 %vm7528_vm6, %v7529_v31  ;;  %v5394_v13 = vld [vmem:[%s7912_s18 + $0x178] sm:$0xff] }
 0x347   : > { %6939 = vmatprep.subr.bf16.mxu0 %v7527_v30  ;;  %v6998_v19 = vpack.c.bf16 %v5394_v13, %v5392_v12  ;;  %v5407_v12 = vld [vmem:[%s7912_s18 + $0x1e0] sm:$0xff]  ;;  %v5409_v13 = vld [vmem:[%s7912_s18 + $0x1f0] sm:$0xff] }
 0x349   : > { %6353 = vmatmul.mubr.msk.f32.gmra.mrb[30].mxu0 %vm587_vm4, %v1938_v20 }
 0x34a   : > { %6941 = vmatpush3.bf16.msra.mxu0 %v6940_v17  ;;  %6371 = vmatprep.mubr.msk.f32.mxu0 %vm7528_vm6, %v7529_v31  ;;  %v2407_v17 = vld [vmem:[%s7912_s18 + $0x40] sm:$0xff] }
 0x34b   : > { %6942 = vmatprep.subr.bf16.mxu0 %v7527_v30  ;;  %v6964_v20 = vpack.c.bf16 %v2409_v18, %v2407_v17  ;;  %v5414_v17 = vld [vmem:[%s7912_s18 + $0x218] sm:$0xff]  ;;  %v7016_v18 = vpack.c.bf16 %v5409_v13, %v5407_v12 }
 0x34c   : > { %v5450_v13 = vld [vmem:[%s7616_s17 + $0x78] sm:$0x7f] }
 0x34e   : > { %6944 = vmatpush3.bf16.msra.mxu0 %v6943_v21  ;;  %v2412_v21 = vld [vmem:[%s7912_s18 + $0x68] sm:$0xff] }
 0x34f   : > { %6945 = vmatprep.subr.bf16.mxu0 %v7527_v30 }
 0x351   : > { %6372 = vmatmul.mubr.msk.f32.vlgmr.msra.gmra.mrb[26].mxu0 %vm587_vm4, %v2040_v22  ;;  %v2414_v22 = vld [vmem:[%s7912_s18 + $0x78] sm:$0xff] }
 0x352   : > { %6374 = vmatprep.mubr.msk.f32.mxu0 %vm7528_vm6, %v7529_v31 }
 0x355   : > { %6375 = vmatmul.mubr.msk.f32.gmra.mrb[28].mxu0 %vm587_vm4, %v2041_v23  ;;  %v5391_v23 = vld [vmem:[%s7912_s18 + $0x160] sm:$0xff] }
 0x356   : > { %6377 = vmatprep.mubr.msk.f32.mxu0 %vm7528_vm6, %v7529_v31 }
 0x359   : > { %6378 = vmatmul.mubr.msk.f32.gmra.mrb[30].mxu0 %vm587_vm4, %v2042_v24  ;;  %v6966_v24 = vpack.c.bf16 %v2414_v22, %v2412_v21  ;;  %v2770_v21 = vld [vmem:[%s8495_s1] sm:$0xff]  ;;  %v2771_v22 = vld [vmem:[%s8495_s1 + $0x8] sm:$0xf] }
 0x35a   : > { %6386 = vmatprep.mubr.msk.f32.mxu0 %vm7528_vm6, %v7529_v31 }
 0x424   : > { %v2127_v26 = vpop.f32.mrb[26].mxu0 }
 0x425   : > { %v6373_v27 = vpop.f32.mrb[27].mxu0  ;;  %v7340_v28 = vadd.f32 %v2127_v26, %v1831_v25 }
 0x426   : > { %v2411_v27 = vld [vmem:[%s7912_s18 + $0x60] sm:$0xff] }
 0x427   : > { %v2144_v34 = vmax.f32 %v7340_v28, 0.0  ;;  %v2413_v28 = vld [vmem:[%s7912_s18 + $0x70] sm:$0xff] }
 0x428   : > { %v2132_v29 = vpop.f32.mrb[28].mxu0 }
 0x429   : > { %v7341_v32 = vadd.f32 %v2132_v29, %v1831_v25  ;;  %v6376_v33 = vpop.f32.mrb[29].mxu0  ;;  %v5396_v29 = vld [vmem:[%s7912_s18 + $0x188] sm:$0xff] }
 0x42a   : > { %v5398_v33 = vld [vmem:[%s7912_s18 + $0x198] sm:$0xff] }
 0x42b   : > { %v2145_v35 = vmax.f32 %v7341_v32, 0.0  ;;  %v6968_v32 = vpack.c.bf16 %v2413_v28, %v2411_v27 }
 0x42c   : > { %v2137_v36 = vpop.f32.mrb[30].mxu0 }
 0x42d   : > { %v6946_v37 = vpack.c.bf16 %v2145_v35, %v2144_v34  ;;  %v7342_v38 = vadd.f32 %v2137_v36, %v1831_v25  ;;  %v6379_v39 = vpop.f32.mrb[31].mxu0  ;;  %v5393_v25 = vld [vmem:[%s7912_s18 + $0x170] sm:$0xff]  ;;  %v2416_v34 = vld [vmem:[%s7912_s18 + $0x88] sm:$0xff]  ;;  %v2418_v35 = vld [vmem:[%s7912_s18 + $0x98] sm:$0xff]  ;;  %v7002_v36 = vpack.c.bf16 %v5398_v33, %v5396_v29 }
 0x42e   : > { %v7000_v26 = vpack.c.bf16 %v5393_v25, %v5391_v23  ;;  %v5397_v39 = vld [vmem:[%s7912_s18 + $0x190] sm:$0xff]  ;;  %v7050_v23 = vpack.c.bf16 %v2771_v22, %v2770_v21  ;;  %v5435_v21 = vld [vmem:[%s7912_s18 + $0x2c0] sm:$0xff] }
 0x42f   : > { %6947 = vmatpush3.bf16.msra.mxu0 %v6946_v37  ;;  %6950 = vmatpush3.bf16.msra.mxu1 %v6946_v37  ;;  %v2146_v42 = vmax.f32 %v7342_v38, 0.0  ;;  %v5395_v38 = vld [vmem:[%s7912_s18 + $0x180] sm:$0xff]  ;;  %v5437_v22 = vld [vmem:[%s7912_s18 + $0x2d0] sm:$0xff] }
 0x430   : > { %6384 = vmatprep.subr.mxu0 %v7529_v31  ;;  %6393 = vmatprep.subr.mxu1 %v7529_v31  ;;  %v7004_v40 = vpack.c.bf16 %v5397_v39, %v5395_v38  ;;  %v5411_v38 = vld [vmem:[%s7912_s18 + $0x200] sm:$0xff]  ;;  %v5413_v39 = vld [vmem:[%s7912_s18 + $0x210] sm:$0xff] }
 0x433   : > { %6385 = vmatpush3.msk.msra.mxu0 %vm2152_vm11, %v2146_v42  ;;  %6394 = vmatpush3.msk.msra.mxu1 %vm2152_vm11, %v2146_v42 }
 0x434   : > { %6951 = vmatprep.subr.bf16.mxu0 %v7527_v30  ;;  %6387 = vmatmul.mubr.msk.f32.vlgmr.msra.gmra.mrb[32].mxu0 %vm2148_vm12, %v2147_v43 }
 0x435   : > { %6953 = vmatpush3.bf16.msra.mxu0 %v6946_v37  ;;  %6396 = vmatmul.mubr.msk.f32.vlgmr.msra.gmra.mrb[8].mxu1 %vm2148_vm12, %v5372_v46  ;;  %v6970_v37 = vpack.c.bf16 %v2418_v35, %v2416_v34  ;;  %v7006_v46 = vpack.c.bf16 %v5402_v45, %v5400_v44  ;;  %v2380_v35 = vld [vmem:[%s7753_s24 + $0x5] ss:$0 sm:$0xff] }
 0x436   : > { %6402 = vmatprep.subr.mxu0 %v7529_v31  ;;  %6404 = vmatprep.mubr.msk.f32.mxu0 %vm7528_vm6, %v7529_v31  ;;  %v5415_v45 = vld [vmem:[%s7912_s18 + $0x220] sm:$0xff] }
 0x437   : > { %6987 = vmatprep.subr.bf16.mxu1 %v6986_v49  ;;  %2602 = vmatprep.mubr.f32.mxu1 %v7529_v31  ;;  %v5399_v49 = vld [vmem:[%s7912_s18 + $0x1a0] sm:$0xff] }
 0x438   : > { %6989 = vmatpush1.bf16.msra.mxu1 %v6988_v52  ;;  %v2419_v52 = vld [vmem:[%s7912_s18 + $0xa0] sm:$0xff]  ;;  %v7008_v54 = vpack.c.bf16 %v5401_v51, %v5399_v49 }
 0x439   : > { %6403 = vmatpush3.msk.msra.mxu0 %vm2152_vm11, %v2146_v42  ;;  %6991 = vmatprep.subr.bf16.mxu1 %v6990_v56  ;;  %v2417_v42 = vld [vmem:[%s7912_s18 + $0x90] sm:$0xff]  ;;  %v6976_v55 = vpack.c.bf16 %v2421_v53, %v2419_v52  ;;  %v5404_v56 = vld [vmem:[%s7912_s18 + $0x1c8] sm:$0xff] }
 0x43a   : > { %6405 = vmatmul.mubr.msk.f32.vlgmr.msra.gmra.mrb[34].mxu0 %vm2148_vm12, %v5375_v0  ;;  %6955 = vmatprep.subr.bf16.mxu0 %v6954_v61  ;;  %v6972_v43 = vpack.c.bf16 %v2417_v42, %v2415_v41  ;;  %v7010_v59 = vpack.c.bf16 %v5406_v57, %v5404_v56  ;;  %v2426_v61 = vld [vmem:[%s7912_s18 + $0xd8] sm:$0xff]  ;;  %v7020_v42 = vpack.c.bf16 %v5413_v39, %v5411_v38  ;;  %v5444_v52 = vld [vmem:[%s7616_s17 + $0x48] sm:$0xff]  ;;  %v5421_v56 = vld [vmem:[%s7912_s18 + $0x250] sm:$0xff] }
 0x43b   : > { %6957 = vmatpush1.bf16.msra.mxu0 %v6956_v1  ;;  %2495 = vmatprep.mubr.f32.mxu0 %v7529_v31  ;;  %v6978_v0 = vpack.c.bf16 %v2426_v61, %v2424_v58  ;;  %v7012_v1 = vpack.c.bf16 %v5405_v63, %v5403_v62  ;;  %v5418_v41 = vld [vmem:[%s7912_s18 + $0x238] sm:$0xff]  ;;  %v5424_v57 = vld [vmem:[%s7912_s18 + $0x268] sm:$0xff]  ;;  %v5447_v62 = vld [vmem:[%s7616_s17 + $0x60] sm:$0xff] }
 0x43c   : > { %6959 = vmatprep.subr.bf16.mxu0 %v6958_v2  ;;  %6993 = vmatpush1.bf16.msra.mxu1 %v6992_v4  ;;  %v2423_v2 = vld [vmem:[%s7912_s18 + $0xc0] sm:$0xff]  ;;  %v2425_v4 = vld [vmem:[%s7912_s18 + $0xd0] sm:$0xff]  ;;  %v5426_v58 = vld [vmem:[%s7912_s18 + $0x278] sm:$0xff] }
 0x43d   : > { %6995 = vmatprep.subr.bf16.mxu1 %v6994_v8  ;;  %v6980_v6 = vpack.c.bf16 %v2425_v4, %v2423_v2  ;;  %v2428_v8 = vld [vmem:[%s7912_s18 + $0xe8] sm:$0xff]  ;;  %v7030_v61 = vpack.c.bf16 %v5426_v58, %v5424_v57  ;;  %v5423_v63 = vld [vmem:[%s7912_s18 + $0x260] sm:$0xff]  ;;  %v5430_v2 = vld [vmem:[%s7912_s18 + $0x298] sm:$0xff] }
 0x43e   : > { %v6982_v11 = vpack.c.bf16 %v2430_v9, %v2428_v8  ;;  %v5427_v8 = vld [vmem:[%s7912_s18 + $0x280] sm:$0xff]  ;;  %v5429_v9 = vld [vmem:[%s7912_s18 + $0x290] sm:$0xff] }
 0x43f   : > { %6961 = vmatpush1.bf16.msra.mxu0 %v6960_v14  ;;  %v2427_v14 = vld [vmem:[%s7912_s18 + $0xe0] sm:$0xff]  ;;  %v7036_v12 = vpack.c.bf16 %v5429_v9, %v5427_v8 }
 0x440   : > { %6963 = vmatprep.subr.bf16.mxu0 %v6962_v15  ;;  %6997 = vmatpush1.bf16.msra.mxu1 %v6996_v16  ;;  %v2429_v15 = vld [vmem:[%s7912_s18 + $0xf0] sm:$0xff]  ;;  %v5412_v16 = vld [vmem:[%s7912_s18 + $0x208] sm:$0xff]  ;;  %v2942_v39 = vld [vmem:[%s7621_s20 + $0x20] sm:$0xff] }
 0x441   : > { %6999 = vmatprep.subr.bf16.mxu1 %v6998_v19  ;;  %v6984_v19 = vpack.c.bf16 %v2429_v15, %v2427_v14  ;;  %v5431_v15 = vld [vmem:[%s7912_s18 + $0x2a0] sm:$0xff] }
 0x443   : > { %6965 = vmatpush1.bf16.msra.mxu0 %v6964_v20  ;;  %v7018_v20 = vpack.c.bf16 %v5414_v17, %v5412_v16  ;;  %v5433_v16 = vld [vmem:[%s7912_s18 + $0x2b0] sm:$0xff]  ;;  %v5436_v17 = vld [vmem:[%s7912_s18 + $0x2c8] sm:$0xff] }
 0x444   : > { %6967 = vmatprep.subr.bf16.mxu0 %v6966_v24  ;;  %7001 = vmatpush1.bf16.msra.mxu1 %v7000_v26 }
 0x445   : > { %7003 = vmatprep.subr.bf16.mxu1 %v7002_v36 }
 0x447   : > { %6969 = vmatpush1.bf16.msra.mxu0 %v6968_v32  ;;  %v2378_v32 = vld [vmem:[%s7753_s24 + $0x4] ss:$0 sm:$0xff] }
 0x448   : > { %6971 = vmatprep.subr.bf16.mxu0 %v6970_v37  ;;  %7005 = vmatpush1.bf16.msra.mxu1 %v7004_v40  ;;  %v5416_v40 = vld [vmem:[%s7912_s18 + $0x228] sm:$0xff] }
 0x449   : > { %7007 = vmatprep.subr.bf16.mxu1 %v7006_v46  ;;  %v7022_v44 = vpack.c.bf16 %v5418_v41, %v5416_v40  ;;  %v5417_v46 = vld [vmem:[%s7912_s18 + $0x230] sm:$0xff]  ;;  %v2943_v40 = vld [vmem:[%s7621_s20 + $0x28] sm:$0xff] }
 0x44a   : > { %v7024_v51 = vpack.c.bf16 %v5417_v46, %v5415_v45  ;;  %v7064_v41 = vpack.c.bf16 %v2943_v40, %v2942_v39  ;;  %v5476_v45 = vld [vmem:[%s7621_s20 + $0x40] sm:$0xff]  ;;  %v5477_v46 = vld [vmem:[%s7621_s20 + $0x48] sm:$0xff]  ;;  %v5494_v40 = vld [vmem:[%s7621_s20 + $0x90] sm:$0xff] }
 0x44b   : > { %6973 = vmatpush1.bf16.msra.mxu0 %v6972_v43  ;;  %v5443_v43 = vld [vmem:[%s7616_s17 + $0x40] sm:$0xff] }
 0x44c   : > { %6975 = vmatprep.subr.bf16.mxu0 %v6974_v50  ;;  %7009 = vmatpush1.bf16.msra.mxu1 %v7008_v54  ;;  %v5422_v50 = vld [vmem:[%s7912_s18 + $0x258] sm:$0xff]  ;;  %v5445_v54 = vld [vmem:[%s7616_s17 + $0x50] sm:$0xff] }
 0x44d   : > { %7011 = vmatprep.subr.bf16.mxu1 %v7010_v59  ;;  %v7026_v53 = vpack.c.bf16 %v5422_v50, %v5420_v47  ;;  %v5446_v59 = vld [vmem:[%s7616_s17 + $0x58] sm:$0xff]  ;;  %v7072_v47 = vpack.c.bf16 %v5477_v46, %v5476_v45  ;;  %s5677_s17 = sshll.u32 %s8514_s27, 2 }
 0x44e   : > { %s8156_s15 = scalar_lea.vmem %s8502_s8, %s5677_s17 }
 0x44f   : > { %6977 = vmatpush1.bf16.msra.mxu0 %v6976_v55  ;;  %v5419_v55 = vld [vmem:[%s7912_s18 + $0x240] sm:$0xff] }
 0x450   : > { %6979 = vmatprep.subr.bf16.mxu0 %v6978_v0  ;;  %7013 = vmatpush1.bf16.msra.mxu1 %v7012_v1  ;;  %v7028_v3 = vpack.c.bf16 %v5421_v56, %v5419_v55  ;;  %v5425_v0 = vld [vmem:[%s7912_s18 + $0x270] sm:$0xff]  ;;  %v5428_v1 = vld [vmem:[%s7912_s18 + $0x288] sm:$0xff] }
 0x451   : > { %7015 = vmatprep.subr.bf16.mxu1 %v7014_v10  ;;  %v7032_v4 = vpack.c.bf16 %v5425_v0, %v5423_v63  ;;  %v5432_v10 = vld [vmem:[%s7912_s18 + $0x2a8] sm:$0xff] }
 0x453   : > { %6981 = vmatpush1.bf16.msra.mxu0 %v6980_v6  ;;  %v7034_v6 = vpack.c.bf16 %v5430_v2, %v5428_v1  ;;  %v5478_v2 = vld [vmem:[%s7621_s20 + $0x50] sm:$0xff] }
 0x454   : > { %6983 = vmatprep.subr.bf16.mxu0 %v6982_v11  ;;  %7017 = vmatpush1.bf16.msra.mxu1 %v7016_v18  ;;  %v5434_v11 = vld [vmem:[%s7912_s18 + $0x2b8] sm:$0xff] }
 0x455   : > { %7019 = vmatprep.subr.bf16.mxu1 %v7018_v20  ;;  %v7038_v14 = vpack.c.bf16 %v5434_v11, %v5432_v10  ;;  %v5438_v18 = vld [vmem:[%s7912_s18 + $0x2d8] sm:$0xff] }
 0x456   : > { %v7042_v20 = vpack.c.bf16 %v5438_v18, %v5436_v17 }
 0x457   : > { %6985 = vmatpush1.bf16.msra.mxu0 %v6984_v19  ;;  %v7040_v19 = vpack.c.bf16 %v5433_v16, %v5431_v15  ;;  %v5480_v15 = vld [vmem:[%s7621_s20 + $0x60] sm:$0xff]  ;;  %v5481_v16 = vld [vmem:[%s7621_s20 + $0x68] sm:$0xff] }
 0x458   : > { %7052 = vmatprep.subr.msk.bf16.mxu0 %vm7601_vm2, %v7050_v23 }
 0x507   : > { %v2222_v24 = vpop.f32.mrb[32].mxu0 }
 0x508   : > { %v6388_v25 = vpop.f32.mrb[33].mxu0  ;;  %v2297_v26 = vpop.f32.mrb[8].mxu1 }
 0x509   : > { %v2301_v27 = vmax.f32 %v2222_v24, %v2297_v26  ;;  %v6397_v28 = vpop.f32.mrb[9].mxu1  ;;  %v5442_v24 = vld [vmem:[%s7912_s18 + $0x2f8] sm:$0xff]  ;;  %v7044_v25 = vpack.c.bf16 %v5437_v22, %v5435_v21  ;;  %v7080_v21 = vpack.c.bf16 %v5481_v16, %v5480_v15 }
 0x50a   : > { %v5441_v28 = vld [vmem:[%s7912_s18 + $0x2f0] sm:$0xff] }
 0x50d   : > { %v2373_v29 = vpop.f32.mrb[34].mxu0 }
 0x50e   : > { %v2377_v33 = vmax.f32 %v2301_v27, %v2373_v29  ;;  %v6406_v34 = vpop.f32.mrb[35].mxu0  ;;  %v5439_v27 = vld [vmem:[%s7912_s18 + $0x2e0] sm:$0xff] }
 0x50f   : > { %v7048_v29 = vpack.c.bf16 %v5441_v28, %v5439_v27  ;;  %v2939_v34 = vld [vmem:[%s7621_s20 + $0x8] sm:$0xff] }
 0x510   : > { %v2379_v36 = vmul.f32 %v2378_v32, %v2377_v33  ;;  %v2938_v33 = vld [vmem:[%s7621_s20] sm:$0xff] }
 0x512   : > { %v2381_v37 = vadd.f32 %v2380_v35, %v2379_v36  ;;  %v7056_v35 = vpack.c.bf16 %v2939_v34, %v2938_v33  ;;  %v2940_v36 = vld [vmem:[%s7621_s20 + $0x10] sm:$0xff]  ;;  %v5492_v33 = vld [vmem:[%s7621_s20 + $0x80] sm:$0xff]  ;;  %v5493_v34 = vld [vmem:[%s7621_s20 + $0x88] sm:$0xff] }
 0x514   : > { %2382 = vst [vmem:[#allocation4] sm:$0x1f] %v2381_v37  ;;  %v2941_v37 = vld [vmem:[%s7621_s20 + $0x18] sm:$0xff] }
 0x515   : > { %v7060_v38 = vpack.c.bf16 %v2941_v37, %v2940_v36 }
 0x51b   : > { %v2398_v48 = vld [vmem:[#allocation4] sm:$0x7] }
 0x51c   : > { %v2504_v49 = vld [vmem:[#allocation4 + $0x1] sm:$0x7]  ;;  %2496 = vmatmul.mubr.f32.vlgmr.msra.gmra.mrb[36].mxu0 %v2398_v48 }
 0x51d   : > { %2603 = vmatmul.mubr.f32.vlgmr.msra.gmra.mrb[10].mxu1 %v2504_v49  ;;  %7055 = vmatpush3.bf16.msk.msra.mxu0 %vm7601_vm2, %v7050_v23  ;;  %v5440_v23 = vld [vmem:[%s7912_s18 + $0x2e8] sm:$0xff]  ;;  %v2611_v32 = vld [vmem:[#allocation4 + $0x2] sm:$0x7] }
 0x51e   : > { %7021 = vmatpush1.bf16.msra.mxu1 %v7020_v42  ;;  %6411 = vmatprep.mubr.msk.f32.mxu0 %vm437_vm3, %v5443_v43  ;;  %v7046_v26 = vpack.c.bf16 %v5442_v24, %v5440_v23  ;;  %v2944_v42 = vld [vmem:[%s7621_s20 + $0x30] sm:$0xff]  ;;  %v2945_v43 = vld [vmem:[%s7621_s20 + $0x38] sm:$0xff] }
 0x51f   : > { %7023 = vmatprep.subr.bf16.mxu1 %v7022_v44  ;;  %2709 = vmatprep.mubr.f32.mxu1 %v7529_v31  ;;  %v7068_v44 = vpack.c.bf16 %v2945_v43, %v2944_v42  ;;  %v5482_v23 = vld [vmem:[%s7621_s20 + $0x70] sm:$0xff]  ;;  %v5483_v24 = vld [vmem:[%s7621_s20 + $0x78] sm:$0xff] }
 0x520   : > { %6412 = vmatmul.mubr.msk.f32.vlgmr.msra.gmra.mrb[38].mxu0 %vm437_vm3, %v5444_v52  ;;  %7057 = vmatprep.subr.bf16.mxu0 %v7056_v35 }
 0x521   : > { %6414 = vmatprep.mubr.msk.f32.mxu0 %vm437_vm3, %v5445_v54  ;;  %7059 = vmatpush3.bf16.msra.mxu0 %v7056_v35 }
 0x522   : > { %7025 = vmatpush1.bf16.msra.mxu1 %v7024_v51  ;;  %7061 = vmatprep.subr.bf16.mxu0 %v7060_v38 }
 0x523   : > { %7027 = vmatprep.subr.bf16.mxu1 %v7026_v53 }
 0x524   : > { %6415 = vmatmul.mubr.msk.f32.gmra.mrb[40].mxu0 %vm437_vm3, %v5446_v59 }
 0x525   : > { %6417 = vmatprep.mubr.msk.f32.mxu0 %vm437_vm3, %v5447_v62  ;;  %7063 = vmatpush3.bf16.msra.mxu0 %v7060_v38  ;;  %v7088_v38 = vpack.c.bf16 %v5493_v34, %v5492_v33  ;;  %v5512_v34 = vld [vmem:[%s7621_s20 + $0xe0] sm:$0xff] }
 0x526   : > { %7029 = vmatpush1.bf16.msra.mxu1 %v7028_v3  ;;  %7065 = vmatprep.subr.bf16.mxu0 %v7064_v41 }
 0x527   : > { %7031 = vmatprep.subr.bf16.mxu1 %v7030_v61 }
 0x528   : > { %6418 = vmatmul.mubr.msk.f32.gmra.mrb[42].mxu0 %vm437_vm3, %v5448_v5  ;;  %v2386_v5 = vlaneseq }
 0x529   : > { %6420 = vmatprep.mubr.msk.f32.mxu0 %vm437_vm3, %v5449_v7  ;;  %7067 = vmatpush3.bf16.msra.mxu0 %v7064_v41  ;;  %v5495_v41 = vld [vmem:[%s7621_s20 + $0x98] sm:$0xff] }
 0x52a   : > { %7033 = vmatpush1.bf16.msra.mxu1 %v7032_v4  ;;  %7069 = vmatprep.subr.bf16.mxu0 %v7068_v44  ;;  %v5479_v4 = vld [vmem:[%s7621_s20 + $0x58] sm:$0xff]  ;;  %v8091_v17 = vshrl.u32 %v2386_v5, 7  ;;  %vm8149_vm14 = vcmp.lt.s32.totalorder %v2386_v5, 256  ;;  %v5524_v5 = vld [vmem:[%s7621_s20 + $0x100] sm:$0xff] }
 0x52b   : > { %7035 = vmatprep.subr.bf16.mxu1 %v7034_v6 }
 0x52c   : > { %6421 = vmatmul.mubr.msk.f32.gmra.mrb[44].mxu0 %vm437_vm3, %v5450_v13  ;;  %v2392_v27 = vsub.s32 1, %v8091_v17 }
 0x52d   : > { %7071 = vmatpush3.bf16.msra.mxu0 %v7068_v44 }
 0x52e   : > { %7037 = vmatpush1.bf16.msra.mxu1 %v7036_v12  ;;  %7073 = vmatprep.subr.bf16.mxu0 %v7072_v47  ;;  %v7076_v12 = vpack.c.bf16 %v5479_v4, %v5478_v2 }
 0x52f   : > { %7039 = vmatprep.subr.bf16.mxu1 %v7038_v14 }
 0x532   : > { %7041 = vmatpush1.bf16.msra.mxu1 %v7040_v19 }
 0x533   : > { %7043 = vmatprep.subr.bf16.mxu1 %v7042_v20 }
 0x536   : > { %7045 = vmatpush1.bf16.msra.mxu1 %v7044_v25  ;;  %v2388_v25 = vsub.s32 0, %v8091_v17 }
 0x537   : > { %7047 = vmatprep.subr.bf16.mxu1 %v7046_v26  ;;  %v5378_v26 = vld [vmem:[%s7753_s24 + $0x6] ss:$8 sm:$0x3] }
 0x538   : > { %v2389_v35 = vrot.slane %v5378_v26, %v2388_v25  ;;  %v2393_v36 = vrot.slane %v5378_v26, %v2392_v27 }
 0x53a   : > { %7049 = vmatpush1.bf16.msra.mxu1 %v7048_v29  ;;  %v7084_v29 = vpack.c.bf16 %v5483_v24, %v5482_v23 }
 0x53b   : > { %7152 = vmatprep.subr.bf16.mxu1 %v7527_v30 }
 0x53d   : > { %2710 = vmatmul.mubr.f32.vlgmr.msra.gmra.mrb[10].mxu1 %v2611_v32 }
 0x53e   : > { %6607 = vmatprep.mubr.msk.f32.mxu1 %vm7528_vm6, %v7529_v31 }
 0x5ef   : > { %v8075_v48 = vpop.f32.mrb[36].mxu0 }
 0x5f0   : > { %v8077_v49 = vpop.f32.mrb[37].mxu0  ;;  %v2502_v42 = vadd.f32 %v8075_v48, %v2389_v35  ;;  %v5497_v48 = vld [vmem:[%s7621_s20 + $0xa8] sm:$0xff] }
 0x5f1   : > { %v2503_v44 = vadd.f32 %v8077_v49, %v2393_v36  ;;  %v5513_v35 = vld [vmem:[%s7621_s20 + $0xe8] sm:$0xff] }
 0x5f3   : > { %v6413_v50 = vpop.f32.mrb[38].mxu0 }
 0x5f4   : > { %v5461_v51 = vadd.f32 -2.0, %v6413_v50  ;;  %v2865_v52 = vpop.f32.mrb[39].mxu0  ;;  %v7092_v50 = vpack.c.bf16 %v5495_v41, %v5494_v40  ;;  %v7112_v40 = vpack.c.bf16 %v5513_v35, %v5512_v34 }
 0x5f5   : > { %v5460_v53 = vadd.f32 -2.0, %v2865_v52 }
 0x5f6   : > { %v2913_v54 = vmax.f32 %v5461_v51, 0.0 }
 0x5f7   : > { %v2912_v55 = vmax.f32 %v5460_v53, 0.0  ;;  %v6416_v56 = vpop.f32.mrb[40].mxu0  ;;  %v5496_v53 = vld [vmem:[%s7621_s20 + $0xa0] sm:$0xff] }
 0x5f8   : > { %2921 = vst.msk [vmem:[#allocation2 + $0x8] sm:$0xff] %vm587_vm4, %v2913_v54  ;;  %v5463_v57 = vadd.f32 -2.0, %v6416_v56  ;;  %v2875_v58 = vpop.f32.mrb[41].mxu0 }
 0x5f9   : > { %2920 = vst.msk [vmem:[#allocation2] sm:$0xff] %vm587_vm4, %v2912_v55  ;;  %v5462_v3 = vadd.f32 -2.0, %v2875_v58 }
 0x5fa   : > { %v2915_v59 = vmax.f32 %v5463_v57, 0.0  ;;  %v7096_v57 = vpack.c.bf16 %v5497_v48, %v5496_v53 }
 0x5fb   : > { %v2914_v61 = vmax.f32 %v5462_v3, 0.0  ;;  %v6419_v62 = vpop.f32.mrb[42].mxu0 }
 0x5fc   : > { %2923 = vst.msk [vmem:[#allocation2 + $0x18] sm:$0xff] %vm587_vm4, %v2915_v59  ;;  %v5465_v63 = vadd.f32 -2.0, %v6419_v62  ;;  %v2885_v0 = vpop.f32.mrb[43].mxu0  ;;  %v5499_v62 = vld [vmem:[%s7621_s20 + $0xb8] sm:$0xff] }
 0x5fd   : > { %2922 = vst.msk [vmem:[#allocation2 + $0x10] sm:$0xff] %vm587_vm4, %v2914_v61  ;;  %v5464_v1 = vadd.f32 -2.0, %v2885_v0  ;;  %v5498_v61 = vld [vmem:[%s7621_s20 + $0xb0] sm:$0xff] }
 0x5fe   : > { %v2917_v6 = vmax.f32 %v5465_v63, 0.0  ;;  %v7100_v4 = vpack.c.bf16 %v5499_v62, %v5498_v61 }
 0x5ff   : > { %v2916_v7 = vmax.f32 %v5464_v1, 0.0  ;;  %v6422_v8 = vpop.f32.mrb[44].mxu0  ;;  %v2931_v14 = vld [vmem:[#allocation2 + $0x8] sm:$0xff] }
 0x600   : > { %2925 = vst.msk [vmem:[#allocation2 + $0x28] sm:$0xff] %vm587_vm4, %v2917_v6  ;;  %v5467_v9 = vadd.f32 -2.0, %v6422_v8  ;;  %v2895_v10 = vpop.f32.mrb[45].mxu0  ;;  %v2930_v11 = vld [vmem:[#allocation2] sm:$0xff] }
 0x601   : > { %2924 = vst.msk [vmem:[#allocation2 + $0x20] sm:$0xff] %vm587_vm4, %v2916_v7  ;;  %v5466_v13 = vadd.f32 -2.0, %v2895_v10  ;;  %6439 = vmatprep.mubr.msk.f32.mxu0 %vm587_vm4, %v2930_v11  ;;  %v3083_v43 = vld [vmem:[#allocation2 + $0x1] sm:$0xff]  ;;  %v7530_v10 = vmov 1966171168  }
 0x602   : > { %v2919_v18 = vmax.f32 %v5467_v9, 0.0  ;;  %6440 = vmatmul.mubr.msk.f32.vlgmr.msra.gmra.mrb[46].mxu0 %vm587_vm4, %v2931_v14  ;;  %v5508_v8 = vld [vmem:[%s7621_s20 + $0xc0] sm:$0xff]  ;;  %v5509_v9 = vld [vmem:[%s7621_s20 + $0xc8] sm:$0xff]  ;;  %v2742_v11 = vunpack.c.l.s4 %v7530_v10 }
 0x603   : > { %v2918_v19 = vmax.f32 %v5466_v13, 0.0  ;;  %7075 = vmatpush3.bf16.msra.mxu0 %v7072_v47  ;;  %v2933_v22 = vld [vmem:[#allocation2 + $0x18] sm:$0xff]  ;;  %v7104_v16 = vpack.c.bf16 %v5509_v9, %v5508_v8  ;;  %v3236_v24 = vld [vmem:[#allocation2 + $0x2] sm:$0xff] }
 0x604   : > { %2927 = vst.msk [vmem:[#allocation2 + $0x38] sm:$0x7f] %vm595_vm5, %v2919_v18  ;;  %v2932_v20 = vld [vmem:[#allocation2 + $0x10] sm:$0xff]  ;;  %7077 = vmatprep.subr.bf16.mxu0 %v7076_v12  ;;  %v5541_v8 = vld [vmem:[%s7621_s20 + $0x148] sm:$0xff] }
 0x605   : > { %2926 = vst.msk [vmem:[#allocation2 + $0x30] sm:$0xff] %vm587_vm4, %v2918_v19  ;;  %6442 = vmatprep.mubr.msk.f32.mxu0 %vm587_vm4, %v2932_v20  ;;  %v3084_v52 = vld [vmem:[#allocation2 + $0x9] sm:$0xff]  ;;  %v3085_v55 = vld [vmem:[#allocation2 + $0x11] sm:$0xff] }
 0x606   : > { %6443 = vmatmul.mubr.msk.f32.gmra.mrb[48].mxu0 %vm587_vm4, %v2933_v22  ;;  %v5510_v20 = vld [vmem:[%s7621_s20 + $0xd0] sm:$0xff]  ;;  %v2743_v22 = vunpack.c.0.s8 %v2742_v11  ;;  %v3695_v34 = vld [vmem:[#allocation2 + $0x5] sm:$0xff] }
 0x607   : > { %7079 = vmatpush3.bf16.msra.mxu0 %v7076_v12  ;;  %v2935_v32 = vld [vmem:[#allocation2 + $0x28] sm:$0xff]  ;;  %v3391_v61 = vld [vmem:[#allocation2 + $0x13] sm:$0xff] }
 0x608   : > { %v2934_v28 = vld [vmem:[#allocation2 + $0x20] sm:$0xff]  ;;  %7081 = vmatprep.subr.bf16.mxu0 %v7080_v21  ;;  %v3237_v33 = vld [vmem:[#allocation2 + $0xa] sm:$0xff]  ;;  %v8139_v36 = vsub.s32 %v2743_v22, %v8091_v17 }
 0x609   : > { %6445 = vmatprep.mubr.msk.f32.mxu0 %vm587_vm4, %v2934_v28  ;;  %v3086_v59 = vld [vmem:[#allocation2 + $0x19] sm:$0xff]  ;;  %v3087_v0 = vld [vmem:[#allocation2 + $0x21] sm:$0xff]  ;;  %v3696_v35 = vld [vmem:[#allocation2 + $0xd] sm:$0xff] }
 0x60a   : > { %6446 = vmatmul.mubr.msk.f32.gmra.mrb[50].mxu0 %vm587_vm4, %v2935_v32  ;;  %v3239_v41 = vld [vmem:[#allocation2 + $0x1a] sm:$0xff] }
 0x60b   : > { %7083 = vmatpush3.bf16.msra.mxu0 %v7080_v21  ;;  %v2937_v39 = vld [vmem:[#allocation2 + $0x38] sm:$0x3]  ;;  %v3396_v11 = vld [vmem:[#allocation2 + $0x3b] sm:$0x3] }
 0x60c   : > { %v2936_v37 = vld [vmem:[#allocation2 + $0x30] sm:$0xff]  ;;  %7085 = vmatprep.subr.bf16.mxu0 %v7084_v29  ;;  %v3090_v19 = vld [vmem:[#allocation2 + $0x39] sm:$0x3]  ;;  %v3545_v22 = vld [vmem:[#allocation2 + $0x1c] sm:$0xff] }
 0x60d   : > { %6448 = vmatprep.mubr.msk.f32.mxu0 %vm587_vm4, %v2936_v37  ;;  %v3088_v7 = vld [vmem:[#allocation2 + $0x29] sm:$0xff]  ;;  %v3089_v13 = vld [vmem:[#allocation2 + $0x31] sm:$0xff] }
 0x60e   : > { %6449 = vmatmul.mubr.msk.f32.gmra.mrb[52].mxu0 %vm587_vm4, %v2937_v39  ;;  %v5511_v21 = vld [vmem:[%s7621_s20 + $0xd8] sm:$0xff] }
 0x60f   : > { %7087 = vmatpush3.bf16.msra.mxu0 %v7084_v29  ;;  %6467 = vmatprep.mubr.msk.f32.mxu0 %vm587_vm4, %v3083_v43  ;;  %v7108_v29 = vpack.c.bf16 %v5511_v21, %v5510_v20  ;;  %v5515_v43 = vld [vmem:[%s7621_s20 + $0xf8] sm:$0xff] }
 0x610   : > { %v2711_v45 = vpop.f32.mrb[10].mxu1  ;;  %7089 = vmatprep.subr.bf16.mxu0 %v7088_v38  ;;  %v3242_v53 = vld [vmem:[#allocation2 + $0x32] sm:$0xff] }
 0x611   : > { %v7344_v46 = vadd.f32 %v2711_v45, %v2502_v42  ;;  %v2713_v47 = vpop.f32.mrb[11].mxu1  ;;  %v5514_v42 = vld [vmem:[%s7621_s20 + $0xf0] sm:$0xff]  ;;  %v3240_v45 = vld [vmem:[#allocation2 + $0x22] sm:$0xff] }
 0x612   : > { %v7346_v51 = vadd.f32 %v2713_v47, %v2503_v44  ;;  %6468 = vmatmul.mubr.msk.f32.vlgmr.msra.gmra.mrb[46].mxu0 %vm587_vm4, %v3084_v52  ;;  %v5525_v52 = vld [vmem:[%s7621_s20 + $0x108] sm:$0xff]  ;;  %v3395_v9 = vld [vmem:[#allocation2 + $0x33] sm:$0xff] }
 0x613   : > { %v2718_v54 = vmax.f32 %v7344_v46, 0.0  ;;  %6470 = vmatprep.mubr.msk.f32.mxu0 %vm587_vm4, %v3085_v55  ;;  %7091 = vmatpush3.bf16.msra.mxu0 %v7088_v38  ;;  %v3238_v38 = vld [vmem:[#allocation2 + $0x12] sm:$0xff]  ;;  %v7120_v48 = vpack.c.bf16 %v5525_v52, %v5524_v5 }
 0x614   : > { %v2719_v49 = vmax.f32 %v7346_v51, 0.0  ;;  %7093 = vmatprep.subr.bf16.mxu0 %v7092_v50  ;;  %v3241_v51 = vld [vmem:[#allocation2 + $0x2a] sm:$0xff]  ;;  %v3544_v20 = vld [vmem:[#allocation2 + $0x14] sm:$0xff] }
 0x615   : > { %v2721_v56 = vsel %vm2720_vm13, %v2718_v54, 0.0  ;;  %v3243_v54 = vld [vmem:[#allocation2 + $0x3a] sm:$0x3]  ;;  %v5526_v55 = vld [vmem:[%s7621_s20 + $0x110] sm:$0xff] }
 0x616   : > { %v2722_v58 = vrot.slane %v2721_v56, 4  ;;  %v2728_v3 = vsel %vm2720_vm13, %v2719_v49, 0.0  ;;  %6471 = vmatmul.mubr.msk.f32.gmra.mrb[48].mxu0 %vm587_vm4, %v3086_v59  ;;  %v5527_v49 = vld [vmem:[%s7621_s20 + $0x118] sm:$0xff]  ;;  %v5529_v59 = vld [vmem:[%s7621_s20 + $0x128] sm:$0xff] }
 0x617   : > { %v2729_v63 = vrot.slane %v2728_v3, 4  ;;  %6473 = vmatprep.mubr.msk.f32.mxu0 %vm587_vm4, %v3087_v0  ;;  %7095 = vmatpush3.bf16.msra.mxu0 %v7092_v50  ;;  %v7116_v50 = vpack.c.bf16 %v5515_v43, %v5514_v42  ;;  %v5530_v0 = vld [vmem:[%s7621_s20 + $0x130] sm:$0xff]  ;;  %v3702_v42 = vld [vmem:[#allocation2 + $0x3d] sm:$0x3]  ;;  %v2928_v43 = vld [vmem:[%s7753_s24] ss:$0 sm:$0xff] }
 0x618   : > { %v2723_v1 = vadd.f32 %v2722_v58, %v2721_v56  ;;  %7097 = vmatprep.subr.bf16.mxu0 %v7096_v57  ;;  %v3389_v56 = vld [vmem:[#allocation2 + $0x3] sm:$0xff]  ;;  %v3390_v58 = vld [vmem:[#allocation2 + $0xb] sm:$0xff] }
 0x619   : > { %v2730_v2 = vadd.f32 %v2729_v63, %v2728_v3  ;;  %v5528_v3 = vld [vmem:[%s7621_s20 + $0x120] sm:$0xff] }
 0x61a   : > { %v2724_v6 = vrot.slane %v2723_v1, 2  ;;  %6474 = vmatmul.mubr.msk.f32.gmra.mrb[50].mxu0 %vm587_vm4, %v3088_v7  ;;  %v7128_v62 = vpack.c.bf16 %v5529_v59, %v5528_v3  ;;  %v3392_v63 = vld [vmem:[#allocation2 + $0x1b] sm:$0xff] }
 0x61b   : > { %v2731_v12 = vrot.slane %v2730_v2, 2  ;;  %6476 = vmatprep.mubr.msk.f32.mxu0 %vm587_vm4, %v3089_v13  ;;  %7099 = vmatpush3.bf16.msra.mxu0 %v7096_v57  ;;  %v7124_v57 = vpack.c.bf16 %v5527_v49, %v5526_v55  ;;  %v5540_v7 = vld [vmem:[%s7621_s20 + $0x140] sm:$0xff]  ;;  %v5543_v13 = vld [vmem:[%s7621_s20 + $0x158] sm:$0xff] }
 0x61c   : > { %v2725_v14 = vadd.f32 %v2724_v6, %v2723_v1  ;;  %7101 = vmatprep.subr.bf16.mxu0 %v7100_v4  ;;  %v5531_v1 = vld [vmem:[%s7621_s20 + $0x138] sm:$0xff]  ;;  %v3394_v6 = vld [vmem:[#allocation2 + $0x2b] sm:$0xff]  ;;  %v7136_v10 = vpack.c.bf16 %v5541_v8, %v5540_v7 }
 0x61d   : > { %v2732_v15 = vadd.f32 %v2731_v12, %v2730_v2  ;;  %v3393_v2 = vld [vmem:[#allocation2 + $0x23] sm:$0xff]  ;;  %v5542_v12 = vld [vmem:[%s7621_s20 + $0x150] sm:$0xff] }
 0x61e   : > { %v2726_v18 = vrot.slane %v2725_v14, 1  ;;  %6477 = vmatmul.mubr.msk.f32.gmra.mrb[52].mxu0 %vm587_vm4, %v3090_v19  ;;  %v5545_v19 = vld [vmem:[%s7621_s20 + $0x168] sm:$0xff] }
 0x61f   : > { %v2733_v23 = vrot.slane %v2732_v15, 1  ;;  %7103 = vmatpush3.bf16.msra.mxu0 %v7100_v4  ;;  %6495 = vmatprep.mubr.msk.f32.mxu0 %vm587_vm4, %v3236_v24  ;;  %v7132_v4 = vpack.c.bf16 %v5531_v1, %v5530_v0  ;;  %v5547_v24 = vld [vmem:[%s7621_s20 + $0x178] sm:$0xff] }
 0x620   : > { %v2727_v26 = vadd.f32 %v2726_v18, %v2725_v14  ;;  %7105 = vmatprep.subr.bf16.mxu0 %v7104_v16  ;;  %v3542_v14 = vld [vmem:[#allocation2 + $0x4] sm:$0xff] }
 0x621   : > { %v2734_v28 = vadd.f32 %v2733_v23, %v2732_v15  ;;  %v7140_v15 = vpack.c.bf16 %v5543_v13, %v5542_v12  ;;  %v5544_v18 = vld [vmem:[%s7621_s20 + $0x160] sm:$0xff]  ;;  %v5546_v23 = vld [vmem:[%s7621_s20 + $0x170] sm:$0xff]  ;;  %v3857_v12 = vld [vmem:[%s8500_s6 + $0x8] sm:$0xff] }
 0x622   : > { %v2736_v32 = vmul.f32 0.33333334, %v2727_v26  ;;  %6496 = vmatmul.mubr.msk.f32.vlgmr.msra.gmra.mrb[46].mxu0 %vm587_vm4, %v3237_v33  ;;  %v7144_v21 = vpack.c.bf16 %v5545_v19, %v5544_v18  ;;  %v3546_v26 = vld [vmem:[#allocation2 + $0x24] sm:$0xff]  ;;  %v3549_v33 = vld [vmem:[#allocation2 + $0x3c] sm:$0x3] }
 0x623   : > { %v2737_v37 = vmul.f32 0.33333334, %v2734_v28  ;;  %6498 = vmatprep.mubr.msk.f32.mxu0 %vm587_vm4, %v3238_v38  ;;  %7107 = vmatpush3.bf16.msra.mxu0 %v7104_v16  ;;  %v3543_v16 = vld [vmem:[#allocation2 + $0xc] sm:$0xff]  ;;  %v7148_v28 = vpack.c.bf16 %v5547_v24, %v5546_v23  ;;  %v3698_v38 = vld [vmem:[#allocation2 + $0x1d] sm:$0xff] }
 0x624   : > { %7109 = vmatprep.subr.bf16.mxu0 %v7108_v29  ;;  %v5561_v13 = vld [vmem:[%s8500_s6 + $0x20] sm:$0xff]  ;;  %v5568_v18 = vld [vmem:[%s8500_s6 + $0x38] sm:$0xff] }
 0x625   : > { %v2740_v39 = vcombine.low %v2736_v32, %v2737_v37  ;;  %v3548_v32 = vld [vmem:[#allocation2 + $0x34] sm:$0xff]  ;;  %v4157_v19 = vld [vmem:[%s7837_s13] sm:$0xff] }
 0x626   : > { %6499 = vmatmul.mubr.msk.f32.gmra.mrb[48].mxu0 %vm587_vm4, %v3239_v41  ;;  %v3697_v37 = vld [vmem:[#allocation2 + $0x15] sm:$0xff] }
 0x627   : > { %v2747_v44 = vrot.slane %v2740_v39, %v8139_v36  ;;  %6501 = vmatprep.mubr.msk.f32.mxu0 %vm587_vm4, %v3240_v45  ;;  %7111 = vmatpush3.bf16.msra.mxu0 %v7108_v29  ;;  %v3547_v29 = vld [vmem:[#allocation2 + $0x2c] sm:$0xff]  ;;  %v3701_v41 = vld [vmem:[#allocation2 + $0x35] sm:$0xff] }
 0x628   : > { %7113 = vmatprep.subr.bf16.mxu0 %v7112_v40  ;;  %v3699_v39 = vld [vmem:[#allocation2 + $0x25] sm:$0xff]  ;;  %v4160_v23 = vld [vmem:[%s7837_s13 + $0x18] sm:$0xff] }
 0x629   : > { %v2754_v47 = vrot.slane %v2747_v44, %v8139_v36 }
 0x62a   : > { %6502 = vmatmul.mubr.msk.f32.gmra.mrb[50].mxu0 %vm587_vm4, %v3241_v51 }
 0x62b   : > { %2760 = vst.msk [vmem:[%s8156_s15] ss:$2 sm:$0x3] %vm8149_vm14, %v2754_v47  ;;  %6504 = vmatprep.mubr.msk.f32.mxu0 %vm587_vm4, %v3242_v53  ;;  %7115 = vmatpush3.bf16.msra.mxu0 %v7112_v40  ;;  %v3700_v40 = vld [vmem:[#allocation2 + $0x2d] sm:$0xff] }
 0x62c   : > { %7117 = vmatprep.subr.bf16.mxu0 %v7116_v50 }
 0x62e   : > { %6505 = vmatmul.mubr.msk.f32.gmra.mrb[52].mxu0 %vm587_vm4, %v3243_v54 }
 0x62f   : > { %7119 = vmatpush3.bf16.msra.mxu0 %v7116_v50  ;;  %6523 = vmatprep.mubr.msk.f32.mxu0 %vm587_vm4, %v3389_v56 }
 0x630   : > { %7121 = vmatprep.subr.bf16.mxu0 %v7120_v48 }
 0x632   : > { %6524 = vmatmul.mubr.msk.f32.vlgmr.msra.gmra.mrb[46].mxu0 %vm587_vm4, %v3390_v58 }
 0x633   : > { %6526 = vmatprep.mubr.msk.f32.mxu0 %vm587_vm4, %v3391_v61  ;;  %7123 = vmatpush3.bf16.msra.mxu0 %v7120_v48 }
 0x634   : > { %7125 = vmatprep.subr.bf16.mxu0 %v7124_v57 }
 0x636   : > { %6527 = vmatmul.mubr.msk.f32.gmra.mrb[48].mxu0 %vm587_vm4, %v3392_v63 }
 0x637   : > { %6529 = vmatprep.mubr.msk.f32.mxu0 %vm587_vm4, %v3393_v2  ;;  %7127 = vmatpush3.bf16.msra.mxu0 %v7124_v57 }
 0x638   : > { %7129 = vmatprep.subr.bf16.mxu0 %v7128_v62 }
 0x63a   : > { %6530 = vmatmul.mubr.msk.f32.gmra.mrb[50].mxu0 %vm587_vm4, %v3394_v6 }
 0x63b   : > { %6532 = vmatprep.mubr.msk.f32.mxu0 %vm587_vm4, %v3395_v9  ;;  %7131 = vmatpush3.bf16.msra.mxu0 %v7128_v62 }
 0x63c   : > { %7133 = vmatprep.subr.bf16.mxu0 %v7132_v4 }
 0x63e   : > { %6533 = vmatmul.mubr.msk.f32.gmra.mrb[52].mxu0 %vm587_vm4, %v3396_v11  ;;  %v5560_v11 = vld [vmem:[%s8500_s6 + $0x18] sm:$0xff] }
 0x63f   : > { %7135 = vmatpush3.bf16.msra.mxu0 %v7132_v4  ;;  %6551 = vmatprep.mubr.msk.f32.mxu0 %vm587_vm4, %v3542_v14  ;;  %v3858_v14 = vld [vmem:[%s8500_s6 + $0x10] sm:$0x7] }
 0x640   : > { %7137 = vmatprep.subr.bf16.mxu0 %v7136_v10 }
 0x642   : > { %6552 = vmatmul.mubr.msk.f32.vlgmr.msra.gmra.mrb[46].mxu0 %vm587_vm4, %v3543_v16  ;;  %v5567_v16 = vld [vmem:[%s8500_s6 + $0x30] sm:$0xff] }
 0x643   : > { %6554 = vmatprep.mubr.msk.f32.mxu0 %vm587_vm4, %v3544_v20  ;;  %7139 = vmatpush3.bf16.msra.mxu0 %v7136_v10  ;;  %v3856_v10 = vld [vmem:[%s8500_s6] sm:$0xff]  ;;  %v4158_v20 = vld [vmem:[%s7837_s13 + $0x8] sm:$0xff] }
 0x644   : > { %7141 = vmatprep.subr.bf16.mxu0 %v7140_v15 }
 0x646   : > { %6555 = vmatmul.mubr.msk.f32.gmra.mrb[48].mxu0 %vm587_vm4, %v3545_v22  ;;  %v4159_v22 = vld [vmem:[%s7837_s13 + $0x10] sm:$0xff] }
 0x647   : > { %6557 = vmatprep.mubr.msk.f32.mxu0 %vm587_vm4, %v3546_v26  ;;  %7143 = vmatpush3.bf16.msra.mxu0 %v7140_v15  ;;  %v5562_v15 = vld [vmem:[%s8500_s6 + $0x28] sm:$0x7]  ;;  %v7195_v24 = vpack.c.bf16 %v4160_v23, %v4159_v22  ;;  %v4161_v26 = vld [vmem:[%s7837_s13 + $0x20] sm:$0xff] }
 0x648   : > { %7145 = vmatprep.subr.bf16.mxu0 %v7144_v21  ;;  %v5589_v22 = vld [vmem:[%s7837_s13 + $0x88] sm:$0xff] }
 0x64a   : > { %6558 = vmatmul.mubr.msk.f32.gmra.mrb[50].mxu0 %vm587_vm4, %v3547_v29 }
 0x64b   : > { %6560 = vmatprep.mubr.msk.f32.mxu0 %vm587_vm4, %v3548_v32  ;;  %7147 = vmatpush3.bf16.msra.mxu0 %v7144_v21  ;;  %v7192_v21 = vpack.c.bf16 %v4158_v20, %v4157_v19  ;;  %v4163_v32 = vld [vmem:[%s7837_s13 + $0x30] sm:$0xff] }
 0x64c   : > { %7149 = vmatprep.subr.bf16.mxu0 %v7148_v28 }
 0x64e   : > { %6561 = vmatmul.mubr.msk.f32.gmra.mrb[52].mxu0 %vm587_vm4, %v3549_v33  ;;  %v4164_v33 = vld [vmem:[%s7837_s13 + $0x38] sm:$0xff] }
 0x64f   : > { %7151 = vmatpush3.bf16.msra.mxu0 %v7148_v28  ;;  %6579 = vmatprep.mubr.msk.f32.mxu0 %vm587_vm4, %v3695_v34  ;;  %v4162_v28 = vld [vmem:[%s7837_s13 + $0x28] sm:$0xff]  ;;  %v7201_v34 = vpack.c.bf16 %v4164_v33, %v4163_v32  ;;  %v5592_v32 = vld [vmem:[%s7837_s13 + $0xa0] sm:$0xff] }
 0x650   : > { %7165 = vmatprep.subr.bf16.mxu0 %v7527_v30  ;;  %v7198_v29 = vpack.c.bf16 %v4162_v28, %v4161_v26  ;;  %v5591_v26 = vld [vmem:[%s7837_s13 + $0x98] sm:$0xff]  ;;  %v5593_v33 = vld [vmem:[%s7837_s13 + $0xa8] sm:$0xff] }
 0x652   : > { %6580 = vmatmul.mubr.msk.f32.vlgmr.msra.gmra.mrb[46].mxu0 %vm587_vm4, %v3696_v35 }
 0x653   : > { %6582 = vmatprep.mubr.msk.f32.mxu0 %vm587_vm4, %v3697_v37 }
 0x656   : > { %6583 = vmatmul.mubr.msk.f32.gmra.mrb[48].mxu0 %vm587_vm4, %v3698_v38 }
 0x657   : > { %6585 = vmatprep.mubr.msk.f32.mxu0 %vm587_vm4, %v3699_v39 }
 0x65a   : > { %6586 = vmatmul.mubr.msk.f32.gmra.mrb[50].mxu0 %vm587_vm4, %v3700_v40 }
 0x65b   : > { %6588 = vmatprep.mubr.msk.f32.mxu0 %vm587_vm4, %v3701_v41 }
 0x65e   : > { %6589 = vmatmul.mubr.msk.f32.gmra.mrb[52].mxu0 %vm587_vm4, %v3702_v42 }
 0x65f   : > { %6632 = vmatprep.mubr.msk.f32.mxu0 %vm7528_vm6, %v7529_v31 }
 0x725   : > { %v6581_v44 = vpop.f32.mrb[46].mxu0 }
 0x726   : > { %v7347_v45 = vadd.f32 %v6581_v44, %v2928_v43  ;;  %v3801_v47 = vpop.f32.mrb[47].mxu0 }
 0x727   : > { %v7348_v50 = vadd.f32 %v3801_v47, %v2928_v43 }
 0x728   : > { %v3849_v51 = vmax.f32 %v7347_v45, 0.0 }
 0x729   : > { %v3848_v5 = vmax.f32 %v7348_v50, 0.0  ;;  %v6584_v52 = vpop.f32.mrb[48].mxu0 }
 0x72a   : > { %v7349_v53 = vadd.f32 %v6584_v52, %v2928_v43  ;;  %v3811_v48 = vpop.f32.mrb[49].mxu0 }
 0x72b   : > { %v7153_v54 = vpack.c.bf16 %v3849_v51, %v3848_v5  ;;  %v7350_v55 = vadd.f32 %v3811_v48, %v2928_v43  ;;  %v4141_v48 = vld [vmem:[%s7753_s24 + $0x1] ss:$0 sm:$0xff] }
 0x72c   : > { %v3851_v49 = vmax.f32 %v7349_v53, 0.0 }
 0x72d   : > { %v3850_v56 = vmax.f32 %v7350_v55, 0.0  ;;  %v6587_v57 = vpop.f32.mrb[50].mxu0  ;;  %7154 = vmatpush3.bf16.msra.mxu1 %v7153_v54  ;;  %7167 = vmatpush3.bf16.msra.mxu0 %v7153_v54 }
 0x72e   : > { %v7351_v58 = vadd.f32 %v6587_v57, %v2928_v43  ;;  %v3821_v3 = vpop.f32.mrb[51].mxu0  ;;  %7155 = vmatprep.subr.bf16.mxu1 %v7527_v30  ;;  %7168 = vmatprep.subr.bf16.mxu0 %v7527_v30 }
 0x72f   : > { %v7156_v59 = vpack.c.bf16 %v3851_v49, %v3850_v56  ;;  %v7352_v61 = vadd.f32 %v3821_v3, %v2928_v43  ;;  %v4145_v49 = vld [vmem:[%s7753_s24 + $0x2] ss:$0 sm:$0xff] }
 0x730   : > { %v3853_v62 = vmax.f32 %v7351_v58, 0.0 }
 0x731   : > { %v3852_v63 = vmax.f32 %v7352_v61, 0.0  ;;  %v6590_v0 = vpop.f32.mrb[52].mxu0  ;;  %7157 = vmatpush3.bf16.msra.mxu1 %v7156_v59  ;;  %7170 = vmatpush3.bf16.msra.mxu0 %v7156_v59 }
 0x732   : > { %v7353_v1 = vadd.f32 %v6590_v0, %v2928_v43  ;;  %v3831_v2 = vpop.f32.mrb[53].mxu0  ;;  %7158 = vmatprep.subr.bf16.mxu1 %v7527_v30  ;;  %7171 = vmatprep.subr.bf16.mxu0 %v7527_v30 }
 0x733   : > { %v7159_v4 = vpack.c.bf16 %v3853_v62, %v3852_v63  ;;  %v7354_v6 = vadd.f32 %v3831_v2, %v2928_v43  ;;  %v5577_v2 = vld [vmem:[%s7837_s13 + $0x40] sm:$0xff] }
 0x734   : > { %v3855_v7 = vmax.f32 %v7353_v1, 0.0 }
 0x735   : > { %v3854_v8 = vmax.f32 %v7354_v6, 0.0  ;;  %7160 = vmatpush3.bf16.msra.mxu1 %v7159_v4  ;;  %7173 = vmatpush3.bf16.msra.mxu0 %v7159_v4 }
 0x736   : > { %7161 = vmatprep.subr.bf16.mxu1 %v7527_v30  ;;  %7174 = vmatprep.subr.bf16.mxu0 %v7527_v30 }
 0x737   : > { %v7162_v9 = vpack.c.bf16 %v3855_v7, %v3854_v8 }
 0x739   : > { %7164 = vmatpush3.bf16.msk.msra.mxu1 %vm7759_vm8, %v7162_v9  ;;  %7177 = vmatpush3.bf16.msk.msra.mxu0 %vm7759_vm8, %v7162_v9 }
 0x73a   : > { %7178 = vmatprep.subr.bf16.mxu1 %v7527_v30  ;;  %7191 = vmatprep.subr.bf16.mxu0 %v7527_v30 }
 0x73c   : > { %6608 = vmatmul.mubr.msk.f32.vlgmr.msra.gmra.mrb[12].mxu1 %vm1533_vm9, %v3856_v10  ;;  %6633 = vmatmul.mubr.msk.f32.vlgmr.msra.gmra.mrb[54].mxu0 %vm1533_vm9, %v5560_v11  ;;  %v5580_v10 = vld [vmem:[%s7837_s13 + $0x58] sm:$0xff] }
 0x73d   : > { %7180 = vmatpush3.bf16.msra.mxu1 %v7153_v54  ;;  %6610 = vmatprep.mubr.msk.f32.mxu1 %vm7528_vm6, %v7529_v31 }
 0x73e   : > { %7181 = vmatprep.subr.bf16.mxu1 %v7527_v30  ;;  %6635 = vmatprep.mubr.msk.f32.mxu0 %vm7528_vm6, %v7529_v31 }
 0x73f   : > { %7193 = vmatpush3.bf16.msra.mxu0 %v7192_v21  ;;  %v5588_v21 = vld [vmem:[%s7837_s13 + $0x80] sm:$0xff] }
 0x740   : > { %6611 = vmatmul.mubr.msk.f32.gmra.mrb[14].mxu1 %vm1533_vm9, %v3857_v12  ;;  %6636 = vmatmul.mubr.msk.f32.gmra.mrb[56].mxu0 %vm1533_vm9, %v5561_v13  ;;  %v5581_v13 = vld [vmem:[%s7837_s13 + $0x60] sm:$0xff]  ;;  %v7216_v23 = vpack.c.bf16 %v5589_v22, %v5588_v21  ;;  %v4730_v22 = vld [vmem:[%s7912_s18 + $0x88] sm:$0xff] }
 0x741   : > { %7183 = vmatpush3.bf16.msra.mxu1 %v7156_v59  ;;  %6613 = vmatprep.mubr.msk.f32.mxu1 %vm7528_vm6, %v7529_v31 }
 0x742   : > { %7184 = vmatprep.subr.bf16.mxu1 %v7527_v30  ;;  %6638 = vmatprep.mubr.msk.f32.mxu0 %vm7528_vm6, %v7529_v31 }
 0x743   : > { %7194 = vmatprep.subr.bf16.mxu0 %v7527_v30 }
 0x744   : > { %6614 = vmatmul.mubr.msk.f32.gmra.mrb[16].mxu1 %vm1533_vm9, %v3858_v14  ;;  %6639 = vmatmul.mubr.msk.f32.gmra.mrb[58].mxu0 %vm1533_vm9, %v5562_v15  ;;  %v5582_v14 = vld [vmem:[%s7837_s13 + $0x68] sm:$0xff] }
 0x745   : > { %7186 = vmatpush3.bf16.msra.mxu1 %v7159_v4  ;;  %6657 = vmatprep.mubr.msk.f32.mxu1 %vm7528_vm6, %v7529_v31  ;;  %v5578_v4 = vld [vmem:[%s7837_s13 + $0x48] sm:$0xff] }
 0x746   : > { %7187 = vmatprep.subr.bf16.mxu1 %v7527_v30  ;;  %6682 = vmatprep.mubr.msk.f32.mxu0 %vm7528_vm6, %v7529_v31  ;;  %v7204_v7 = vpack.c.bf16 %v5578_v4, %v5577_v2 }
 0x747   : > { %7196 = vmatpush3.bf16.msra.mxu0 %v7195_v24  ;;  %v5590_v24 = vld [vmem:[%s7837_s13 + $0x90] sm:$0xff] }
 0x748   : > { %7197 = vmatprep.subr.bf16.mxu0 %v7527_v30 }
 0x749   : > { %7190 = vmatpush3.bf16.msk.msra.mxu1 %vm7759_vm8, %v7162_v9  ;;  %v5579_v9 = vld [vmem:[%s7837_s13 + $0x50] sm:$0xff] }
 0x74a   : > { %7230 = vmatprep.subr.bf16.mxu1 %v7527_v30  ;;  %v7207_v12 = vpack.c.bf16 %v5580_v10, %v5579_v9  ;;  %v4722_v9 = vld [vmem:[%s7912_s18 + $0x48] sm:$0xff]  ;;  %v4724_v10 = vld [vmem:[%s7912_s18 + $0x58] sm:$0xff] }
 0x74b   : > { %7199 = vmatpush3.bf16.msra.mxu0 %v7198_v29  ;;  %v7219_v29 = vpack.c.bf16 %v5591_v26, %v5590_v24  ;;  %v4729_v24 = vld [vmem:[%s7912_s18 + $0x80] sm:$0xff] }
 0x74c   : > { %6658 = vmatmul.mubr.msk.f32.vlgmr.msra.gmra.mrb[18].mxu1 %vm1533_vm9, %v5567_v16  ;;  %7200 = vmatprep.subr.bf16.mxu0 %v7527_v30  ;;  %v7210_v16 = vpack.c.bf16 %v5582_v14, %v5581_v13  ;;  %v4721_v13 = vld [vmem:[%s7912_s18 + $0x40] sm:$0xff]  ;;  %v4723_v14 = vld [vmem:[%s7912_s18 + $0x50] sm:$0xff] }
 0x74d   : > { %6660 = vmatprep.mubr.msk.f32.mxu1 %vm7528_vm6, %v7529_v31 }
 0x74f   : > { %7202 = vmatpush3.bf16.msra.mxu0 %v7201_v34 }
 0x750   : > { %6661 = vmatmul.mubr.msk.f32.gmra.mrb[20].mxu1 %vm1533_vm9, %v5568_v18  ;;  %7203 = vmatprep.subr.bf16.mxu0 %v7527_v30  ;;  %v5583_v18 = vld [vmem:[%s7837_s13 + $0x70] sm:$0xff] }
 0x751   : > { %6663 = vmatprep.mubr.msk.f32.mxu1 %vm7528_vm6, %v7529_v31 }
 0x754   : > { %6664 = vmatmul.mubr.msk.f32.gmra.mrb[22].mxu1 %vm1533_vm9, %v5569_v60  ;;  %v5584_v60 = vld [vmem:[%s7837_s13 + $0x78] sm:$0xff] }
 0x755   : > { %6756 = vmatprep.mubr.msk.f32.mxu1 %vm7528_vm6, %v7529_v31  ;;  %v7213_v20 = vpack.c.bf16 %v5584_v60, %v5583_v18  ;;  %v7246_v18 = vpack.c.bf16 %v4723_v14, %v4721_v13  ;;  %v5619_v13 = vld [vmem:[%s7912_s18 + $0x158] sm:$0xff] }
 0x80f   : > { %v3937_v35 = vpop.f32.mrb[12].mxu1  ;;  %v4029_v37 = vpop.f32.mrb[54].mxu0 }
 0x810   : > { %v6609_v38 = vpop.f32.mrb[13].mxu1  ;;  %v4043_v39 = vmax.f32 %v3937_v35, %v4029_v37  ;;  %v6634_v40 = vpop.f32.mrb[55].mxu0  ;;  %v7222_v35 = vpack.c.bf16 %v5593_v33, %v5592_v32  ;;  %v5594_v37 = vld [vmem:[%s7837_s13 + $0xb0] sm:$0xff]  ;;  %v4734_v32 = vld [vmem:[%s7912_s18 + $0xa8] sm:$0xff]  ;;  %v4736_v33 = vld [vmem:[%s7912_s18 + $0xb8] sm:$0xff] }
 0x811   : > { %v5595_v38 = vld [vmem:[%s7837_s13 + $0xb8] sm:$0xff] }
 0x812   : > { %v7225_v40 = vpack.c.bf16 %v5595_v38, %v5594_v37  ;;  %v4735_v37 = vld [vmem:[%s7912_s18 + $0xb0] sm:$0xff]  ;;  %v4738_v38 = vld [vmem:[%s7912_s18 + $0xc8] sm:$0xff] }
 0x813   : > { %v3942_v41 = vpop.f32.mrb[14].mxu1  ;;  %v4034_v42 = vpop.f32.mrb[56].mxu0 }
 0x814   : > { %v6612_v43 = vpop.f32.mrb[15].mxu1  ;;  %v4044_v44 = vmax.f32 %v3942_v41, %v4034_v42  ;;  %v6637_v45 = vpop.f32.mrb[57].mxu0 }
 0x817   : > { %v3947_v47 = vpop.f32.mrb[16].mxu1  ;;  %v4039_v50 = vpop.f32.mrb[58].mxu0 }
 0x818   : > { %v6615_v51 = vpop.f32.mrb[17].mxu1  ;;  %v4045_v5 = vmax.f32 %v3947_v47, %v4039_v50  ;;  %v6640_v52 = vpop.f32.mrb[59].mxu0 }
 0x81f   : > { %v4124_v53 = vpop.f32.mrb[18].mxu1 }
 0x820   : > { %v4138_v54 = vmax.f32 %v4043_v39, %v4124_v53  ;;  %v6659_v55 = vpop.f32.mrb[19].mxu1 }
 0x822   : > { %v4142_v56 = vmul.f32 %v4141_v48, %v4138_v54 }
 0x823   : > { %v4129_v57 = vpop.f32.mrb[20].mxu1 }
 0x824   : > { %v4146_v58 = vadd.f32 %v4145_v49, %v4142_v56  ;;  %v4139_v3 = vmax.f32 %v4044_v44, %v4129_v57  ;;  %v6662_v59 = vpop.f32.mrb[21].mxu1  ;;  %v4152_v44 = vld [vmem:[%s7753_s24 + $0x3] ss:$0 sm:$0xff] }
 0x825   : > { %v4714_v59 = vld [vmem:[%s7912_s18 + $0x8] sm:$0xff] }
 0x826   : > { %4149 = vst.msk [vmem:[#allocation3] sm:$0xff] %vm587_vm4, %v4146_v58  ;;  %v4143_v61 = vmul.f32 %v4141_v48, %v4139_v3  ;;  %v5601_v58 = vld [vmem:[%s8501_s7 + $0x8] sm:$0x1f]  ;;  %v4466_v3 = vld [vmem:[%s8501_s7] sm:$0x1f] }
 0x827   : > { %v4134_v62 = vpop.f32.mrb[22].mxu1 }
 0x828   : > { %v4147_v63 = vadd.f32 %v4145_v49, %v4143_v61  ;;  %v4140_v0 = vmax.f32 %v4045_v5, %v4134_v62  ;;  %v6665_v1 = vpop.f32.mrb[23].mxu1  ;;  %v4716_v61 = vld [vmem:[%s7912_s18 + $0x18] sm:$0xff]  ;;  %v4713_v62 = vld [vmem:[%s7912_s18] sm:$0xff] }
 0x829   : > { %v4720_v1 = vld [vmem:[%s7912_s18 + $0x38] sm:$0xff]  ;;  %v7236_v2 = vpack.c.bf16 %v4716_v61, %v4714_v59  ;;  %v4693_v59 = vld [vmem:[%s7753_s24 + $0x4] ss:$0 sm:$0xff] }
 0x82a   : > { %4150 = vst.msk [vmem:[#allocation3 + $0x8] sm:$0xff] %vm587_vm4, %v4147_v63  ;;  %v4144_v6 = vmul.f32 %v4141_v48, %v4140_v0  ;;  %v4715_v63 = vld [vmem:[%s7912_s18 + $0x10] sm:$0xff]  ;;  %v4718_v0 = vld [vmem:[%s7912_s18 + $0x28] sm:$0xff] }
 0x82b   : > { %v7238_v4 = vpack.c.bf16 %v4715_v63, %v4713_v62  ;;  %v4695_v63 = vld [vmem:[%s7753_s24 + $0x5] ss:$0 sm:$0xff] }
 0x82c   : > { %v4148_v8 = vadd.f32 %v4145_v49, %v4144_v6  ;;  %v7240_v6 = vpack.c.bf16 %v4720_v1, %v4718_v0 }
 0x82d   : > { %v4154_v11 = vld [vmem:[#allocation3] sm:$0xff] }
 0x82e   : > { %4151 = vst.msk [vmem:[#allocation3 + $0x10] sm:$0x7] %vm1829_vm10, %v4148_v8  ;;  %6683 = vmatmul.mubr.msk.f32.vlgmr.msra.gmra.mrb[60].mxu0 %vm587_vm4, %v4154_v11  ;;  %v4719_v8 = vld [vmem:[%s7912_s18 + $0x30] sm:$0xff] }
 0x82f   : > { %7205 = vmatpush3.bf16.msra.mxu0 %v7204_v7  ;;  %6685 = vmatprep.mubr.msk.f32.mxu0 %vm7528_vm6, %v7529_v31  ;;  %v4717_v7 = vld [vmem:[%s7912_s18 + $0x20] sm:$0xff] }
 0x830   : > { %7206 = vmatprep.subr.bf16.mxu0 %v7527_v30  ;;  %v7242_v11 = vpack.c.bf16 %v4719_v8, %v4717_v7 }
 0x831   : > { %v4155_v15 = vld [vmem:[#allocation3 + $0x8] sm:$0xff] }
 0x832   : > { %6686 = vmatmul.mubr.msk.f32.gmra.mrb[62].mxu0 %vm587_vm4, %v4155_v15  ;;  %v4257_v28 = vld [vmem:[#allocation3 + $0x1] sm:$0xff] }
 0x833   : > { %7208 = vmatpush3.bf16.msra.mxu0 %v7207_v12  ;;  %6688 = vmatprep.mubr.msk.f32.mxu0 %vm7528_vm6, %v7529_v31  ;;  %v4360_v41 = vld [vmem:[#allocation3 + $0x2] sm:$0xff]  ;;  %v7244_v12 = vpack.c.bf16 %v4724_v10, %v4722_v9  ;;  %v5614_v10 = vld [vmem:[%s7912_s18 + $0x130] sm:$0xff] }
 0x834   : > { %7209 = vmatprep.subr.bf16.mxu0 %v7527_v30  ;;  %v4726_v15 = vld [vmem:[%s7912_s18 + $0x68] sm:$0xff]  ;;  %v5612_v9 = vld [vmem:[%s7912_s18 + $0x120] sm:$0xff] }
 0x835   : > { %v4156_v19 = vld [vmem:[#allocation3 + $0x10] sm:$0x1]  ;;  %v4259_v39 = vld [vmem:[#allocation3 + $0x11] sm:$0x1]  ;;  %v4362_v43 = vld [vmem:[#allocation3 + $0x12] sm:$0x1]  ;;  %v7274_v14 = vpack.c.bf16 %v5614_v10, %v5612_v9 }
 0x836   : > { %6689 = vmatmul.mubr.msk.f32.gmra.mrb[64].mxu0 %vm587_vm4, %v4156_v19  ;;  %v4258_v34 = vld [vmem:[#allocation3 + $0x9] sm:$0xff]  ;;  %v4725_v19 = vld [vmem:[%s7912_s18 + $0x60] sm:$0xff]  ;;  %v5655_v10 = vld [vmem:[%s7912_s18 + $0x278] sm:$0xff] }
 0x837   : > { %7211 = vmatpush3.bf16.msra.mxu0 %v7210_v16  ;;  %6707 = vmatprep.mubr.msk.f32.mxu0 %vm7528_vm6, %v7529_v31  ;;  %v4361_v42 = vld [vmem:[#allocation3 + $0xa] sm:$0xff]  ;;  %v4728_v16 = vld [vmem:[%s7912_s18 + $0x78] sm:$0xff] }
 0x838   : > { %7212 = vmatprep.subr.bf16.mxu0 %v7527_v30  ;;  %v7248_v60 = vpack.c.bf16 %v4728_v16, %v4726_v15  ;;  %v5616_v16 = vld [vmem:[%s7912_s18 + $0x140] sm:$0xff]  ;;  %v5653_v9 = vld [vmem:[%s7912_s18 + $0x268] sm:$0xff] }
 0x83b   : > { %7214 = vmatpush3.bf16.msra.mxu0 %v7213_v20  ;;  %v4727_v20 = vld [vmem:[%s7912_s18 + $0x70] sm:$0xff] }
 0x83c   : > { %7215 = vmatprep.subr.bf16.mxu0 %v7527_v30  ;;  %v7250_v21 = vpack.c.bf16 %v4727_v20, %v4725_v19  ;;  %v5623_v19 = vld [vmem:[%s7912_s18 + $0x178] sm:$0xff] }
 0x83e   : > { %6708 = vmatmul.mubr.msk.f32.vlgmr.msra.gmra.mrb[60].mxu0 %vm587_vm4, %v4257_v28  ;;  %v4731_v28 = vld [vmem:[%s7912_s18 + $0x90] sm:$0xff] }
 0x83f   : > { %7217 = vmatpush3.bf16.msra.mxu0 %v7216_v23  ;;  %6710 = vmatprep.mubr.msk.f32.mxu0 %vm7528_vm6, %v7529_v31  ;;  %v4732_v23 = vld [vmem:[%s7912_s18 + $0x98] sm:$0xff] }
 0x840   : > { %7218 = vmatprep.subr.bf16.mxu0 %v7527_v30  ;;  %v7252_v26 = vpack.c.bf16 %v4732_v23, %v4730_v22  ;;  %v5620_v22 = vld [vmem:[%s7912_s18 + $0x160] sm:$0xff]  ;;  %v5622_v23 = vld [vmem:[%s7912_s18 + $0x170] sm:$0xff] }
 0x842   : > { %6711 = vmatmul.mubr.msk.f32.gmra.mrb[62].mxu0 %vm587_vm4, %v4258_v34  ;;  %v7256_v34 = vpack.c.bf16 %v4736_v33, %v4734_v32  ;;  %v5624_v32 = vld [vmem:[%s7912_s18 + $0x180] sm:$0xff]  ;;  %v5626_v33 = vld [vmem:[%s7912_s18 + $0x190] sm:$0xff] }
 0x843   : > { %7220 = vmatpush3.bf16.msra.mxu0 %v7219_v29  ;;  %6713 = vmatprep.mubr.msk.f32.mxu0 %vm7528_vm6, %v7529_v31  ;;  %v7254_v29 = vpack.c.bf16 %v4731_v28, %v4729_v24  ;;  %v5625_v24 = vld [vmem:[%s7912_s18 + $0x188] sm:$0xff]  ;;  %v7282_v28 = vpack.c.bf16 %v5622_v23, %v5620_v22 }
 0x844   : > { %7221 = vmatprep.subr.bf16.mxu0 %v7527_v30 }
 0x846   : > { %6714 = vmatmul.mubr.msk.f32.gmra.mrb[64].mxu0 %vm587_vm4, %v4259_v39 }
 0x847   : > { %7223 = vmatpush3.bf16.msra.mxu0 %v7222_v35  ;;  %6732 = vmatprep.mubr.msk.f32.mxu0 %vm7528_vm6, %v7529_v31  ;;  %v4733_v35 = vld [vmem:[%s7912_s18 + $0xa0] sm:$0xff] }
 0x848   : > { %7224 = vmatprep.subr.bf16.mxu0 %v7527_v30  ;;  %v7258_v39 = vpack.c.bf16 %v4735_v37, %v4733_v35  ;;  %v5631_v35 = vld [vmem:[%s7912_s18 + $0x1b8] sm:$0xff]  ;;  %v7286_v37 = vpack.c.bf16 %v5626_v33, %v5624_v32 }
 0x84b   : > { %7226 = vmatpush3.bf16.msra.mxu0 %v7225_v40  ;;  %v4740_v40 = vld [vmem:[%s7912_s18 + $0xd8] sm:$0xff] }
 0x84c   : > { %7227 = vmatprep.subr.bf16.mxu0 %v7527_v30 }
 0x84e   : > { %6733 = vmatmul.mubr.msk.f32.vlgmr.msra.gmra.mrb[60].mxu0 %vm587_vm4, %v4360_v41  ;;  %v4737_v41 = vld [vmem:[%s7912_s18 + $0xc0] sm:$0xff] }
 0x84f   : > { %6735 = vmatprep.mubr.msk.f32.mxu0 %vm7528_vm6, %v7529_v31 }
 0x852   : > { %6736 = vmatmul.mubr.msk.f32.gmra.mrb[62].mxu0 %vm587_vm4, %v4361_v42  ;;  %v4739_v42 = vld [vmem:[%s7912_s18 + $0xd0] sm:$0xff] }
 0x853   : > { %6738 = vmatprep.mubr.msk.f32.mxu0 %vm7528_vm6, %v7529_v31 }
 0x856   : > { %6739 = vmatmul.mubr.msk.f32.gmra.mrb[64].mxu0 %vm587_vm4, %v4362_v43  ;;  %v7260_v43 = vpack.c.bf16 %v4740_v40, %v4738_v38  ;;  %v5630_v40 = vld [vmem:[%s7912_s18 + $0x1b0] sm:$0xff] }
 0x857   : > { %6747 = vmatprep.mubr.msk.f32.mxu0 %vm7528_vm6, %v7529_v31 }
 0x921   : > { %v4446_v45 = vpop.f32.mrb[60].mxu0 }
 0x922   : > { %v6734_v47 = vpop.f32.mrb[61].mxu0  ;;  %v7355_v50 = vadd.f32 %v4446_v45, %v4152_v44  ;;  %v4744_v45 = vld [vmem:[%s7912_s18 + $0xf8] sm:$0xff] }
 0x923   : > { %v7262_v47 = vpack.c.bf16 %v4739_v42, %v4737_v41  ;;  %v5633_v41 = vld [vmem:[%s7912_s18 + $0x1c8] sm:$0xff]  ;;  %v5635_v42 = vld [vmem:[%s7912_s18 + $0x1d8] sm:$0xff] }
 0x924   : > { %v4463_v53 = vmax.f32 %v7355_v50, 0.0 }
 0x925   : > { %v4451_v51 = vpop.f32.mrb[62].mxu0 }
 0x926   : > { %v7356_v5 = vadd.f32 %v4451_v51, %v4152_v44  ;;  %v6737_v52 = vpop.f32.mrb[63].mxu0  ;;  %v4741_v51 = vld [vmem:[%s7912_s18 + $0xe0] sm:$0xff] }
 0x927   : > { %v5609_v52 = vld [vmem:[%s7912_s18 + $0x108] sm:$0xff] }
 0x928   : > { %v4464_v48 = vmax.f32 %v7356_v5, 0.0  ;;  %v4743_v5 = vld [vmem:[%s7912_s18 + $0xf0] sm:$0xff] }
 0x929   : > { %v4456_v54 = vpop.f32.mrb[64].mxu0 }
 0x92a   : > { %v7228_v55 = vpack.c.bf16 %v4464_v48, %v4463_v53  ;;  %v7357_v49 = vadd.f32 %v4456_v54, %v4152_v44  ;;  %v6740_v56 = vpop.f32.mrb[65].mxu0  ;;  %v4742_v44 = vld [vmem:[%s7912_s18 + $0xe8] sm:$0xff]  ;;  %v5611_v53 = vld [vmem:[%s7912_s18 + $0x118] sm:$0xff]  ;;  %v7266_v48 = vpack.c.bf16 %v4743_v5, %v4741_v51 }
 0x92b   : > { %v7264_v50 = vpack.c.bf16 %v4744_v45, %v4742_v44  ;;  %v7268_v54 = vpack.c.bf16 %v5611_v53, %v5609_v52  ;;  %v7292_v44 = vpack.c.bf16 %v5635_v42, %v5633_v41  ;;  %v5632_v45 = vld [vmem:[%s7912_s18 + $0x1c0] sm:$0xff]  ;;  %v5639_v51 = vld [vmem:[%s7912_s18 + $0x1f8] sm:$0xff]  ;;  %v5670_v42 = vld [vmem:[%s7912_s18 + $0x2f0] sm:$0xff] }
 0x92c   : > { %7229 = vmatpush3.bf16.msra.mxu0 %v7228_v55  ;;  %7232 = vmatpush3.bf16.msra.mxu1 %v7228_v55  ;;  %v4465_v57 = vmax.f32 %v7357_v49, 0.0  ;;  %v5636_v53 = vld [vmem:[%s7912_s18 + $0x1e0] sm:$0xff] }
 0x92d   : > { %6745 = vmatprep.subr.mxu0 %v7529_v31  ;;  %6754 = vmatprep.subr.mxu1 %v7529_v31  ;;  %v5668_v41 = vld [vmem:[%s7912_s18 + $0x2e0] sm:$0xff] }
 0x930   : > { %6746 = vmatpush3.msk.msra.mxu0 %vm2152_vm11, %v4465_v57  ;;  %6755 = vmatpush3.msk.msra.mxu1 %vm2152_vm11, %v4465_v57 }
 0x931   : > { %7233 = vmatprep.subr.bf16.mxu1 %v7527_v30  ;;  %6757 = vmatmul.mubr.msk.f32.vlgmr.msra.gmra.mrb[24].mxu1 %vm2148_vm12, %v5601_v58  ;;  %v5604_v30 = vld [vmem:[%s8501_s7 + $0x10] sm:$0x1f] }
 0x932   : > { %7235 = vmatpush3.bf16.msra.mxu1 %v7228_v55  ;;  %6748 = vmatmul.mubr.msk.f32.vlgmr.msra.gmra.mrb[66].mxu0 %vm2148_vm12, %v4466_v3 }
 0x933   : > { %6763 = vmatprep.subr.mxu1 %v7529_v31  ;;  %6765 = vmatprep.mubr.msk.f32.mxu1 %vm7528_vm6, %v7529_v31 }
 0x936   : > { %6764 = vmatpush3.msk.msra.mxu1 %vm2152_vm11, %v4465_v57 }
 0x937   : > { %6766 = vmatmul.mubr.msk.f32.vlgmr.msra.gmra.mrb[26].mxu1 %vm2148_vm12, %v5604_v30  ;;  %7237 = vmatprep.subr.bf16.mxu1 %v7236_v2  ;;  %v5608_v2 = vld [vmem:[%s7912_s18 + $0x100] sm:$0xff]  ;;  %v5610_v30 = vld [vmem:[%s7912_s18 + $0x110] sm:$0xff] }
 0x938   : > { %7239 = vmatpush1.bf16.msra.mxu1 %v7238_v4  ;;  %4809 = vmatprep.mubr.f32.mxu1 %v7529_v31  ;;  %v5613_v4 = vld [vmem:[%s7912_s18 + $0x128] sm:$0xff]  ;;  %v7270_v7 = vpack.c.bf16 %v5610_v30, %v5608_v2  ;;  %v5651_v30 = vld [vmem:[%s7912_s18 + $0x258] sm:$0xff] }
 0x939   : > { %7241 = vmatprep.subr.bf16.mxu1 %v7240_v6  ;;  %v5615_v6 = vld [vmem:[%s7912_s18 + $0x138] sm:$0xff]  ;;  %v5649_v2 = vld [vmem:[%s7912_s18 + $0x248] sm:$0xff] }
 0x93a   : > { %v7272_v8 = vpack.c.bf16 %v5615_v6, %v5613_v4  ;;  %v7308_v6 = vpack.c.bf16 %v5651_v30, %v5649_v2 }
 0x93c   : > { %7243 = vmatpush1.bf16.msra.mxu1 %v7242_v11 }
 0x93d   : > { %7245 = vmatprep.subr.bf16.mxu1 %v7244_v12  ;;  %v5617_v12 = vld [vmem:[%s7912_s18 + $0x148] sm:$0xff] }
 0x93e   : > { %v7276_v15 = vpack.c.bf16 %v5619_v13, %v5617_v12  ;;  %v7312_v12 = vpack.c.bf16 %v5655_v10, %v5653_v9  ;;  %v5652_v13 = vld [vmem:[%s7912_s18 + $0x260] sm:$0xff] }
 0x940   : > { %7247 = vmatpush1.bf16.msra.mxu1 %v7246_v18  ;;  %v5618_v18 = vld [vmem:[%s7912_s18 + $0x150] sm:$0xff] }
 0x941   : > { %7249 = vmatprep.subr.bf16.mxu1 %v7248_v60  ;;  %v5621_v60 = vld [vmem:[%s7912_s18 + $0x168] sm:$0xff]  ;;  %v7278_v20 = vpack.c.bf16 %v5618_v18, %v5616_v16 }
 0x944   : > { %7251 = vmatpush1.bf16.msra.mxu1 %v7250_v21  ;;  %v7280_v21 = vpack.c.bf16 %v5623_v19, %v5621_v60  ;;  %v5656_v60 = vld [vmem:[%s7912_s18 + $0x280] sm:$0xff]  ;;  %v5658_v19 = vld [vmem:[%s7912_s18 + $0x290] sm:$0xff] }
 0x945   : > { %7253 = vmatprep.subr.bf16.mxu1 %v7252_v26  ;;  %v5627_v26 = vld [vmem:[%s7912_s18 + $0x198] sm:$0xff]  ;;  %v7318_v22 = vpack.c.bf16 %v5658_v19, %v5656_v60 }
 0x948   : > { %7255 = vmatpush1.bf16.msra.mxu1 %v7254_v29  ;;  %v7284_v29 = vpack.c.bf16 %v5627_v26, %v5625_v24  ;;  %v5660_v24 = vld [vmem:[%s7912_s18 + $0x2a0] sm:$0xff]  ;;  %v5662_v26 = vld [vmem:[%s7912_s18 + $0x2b0] sm:$0xff] }
 0x949   : > { %7257 = vmatprep.subr.bf16.mxu1 %v7256_v34  ;;  %v5629_v34 = vld [vmem:[%s7912_s18 + $0x1a8] sm:$0xff]  ;;  %v7322_v32 = vpack.c.bf16 %v5662_v26, %v5660_v24 }
 0x94a   : > { %v7288_v38 = vpack.c.bf16 %v5631_v35, %v5629_v34  ;;  %v5664_v34 = vld [vmem:[%s7912_s18 + $0x2c0] sm:$0xff]  ;;  %v5666_v35 = vld [vmem:[%s7912_s18 + $0x2d0] sm:$0xff] }
 0x94c   : > { %7259 = vmatpush1.bf16.msra.mxu1 %v7258_v39  ;;  %v5628_v39 = vld [vmem:[%s7912_s18 + $0x1a0] sm:$0xff] }
 0x94d   : > { %7261 = vmatprep.subr.bf16.mxu1 %v7260_v43  ;;  %v7290_v43 = vpack.c.bf16 %v5630_v40, %v5628_v39  ;;  %v7326_v39 = vpack.c.bf16 %v5666_v35, %v5664_v34 }
 0x950   : > { %7263 = vmatpush1.bf16.msra.mxu1 %v7262_v47  ;;  %v5634_v47 = vld [vmem:[%s7912_s18 + $0x1d0] sm:$0xff] }
 0x951   : > { %7265 = vmatprep.subr.bf16.mxu1 %v7264_v50  ;;  %v5637_v50 = vld [vmem:[%s7912_s18 + $0x1e8] sm:$0xff]  ;;  %v7294_v5 = vpack.c.bf16 %v5634_v47, %v5632_v45 }
 0x952   : > { %v7296_v52 = vpack.c.bf16 %v5639_v51, %v5637_v50  ;;  %v5607_v45 = vld [vmem:[%s7753_s24 + $0x6] ss:$8 sm:$0x3] }
 0x953   : > { %v4703_v47 = vrot.slane %v5607_v45, %v2388_v25  ;;  %v4707_v50 = vrot.slane %v5607_v45, %v2392_v27 }
 0x954   : > { %7267 = vmatpush1.bf16.msra.mxu1 %v7266_v48  ;;  %v5638_v48 = vld [vmem:[%s7912_s18 + $0x1f0] sm:$0xff] }
 0x955   : > { %7269 = vmatprep.subr.bf16.mxu1 %v7268_v54  ;;  %v5641_v54 = vld [vmem:[%s7912_s18 + $0x208] sm:$0xff] }
 0xa04   : > { %v4613_v55 = vpop.f32.mrb[24].mxu1 }
 0xa05   : > { %v4539_v49 = vpop.f32.mrb[66].mxu0  ;;  %v6758_v56 = vpop.f32.mrb[25].mxu1 }
 0xa06   : > { %v4617_v57 = vmax.f32 %v4539_v49, %v4613_v55  ;;  %v6749_v58 = vpop.f32.mrb[67].mxu0  ;;  %v5643_v55 = vld [vmem:[%s7912_s18 + $0x218] sm:$0xff]  ;;  %v7298_v49 = vpack.c.bf16 %v5638_v48, %v5636_v53 }
 0xa07   : > { %v7300_v56 = vpack.c.bf16 %v5643_v55, %v5641_v54  ;;  %v5642_v58 = vld [vmem:[%s7912_s18 + $0x210] sm:$0xff] }
 0xa0a   : > { %v4688_v3 = vpop.f32.mrb[26].mxu1 }
 0xa0b   : > { %v4692_v61 = vmax.f32 %v4617_v57, %v4688_v3  ;;  %v6767_v62 = vpop.f32.mrb[27].mxu1  ;;  %v5640_v57 = vld [vmem:[%s7912_s18 + $0x200] sm:$0xff]  ;;  %v5645_v3 = vld [vmem:[%s7912_s18 + $0x228] sm:$0xff] }
 0xa0d   : > { %v4694_v0 = vmul.f32 %v4693_v59, %v4692_v61  ;;  %v5647_v59 = vld [vmem:[%s7912_s18 + $0x238] sm:$0xff]  ;;  %v7302_v61 = vpack.c.bf16 %v5642_v58, %v5640_v57 }
 0xa0e   : > { %v7304_v62 = vpack.c.bf16 %v5647_v59, %v5645_v3 }
 0xa0f   : > { %v4696_v1 = vadd.f32 %v4695_v63, %v4694_v0  ;;  %v5644_v63 = vld [vmem:[%s7912_s18 + $0x220] sm:$0xff]  ;;  %v5646_v0 = vld [vmem:[%s7912_s18 + $0x230] sm:$0xff] }
 0xa10   : > { %v7306_v4 = vpack.c.bf16 %v5646_v0, %v5644_v63 }
 0xa11   : > { %4697 = vst [vmem:[#allocation4] sm:$0x1f] %v4696_v1 }
 0xa18   : > { %v4712_v11 = vld [vmem:[#allocation4] sm:$0x7] }
 0xa19   : > { %4810 = vmatmul.mubr.f32.vlgmr.msra.gmra.mrb[28].mxu1 %v4712_v11  ;;  %v4818_v1 = vld [vmem:[#allocation4 + $0x1] sm:$0x7] }
 0xa1a   : > { %7271 = vmatpush1.bf16.msra.mxu1 %v7270_v7  ;;  %4915 = vmatprep.mubr.f32.mxu1 %v7529_v31  ;;  %v5648_v7 = vld [vmem:[%s7912_s18 + $0x240] sm:$0xff] }
 0xa1b   : > { %7273 = vmatprep.subr.bf16.mxu1 %v7272_v8  ;;  %v5650_v8 = vld [vmem:[%s7912_s18 + $0x250] sm:$0xff] }
 0xa1c   : > { %v7310_v11 = vpack.c.bf16 %v5650_v8, %v5648_v7 }
 0xa1e   : > { %7275 = vmatpush1.bf16.msra.mxu1 %v7274_v14  ;;  %v5654_v14 = vld [vmem:[%s7912_s18 + $0x270] sm:$0xff] }
 0xa1f   : > { %7277 = vmatprep.subr.bf16.mxu1 %v7276_v15  ;;  %v5657_v15 = vld [vmem:[%s7912_s18 + $0x288] sm:$0xff]  ;;  %v7314_v16 = vpack.c.bf16 %v5654_v14, %v5652_v13 }
 0xa22   : > { %7279 = vmatpush1.bf16.msra.mxu1 %v7278_v20  ;;  %v5661_v20 = vld [vmem:[%s7912_s18 + $0x2a8] sm:$0xff] }
 0xa23   : > { %7281 = vmatprep.subr.bf16.mxu1 %v7280_v21  ;;  %v5663_v21 = vld [vmem:[%s7912_s18 + $0x2b8] sm:$0xff] }
 0xa24   : > { %v7320_v23 = vpack.c.bf16 %v5663_v21, %v5661_v20 }
 0xa26   : > { %7283 = vmatpush1.bf16.msra.mxu1 %v7282_v28  ;;  %v5665_v28 = vld [vmem:[%s7912_s18 + $0x2c8] sm:$0xff] }
 0xa27   : > { %7285 = vmatprep.subr.bf16.mxu1 %v7284_v29  ;;  %v5667_v29 = vld [vmem:[%s7912_s18 + $0x2d8] sm:$0xff] }
 0xa28   : > { %v7324_v33 = vpack.c.bf16 %v5667_v29, %v5665_v28 }
 0xa2a   : > { %7287 = vmatpush1.bf16.msra.mxu1 %v7286_v37  ;;  %v5669_v37 = vld [vmem:[%s7912_s18 + $0x2e8] sm:$0xff] }
 0xa2b   : > { %7289 = vmatprep.subr.bf16.mxu1 %v7288_v38  ;;  %v5671_v38 = vld [vmem:[%s7912_s18 + $0x2f8] sm:$0xff] }
 0xa2c   : > { %v7328_v40 = vpack.c.bf16 %v5671_v38, %v5669_v37 }
 0xa2e   : > { %7291 = vmatpush1.bf16.msra.mxu1 %v7290_v43  ;;  %v7330_v43 = vpack.c.bf16 %v5670_v42, %v5668_v41 }
 0xa2f   : > { %7293 = vmatprep.subr.bf16.mxu1 %v7292_v44  ;;  %v4924_v44 = vld [vmem:[#allocation4 + $0x2] sm:$0x7] }
 0xa32   : > { %7295 = vmatpush1.bf16.msra.mxu1 %v7294_v5 }
 0xa33   : > { %7297 = vmatprep.subr.bf16.mxu1 %v7296_v52 }
 0xa36   : > { %7299 = vmatpush1.bf16.msra.mxu1 %v7298_v49 }
 0xa37   : > { %7301 = vmatprep.subr.bf16.mxu1 %v7300_v56 }
 0xa39   : > { %4916 = vmatmul.mubr.f32.vlgmr.msra.gmra.mrb[28].mxu1 %v4818_v1 }
 0xa3a   : > { %7303 = vmatpush1.bf16.msra.mxu1 %v7302_v61  ;;  %5021 = vmatprep.mubr.f32.mxu1 %v7529_v31  ;;  %v5659_v31 = vld [vmem:[%s7912_s18 + $0x298] sm:$0xff] }
 0xa3b   : > { %7305 = vmatprep.subr.bf16.mxu1 %v7304_v62  ;;  %v7316_v18 = vpack.c.bf16 %v5659_v31, %v5657_v15 }
 0xa3e   : > { %7307 = vmatpush1.bf16.msra.mxu1 %v7306_v4 }
 0xa3f   : > { %7309 = vmatprep.subr.bf16.mxu1 %v7308_v6 }
 0xa42   : > { %7311 = vmatpush1.bf16.msra.mxu1 %v7310_v11 }
 0xa43   : > { %7313 = vmatprep.subr.bf16.mxu1 %v7312_v12 }
 0xa46   : > { %7315 = vmatpush1.bf16.msra.mxu1 %v7314_v16 }
 0xa47   : > { %7317 = vmatprep.subr.bf16.mxu1 %v7316_v18 }
 0xa4a   : > { %7319 = vmatpush1.bf16.msra.mxu1 %v7318_v22 }
 0xa4b   : > { %7321 = vmatprep.subr.bf16.mxu1 %v7320_v23 }
 0xa4e   : > { %7323 = vmatpush1.bf16.msra.mxu1 %v7322_v32 }
 0xa4f   : > { %7325 = vmatprep.subr.bf16.mxu1 %v7324_v33 }
 0xa52   : > { %7327 = vmatpush1.bf16.msra.mxu1 %v7326_v39 }
 0xa53   : > { %7329 = vmatprep.subr.bf16.mxu1 %v7328_v40 }
 0xa56   : > { %7331 = vmatpush1.bf16.msra.mxu1 %v7330_v43 }
 0xa59   : > { %5022 = vmatmul.mubr.f32.vlgmr.msra.gmra.mrb[28].mxu1 %v4924_v44 }
 0xb2c   : > { %v5023_v51 = vpop.f32.mrb[28].mxu1 }
 0xb2d   : > { %v7358_v5 = vadd.f32 %v5023_v51, %v4703_v47  ;;  %v5025_v52 = vpop.f32.mrb[29].mxu1 }
 0xb2e   : > { %v7359_v53 = vadd.f32 %v5025_v52, %v4707_v50 }
 0xb2f   : > { %v5030_v48 = vmax.f32 %v7358_v5, 0.0 }
 0xb30   : > { %v5031_v54 = vmax.f32 %v7359_v53, 0.0 }
 0xb31   : > { %v5032_v55 = vsel %vm2720_vm13, %v5030_v48, 0.0 }
 0xb32   : > { %v5033_v49 = vrot.slane %v5032_v55, 4  ;;  %v5039_v56 = vsel %vm2720_vm13, %v5031_v54, 0.0 }
 0xb33   : > { %v5040_v57 = vrot.slane %v5039_v56, 4 }
 0xb34   : > { %v5034_v58 = vadd.f32 %v5033_v49, %v5032_v55 }
 0xb35   : > { %v5041_v3 = vadd.f32 %v5040_v57, %v5039_v56 }
 0xb36   : > { %v5035_v59 = vrot.slane %v5034_v58, 2 }
 0xb37   : > { %v5042_v25 = vrot.slane %v5041_v3, 2 }
 0xb38   : > { %v5036_v61 = vadd.f32 %v5035_v59, %v5034_v58 }
 0xb39   : > { %v5043_v17 = vadd.f32 %v5042_v25, %v5041_v3 }
 0xb3a   : > { %v5037_v27 = vrot.slane %v5036_v61, 1 }
 0xb3b   : > { %v5044_v62 = vrot.slane %v5043_v17, 1 }
 0xb3c   : > { %v5038_v63 = vadd.f32 %v5037_v27, %v5036_v61 }
 0xb3d   : > { %v5045_v0 = vadd.f32 %v5044_v62, %v5043_v17 }
 0xb3e   : > { %v5046_v1 = vmul.f32 0.33333334, %v5038_v63 }
 0xb3f   : > { %v5047_v2 = vmul.f32 0.33333334, %v5045_v0 }
 0xb41   : > { %v5050_v30 = vcombine.low %v5046_v1, %v5047_v2 }
 0xb43   : > { %v5057_v4 = vrot.slane %v5050_v30, %v8139_v36 }
 0xb45   : > { %v5064_v6 = vrot.slane %v5057_v4, %v8139_v36 }
 0xb47   : > { %5672 = vst.msk [vmem:[%s8156_s15 + $0x1] ss:$2 sm:$0x3] %vm8149_vm14, %v5064_v6 }
 0xb48 PF: > { %s18_s29 = sadd.s32 1, %s7524_s29   ;;  %s8509_s27 = smov %s7520_s28 }
 0xb49   : > { %p15_p5 = scmp.ge.s32.totalorder %s18_s29, 4   ;;  %s8510_s28 = smov %s8512_s30 }
 0xb4b   :  { %17 = sbr.rel (!%p15_p5) target bundleno = 2 (0x2), region = 110 }

// kernel: virus_cnn_forward.5
= control target key start
LH: loop header
LB: loop body
LE: loop exit
PB: predicated region body
PF: predicated region fallthrough
CT: control target
= control target key end

     0   :  { %vm917_vm0 = vmmov 0   ;;  %s1417_s2 = inlined_call_operand.vmem [shape: f32[1024,128], index: 2, kind: input, shape index: {}]   ;;  %s1418_s0 = inlined_call_operand.vmem [shape: f32[4,256], index: 0, kind: input, shape index: {}]   ;;  %s1419_s1 = inlined_call_operand.vmem [shape: f32[4,256], index: 1, kind: input, shape index: {}]   ;;  %s1420_s4 = inlined_call_operand.vmem [shape: f32[128,128], index: 4, kind: input, shape index: {}]   ;;  %s1421_s3 = inlined_call_operand.vmem [shape: f32[1,128], index: 3, kind: input, shape index: {}]   ;;  %s1422_s5 = inlined_call_operand.vmem [shape: f32[1,128], index: 5, kind: input, shape index: {}]   ;;  %s1423_s6 = inlined_call_operand.vmem [shape: f32[2,128], index: 6, kind: output, shape index: {}]  }
   0x1   :  { %v44_v0 = vld [vmem:[%s1417_s2 + $0x80] sm:$0xff]  ;;  %v45_v1 = vld [vmem:[%s1417_s2 + $0x88] sm:$0xff]  ;;  %v46_v11 = vld [vmem:[%s1417_s2 + $0x90] sm:$0xff] }
   0x2   :  { %v28_v2 = vld [vmem:[%s1417_s2] sm:$0xff]  ;;  %v757_v3 = vpack.c.bf16 %v45_v1, %v44_v0  ;;  %v29_v4 = vld [vmem:[%s1417_s2 + $0x8] sm:$0xff]  ;;  %v47_v13 = vld [vmem:[%s1417_s2 + $0x98] sm:$0xff] }
   0x3   :  { %v156_v5 = vld [vmem:[%s1417_s2 + $0x180] sm:$0xff]  ;;  %v157_v6 = vld [vmem:[%s1417_s2 + $0x188] sm:$0xff]  ;;  %v759_v7 = vpack.c.bf16 %v29_v4, %v28_v2  ;;  %v30_v14 = vld [vmem:[%s1417_s2 + $0x10] sm:$0xff]  ;;  %v761_v16 = vpack.c.bf16 %v47_v13, %v46_v11 }
   0x4   :  { %v789_v8 = vpack.c.bf16 %v157_v6, %v156_v5  ;;  %v140_v9 = vld [vmem:[%s1417_s2 + $0x100] sm:$0xff]  ;;  %v141_v10 = vld [vmem:[%s1417_s2 + $0x108] sm:$0xff]  ;;  %758 = vmatprep.subr.bf16.mxu0 %v757_v3  ;;  %v31_v15 = vld [vmem:[%s1417_s2 + $0x18] sm:$0xff] }
   0x5   :  { %v791_v12 = vpack.c.bf16 %v141_v10, %v140_v9  ;;  %760 = vmatpush3.bf16.msra.mxu0 %v759_v7  ;;  %v763_v17 = vpack.c.bf16 %v31_v15, %v30_v14  ;;  %v158_v18 = vld [vmem:[%s1417_s2 + $0x190] sm:$0xff]  ;;  %v159_v19 = vld [vmem:[%s1417_s2 + $0x198] sm:$0xff]  ;;  %v48_v23 = vld [vmem:[%s1417_s2 + $0xa0] sm:$0xff] }
   0x6   :  { %790 = vmatprep.subr.bf16.mxu1 %v789_v8  ;;  %v142_v20 = vld [vmem:[%s1417_s2 + $0x110] sm:$0xff]  ;;  %v793_v21 = vpack.c.bf16 %v159_v19, %v158_v18  ;;  %v143_v22 = vld [vmem:[%s1417_s2 + $0x118] sm:$0xff]  ;;  %v49_v24 = vld [vmem:[%s1417_s2 + $0xa8] sm:$0xff]  ;;  %762 = vmatprep.subr.bf16.mxu0 %v761_v16 }
   0x7   :  { %792 = vmatpush3.bf16.msra.mxu1 %v791_v12  ;;  %v795_v25 = vpack.c.bf16 %v143_v22, %v142_v20  ;;  %v765_v26 = vpack.c.bf16 %v49_v24, %v48_v23  ;;  %v32_v27 = vld [vmem:[%s1417_s2 + $0x20] sm:$0xff]  ;;  %v33_v28 = vld [vmem:[%s1417_s2 + $0x28] sm:$0xff]  ;;  %v50_v35 = vld [vmem:[%s1417_s2 + $0xb0] sm:$0xff] }
   0x8   :  { %v160_v29 = vld [vmem:[%s1417_s2 + $0x1a0] sm:$0xff]  ;;  %794 = vmatprep.subr.bf16.mxu1 %v793_v21  ;;  %v161_v30 = vld [vmem:[%s1417_s2 + $0x1a8] sm:$0xff]  ;;  %v767_v33 = vpack.c.bf16 %v33_v28, %v32_v27  ;;  %v51_v36 = vld [vmem:[%s1417_s2 + $0xb8] sm:$0xff] }
   0x9   :  { %v144_v31 = vld [vmem:[%s1417_s2 + $0x120] sm:$0xff]  ;;  %v145_v32 = vld [vmem:[%s1417_s2 + $0x128] sm:$0xff]  ;;  %764 = vmatpush3.bf16.msra.mxu0 %v763_v17  ;;  %v797_v34 = vpack.c.bf16 %v161_v30, %v160_v29  ;;  %v34_v37 = vld [vmem:[%s1417_s2 + $0x30] sm:$0xff]  ;;  %v769_v39 = vpack.c.bf16 %v51_v36, %v50_v35 }
   0xa   :  { %766 = vmatprep.subr.bf16.mxu0 %v765_v26  ;;  %v799_v38 = vpack.c.bf16 %v145_v32, %v144_v31  ;;  %v35_v40 = vld [vmem:[%s1417_s2 + $0x38] sm:$0xff]  ;;  %v162_v41 = vld [vmem:[%s1417_s2 + $0x1b0] sm:$0xff]  ;;  %v52_v46 = vld [vmem:[%s1417_s2 + $0xc0] sm:$0xff] }
   0xb   :  { %796 = vmatpush3.bf16.msra.mxu1 %v795_v25  ;;  %v163_v42 = vld [vmem:[%s1417_s2 + $0x1b8] sm:$0xff]  ;;  %v146_v44 = vld [vmem:[%s1417_s2 + $0x130] sm:$0xff]  ;;  %v53_v47 = vld [vmem:[%s1417_s2 + $0xc8] sm:$0xff]  ;;  %v771_v48 = vpack.c.bf16 %v35_v40, %v34_v37 }
   0xc   :  { %798 = vmatprep.subr.bf16.mxu1 %v797_v34  ;;  %v801_v43 = vpack.c.bf16 %v163_v42, %v162_v41  ;;  %v147_v45 = vld [vmem:[%s1417_s2 + $0x138] sm:$0xff]  ;;  %v164_v49 = vld [vmem:[%s1417_s2 + $0x1c0] sm:$0xff]  ;;  %v165_v50 = vld [vmem:[%s1417_s2 + $0x1c8] sm:$0xff]  ;;  %v773_v52 = vpack.c.bf16 %v53_v47, %v52_v46 }
   0xd   :  { %768 = vmatpush3.bf16.msra.mxu0 %v767_v33  ;;  %v803_v51 = vpack.c.bf16 %v147_v45, %v146_v44  ;;  %v36_v53 = vld [vmem:[%s1417_s2 + $0x40] sm:$0xff]  ;;  %v37_v54 = vld [vmem:[%s1417_s2 + $0x48] sm:$0xff]  ;;  %v805_v56 = vpack.c.bf16 %v165_v50, %v164_v49  ;;  %v54_v58 = vld [vmem:[%s1417_s2 + $0xd0] sm:$0xff] }
   0xe   :  { %770 = vmatprep.subr.bf16.mxu0 %v769_v39  ;;  %v148_v55 = vld [vmem:[%s1417_s2 + $0x140] sm:$0xff]  ;;  %v149_v57 = vld [vmem:[%s1417_s2 + $0x148] sm:$0xff]  ;;  %v55_v59 = vld [vmem:[%s1417_s2 + $0xd8] sm:$0xff]  ;;  %v775_v62 = vpack.c.bf16 %v37_v54, %v36_v53 }
   0xf   :  { %800 = vmatpush3.bf16.msra.mxu1 %v799_v38  ;;  %v166_v60 = vld [vmem:[%s1417_s2 + $0x1d0] sm:$0xff]  ;;  %v167_v61 = vld [vmem:[%s1417_s2 + $0x1d8] sm:$0xff]  ;;  %v807_v63 = vpack.c.bf16 %v149_v57, %v148_v55  ;;  %v777_v0 = vpack.c.bf16 %v55_v59, %v54_v58  ;;  %v56_v6 = vld [vmem:[%s1417_s2 + $0xe0] sm:$0xff] }
  0x10   :  { %802 = vmatprep.subr.bf16.mxu1 %v801_v43  ;;  %v38_v1 = vld [vmem:[%s1417_s2 + $0x50] sm:$0xff]  ;;  %v39_v2 = vld [vmem:[%s1417_s2 + $0x58] sm:$0xff]  ;;  %v809_v4 = vpack.c.bf16 %v167_v61, %v166_v60  ;;  %v57_v7 = vld [vmem:[%s1417_s2 + $0xe8] sm:$0xff] }
  0x11   :  { %772 = vmatpush3.bf16.msra.mxu0 %v771_v48  ;;  %v150_v3 = vld [vmem:[%s1417_s2 + $0x150] sm:$0xff]  ;;  %v151_v5 = vld [vmem:[%s1417_s2 + $0x158] sm:$0xff]  ;;  %v168_v8 = vld [vmem:[%s1417_s2 + $0x1e0] sm:$0xff]  ;;  %v779_v10 = vpack.c.bf16 %v39_v2, %v38_v1  ;;  %v781_v14 = vpack.c.bf16 %v57_v7, %v56_v6 }
  0x12   :  { %774 = vmatprep.subr.bf16.mxu0 %v773_v52  ;;  %v169_v9 = vld [vmem:[%s1417_s2 + $0x1e8] sm:$0xff]  ;;  %v40_v11 = vld [vmem:[%s1417_s2 + $0x60] sm:$0xff]  ;;  %v811_v13 = vpack.c.bf16 %v151_v5, %v150_v3  ;;  %v58_v19 = vld [vmem:[%s1417_s2 + $0xf0] sm:$0xff] }
  0x13   :  { %804 = vmatpush3.bf16.msra.mxu1 %v803_v51  ;;  %v41_v12 = vld [vmem:[%s1417_s2 + $0x68] sm:$0xff]  ;;  %v152_v15 = vld [vmem:[%s1417_s2 + $0x160] sm:$0xff]  ;;  %v813_v18 = vpack.c.bf16 %v169_v9, %v168_v8  ;;  %v59_v20 = vld [vmem:[%s1417_s2 + $0xf8] sm:$0xff] }
  0x14   :  { %806 = vmatprep.subr.bf16.mxu1 %v805_v56  ;;  %v153_v16 = vld [vmem:[%s1417_s2 + $0x168] sm:$0xff]  ;;  %v23_v17 = vld [vmem:[%s1418_s0] sm:$0x33]  ;;  %v170_v23 = vld [vmem:[%s1417_s2 + $0x1f0] sm:$0xff]  ;;  %v783_v26 = vpack.c.bf16 %v41_v12, %v40_v11  ;;  %v785_v28 = vpack.c.bf16 %v59_v20, %v58_v19 }
  0x15   :  { %776 = vmatpush3.bf16.msra.mxu0 %v775_v62  ;;  %v61_v21 = vcombine.high %v23_v17, %v23_v17  ;;  %v24_v22 = vld [vmem:[%s1419_s1] sm:$0x33]  ;;  %v171_v24 = vld [vmem:[%s1417_s2 + $0x1f8] sm:$0xff]  ;;  %v815_v27 = vpack.c.bf16 %v153_v16, %v152_v15  ;;  %v42_v29 = vld [vmem:[%s1417_s2 + $0x70] sm:$0xff] }
  0x16   :  { %778 = vmatprep.subr.bf16.mxu0 %v777_v0  ;;  %v173_v25 = vcombine.high %v24_v22, %v24_v22  ;;  %v43_v30 = vld [vmem:[%s1417_s2 + $0x78] sm:$0xff]  ;;  %v154_v31 = vld [vmem:[%s1417_s2 + $0x170] sm:$0xff]  ;;  %v817_v32 = vpack.c.bf16 %v171_v24, %v170_v23  ;;  %v262_v34 = vld [vmem:[%s1417_s2 + $0x280] sm:$0xff] }
  0x17   :  { %808 = vmatpush3.bf16.msra.mxu1 %v807_v63  ;;  %127 = vmatprep.mubr.f32.mxu0 %v61_v21  ;;  %v155_v33 = vld [vmem:[%s1417_s2 + $0x178] sm:$0xff]  ;;  %v263_v35 = vld [vmem:[%s1417_s2 + $0x288] sm:$0xff]  ;;  %v1161_v36 = vld [vmem:[%s1418_s0] sm:$0xcc]  ;;  %v787_v39 = vpack.c.bf16 %v43_v30, %v42_v29 }
  0x18   :  { %810 = vmatprep.subr.bf16.mxu1 %v809_v4  ;;  %239 = vmatprep.mubr.f32.mxu1 %v173_v25  ;;  %v371_v37 = vld [vmem:[%s1417_s2 + $0x380] sm:$0xff]  ;;  %v372_v38 = vld [vmem:[%s1417_s2 + $0x388] sm:$0xff]  ;;  %v819_v41 = vpack.c.bf16 %v155_v33, %v154_v31  ;;  %v821_v42 = vpack.c.bf16 %v263_v35, %v262_v34  ;;  %v279_v46 = vcombine.high %v1161_v36, %v1161_v36  ;;  %v264_v49 = vld [vmem:[%s1417_s2 + $0x290] sm:$0xff] }
  0x19   :  { %780 = vmatpush3.bf16.msra.mxu0 %v779_v10  ;;  %v1172_v40 = vld [vmem:[%s1419_s1] sm:$0xcc]  ;;  %v247_v44 = vld [vmem:[%s1417_s2 + $0x208] sm:$0xff]  ;;  %v853_v47 = vpack.c.bf16 %v372_v38, %v371_v37  ;;  %v265_v50 = vld [vmem:[%s1417_s2 + $0x298] sm:$0xff] }
  0x1a   :  { %782 = vmatprep.subr.bf16.mxu0 %v781_v14  ;;  %v246_v43 = vld [vmem:[%s1417_s2 + $0x200] sm:$0xff]  ;;  %v356_v48 = vld [vmem:[%s1417_s2 + $0x308] sm:$0xff]  ;;  %v388_v51 = vcombine.high %v1172_v40, %v1172_v40  ;;  %v373_v52 = vld [vmem:[%s1417_s2 + $0x390] sm:$0xff]  ;;  %v825_v56 = vpack.c.bf16 %v265_v50, %v264_v49  ;;  %v281_v0 = vrot.slane %v279_v46, 2 }
  0x1b   :  { %812 = vmatpush3.bf16.msra.mxu1 %v811_v13  ;;  %v355_v45 = vld [vmem:[%s1417_s2 + $0x300] sm:$0xff]  ;;  %v374_v53 = vld [vmem:[%s1417_s2 + $0x398] sm:$0xff]  ;;  %v823_v54 = vpack.c.bf16 %v247_v44, %v246_v43  ;;  %v248_v57 = vld [vmem:[%s1417_s2 + $0x210] sm:$0xff] }
  0x1c   :  { %814 = vmatprep.subr.bf16.mxu1 %v813_v18  ;;  %v855_v55 = vpack.c.bf16 %v356_v48, %v355_v45  ;;  %v249_v58 = vld [vmem:[%s1417_s2 + $0x218] sm:$0xff]  ;;  %v357_v59 = vld [vmem:[%s1417_s2 + $0x310] sm:$0xff]  ;;  %v857_v60 = vpack.c.bf16 %v374_v53, %v373_v52  ;;  %v266_v62 = vld [vmem:[%s1417_s2 + $0x2a0] sm:$0xff]  ;;  %v390_v3 = vrot.slane %v388_v51, 2 }
  0x1d   :  { %784 = vmatpush3.bf16.msra.mxu0 %v783_v26  ;;  %v358_v61 = vld [vmem:[%s1417_s2 + $0x318] sm:$0xff]  ;;  %v267_v63 = vld [vmem:[%s1417_s2 + $0x2a8] sm:$0xff]  ;;  %v375_v1 = vld [vmem:[%s1417_s2 + $0x3a0] sm:$0xff]  ;;  %v827_v4 = vpack.c.bf16 %v249_v58, %v248_v57 }
  0x1e   :  { %786 = vmatprep.subr.bf16.mxu0 %v785_v28  ;;  %v376_v2 = vld [vmem:[%s1417_s2 + $0x3a8] sm:$0xff]  ;;  %v859_v5 = vpack.c.bf16 %v358_v61, %v357_v59  ;;  %v829_v6 = vpack.c.bf16 %v267_v63, %v266_v62  ;;  %v250_v7 = vld [vmem:[%s1417_s2 + $0x220] sm:$0xff]  ;;  %v268_v12 = vld [vmem:[%s1417_s2 + $0x2b0] sm:$0xff] }
  0x1f   :  { %816 = vmatpush3.bf16.msra.mxu1 %v815_v27  ;;  %v251_v8 = vld [vmem:[%s1417_s2 + $0x228] sm:$0xff]  ;;  %v359_v9 = vld [vmem:[%s1417_s2 + $0x320] sm:$0xff]  ;;  %v861_v10 = vpack.c.bf16 %v376_v2, %v375_v1  ;;  %v269_v13 = vld [vmem:[%s1417_s2 + $0x2b8] sm:$0xff] }
  0x20   :  { %818 = vmatprep.subr.bf16.mxu1 %v817_v32  ;;  %v360_v11 = vld [vmem:[%s1417_s2 + $0x328] sm:$0xff]  ;;  %v377_v14 = vld [vmem:[%s1417_s2 + $0x3b0] sm:$0xff]  ;;  %v378_v15 = vld [vmem:[%s1417_s2 + $0x3b8] sm:$0xff]  ;;  %v831_v16 = vpack.c.bf16 %v251_v8, %v250_v7  ;;  %v833_v18 = vpack.c.bf16 %v269_v13, %v268_v12  ;;  %v280_v12 = vrot.slane %v1161_v36, 2  ;;  %v389_v13 = vrot.slane %v1172_v40, 2 }
  0x21   :  { %788 = vmatpush3.bf16.msra.mxu0 %v787_v39  ;;  %v252_v19 = vld [vmem:[%s1417_s2 + $0x230] sm:$0xff]  ;;  %v253_v20 = vld [vmem:[%s1417_s2 + $0x238] sm:$0xff]  ;;  %v270_v24 = vld [vmem:[%s1417_s2 + $0x2c0] sm:$0xff] }
  0x22   :  { %822 = vmatprep.subr.bf16.mxu0 %v821_v42  ;;  %v361_v21 = vld [vmem:[%s1417_s2 + $0x330] sm:$0xff]  ;;  %v362_v23 = vld [vmem:[%s1417_s2 + $0x338] sm:$0xff]  ;;  %v271_v25 = vld [vmem:[%s1417_s2 + $0x2c8] sm:$0xff]  ;;  %v835_v28 = vpack.c.bf16 %v253_v20, %v252_v19 }
  0x23   :  { %820 = vmatpush3.bf16.msra.mxu1 %v819_v41  ;;  %v379_v26 = vld [vmem:[%s1417_s2 + $0x3c0] sm:$0xff]  ;;  %v380_v27 = vld [vmem:[%s1417_s2 + $0x3c8] sm:$0xff]  ;;  %v867_v29 = vpack.c.bf16 %v362_v23, %v361_v21  ;;  %v837_v30 = vpack.c.bf16 %v271_v25, %v270_v24  ;;  %v272_v37 = vld [vmem:[%s1417_s2 + $0x2d0] sm:$0xff] }
  0x24   :  { %854 = vmatprep.subr.bf16.mxu1 %v853_v47  ;;  %128 = vmatmul.mubr.f32.vlgmr.msra.gmra.mrb[0].mxu0 %v23_v17  ;;  %v863_v17 = vpack.c.bf16 %v360_v11, %v359_v9  ;;  %v254_v31 = vld [vmem:[%s1417_s2 + $0x240] sm:$0xff]  ;;  %v255_v32 = vld [vmem:[%s1417_s2 + $0x248] sm:$0xff]  ;;  %v869_v34 = vpack.c.bf16 %v380_v27, %v379_v26  ;;  %v273_v38 = vld [vmem:[%s1417_s2 + $0x2d8] sm:$0xff] }
  0x25   :  { %824 = vmatpush3.bf16.msra.mxu0 %v823_v54  ;;  %348 = vmatprep.mubr.f32.mxu0 %v281_v0  ;;  %v363_v33 = vld [vmem:[%s1417_s2 + $0x340] sm:$0xff]  ;;  %v364_v35 = vld [vmem:[%s1417_s2 + $0x348] sm:$0xff]  ;;  %v381_v39 = vld [vmem:[%s1417_s2 + $0x3d0] sm:$0xff]  ;;  %v839_v42 = vpack.c.bf16 %v255_v32, %v254_v31  ;;  %v841_v44 = vpack.c.bf16 %v273_v38, %v272_v37  ;;  %v918_v38 = vmov 0.0  }
  0x26   :  { %240 = vmatmul.mubr.f32.vlgmr.msra.gmra.mrb[0].mxu1 %v24_v22  ;;  %826 = vmatprep.subr.bf16.mxu0 %v825_v56  ;;  %v865_v22 = vpack.c.bf16 %v378_v15, %v377_v14  ;;  %v382_v41 = vld [vmem:[%s1417_s2 + $0x3d8] sm:$0xff]  ;;  %v871_v43 = vpack.c.bf16 %v364_v35, %v363_v33  ;;  %v256_v45 = vld [vmem:[%s1417_s2 + $0x250] sm:$0xff]  ;;  %v274_v50 = vld [vmem:[%s1417_s2 + $0x2e0] sm:$0xff]  ;;  %v916_v14 = vmov 0.0|0.0  }
  0x27   :  { %856 = vmatpush3.bf16.msra.mxu1 %v855_v55  ;;  %457 = vmatprep.mubr.f32.mxu1 %v390_v3  ;;  %v257_v46 = vld [vmem:[%s1417_s2 + $0x258] sm:$0xff]  ;;  %v365_v47 = vld [vmem:[%s1417_s2 + $0x350] sm:$0xff]  ;;  %v873_v48 = vpack.c.bf16 %v382_v41, %v381_v39  ;;  %v275_v51 = vld [vmem:[%s1417_s2 + $0x2e8] sm:$0xff] }
  0x28   :  { %858 = vmatprep.subr.bf16.mxu1 %v857_v60  ;;  %v366_v49 = vld [vmem:[%s1417_s2 + $0x358] sm:$0xff]  ;;  %v383_v52 = vld [vmem:[%s1417_s2 + $0x3e0] sm:$0xff]  ;;  %v384_v53 = vld [vmem:[%s1417_s2 + $0x3e8] sm:$0xff]  ;;  %v843_v54 = vpack.c.bf16 %v257_v46, %v256_v45  ;;  %v845_v56 = vpack.c.bf16 %v275_v51, %v274_v50 }
  0x29   :  { %828 = vmatpush3.bf16.msra.mxu0 %v827_v4  ;;  %v875_v55 = vpack.c.bf16 %v366_v49, %v365_v47  ;;  %v258_v57 = vld [vmem:[%s1417_s2 + $0x260] sm:$0xff]  ;;  %v259_v58 = vld [vmem:[%s1417_s2 + $0x268] sm:$0xff]  ;;  %v877_v60 = vpack.c.bf16 %v384_v53, %v383_v52  ;;  %v276_v62 = vld [vmem:[%s1417_s2 + $0x2f0] sm:$0xff] }
  0x2a   :  { %830 = vmatprep.subr.bf16.mxu0 %v829_v6  ;;  %v367_v59 = vld [vmem:[%s1417_s2 + $0x360] sm:$0xff]  ;;  %v368_v61 = vld [vmem:[%s1417_s2 + $0x368] sm:$0xff]  ;;  %v277_v63 = vld [vmem:[%s1417_s2 + $0x2f8] sm:$0xff]  ;;  %v847_v2 = vpack.c.bf16 %v259_v58, %v258_v57 }
  0x2b   :  { %860 = vmatpush3.bf16.msra.mxu1 %v859_v5  ;;  %v385_v0 = vld [vmem:[%s1417_s2 + $0x3f0] sm:$0xff]  ;;  %v386_v1 = vld [vmem:[%s1417_s2 + $0x3f8] sm:$0xff]  ;;  %v879_v3 = vpack.c.bf16 %v368_v61, %v367_v59  ;;  %v849_v4 = vpack.c.bf16 %v277_v63, %v276_v62  ;;  %v465_v15 = vld [vmem:[%s1420_s4] sm:$0xff] }
  0x2c   :  { %862 = vmatprep.subr.bf16.mxu1 %v861_v10  ;;  %v260_v5 = vld [vmem:[%s1417_s2 + $0x270] sm:$0xff]  ;;  %v261_v6 = vld [vmem:[%s1417_s2 + $0x278] sm:$0xff]  ;;  %v881_v7 = vpack.c.bf16 %v386_v1, %v385_v0  ;;  %v469_v19 = vld [vmem:[%s1420_s4 + $0x20] sm:$0xff] }
  0x2d   :  { %832 = vmatpush3.bf16.msra.mxu0 %v831_v16  ;;  %v369_v8 = vld [vmem:[%s1417_s2 + $0x370] sm:$0xff]  ;;  %v370_v9 = vld [vmem:[%s1417_s2 + $0x378] sm:$0xff]  ;;  %v851_v10 = vpack.c.bf16 %v261_v6, %v260_v5  ;;  %v466_v16 = vld [vmem:[%s1420_s4 + $0x8] sm:$0xff] }
  0x2e   :  { %834 = vmatprep.subr.bf16.mxu0 %v833_v18  ;;  %v883_v11 = vpack.c.bf16 %v370_v9, %v369_v8  ;;  %v467_v36 = vld [vmem:[%s1420_s4 + $0x10] sm:$0xff]  ;;  %v468_v40 = vld [vmem:[%s1420_s4 + $0x18] sm:$0xff]  ;;  %v470_v20 = vld [vmem:[%s1420_s4 + $0x28] sm:$0xff] }
  0x2f   :  { %864 = vmatpush3.bf16.msra.mxu1 %v863_v17  ;;  %v886_v17 = vpack.c.bf16 %v466_v16, %v465_v15  ;;  %v889_v18 = vpack.c.bf16 %v468_v40, %v467_v36  ;;  %v892_v21 = vpack.c.bf16 %v470_v20, %v469_v19  ;;  %v472_v23 = vld [vmem:[%s1420_s4 + $0x38] sm:$0xff]  ;;  %v473_v25 = vld [vmem:[%s1420_s4 + $0x40] sm:$0xff]  ;;  %v474_v26 = vld [vmem:[%s1420_s4 + $0x48] sm:$0xff] }
  0x30   :  { %866 = vmatprep.subr.bf16.mxu1 %v865_v22  ;;  %v471_v22 = vld [vmem:[%s1420_s4 + $0x30] sm:$0xff]  ;;  %v898_v27 = vpack.c.bf16 %v474_v26, %v473_v25  ;;  %v477_v31 = vld [vmem:[%s1420_s4 + $0x60] sm:$0xff]  ;;  %v478_v32 = vld [vmem:[%s1420_s4 + $0x68] sm:$0xff] }
  0x31   :  { %836 = vmatpush3.bf16.msra.mxu0 %v835_v28  ;;  %v895_v24 = vpack.c.bf16 %v472_v23, %v471_v22  ;;  %v475_v28 = vld [vmem:[%s1420_s4 + $0x50] sm:$0xff]  ;;  %v904_v33 = vpack.c.bf16 %v478_v32, %v477_v31  ;;  %v480_v35 = vld [vmem:[%s1420_s4 + $0x78] sm:$0xff]  ;;  %v563_v41 = vld [vmem:[%s1421_s3] ss:$0 sm:$0xff] }
  0x32   :  { %838 = vmatprep.subr.bf16.mxu0 %v837_v30  ;;  %v564_v58 = vld [vmem:[%s1422_s5] ss:$0 sm:$0xff] }
  0x33   :  { %868 = vmatpush3.bf16.msra.mxu1 %v867_v29  ;;  %v476_v29 = vld [vmem:[%s1420_s4 + $0x58] sm:$0xff] }
  0x34   :  { %870 = vmatprep.subr.bf16.mxu1 %v869_v34  ;;  %v901_v30 = vpack.c.bf16 %v476_v29, %v475_v28  ;;  %v479_v34 = vld [vmem:[%s1420_s4 + $0x70] sm:$0xff] }
  0x35   :  { %840 = vmatpush3.bf16.msra.mxu0 %v839_v42  ;;  %v907_v37 = vpack.c.bf16 %v480_v35, %v479_v34 }
  0x36   :  { %842 = vmatprep.subr.bf16.mxu0 %v841_v44 }
  0x37   :  { %872 = vmatpush3.bf16.msra.mxu1 %v871_v43 }
  0x38   :  { %874 = vmatprep.subr.bf16.mxu1 %v873_v48 }
  0x39   :  { %844 = vmatpush3.bf16.msra.mxu0 %v843_v54 }
  0x3a   :  { %846 = vmatprep.subr.bf16.mxu0 %v845_v56 }
  0x3b   :  { %876 = vmatpush3.bf16.msra.mxu1 %v875_v55 }
  0x3c   :  { %878 = vmatprep.subr.bf16.mxu1 %v877_v60 }
  0x3d   :  { %848 = vmatpush3.bf16.msra.mxu0 %v847_v2 }
  0x3e   :  { %850 = vmatprep.subr.bf16.mxu0 %v849_v4 }
  0x3f   :  { %880 = vmatpush3.bf16.msra.mxu1 %v879_v3 }
  0x40   :  { %882 = vmatprep.subr.bf16.mxu1 %v881_v7 }
  0x41   :  { %852 = vmatpush3.bf16.msra.mxu0 %v851_v10 }
  0x42   :  { %885 = vmatprep.subr.bf16.mxu0 %v916_v14 }
  0x43   :  { %884 = vmatpush3.bf16.msra.mxu1 %v883_v11 }
  0x44   :  { %349 = vmatmul.mubr.f32.vlgmr.msra.gmra.mrb[2].mxu0 %v280_v12 }
  0x45   :  { %887 = vmatpush3.bf16.msra.mxu0 %v886_v17  ;;  %754 = vmatprep.mubr.msk.f32.mxu0 %vm917_vm0, %v918_v38 }
  0x46   :  { %458 = vmatmul.mubr.f32.vlgmr.msra.gmra.mrb[2].mxu1 %v389_v13  ;;  %888 = vmatprep.subr.bf16.mxu0 %v916_v14 }
  0x49   :  { %890 = vmatpush3.bf16.msra.mxu0 %v889_v18 }
  0x4a   :  { %891 = vmatprep.subr.bf16.mxu0 %v916_v14 }
  0x4d   :  { %893 = vmatpush3.bf16.msra.mxu0 %v892_v21 }
  0x4e   :  { %894 = vmatprep.subr.bf16.mxu0 %v916_v14 }
  0x51   :  { %896 = vmatpush3.bf16.msra.mxu0 %v895_v24 }
  0x52   :  { %897 = vmatprep.subr.bf16.mxu0 %v916_v14 }
  0x55   :  { %899 = vmatpush3.bf16.msra.mxu0 %v898_v27 }
  0x56   :  { %900 = vmatprep.subr.bf16.mxu0 %v916_v14 }
  0x59   :  { %902 = vmatpush3.bf16.msra.mxu0 %v901_v30 }
  0x5a   :  { %903 = vmatprep.subr.bf16.mxu0 %v916_v14 }
  0x5d   :  { %905 = vmatpush3.bf16.msra.mxu0 %v904_v33 }
  0x5e   :  { %906 = vmatprep.subr.bf16.mxu0 %v916_v14 }
  0x61   :  { %908 = vmatpush3.bf16.msra.mxu0 %v907_v37 }
  0xf7   :  { %v597_v39 = vpop.f32.mrb[0].mxu0 }
  0xf8   :  { %v598_v42 = vpop.f32.mrb[1].mxu0 }
  0xf9   :  { %v632_v43 = vpop.f32.mrb[0].mxu1  ;;  %v599_v44 = vadd.f32 %v598_v42, %v597_v39 }
  0xfa   :  { %v633_v45 = vpop.f32.mrb[1].mxu1 }
  0xfb   :  { %v634_v46 = vadd.f32 %v633_v45, %v632_v43  ;;  %v139_v47 = vadd.f32 %v599_v44, %v563_v41 }
  0xfd   :  { %v245_v48 = vadd.f32 %v634_v46, %v139_v47 }
 0x117   :  { %v667_v49 = vpop.f32.mrb[2].mxu0 }
 0x118   :  { %v668_v50 = vpop.f32.mrb[3].mxu0 }
 0x119   :  { %v702_v51 = vpop.f32.mrb[2].mxu1  ;;  %v669_v52 = vadd.f32 %v668_v50, %v667_v49 }
 0x11a   :  { %v703_v53 = vpop.f32.mrb[3].mxu1 }
 0x11b   :  { %v704_v54 = vadd.f32 %v703_v53, %v702_v51  ;;  %v354_v55 = vadd.f32 %v669_v52, %v245_v48 }
 0x11d   :  { %v463_v56 = vadd.f32 %v704_v54, %v354_v55 }
 0x11f   :  { %v464_v57 = vmax.f32 %v463_v56, 0.0 }
 0x121   :  { %755 = vmatmul.mubr.f32.vlgmr.msra.gmra.mrb[4].mxu0 %v464_v57 }
 0x1f4   :  { %v554_v59 = vpop.f32.mrb[4].mxu0 }
 0x1f5   :  { %v555_v60 = vadd.f32 %v564_v58, %v554_v59  ;;  %v756_v61 = vpop.f32.mrb[5].mxu0 }
 0x1f7   :  { %558 = vst [vmem:[%s1423_s6] sm:$0x3] %v555_v60 }

// kernel: virus_cnn_forward.3
= control target key start
LH: loop header
LB: loop body
LE: loop exit
PB: predicated region body
PF: predicated region fallthrough
CT: control target
= control target key end

     0   :  { %s4639_s24 = smov 0   ;;  %s4641_s25 = smov 0   ;;  %s5426_s0 = inlined_call_operand.vmem [shape: f32[2,2,59,24], index: 0, kind: input, shape index: {}]   ;;  %s5427_s1 = inlined_call_operand.vmem [shape: f32[2,24,64], index: 1, kind: input, shape index: {}]   ;;  %s5428_s2 = inlined_call_operand.vmem [shape: f32[2,3,64,128], index: 2, kind: input, shape index: {}]   ;;  %s5429_s3 = inlined_call_operand.vmem [shape: f32[2,3,128,256], index: 3, kind: input, shape index: {}]   ;;  %s5430_s4 = inlined_call_operand.vmem [shape: f32[2,8,256], index: 4, kind: input, shape index: {}]   ;;  %s5431_s5 = inlined_call_operand.vmem [shape: f32[3,19,59], index: 5, kind: input, shape index: {}]   ;;  %s5432_s6 = inlined_call_operand.vmem [shape: f32[3,5,17], index: 6, kind: input, shape index: {}]   ;;  %s5433_s7 = inlined_call_operand.vmem [shape: f32[2,2,256], index: 7, kind: output, shape index: {}]  }
   0x1   :  { %s4643_s26 = smov 0  }
   0x2 LB: > { %s29_s27 = sadd.s32 1, %s4588_s25  ;;  %p3287_p0 = scmp.ge.s32.totalorder %s4592_s26, 1  ;;  %s4592_s26 = sphi %s4643_s26, %s17_s26   ;;  %s4588_s25 = sphi %s4641_s25, %s5439_s25   ;;  %s4584_s24 = sphi %s4639_s24, %s5438_s24  }
   0x3   : > { %p31_p1 = scmp.ge.s32.totalorder %s29_s27, 2  ;;  %p299_p2 = scmp.lt.s32.totalorder %s4592_s26, 3 }
   0x5   : > { %s5441_s27 = smov (%p31_p1, %s29_s27), 0  ;;  %p300_p3 = pnand %p3287_p0, %p299_p2 }
   0x6   : > { %p361_p4 = scmp.lt.s32.totalorder (!%p300_p3), %s4584_s24, 1  ;;  %vm412_vm0 = vcmask (!%p300_p3), 195584   ;;  %v4594_v12 = vmov (!%p300_p3), 0.0|0.0   ;;  %vm4595_vm1 = vmmov (!%p300_p3), 0   ;;  %v4596_v13 = vmov (!%p300_p3), 0.0   ;;  %v4734_v44 = vld [vmem:[%s5431_s5] sm:$0xff] (!%p300_p3) }
   0x7   : > { %303 = sbr.rel (%p300_p3) target bundleno = 2300 (0x8fc), region = 48  ;;  %4131 = vmatprep.subr.bf16.mxu0 (!%p300_p3), %v4594_v12  ;;  %3771 = vmatprep.mubr.msk.f32.mxu0 (!%p300_p3), %vm4595_vm1, %v4596_v13  ;;  %vm563_vm2 = vcmask (!%p300_p3), 1042432   ;;  %vm4597_vm3 = vmmov (!%p300_p3), 1   ;;  %vm553_vm5 = vcmask (!%p300_p3), 482304   ;;  %v3316_v45 = vld [vmem:[%s5431_s5 + $0x30] sm:$0xff] (!%p300_p3)  ;;  %v551_v46 = vld [vmem:[%s5431_s5 + $0x8] sm:$0xff] (!%p300_p3) }
   0x8   : > { %vm4723_vm4 = vmpackc.low (!%p300_p3), %vm563_vm2, %vm4597_vm3  ;;  %v3317_v47 = vld [vmem:[%s5431_s5 + $0x38] sm:$0xff] (!%p300_p3)  ;;  %v552_v48 = vld [vmem:[%s5431_s5 + $0x10] sm:$0x7] (!%p300_p3)  ;;  %vm847_vm6 = vcmask (!%p300_p3), 523264   ;;  %vm850_vm7 = vcmask (!%p300_p3), 518144   ;;  %vm1173_vm8 = vcmask (!%p300_p3), 1040384  }
   0x9   : > { %v3318_v49 = vld [vmem:[%s5431_s5 + $0x40] sm:$0x7] (!%p300_p3)  ;;  %v3309_v50 = vld [vmem:[%s5431_s5 + $0x18] sm:$0xff] (!%p300_p3)  ;;  %v3311_v52 = vld [vmem:[%s5431_s5 + $0x28] sm:$0x7] (!%p300_p3)  ;;  %vm1169_vm9 = vcmask (!%p300_p3), 138240  }
   0xa   : > { %v3310_v51 = vld [vmem:[%s5431_s5 + $0x20] sm:$0xff] (!%p300_p3)  ;;  %v3449_v42 = vld [vmem:[%s5431_s5 + $0x38] sm:$0xff] (!%p300_p3) }
   0xe   : > { %s5443_s24 = smov (!%p361_p4, %s4584_s24), 1 }
   0xf   : > { %s3556_s28 = sshll.u32 %s5443_s24, 7  ;;  %s4537_s29 = smul.u32 24, %s5443_s24 }
  0x10   : > { %s4664_s9 = scalar_lea.vmem %s5426_s0, %s3556_s28  ;;  %s3557_s13 = sshll.u32 %s5443_s24, 4 }
  0x11   : > { %s375_s12 = scalar_lea.vmem %s5427_s1, %s4537_s29  ;;  %v400_v0 = vld [vmem:[%s4664_s9] sm:$0xff]  ;;  %v401_v5 = vld [vmem:[%s4664_s9 + $0x8] sm:$0xff]  ;;  %v402_v6 = vld [vmem:[%s4664_s9 + $0x10] sm:$0xff]  ;;  %s4703_s16 = scalar_lea.vmem %s5430_s4, %s3557_s13 }
  0x12   : > { %v408_v1 = vld [vmem:[%s375_s12] sm:$0xff]  ;;  %v409_v2 = vld [vmem:[%s375_s12 + $0x8] sm:$0xff]  ;;  %3743 = vmatprep.mubr.msk.f32.mxu1 %vm412_vm0, %v400_v0  ;;  %v4673_v4 = vld [vmem:[%s375_s12 + $0x10] sm:$0xff]  ;;  %s4538_s18 = smul.u32 192, %s5443_s24  ;;  %s3558_s30 = sshll.u32 %s5443_s24, 2 }
  0x13   : > { %v4671_v3 = vpack.c.bf16 %v409_v2, %v408_v1  ;;  %v403_v7 = vld [vmem:[%s4664_s9 + $0x18] sm:$0xff]  ;;  %v404_v8 = vld [vmem:[%s4664_s9 + $0x20] sm:$0xff]  ;;  %v405_v9 = vld [vmem:[%s4664_s9 + $0x28] sm:$0xff]  ;;  %s4539_s22 = smul.u32 768, %s5443_s24  ;;  %s5213_s10 = scalar_lea.vmem %s5433_s7, %s3558_s30 }
  0x14   : > { %v406_v10 = vld [vmem:[%s4664_s9 + $0x30] sm:$0xff]  ;;  %v407_v11 = vld [vmem:[%s4664_s9 + $0x38] sm:$0x7]  ;;  %v4706_v14 = vld [vmem:[%s4703_s16] ss:$0 sm:$0xff]  ;;  %s4800_s21 = scalar_lea.vmem %s5428_s2, %s4538_s18 }
  0x15   : > { %4128 = vmatprep.subr.bf16.mxu1 %v4671_v3  ;;  %v857_v53 = vld [vmem:[%s4800_s21] sm:$0xff]  ;;  %v858_v54 = vld [vmem:[%s4800_s21 + $0x8] sm:$0xff]  ;;  %v859_v56 = vld [vmem:[%s4800_s21 + $0x10] sm:$0xff]  ;;  %s4872_s29 = scalar_lea.vmem %s5429_s3, %s4539_s22 }
  0x16   : > { %4130 = vmatpush3.bf16.msra.mxu1 %v4671_v3  ;;  %v4171_v55 = vpack.c.bf16 %v858_v54, %v857_v53  ;;  %v860_v57 = vld [vmem:[%s4800_s21 + $0x18] sm:$0xff]  ;;  %v861_v59 = vld [vmem:[%s4800_s21 + $0x20] sm:$0xff]  ;;  %v862_v60 = vld [vmem:[%s4800_s21 + $0x28] sm:$0xff] }
  0x17   : > { %3741 = vmatprep.subr.mxu1 %v4673_v4  ;;  %v4174_v58 = vpack.c.bf16 %v860_v57, %v859_v56  ;;  %v4177_v61 = vpack.c.bf16 %v862_v60, %v861_v59  ;;  %v863_v62 = vld [vmem:[%s4800_s21 + $0x30] sm:$0xff]  ;;  %v864_v63 = vld [vmem:[%s4800_s21 + $0x38] sm:$0xff]  ;;  %v3338_v56 = vld [vmem:[%s4800_s21 + $0x88] sm:$0xff] }
  0x18   : > { %v4180_v0 = vpack.c.bf16 %v864_v63, %v863_v62  ;;  %v3340_v59 = vld [vmem:[%s4800_s21 + $0x98] sm:$0xff]  ;;  %v3341_v62 = vld [vmem:[%s4800_s21 + $0xa0] sm:$0xff]  ;;  %v3342_v63 = vld [vmem:[%s4800_s21 + $0xa8] sm:$0xff] }
  0x1a   : > { %3742 = vmatpush3.msra.mxu1 %v4673_v4 }
  0x1b   : > { %3744 = vmatmul.mubr.msk.f32.vlgmr.msra.gmra.mrb[0].mxu1 %vm412_vm0, %v401_v5  ;;  %4157 = vmatprep.subr.bf16.mxu1 %v4594_v12 }
  0x1c   : > { %3746 = vmatprep.mubr.msk.f32.mxu1 %vm412_vm0, %v402_v6 }
  0x1f   : > { %3747 = vmatmul.mubr.msk.f32.gmra.mrb[2].mxu1 %vm412_vm0, %v403_v7 }
  0x20   : > { %3749 = vmatprep.mubr.msk.f32.mxu1 %vm412_vm0, %v404_v8 }
  0x23   : > { %3750 = vmatmul.mubr.msk.f32.gmra.mrb[4].mxu1 %vm412_vm0, %v405_v9 }
  0x24   : > { %3752 = vmatprep.mubr.msk.f32.mxu1 %vm412_vm0, %v406_v10 }
  0x27   : > { %3753 = vmatmul.mubr.msk.f32.gmra.mrb[6].mxu1 %vm412_vm0, %v407_v11 }
  0x28   : > { %3821 = vmatprep.mubr.msk.f32.mxu1 %vm4595_vm1, %v4596_v13 }
  0xee   : > { %v3745_v15 = vpop.f32.mrb[0].mxu1 }
  0xef   : > { %v509_v16 = vadd.f32 %v3745_v15, %v4706_v14  ;;  %v503_v17 = vpop.f32.mrb[1].mxu1 }
  0xf0   : > { %v504_v18 = vadd.f32 %v503_v17, %v4706_v14 }
  0xf1   : > { %v543_v19 = vmax.f32 %v509_v16, 0.0 }
  0xf2   : > { %v542_v20 = vmax.f32 %v504_v18, 0.0  ;;  %v3748_v21 = vpop.f32.mrb[2].mxu1 }
  0xf3   : > { %v519_v22 = vadd.f32 %v3748_v21, %v4706_v14  ;;  %v513_v23 = vpop.f32.mrb[3].mxu1  ;;  %v839_v21 = vld [vmem:[%s4703_s16 + $0x1] ss:$0 sm:$0xff] }
  0xf4   : > { %v4132_v24 = vpack.c.bf16 %v543_v19, %v542_v20  ;;  %v514_v25 = vadd.f32 %v513_v23, %v4706_v14  ;;  %v843_v23 = vld [vmem:[%s4703_s16 + $0x2] ss:$0 sm:$0xff] }
  0xf5   : > { %v545_v26 = vmax.f32 %v519_v22, 0.0 }
  0xf6   : > { %v544_v27 = vmax.f32 %v514_v25, 0.0  ;;  %v3751_v28 = vpop.f32.mrb[4].mxu1  ;;  %4133 = vmatpush3.bf16.msra.mxu0 %v4132_v24  ;;  %4159 = vmatpush3.bf16.msra.mxu1 %v4132_v24 }
  0xf7   : > { %v529_v29 = vadd.f32 %v3751_v28, %v4706_v14  ;;  %v523_v30 = vpop.f32.mrb[5].mxu1  ;;  %4134 = vmatprep.subr.bf16.mxu0 %v4594_v12  ;;  %4160 = vmatprep.subr.bf16.mxu1 %v4594_v12 }
  0xf8   : > { %v4135_v31 = vpack.c.bf16 %v545_v26, %v544_v27  ;;  %v524_v32 = vadd.f32 %v523_v30, %v4706_v14 }
  0xf9   : > { %v547_v33 = vmax.f32 %v529_v29, 0.0 }
  0xfa   : > { %v546_v34 = vmax.f32 %v524_v32, 0.0  ;;  %v3754_v35 = vpop.f32.mrb[6].mxu1  ;;  %4136 = vmatpush3.bf16.msra.mxu0 %v4135_v31  ;;  %4162 = vmatpush3.bf16.msra.mxu1 %v4135_v31 }
  0xfb   : > { %v539_v36 = vadd.f32 %v3754_v35, %v4706_v14  ;;  %v533_v37 = vpop.f32.mrb[7].mxu1  ;;  %4137 = vmatprep.subr.bf16.mxu0 %v4594_v12  ;;  %4163 = vmatprep.subr.bf16.mxu1 %v4594_v12 }
  0xfc   : > { %v4138_v38 = vpack.c.bf16 %v547_v33, %v546_v34  ;;  %v534_v39 = vadd.f32 %v533_v37, %v4706_v14  ;;  %v3327_v37 = vld [vmem:[%s4800_s21 + $0x48] sm:$0xff] }
  0xfd   : > { %v549_v40 = vmax.f32 %v539_v36, 0.0  ;;  %v3326_v36 = vld [vmem:[%s4800_s21 + $0x40] sm:$0xff] }
  0xfe   : > { %v548_v41 = vmax.f32 %v534_v39, 0.0  ;;  %4139 = vmatpush3.bf16.msra.mxu0 %v4138_v38  ;;  %4165 = vmatpush3.bf16.msra.mxu1 %v4138_v38  ;;  %v4183_v39 = vpack.c.bf16 %v3327_v37, %v3326_v36 }
  0xff   : > { %4140 = vmatprep.subr.bf16.mxu0 %v4594_v12  ;;  %4166 = vmatprep.subr.bf16.mxu1 %v4594_v12 }
 0x100   : > { %v4141_v43 = vpack.c.bf16 %v549_v40, %v548_v41  ;;  %v3328_v41 = vld [vmem:[%s4800_s21 + $0x50] sm:$0xff] }
 0x102   : > { %4143 = vmatpush3.bf16.msk.msra.mxu0 %vm4723_vm4, %v4141_v43  ;;  %4169 = vmatpush3.bf16.msk.msra.mxu1 %vm4723_vm4, %v4141_v43 }
 0x103   : > { %4144 = vmatprep.subr.bf16.mxu0 %v4594_v12  ;;  %4206 = vmatprep.subr.bf16.mxu1 %v4594_v12 }
 0x105   : > { %3772 = vmatmul.mubr.msk.f32.vlgmr.msra.gmra.mrb[0].mxu0 %vm553_vm5, %v4734_v44  ;;  %3822 = vmatmul.mubr.msk.f32.vlgmr.msra.gmra.mrb[8].mxu1 %vm553_vm5, %v3316_v45 }
 0x106   : > { %4146 = vmatpush3.bf16.msra.mxu0 %v4132_v24  ;;  %3774 = vmatprep.mubr.msk.f32.mxu0 %vm4595_vm1, %v4596_v13 }
 0x107   : > { %4147 = vmatprep.subr.bf16.mxu0 %v4594_v12  ;;  %3824 = vmatprep.mubr.msk.f32.mxu1 %vm4595_vm1, %v4596_v13 }
 0x109   : > { %3775 = vmatmul.mubr.msk.f32.gmra.mrb[2].mxu0 %vm553_vm5, %v551_v46  ;;  %3825 = vmatmul.mubr.msk.f32.gmra.mrb[10].mxu1 %vm553_vm5, %v3317_v47  ;;  %v3330_v47 = vld [vmem:[%s4800_s21 + $0x60] sm:$0xff] }
 0x10a   : > { %4149 = vmatpush3.bf16.msra.mxu0 %v4135_v31  ;;  %3777 = vmatprep.mubr.msk.f32.mxu0 %vm4595_vm1, %v4596_v13 }
 0x10b   : > { %4150 = vmatprep.subr.bf16.mxu0 %v4594_v12  ;;  %3827 = vmatprep.mubr.msk.f32.mxu1 %vm4595_vm1, %v4596_v13 }
 0x10d   : > { %3778 = vmatmul.mubr.msk.f32.gmra.mrb[4].mxu0 %vm553_vm5, %v552_v48  ;;  %3828 = vmatmul.mubr.msk.f32.gmra.mrb[12].mxu1 %vm553_vm5, %v3318_v49  ;;  %v3331_v48 = vld [vmem:[%s4800_s21 + $0x68] sm:$0xff] }
 0x10e   : > { %4152 = vmatpush3.bf16.msra.mxu0 %v4138_v38  ;;  %3796 = vmatprep.mubr.msk.f32.mxu0 %vm4595_vm1, %v4596_v13 }
 0x10f   : > { %4153 = vmatprep.subr.bf16.mxu0 %v4594_v12  ;;  %3911 = vmatprep.mubr.msk.f32.mxu1 %vm4595_vm1, %v4596_v13 }
 0x112   : > { %4156 = vmatpush3.bf16.msk.msra.mxu0 %vm4723_vm4, %v4141_v43  ;;  %v3329_v43 = vld [vmem:[%s4800_s21 + $0x58] sm:$0xff] }
 0x113   : > { %4170 = vmatprep.subr.bf16.mxu0 %v4594_v12  ;;  %v4186_v46 = vpack.c.bf16 %v3329_v43, %v3328_v41 }
 0x115   : > { %3797 = vmatmul.mubr.msk.f32.vlgmr.msra.gmra.mrb[6].mxu0 %vm553_vm5, %v3309_v50  ;;  %v4189_v50 = vpack.c.bf16 %v3331_v48, %v3330_v47  ;;  %v1168_v48 = vld [vmem:[%s5432_s6] sm:$0x1f] }
 0x116   : > { %3799 = vmatprep.mubr.msk.f32.mxu0 %vm4595_vm1, %v4596_v13  ;;  %4172 = vmatpush3.bf16.msra.mxu0 %v4171_v55  ;;  %v3337_v55 = vld [vmem:[%s4800_s21 + $0x80] sm:$0xff] }
 0x117   : > { %4173 = vmatprep.subr.bf16.mxu0 %v4594_v12  ;;  %v4195_v57 = vpack.c.bf16 %v3338_v56, %v3337_v55  ;;  %v3364_v55 = vld [vmem:[%s4872_s29 + $0x138] sm:$0xff] }
 0x119   : > { %3800 = vmatmul.mubr.msk.f32.gmra.mrb[8].mxu0 %vm553_vm5, %v3310_v51  ;;  %v3332_v51 = vld [vmem:[%s4800_s21 + $0x70] sm:$0xff] }
 0x11a   : > { %3802 = vmatprep.mubr.msk.f32.mxu0 %vm4595_vm1, %v4596_v13  ;;  %4175 = vmatpush3.bf16.msra.mxu0 %v4174_v58  ;;  %v3339_v58 = vld [vmem:[%s4800_s21 + $0x90] sm:$0xff] }
 0x11b   : > { %4176 = vmatprep.subr.bf16.mxu0 %v4594_v12 }
 0x11d   : > { %3803 = vmatmul.mubr.msk.f32.gmra.mrb[10].mxu0 %vm553_vm5, %v3311_v52  ;;  %v3333_v52 = vld [vmem:[%s4800_s21 + $0x78] sm:$0xff] }
 0x11e   : > { %3846 = vmatprep.mubr.msk.f32.mxu0 %vm4595_vm1, %v4596_v13  ;;  %4178 = vmatpush3.bf16.msra.mxu0 %v4177_v61  ;;  %v4192_v54 = vpack.c.bf16 %v3333_v52, %v3332_v51  ;;  %v4198_v61 = vpack.c.bf16 %v3340_v59, %v3339_v58  ;;  %v3360_v51 = vld [vmem:[%s4872_s29 + $0x118] sm:$0xff]  ;;  %v3357_v52 = vld [vmem:[%s4872_s29 + $0x100] sm:$0xff] }
 0x11f   : > { %4179 = vmatprep.subr.bf16.mxu0 %v4594_v12 }
 0x122   : > { %4181 = vmatpush3.bf16.msra.mxu0 %v4180_v0 }
 0x123   : > { %4182 = vmatprep.subr.bf16.mxu0 %v4594_v12 }
 0x1d8   : > { %v633_v1 = vpop.f32.mrb[0].mxu0  ;;  %v822_v2 = vpop.f32.mrb[8].mxu1 }
 0x1d9   : > { %v3773_v5 = vpop.f32.mrb[1].mxu0  ;;  %v3823_v6 = vpop.f32.mrb[9].mxu1 }
 0x1da   : > { %v3344_v5 = vld [vmem:[%s4800_s21 + $0xb8] sm:$0xff] }
 0x1dc   : > { %v638_v7 = vpop.f32.mrb[2].mxu0  ;;  %v827_v8 = vpop.f32.mrb[10].mxu1 }
 0x1dd   : > { %v3776_v9 = vpop.f32.mrb[3].mxu0  ;;  %v3826_v10 = vpop.f32.mrb[11].mxu1 }
 0x1e0   : > { %v643_v11 = vpop.f32.mrb[4].mxu0  ;;  %v832_v15 = vpop.f32.mrb[12].mxu1 }
 0x1e1   : > { %v3779_v16 = vpop.f32.mrb[5].mxu0  ;;  %v3829_v17 = vpop.f32.mrb[13].mxu1 }
 0x1e2   : > { %v1420_v17 = vld [vmem:[%s4872_s29] sm:$0xff] }
 0x1e8   : > { %v726_v18 = vpop.f32.mrb[6].mxu0 }
 0x1e9   : > { %v740_v19 = vmax.f32 %v633_v1, %v726_v18  ;;  %v3798_v20 = vpop.f32.mrb[7].mxu0  ;;  %v4201_v1 = vpack.c.bf16 %v3342_v63, %v3341_v62  ;;  %v1422_v18 = vld [vmem:[%s4872_s29 + $0x10] sm:$0xff]  ;;  %v3366_v62 = vld [vmem:[%s4872_s29 + $0x148] sm:$0xff]  ;;  %v3368_v63 = vld [vmem:[%s4872_s29 + $0x158] sm:$0xff] }
 0x1ea   : > { %v1425_v20 = vld [vmem:[%s4872_s29 + $0x28] sm:$0xff] }
 0x1eb   : > { %v836_v22 = vmax.f32 %v740_v19, %v822_v2  ;;  %v3343_v2 = vld [vmem:[%s4800_s21 + $0xb0] sm:$0xff]  ;;  %v4217_v19 = vpack.c.bf16 %v1422_v18, %v1420_v17 }
 0x1ec   : > { %v731_v24 = vpop.f32.mrb[8].mxu0 }
 0x1ed   : > { %v840_v25 = vmul.f32 %v839_v21, %v836_v22  ;;  %v741_v26 = vmax.f32 %v638_v7, %v731_v24  ;;  %v3801_v27 = vpop.f32.mrb[9].mxu0  ;;  %v4204_v7 = vpack.c.bf16 %v3344_v5, %v3343_v2  ;;  %v1426_v24 = vld [vmem:[%s4872_s29 + $0x30] sm:$0xff]  ;;  %v3365_v2 = vld [vmem:[%s4872_s29 + $0x140] sm:$0xff] }
 0x1ee   : > { %v1431_v27 = vld [vmem:[%s4872_s29 + $0x58] sm:$0xff]  ;;  %v3367_v5 = vld [vmem:[%s4872_s29 + $0x150] sm:$0xff] }
 0x1ef   : > { %v844_v28 = vadd.f32 %v843_v23, %v840_v25  ;;  %v837_v29 = vmax.f32 %v741_v26, %v827_v8  ;;  %v1429_v26 = vld [vmem:[%s4872_s29 + $0x48] sm:$0xff] }
 0x1f0   : > { %v736_v30 = vpop.f32.mrb[10].mxu0 }
 0x1f1   : > { %848 = vst.msk [vmem:[#allocation2] sm:$0xff] %vm847_vm6, %v844_v28  ;;  %v841_v31 = vmul.f32 %v839_v21, %v837_v29  ;;  %v742_v32 = vmax.f32 %v643_v11, %v736_v30  ;;  %v3804_v33 = vpop.f32.mrb[11].mxu0  ;;  %v1421_v11 = vld [vmem:[%s4872_s29 + $0x8] sm:$0xff]  ;;  %v4889_v28 = vpack.c.bf16 %v1431_v27, %v1429_v26  ;;  %v1428_v29 = vld [vmem:[%s4872_s29 + $0x40] sm:$0xff]  ;;  %v1430_v30 = vld [vmem:[%s4872_s29 + $0x50] sm:$0xff] }
 0x1f2   : > { %v3374_v26 = vld [vmem:[%s4872_s29 + $0x188] sm:$0xff] }
 0x1f3   : > { %v845_v34 = vadd.f32 %v843_v23, %v841_v31  ;;  %v838_v35 = vmax.f32 %v742_v32, %v832_v15  ;;  %v1423_v15 = vld [vmem:[%s4872_s29 + $0x18] sm:$0xff]  ;;  %v4894_v31 = vpack.c.bf16 %v1430_v30, %v1428_v29  ;;  %v852_v32 = vld [vmem:[%s4703_s16 + $0x3] ss:$0 sm:$0xff] }
 0x1f4   : > { %v4215_v16 = vpack.c.bf16 %v1423_v15, %v1421_v11  ;;  %v3372_v11 = vld [vmem:[%s4872_s29 + $0x178] sm:$0xff]  ;;  %v1432_v15 = vld [vmem:[%s4872_s29 + $0x60] sm:$0xff] }
 0x1f5   : > { %849 = vst.msk [vmem:[#allocation2 + $0x8] sm:$0xff] %vm847_vm6, %v845_v34  ;;  %v842_v38 = vmul.f32 %v839_v21, %v838_v35  ;;  %v1427_v21 = vld [vmem:[%s4872_s29 + $0x38] sm:$0xff]  ;;  %v1436_v30 = vld [vmem:[%s4872_s29 + $0x80] sm:$0xff] }
 0x1f6   : > { %v4880_v22 = vpack.c.bf16 %v1427_v21, %v1425_v20  ;;  %v3371_v20 = vld [vmem:[%s4872_s29 + $0x170] sm:$0xff]  ;;  %v3376_v29 = vld [vmem:[%s4872_s29 + $0x198] sm:$0xff] }
 0x1f7   : > { %v846_v40 = vadd.f32 %v843_v23, %v842_v38  ;;  %v1424_v23 = vld [vmem:[%s4872_s29 + $0x20] sm:$0xff] }
 0x1f8   : > { %v854_v45 = vld [vmem:[#allocation2] sm:$0xff]  ;;  %v4884_v25 = vpack.c.bf16 %v1426_v24, %v1424_v23  ;;  %v1437_v23 = vld [vmem:[%s4872_s29 + $0x88] sm:$0xff]  ;;  %v1439_v24 = vld [vmem:[%s4872_s29 + $0x98] sm:$0xff] }
 0x1f9   : > { %851 = vst.msk [vmem:[#allocation2 + $0x10] sm:$0x7] %vm850_vm7, %v846_v40  ;;  %3847 = vmatmul.mubr.msk.f32.vlgmr.msra.gmra.mrb[12].mxu0 %vm847_vm6, %v854_v45  ;;  %v4953_v27 = vpack.c.bf16 %v1439_v24, %v1437_v23 }
 0x1fa   : > { %4184 = vmatpush3.bf16.msra.mxu0 %v4183_v39  ;;  %3849 = vmatprep.mubr.msk.f32.mxu0 %vm4595_vm1, %v4596_v13 }
 0x1fb   : > { %4185 = vmatprep.subr.bf16.mxu0 %v4594_v12 }
 0x1fc   : > { %v855_v49 = vld [vmem:[#allocation2 + $0x8] sm:$0xff] }
 0x1fd   : > { %3850 = vmatmul.mubr.msk.f32.gmra.mrb[14].mxu0 %vm847_vm6, %v855_v49  ;;  %v957_v60 = vld [vmem:[#allocation2 + $0x1] sm:$0xff] }
 0x1fe   : > { %4187 = vmatpush3.bf16.msra.mxu0 %v4186_v46  ;;  %3852 = vmatprep.mubr.msk.f32.mxu0 %vm4595_vm1, %v4596_v13  ;;  %v1061_v8 = vld [vmem:[#allocation2 + $0x2] sm:$0xff] }
 0x1ff   : > { %4188 = vmatprep.subr.bf16.mxu0 %v4594_v12  ;;  %v3350_v49 = vld [vmem:[%s5432_s6 + $0x8] sm:$0x1f] }
 0x200   : > { %v856_v53 = vld [vmem:[#allocation2 + $0x10] sm:$0x1]  ;;  %v959_v6 = vld [vmem:[#allocation2 + $0x11] sm:$0x1]  ;;  %v1063_v10 = vld [vmem:[#allocation2 + $0x12] sm:$0x1] }
 0x201   : > { %3853 = vmatmul.mubr.msk.f32.gmra.mrb[16].mxu0 %vm847_vm6, %v856_v53  ;;  %v958_v0 = vld [vmem:[#allocation2 + $0x9] sm:$0xff] }
 0x202   : > { %4190 = vmatpush3.bf16.msra.mxu0 %v4189_v50  ;;  %3871 = vmatprep.mubr.msk.f32.mxu0 %vm4595_vm1, %v4596_v13  ;;  %v1062_v9 = vld [vmem:[#allocation2 + $0xa] sm:$0xff] }
 0x203   : > { %4191 = vmatprep.subr.bf16.mxu0 %v4594_v12  ;;  %v3358_v50 = vld [vmem:[%s4872_s29 + $0x108] sm:$0xff]  ;;  %v3359_v53 = vld [vmem:[%s4872_s29 + $0x110] sm:$0xff] }
 0x204   : > { %v4247_v56 = vpack.c.bf16 %v3360_v51, %v3358_v50  ;;  %v4249_v58 = vpack.c.bf16 %v3359_v53, %v3357_v52  ;;  %v3379_v50 = vld [vmem:[%s4872_s29 + $0x1b0] sm:$0xff]  ;;  %v1445_v52 = vld [vmem:[%s4872_s29 + $0xc8] sm:$0xff]  ;;  %v1447_v53 = vld [vmem:[%s4872_s29 + $0xd8] sm:$0xff] }
 0x206   : > { %4193 = vmatpush3.bf16.msra.mxu0 %v4192_v54  ;;  %v3362_v54 = vld [vmem:[%s4872_s29 + $0x128] sm:$0xff] }
 0x207   : > { %4194 = vmatprep.subr.bf16.mxu0 %v4594_v12  ;;  %v4251_v59 = vpack.c.bf16 %v3364_v55, %v3362_v54  ;;  %v4980_v54 = vpack.c.bf16 %v1447_v53, %v1445_v52  ;;  %v3382_v55 = vld [vmem:[%s4872_s29 + $0x1c8] sm:$0xff] }
 0x208   : > { %v3398_v52 = vld [vmem:[%s4872_s29 + $0x248] sm:$0xff] }
 0x209   : > { %3872 = vmatmul.mubr.msk.f32.vlgmr.msra.gmra.mrb[12].mxu0 %vm847_vm6, %v957_v60  ;;  %v3361_v60 = vld [vmem:[%s4872_s29 + $0x120] sm:$0xff] }
 0x20a   : > { %4196 = vmatpush3.bf16.msra.mxu0 %v4195_v57  ;;  %3874 = vmatprep.mubr.msk.f32.mxu0 %vm4595_vm1, %v4596_v13  ;;  %v3353_v57 = vld [vmem:[%s5432_s6 + $0x10] sm:$0x1f] }
 0x20b   : > { %4197 = vmatprep.subr.bf16.mxu0 %v4594_v12 }
 0x20d   : > { %3875 = vmatmul.mubr.msk.f32.gmra.mrb[14].mxu0 %vm847_vm6, %v958_v0 }
 0x20e   : > { %4199 = vmatpush3.bf16.msra.mxu0 %v4198_v61  ;;  %3877 = vmatprep.mubr.msk.f32.mxu0 %vm4595_vm1, %v4596_v13  ;;  %v3363_v61 = vld [vmem:[%s4872_s29 + $0x130] sm:$0xff] }
 0x20f   : > { %4200 = vmatprep.subr.bf16.mxu0 %v4594_v12  ;;  %v4253_v0 = vpack.c.bf16 %v3363_v61, %v3361_v60  ;;  %v3381_v60 = vld [vmem:[%s4872_s29 + $0x1c0] sm:$0xff]  ;;  %v3383_v61 = vld [vmem:[%s4872_s29 + $0x1d0] sm:$0xff] }
 0x211   : > { %3878 = vmatmul.mubr.msk.f32.gmra.mrb[16].mxu0 %vm847_vm6, %v959_v6  ;;  %v4257_v6 = vpack.c.bf16 %v3367_v5, %v3365_v2  ;;  %v3386_v2 = vld [vmem:[%s4872_s29 + $0x1e8] sm:$0xff] }
 0x212   : > { %4202 = vmatpush3.bf16.msra.mxu0 %v4201_v1  ;;  %3896 = vmatprep.mubr.msk.f32.mxu0 %vm4595_vm1, %v4596_v13  ;;  %v4255_v1 = vpack.c.bf16 %v3368_v63, %v3366_v62  ;;  %v4273_v63 = vpack.c.bf16 %v3383_v61, %v3381_v60  ;;  %v3397_v60 = vld [vmem:[%s4872_s29 + $0x240] sm:$0xff]  ;;  %v3399_v61 = vld [vmem:[%s4872_s29 + $0x250] sm:$0xff] }
 0x213   : > { %4203 = vmatprep.subr.bf16.mxu0 %v4594_v12 }
 0x216   : > { %4205 = vmatpush3.bf16.msra.mxu0 %v4204_v7  ;;  %v1433_v7 = vld [vmem:[%s4872_s29 + $0x68] sm:$0xff] }
 0x217   : > { %4216 = vmatprep.subr.bf16.mxu0 %v4215_v16  ;;  %v1434_v16 = vld [vmem:[%s4872_s29 + $0x70] sm:$0xff] }
 0x218   : > { %v4944_v18 = vpack.c.bf16 %v1434_v16, %v1432_v15  ;;  %v3385_v15 = vld [vmem:[%s4872_s29 + $0x1e0] sm:$0xff]  ;;  %v3387_v16 = vld [vmem:[%s4872_s29 + $0x1f0] sm:$0xff] }
 0x219   : > { %3897 = vmatmul.mubr.msk.f32.vlgmr.msra.gmra.mrb[12].mxu0 %vm847_vm6, %v1061_v8  ;;  %v1435_v8 = vld [vmem:[%s4872_s29 + $0x78] sm:$0xff] }
 0x21a   : > { %3899 = vmatprep.mubr.msk.f32.mxu0 %vm4595_vm1, %v4596_v13  ;;  %4218 = vmatpush1.bf16.msra.mxu0 %v4217_v19  ;;  %v3369_v19 = vld [vmem:[%s4872_s29 + $0x160] sm:$0xff] }
 0x21b   : > { %4220 = vmatprep.subr.bf16.mxu0 %v4880_v22  ;;  %v4261_v21 = vpack.c.bf16 %v3371_v20, %v3369_v19  ;;  %v4277_v19 = vpack.c.bf16 %v3387_v16, %v3385_v15  ;;  %v3392_v20 = vld [vmem:[%s4872_s29 + $0x218] sm:$0xff]  ;;  %v3425_v16 = vld [vmem:[%s4664_s9 + $0x60] sm:$0xff] }
 0x21c   : > { %v3408_v15 = vld [vmem:[%s4872_s29 + $0x298] sm:$0xff] }
 0x21d   : > { %3900 = vmatmul.mubr.msk.f32.gmra.mrb[14].mxu0 %vm847_vm6, %v1062_v9  ;;  %v3370_v9 = vld [vmem:[%s4872_s29 + $0x168] sm:$0xff] }
 0x21e   : > { %3902 = vmatprep.mubr.msk.f32.mxu0 %vm4595_vm1, %v4596_v13  ;;  %4222 = vmatpush1.bf16.msra.mxu0 %v4884_v25  ;;  %v4259_v17 = vpack.c.bf16 %v3372_v11, %v3370_v9 }
 0x21f   : > { %4224 = vmatprep.subr.bf16.mxu0 %v4889_v28 }
 0x221   : > { %3903 = vmatmul.mubr.msk.f32.gmra.mrb[16].mxu0 %vm847_vm6, %v1063_v10  ;;  %v4939_v10 = vpack.c.bf16 %v1435_v8, %v1433_v7  ;;  %v1448_v7 = vld [vmem:[%s4872_s29 + $0xe0] sm:$0xff]  ;;  %v1450_v8 = vld [vmem:[%s4872_s29 + $0xf0] sm:$0xff] }
 0x222   : > { %1516 = vmatprep.mubr.f32.mxu0 %v4596_v13  ;;  %4226 = vmatpush1.bf16.msra.mxu0 %v4894_v31  ;;  %v5000_v11 = vpack.c.bf16 %v1450_v8, %v1448_v7  ;;  %v3401_v7 = vld [vmem:[%s4872_s29 + $0x260] sm:$0xff]  ;;  %v3403_v8 = vld [vmem:[%s4872_s29 + $0x270] sm:$0xff] }
 0x223   : > { %4228 = vmatprep.subr.bf16.mxu0 %v4939_v10 }
 0x226   : > { %4230 = vmatpush1.bf16.msra.mxu0 %v4944_v18 }
 0x227   : > { %4232 = vmatprep.subr.bf16.mxu0 %v4953_v27 }
 0x2ec   : > { %v1148_v33 = vpop.f32.mrb[12].mxu0 }
 0x2ed   : > { %v3898_v34 = vpop.f32.mrb[13].mxu0  ;;  %v4495_v35 = vadd.f32 %v1148_v33, %v852_v32  ;;  %v4263_v33 = vpack.c.bf16 %v3376_v29, %v3374_v26 }
 0x2ef   : > { %v1165_v39 = vmax.f32 %v4495_v35, 0.0  ;;  %v3373_v35 = vld [vmem:[%s4872_s29 + $0x180] sm:$0xff] }
 0x2f0   : > { %v1153_v36 = vpop.f32.mrb[14].mxu0 }
 0x2f1   : > { %v4496_v37 = vadd.f32 %v1153_v36, %v852_v32  ;;  %v3901_v38 = vpop.f32.mrb[15].mxu0  ;;  %v3375_v36 = vld [vmem:[%s4872_s29 + $0x190] sm:$0xff] }
 0x2f2   : > { %v1441_v38 = vld [vmem:[%s4872_s29 + $0xa8] sm:$0xff] }
 0x2f3   : > { %v1166_v40 = vmax.f32 %v4496_v37, 0.0  ;;  %v4265_v37 = vpack.c.bf16 %v3375_v36, %v3373_v35 }
 0x2f4   : > { %v1158_v41 = vpop.f32.mrb[16].mxu0 }
 0x2f5   : > { %v4207_v43 = vpack.c.bf16 %v1166_v40, %v1165_v39  ;;  %v4497_v45 = vadd.f32 %v1158_v41, %v852_v32  ;;  %v3904_v46 = vpop.f32.mrb[17].mxu0  ;;  %v1438_v32 = vld [vmem:[%s4872_s29 + $0x90] sm:$0xff]  ;;  %v1443_v39 = vld [vmem:[%s4872_s29 + $0xb8] sm:$0xff]  ;;  %v3378_v40 = vld [vmem:[%s4872_s29 + $0x1a8] sm:$0xff] }
 0x2f6   : > { %v4958_v34 = vpack.c.bf16 %v1438_v32, %v1436_v30  ;;  %v4967_v41 = vpack.c.bf16 %v1443_v39, %v1441_v38  ;;  %v1442_v46 = vld [vmem:[%s4872_s29 + $0xb0] sm:$0xff] }
 0x2f7   : > { %4208 = vmatpush3.bf16.msra.mxu1 %v4207_v43  ;;  %v1167_v47 = vmax.f32 %v4497_v45, 0.0  ;;  %v1440_v45 = vld [vmem:[%s4872_s29 + $0xa0] sm:$0xff] }
 0x2f8   : > { %3909 = vmatprep.subr.mxu1 %v4596_v13  ;;  %4234 = vmatpush1.bf16.msra.mxu0 %v4958_v34 }
 0x2f9   : > { %4236 = vmatprep.subr.bf16.mxu0 %v4967_v41 }
 0x2fb   : > { %3910 = vmatpush3.msk.msra.mxu1 %vm1173_vm8, %v1167_v47 }
 0x2fc   : > { %4209 = vmatprep.subr.bf16.mxu1 %v4594_v12  ;;  %3912 = vmatmul.mubr.msk.f32.vlgmr.msra.gmra.mrb[14].mxu1 %vm1169_vm9, %v1168_v48  ;;  %v4972_v48 = vpack.c.bf16 %v1442_v46, %v1440_v45  ;;  %v3394_v45 = vld [vmem:[%s4872_s29 + $0x228] sm:$0xff]  ;;  %v3396_v46 = vld [vmem:[%s4872_s29 + $0x238] sm:$0xff] }
 0x2fd   : > { %4211 = vmatpush3.bf16.msra.mxu1 %v4207_v43  ;;  %3920 = vmatprep.mubr.msk.f32.mxu1 %vm4595_vm1, %v4596_v13 }
 0x2fe   : > { %3918 = vmatprep.subr.mxu1 %v4596_v13  ;;  %4238 = vmatpush1.bf16.msra.mxu0 %v4972_v48 }
 0x2ff   : > { %4240 = vmatprep.subr.bf16.mxu0 %v4980_v54 }
 0x301   : > { %3919 = vmatpush3.msk.msra.mxu1 %vm1173_vm8, %v1167_v47 }
 0x302   : > { %3921 = vmatmul.mubr.msk.f32.vlgmr.msra.gmra.mrb[16].mxu1 %vm1169_vm9, %v3350_v49  ;;  %4212 = vmatprep.subr.bf16.mxu1 %v4594_v12  ;;  %v3377_v49 = vld [vmem:[%s4872_s29 + $0x1a0] sm:$0xff] }
 0x303   : > { %4214 = vmatpush3.bf16.msra.mxu1 %v4207_v43  ;;  %3929 = vmatprep.mubr.msk.f32.mxu1 %vm4595_vm1, %v4596_v13  ;;  %v3380_v43 = vld [vmem:[%s4872_s29 + $0x1b8] sm:$0xff]  ;;  %v4269_v51 = vpack.c.bf16 %v3379_v50, %v3377_v49  ;;  %v4283_v49 = vpack.c.bf16 %v3396_v46, %v3394_v45  ;;  %v3393_v50 = vld [vmem:[%s4872_s29 + $0x220] sm:$0xff] }
 0x304   : > { %3927 = vmatprep.subr.mxu1 %v4596_v13  ;;  %v3413_v46 = vld [vmem:[%s4872_s29 + $0x2c0] sm:$0xff] }
 0x307   : > { %3928 = vmatpush3.msk.msra.mxu1 %vm1173_vm8, %v1167_v47  ;;  %v4267_v47 = vpack.c.bf16 %v3380_v43, %v3378_v40  ;;  %v3389_v40 = vld [vmem:[%s4872_s29 + $0x200] sm:$0xff]  ;;  %v3391_v43 = vld [vmem:[%s4872_s29 + $0x210] sm:$0xff] }
 0x308   : > { %3930 = vmatmul.mubr.msk.f32.vlgmr.msra.gmra.mrb[18].mxu1 %vm1169_vm9, %v3353_v57  ;;  %4248 = vmatprep.subr.bf16.mxu1 %v4247_v56  ;;  %v3384_v56 = vld [vmem:[%s4872_s29 + $0x1d8] sm:$0xff]  ;;  %v1444_v57 = vld [vmem:[%s4872_s29 + $0xc0] sm:$0xff] }
 0x309   : > { %4250 = vmatpush1.bf16.msra.mxu1 %v4249_v58  ;;  %1623 = vmatprep.mubr.f32.mxu1 %v4596_v13  ;;  %v4271_v58 = vpack.c.bf16 %v3384_v56, %v3382_v55  ;;  %v3400_v56 = vld [vmem:[%s4872_s29 + $0x258] sm:$0xff] }
 0x30a   : > { %4252 = vmatprep.subr.bf16.mxu1 %v4251_v59  ;;  %v1446_v59 = vld [vmem:[%s4872_s29 + $0xd0] sm:$0xff] }
 0x30b   : > { %v4989_v62 = vpack.c.bf16 %v1446_v59, %v1444_v57  ;;  %v3421_v57 = vld [vmem:[%s4664_s9 + $0x40] sm:$0xff]  ;;  %v5030_v59 = vpack.c.bf16 %v3400_v56, %v3398_v52 }
 0x30d   : > { %4254 = vmatpush1.bf16.msra.mxu1 %v4253_v0  ;;  %v1449_v0 = vld [vmem:[%s4872_s29 + $0xe8] sm:$0xff]  ;;  %4242 = vmatpush1.bf16.msra.mxu0 %v4989_v62 }
 0x30e   : > { %4256 = vmatprep.subr.bf16.mxu1 %v4255_v1  ;;  %v1451_v1 = vld [vmem:[%s4872_s29 + $0xf8] sm:$0xff] }
 0x30f   : > { %v4995_v5 = vpack.c.bf16 %v1451_v1, %v1449_v0  ;;  %v3402_v0 = vld [vmem:[%s4872_s29 + $0x268] sm:$0xff]  ;;  %v3404_v1 = vld [vmem:[%s4872_s29 + $0x278] sm:$0xff] }
 0x311   : > { %4258 = vmatpush1.bf16.msra.mxu1 %v4257_v6  ;;  %v3388_v6 = vld [vmem:[%s4872_s29 + $0x1f8] sm:$0xff]  ;;  %4244 = vmatprep.subr.bf16.mxu0 %v4995_v5 }
 0x312   : > { %4260 = vmatprep.subr.bf16.mxu1 %v4259_v17  ;;  %v4275_v9 = vpack.c.bf16 %v3388_v6, %v3386_v2  ;;  %v3390_v17 = vld [vmem:[%s4872_s29 + $0x208] sm:$0xff]  ;;  %4246 = vmatpush1.bf16.msra.mxu0 %v5000_v11  ;;  %v5042_v2 = vpack.c.bf16 %v3399_v61, %v3397_v60  ;;  %v5046_v6 = vpack.c.bf16 %v3404_v1, %v3402_v0 }
 0x313   : > { %4312 = vmatprep.subr.bf16.mxu0 %v4671_v3 }
 0x315   : > { %4262 = vmatpush1.bf16.msra.mxu1 %v4261_v21  ;;  %v4279_v21 = vpack.c.bf16 %v3392_v20, %v3390_v17  ;;  %v5057_v17 = vpack.c.bf16 %v3403_v8, %v3401_v7  ;;  %v3405_v20 = vld [vmem:[%s4872_s29 + $0x280] sm:$0xff] }
 0x316   : > { %4264 = vmatprep.subr.bf16.mxu1 %v4263_v33  ;;  %v5010_v33 = vld [vmem:[%s4703_s16 + $0x4] ss:$0 sm:$0xff] }
 0x319   : > { %4266 = vmatpush1.bf16.msra.mxu1 %v4265_v37  ;;  %v5013_v37 = vld [vmem:[%s4703_s16 + $0x5] ss:$0 sm:$0xff] }
 0x31a   : > { %4268 = vmatprep.subr.bf16.mxu1 %v4267_v47  ;;  %v4281_v47 = vpack.c.bf16 %v3391_v43, %v3389_v40  ;;  %v3416_v40 = vld [vmem:[%s4872_s29 + $0x2d8] sm:$0xff] }
 0x31d   : > { %4270 = vmatpush1.bf16.msra.mxu1 %v4269_v51  ;;  %v3395_v51 = vld [vmem:[%s4872_s29 + $0x230] sm:$0xff] }
 0x31e   : > { %4272 = vmatprep.subr.bf16.mxu1 %v4271_v58  ;;  %v5027_v58 = vpack.c.bf16 %v3395_v51, %v3393_v50  ;;  %v3420_v50 = vld [vmem:[%s4872_s29 + $0x2f8] sm:$0xff] }
 0x321   : > { %4274 = vmatpush1.bf16.msra.mxu1 %v4273_v63  ;;  %v3422_v63 = vld [vmem:[%s4664_s9 + $0x48] sm:$0xff] }
 0x322   : > { %4276 = vmatprep.subr.bf16.mxu1 %v4275_v9  ;;  %v3424_v9 = vld [vmem:[%s4664_s9 + $0x58] sm:$0xff] }
 0x325   : > { %4278 = vmatpush1.bf16.msra.mxu1 %v4277_v19 }
 0x326   : > { %4280 = vmatprep.subr.bf16.mxu1 %v4279_v21  ;;  %v3407_v21 = vld [vmem:[%s4872_s29 + $0x290] sm:$0xff] }
 0x3cf   : > { %v1243_v23 = vpop.f32.mrb[14].mxu1 }
 0x3d0   : > { %v3913_v24 = vpop.f32.mrb[15].mxu1 }
 0x3d1   : > { %v3410_v24 = vld [vmem:[%s4872_s29 + $0x2a8] sm:$0xff] }
 0x3d5   : > { %v1318_v26 = vpop.f32.mrb[16].mxu1 }
 0x3d6   : > { %v1322_v29 = vmax.f32 %v1243_v23, %v1318_v26  ;;  %v3922_v30 = vpop.f32.mrb[17].mxu1  ;;  %v3426_v23 = vld [vmem:[%s4664_s9 + $0x68] sm:$0xff]  ;;  %v3412_v26 = vld [vmem:[%s4872_s29 + $0x2b8] sm:$0xff] }
 0x3d7   : > { %v5071_v30 = vpack.c.bf16 %v3407_v21, %v3405_v20 }
 0x3db   : > { %v1394_v32 = vpop.f32.mrb[18].mxu1 }
 0x3dc   : > { %v1398_v35 = vmax.f32 %v1322_v29, %v1394_v32  ;;  %v3931_v36 = vpop.f32.mrb[19].mxu1  ;;  %v3427_v29 = vld [vmem:[%s4664_s9 + $0x70] sm:$0xff]  ;;  %v5075_v32 = vpack.c.bf16 %v3412_v26, %v3410_v24  ;;  %v1407_v26 = vlaneseq }
 0x3dd   : > { %v3411_v36 = vld [vmem:[%s4872_s29 + $0x2b0] sm:$0xff] }
 0x3de   : > { %v1400_v38 = vmul.f32 %v5010_v33, %v1398_v35  ;;  %v3409_v35 = vld [vmem:[%s4872_s29 + $0x2a0] sm:$0xff]  ;;  %vm5206_vm10 = vcmp.lt.s32.totalorder %v1407_v26, 256 }
 0x3df   : > { %v5084_v43 = vpack.c.bf16 %v3411_v36, %v3409_v35 }
 0x3e0   : > { %v1402_v39 = vadd.f32 %v5013_v37, %v1400_v38  ;;  %v3428_v38 = vld [vmem:[%s4664_s9 + $0x78] sm:$0x7] }
 0x3e2   : > { %1403 = vst [vmem:[#allocation3] sm:$0x1f] %v1402_v39  ;;  %v3414_v39 = vld [vmem:[%s4872_s29 + $0x2c8] sm:$0xff] }
 0x3e3   : > { %v5088_v45 = vpack.c.bf16 %v3416_v40, %v3414_v39 }
 0x3e9   : > { %v1419_v53 = vld [vmem:[#allocation3] sm:$0x7] }
 0x3ea   : > { %v1525_v55 = vld [vmem:[#allocation3 + $0x1] sm:$0x7]  ;;  %1517 = vmatmul.mubr.f32.vlgmr.msra.gmra.mrb[18].mxu0 %v1419_v53  ;;  %v3417_v53 = vld [vmem:[%s4872_s29 + $0x2e0] sm:$0xff] }
 0x3eb   : > { %1624 = vmatmul.mubr.f32.vlgmr.msra.gmra.mrb[20].mxu1 %v1525_v55  ;;  %4314 = vmatpush3.bf16.msra.mxu0 %v4671_v3  ;;  %v3423_v3 = vld [vmem:[%s4664_s9 + $0x50] sm:$0xff] }
 0x3ec   : > { %4282 = vmatpush1.bf16.msra.mxu1 %v4281_v47  ;;  %3936 = vmatprep.subr.mxu0 %v4673_v4  ;;  %v3415_v47 = vld [vmem:[%s4872_s29 + $0x2d0] sm:$0xff] }
 0x3ed   : > { %4284 = vmatprep.subr.bf16.mxu1 %v4283_v49  ;;  %3938 = vmatprep.mubr.msk.f32.mxu0 %vm412_vm0, %v3421_v57  ;;  %v3418_v49 = vld [vmem:[%s4872_s29 + $0x2e8] sm:$0xff]  ;;  %v5097_v51 = vpack.c.bf16 %v3415_v47, %v3413_v46  ;;  %v3419_v55 = vld [vmem:[%s4872_s29 + $0x2f0] sm:$0xff]  ;;  %v1632_v57 = vld [vmem:[#allocation3 + $0x2] sm:$0x7]  ;;  %v5126_v47 = vshrl.u32 %v1407_v26, 7 }
 0x3ee   : > { %1730 = vmatprep.mubr.f32.mxu1 %v4596_v13  ;;  %v5100_v52 = vpack.c.bf16 %v3420_v50, %v3418_v49  ;;  %v5105_v56 = vpack.c.bf16 %v3419_v55, %v3417_v53  ;;  %v4569_v55 = vld [vmem:[%s4703_s16] ss:$0 sm:$0xff]  ;;  %v3448_v26 = vld [vmem:[%s5431_s5 + $0x30] sm:$0xff] }
 0x3ef   : > { %3937 = vmatpush3.msra.mxu0 %v4673_v4  ;;  %v3406_v4 = vld [vmem:[%s4872_s29 + $0x288] sm:$0xff] }
 0x3f0   : > { %4286 = vmatpush1.bf16.msra.mxu1 %v5027_v58  ;;  %3939 = vmatmul.mubr.msk.f32.vlgmr.msra.gmra.mrb[20].mxu0 %vm412_vm0, %v3422_v63  ;;  %v5061_v19 = vpack.c.bf16 %v3408_v15, %v3406_v4 }
 0x3f1   : > { %4288 = vmatprep.subr.bf16.mxu1 %v5030_v59  ;;  %3941 = vmatprep.mubr.msk.f32.mxu0 %vm412_vm0, %v3423_v3 }
 0x3f2   : > { %4315 = vmatprep.subr.bf16.mxu0 %v4594_v12 }
 0x3f4   : > { %4290 = vmatpush1.bf16.msra.mxu1 %v5042_v2  ;;  %3942 = vmatmul.mubr.msk.f32.gmra.mrb[22].mxu0 %vm412_vm0, %v3424_v9 }
 0x3f5   : > { %4292 = vmatprep.subr.bf16.mxu1 %v5046_v6  ;;  %3944 = vmatprep.mubr.msk.f32.mxu0 %vm412_vm0, %v3425_v16 }
 0x3f8   : > { %4294 = vmatpush1.bf16.msra.mxu1 %v5057_v17  ;;  %3945 = vmatmul.mubr.msk.f32.gmra.mrb[24].mxu0 %vm412_vm0, %v3426_v23 }
 0x3f9   : > { %4296 = vmatprep.subr.bf16.mxu1 %v5061_v19  ;;  %3947 = vmatprep.mubr.msk.f32.mxu0 %vm412_vm0, %v3427_v29 }
 0x3fc   : > { %4298 = vmatpush1.bf16.msra.mxu1 %v5071_v30  ;;  %3948 = vmatmul.mubr.msk.f32.gmra.mrb[26].mxu0 %vm412_vm0, %v3428_v38 }
 0x3fd   : > { %4300 = vmatprep.subr.bf16.mxu1 %v5075_v32  ;;  %3966 = vmatprep.mubr.msk.f32.mxu0 %vm4595_vm1, %v4596_v13 }
 0x400   : > { %4302 = vmatpush1.bf16.msra.mxu1 %v5084_v43 }
 0x401   : > { %4304 = vmatprep.subr.bf16.mxu1 %v5088_v45 }
 0x404   : > { %4306 = vmatpush1.bf16.msra.mxu1 %v5097_v51 }
 0x405   : > { %4308 = vmatprep.subr.bf16.mxu1 %v5100_v52 }
 0x408   : > { %4310 = vmatpush1.bf16.msra.mxu1 %v5105_v56 }
 0x409   : > { %4390 = vmatprep.subr.bf16.mxu1 %v4594_v12 }
 0x40b   : > { %1731 = vmatmul.mubr.f32.vlgmr.msra.gmra.mrb[20].mxu1 %v1632_v57 }
 0x40c   : > { %4106 = vmatprep.mubr.msk.f32.mxu1 %vm4595_vm1, %v4596_v13 }
 0x4bd   : > { %v1518_v60 = vpop.f32.mrb[18].mxu0 }
 0x4be   : > { %v1520_v61 = vpop.f32.mrb[19].mxu0 }
 0x4c3   : > { %v3940_v63 = vpop.f32.mrb[20].mxu0 }
 0x4c4   : > { %v1890_v0 = vadd.f32 %v3940_v63, %v4706_v14  ;;  %v1884_v1 = vpop.f32.mrb[21].mxu0 }
 0x4c5   : > { %v1885_v3 = vadd.f32 %v1884_v1, %v4706_v14  ;;  %v1409_v1 = vsub.s32 0, %v5126_v47 }
 0x4c6   : > { %v1924_v7 = vmax.f32 %v1890_v0, 0.0 }
 0x4c7   : > { %v1923_v8 = vmax.f32 %v1885_v3, 0.0  ;;  %v3943_v9 = vpop.f32.mrb[22].mxu0  ;;  %v3356_v3 = vld [vmem:[%s4703_s16 + $0x6] ss:$8 sm:$0x3] }
 0x4c8   : > { %v1900_v4 = vadd.f32 %v3943_v9, %v4706_v14  ;;  %v1894_v15 = vpop.f32.mrb[23].mxu0 }
 0x4c9   : > { %v5115_v16 = vpack.c.bf16 %v1924_v7, %v1923_v8  ;;  %v1895_v20 = vadd.f32 %v1894_v15, %v4706_v14  ;;  %v1413_v7 = vsub.s32 1, %v5126_v47 }
 0x4ca   : > { %v1926_v21 = vmax.f32 %v1900_v4, 0.0  ;;  %v1932_v4 = vld [vmem:[%s5431_s5 + $0x8] sm:$0xff] }
 0x4cb   : > { %v1925_v23 = vmax.f32 %v1895_v20, 0.0  ;;  %v3946_v24 = vpop.f32.mrb[24].mxu0  ;;  %4317 = vmatpush3.bf16.msra.mxu0 %v5115_v16  ;;  %v1414_v9 = vrot.slane %v3356_v3, %v1413_v7 }
 0x4cc   : > { %v1910_v29 = vadd.f32 %v3946_v24, %v4706_v14  ;;  %v1904_v35 = vpop.f32.mrb[25].mxu0  ;;  %4318 = vmatprep.subr.bf16.mxu0 %v4594_v12 }
 0x4cd   : > { %v5121_v36 = vpack.c.bf16 %v1926_v21, %v1925_v23  ;;  %v1905_v38 = vadd.f32 %v1904_v35, %v4706_v14  ;;  %v1524_v20 = vadd.f32 %v1520_v61, %v1414_v9 }
 0x4ce   : > { %v1928_v39 = vmax.f32 %v1910_v29, 0.0 }
 0x4cf   : > { %v1927_v40 = vmax.f32 %v1905_v38, 0.0  ;;  %v3949_v46 = vpop.f32.mrb[26].mxu0  ;;  %4320 = vmatpush3.bf16.msra.mxu0 %v5121_v36 }
 0x4d0   : > { %v1920_v49 = vadd.f32 %v3949_v46, %v4706_v14  ;;  %v1914_v50 = vpop.f32.mrb[27].mxu0  ;;  %4321 = vmatprep.subr.bf16.mxu0 %v4594_v12  ;;  %v1410_v14 = vrot.slane %v3356_v3, %v1409_v1 }
 0x4d1   : > { %v5130_v53 = vpack.c.bf16 %v1928_v39, %v1927_v40  ;;  %v1915_v57 = vadd.f32 %v4569_v55, %v1914_v50  ;;  %v3441_v55 = vld [vmem:[%s5431_s5 + $0x18] sm:$0xff] }
 0x4d2   : > { %v1930_v63 = vmax.f32 %v1920_v49, 0.0  ;;  %v1523_v15 = vadd.f32 %v1518_v60, %v1410_v14 }
 0x4d3   : > { %v1929_v0 = vmax.f32 %v1915_v57, 0.0  ;;  %4323 = vmatpush3.bf16.msra.mxu0 %v5130_v53  ;;  %v4598_v57 = vmov 1966171168  }
 0x4d4   : > { %4324 = vmatprep.subr.bf16.mxu0 %v4594_v12 }
 0x4d5   : > { %v5138_v8 = vpack.c.bf16 %v1930_v63, %v1929_v0  ;;  %v1762_v63 = vunpack.c.l.s4 %v4598_v57 }
 0x4d7   : > { %4327 = vmatpush3.bf16.msk.msra.mxu0 %vm4723_vm4, %v5138_v8 }
 0x4d8   : > { %4328 = vmatprep.subr.bf16.mxu0 %v4594_v12 }
 0x4da   : > { %3967 = vmatmul.mubr.msk.f32.vlgmr.msra.gmra.mrb[28].mxu0 %vm553_vm5, %v4734_v44  ;;  %v1933_v44 = vld [vmem:[%s5431_s5 + $0x10] sm:$0x7] }
 0x4db   : > { %4330 = vmatpush3.bf16.msra.mxu0 %v5115_v16  ;;  %3969 = vmatprep.mubr.msk.f32.mxu0 %vm4595_vm1, %v4596_v13 }
 0x4dc   : > { %4331 = vmatprep.subr.bf16.mxu0 %v4594_v12 }
 0x4de   : > { %v1732_v21 = vpop.f32.mrb[20].mxu1  ;;  %3970 = vmatmul.mubr.msk.f32.gmra.mrb[30].mxu0 %vm553_vm5, %v1932_v4  ;;  %v3442_v4 = vld [vmem:[%s5431_s5 + $0x20] sm:$0xff] }
 0x4df   : > { %v4499_v23 = vadd.f32 %v1732_v21, %v1523_v15  ;;  %v1734_v24 = vpop.f32.mrb[21].mxu1  ;;  %4333 = vmatpush3.bf16.msra.mxu0 %v5121_v36  ;;  %3972 = vmatprep.mubr.msk.f32.mxu0 %vm4595_vm1, %v4596_v13  ;;  %v1763_v15 = vunpack.c.0.s8 %v1762_v63  ;;  %v2238_v63 = vld [vmem:[%s4800_s21 + $0x30] sm:$0xff] }
 0x4e0   : > { %v4501_v29 = vadd.f32 %v1734_v24, %v1524_v20  ;;  %4334 = vmatprep.subr.bf16.mxu0 %v4594_v12 }
 0x4e1   : > { %v1739_v35 = vmax.f32 %v4499_v23, 0.0 }
 0x4e2   : > { %v1740_v60 = vmax.f32 %v4501_v29, 0.0  ;;  %3973 = vmatmul.mubr.msk.f32.gmra.mrb[32].mxu0 %vm553_vm5, %v1933_v44  ;;  %v5195_v29 = vsub.s32 %v1763_v15, %v5126_v47 }
 0x4e3   : > { %v1741_v61 = vsel %vm563_vm2, %v1739_v35, 0.0  ;;  %4336 = vmatpush3.bf16.msra.mxu0 %v5130_v53  ;;  %3991 = vmatprep.mubr.msk.f32.mxu0 %vm4595_vm1, %v4596_v13 }
 0x4e4   : > { %v1742_v38 = vrot.slane %v1741_v61, 4  ;;  %v1748_v39 = vsel %vm563_vm2, %v1740_v60, 0.0  ;;  %4337 = vmatprep.subr.bf16.mxu0 %v4594_v12 }
 0x4e5   : > { %v1749_v40 = vrot.slane %v1748_v39, 4 }
 0x4e6   : > { %v1743_v46 = vadd.f32 %v1742_v38, %v1741_v61  ;;  %v2232_v61 = vld [vmem:[%s4800_s21] sm:$0xff]  ;;  %v2233_v38 = vld [vmem:[%s4800_s21 + $0x8] sm:$0xff] }
 0x4e7   : > { %v1750_v49 = vadd.f32 %v1749_v40, %v1748_v39  ;;  %4340 = vmatpush3.bf16.msk.msra.mxu0 %vm4723_vm4, %v5138_v8  ;;  %v4355_v39 = vpack.c.bf16 %v2233_v38, %v2232_v61  ;;  %v2234_v40 = vld [vmem:[%s4800_s21 + $0x10] sm:$0xff]  ;;  %v2216_v61 = vld [vmem:[%s4703_s16 + $0x1] ss:$0 sm:$0xff] }
 0x4e8   : > { %v1744_v50 = vrot.slane %v1743_v46, 2  ;;  %4341 = vmatprep.subr.bf16.mxu0 %v4594_v12 }
 0x4e9   : > { %v1751_v0 = vrot.slane %v1750_v49, 2 }
 0x4ea   : > { %v1745_v3 = vadd.f32 %v1744_v50, %v1743_v46  ;;  %3992 = vmatmul.mubr.msk.f32.vlgmr.msra.gmra.mrb[34].mxu0 %vm553_vm5, %v3441_v55  ;;  %v2235_v46 = vld [vmem:[%s4800_s21 + $0x18] sm:$0xff]  ;;  %v2236_v50 = vld [vmem:[%s4800_s21 + $0x20] sm:$0xff]  ;;  %v2237_v55 = vld [vmem:[%s4800_s21 + $0x28] sm:$0xff] }
 0x4eb   : > { %v1752_v14 = vadd.f32 %v1751_v0, %v1750_v49  ;;  %4343 = vmatpush3.bf16.msra.mxu0 %v5115_v16  ;;  %3994 = vmatprep.mubr.msk.f32.mxu0 %vm4595_vm1, %v4596_v13  ;;  %v3443_v16 = vld [vmem:[%s5431_s5 + $0x28] sm:$0x7]  ;;  %v4358_v49 = vpack.c.bf16 %v2235_v46, %v2234_v40  ;;  %v4361_v57 = vpack.c.bf16 %v2237_v55, %v2236_v50  ;;  %v2239_v0 = vld [vmem:[%s4800_s21 + $0x38] sm:$0xff]  ;;  %v2220_v40 = vld [vmem:[%s4703_s16 + $0x2] ss:$0 sm:$0xff] }
 0x4ec   : > { %v1746_v9 = vrot.slane %v1745_v3, 1  ;;  %4344 = vmatprep.subr.bf16.mxu0 %v4594_v12 }
 0x4ed   : > { %v1753_v20 = vrot.slane %v1752_v14, 1 }
 0x4ee   : > { %v1747_v21 = vadd.f32 %v1746_v9, %v1745_v3  ;;  %3995 = vmatmul.mubr.msk.f32.gmra.mrb[36].mxu0 %vm553_vm5, %v3442_v4  ;;  %v4364_v3 = vpack.c.bf16 %v2239_v0, %v2238_v63 }
 0x4ef   : > { %v1754_v23 = vadd.f32 %v1753_v20, %v1752_v14  ;;  %4346 = vmatpush3.bf16.msra.mxu0 %v5121_v36  ;;  %3997 = vmatprep.mubr.msk.f32.mxu0 %vm4595_vm1, %v4596_v13 }
 0x4f0   : > { %v1756_v24 = vmul.f32 0.33333334, %v1747_v21  ;;  %4347 = vmatprep.subr.bf16.mxu0 %v4594_v12 }
 0x4f1   : > { %v1757_v44 = vmul.f32 0.33333334, %v1754_v23 }
 0x4f2   : > { %3998 = vmatmul.mubr.msk.f32.gmra.mrb[38].mxu0 %vm553_vm5, %v3443_v16 }
 0x4f3   : > { %v1760_v35 = vcombine.low %v1756_v24, %v1757_v44  ;;  %4349 = vmatpush3.bf16.msra.mxu0 %v5130_v53  ;;  %4016 = vmatprep.mubr.msk.f32.mxu0 %vm4595_vm1, %v4596_v13 }
 0x4f4   : > { %4350 = vmatprep.subr.bf16.mxu0 %v4594_v12 }
 0x4f5   : > { %v1767_v36 = vrot.slane %v1760_v35, %v5195_v29 }
 0x4f7   : > { %v1774_v53 = vrot.slane %v1767_v36, %v5195_v29  ;;  %4353 = vmatpush3.bf16.msk.msra.mxu0 %vm4723_vm4, %v5138_v8  ;;  %v3450_v8 = vld [vmem:[%s5431_s5 + $0x40] sm:$0x7] }
 0x4f8   : > { %4354 = vmatprep.subr.bf16.mxu0 %v4594_v12 }
 0x4f9   : > { %1780 = vst.msk [vmem:[%s5213_s10] ss:$2 sm:$0x3] %vm5206_vm10, %v1774_v53 }
 0x4fa   : > { %4017 = vmatmul.mubr.msk.f32.vlgmr.msra.gmra.mrb[40].mxu0 %vm553_vm5, %v3448_v26 }
 0x4fb   : > { %4019 = vmatprep.mubr.msk.f32.mxu0 %vm4595_vm1, %v4596_v13  ;;  %4356 = vmatpush3.bf16.msra.mxu0 %v4355_v39 }
 0x4fc   : > { %4357 = vmatprep.subr.bf16.mxu0 %v4594_v12 }
 0x4fe   : > { %4020 = vmatmul.mubr.msk.f32.gmra.mrb[42].mxu0 %vm553_vm5, %v3449_v42 }
 0x4ff   : > { %4022 = vmatprep.mubr.msk.f32.mxu0 %vm4595_vm1, %v4596_v13  ;;  %4359 = vmatpush3.bf16.msra.mxu0 %v4358_v49 }
 0x500   : > { %4360 = vmatprep.subr.bf16.mxu0 %v4594_v12 }
 0x502   : > { %4023 = vmatmul.mubr.msk.f32.gmra.mrb[44].mxu0 %vm553_vm5, %v3450_v8 }
 0x503   : > { %4041 = vmatprep.mubr.msk.f32.mxu0 %vm4595_vm1, %v4596_v13  ;;  %4362 = vmatpush3.bf16.msra.mxu0 %v4361_v57 }
 0x504   : > { %4363 = vmatprep.subr.bf16.mxu0 %v4594_v12 }
 0x507   : > { %4365 = vmatpush3.bf16.msra.mxu0 %v4364_v3 }
 0x508   : > { %4366 = vmatprep.subr.bf16.mxu0 %v4594_v12 }
 0x5ad   : > { %v2012_v14 = vpop.f32.mrb[28].mxu0 }
 0x5ae   : > { %v3968_v9 = vpop.f32.mrb[29].mxu0 }
 0x5af   : > { %v3458_v9 = vld [vmem:[%s4800_s21 + $0x40] sm:$0xff] }
 0x5b1   : > { %v2017_v4 = vpop.f32.mrb[30].mxu0 }
 0x5b2   : > { %v3971_v15 = vpop.f32.mrb[31].mxu0 }
 0x5b5   : > { %v2022_v20 = vpop.f32.mrb[32].mxu0 }
 0x5b6   : > { %v3974_v21 = vpop.f32.mrb[33].mxu0 }
 0x5bd   : > { %v2104_v23 = vpop.f32.mrb[34].mxu0 }
 0x5be   : > { %v2118_v24 = vmax.f32 %v2012_v14, %v2104_v23  ;;  %v3993_v16 = vpop.f32.mrb[35].mxu0 }
 0x5bf   : > { %v3461_v16 = vld [vmem:[%s4800_s21 + $0x58] sm:$0xff] }
 0x5c1   : > { %v2109_v44 = vpop.f32.mrb[36].mxu0 }
 0x5c2   : > { %v2119_v35 = vmax.f32 %v2017_v4, %v2109_v44  ;;  %v3996_v36 = vpop.f32.mrb[37].mxu0  ;;  %v3459_v4 = vld [vmem:[%s4800_s21 + $0x48] sm:$0xff] }
 0x5c3   : > { %v4367_v21 = vpack.c.bf16 %v3459_v4, %v3458_v9  ;;  %v3462_v36 = vld [vmem:[%s4800_s21 + $0x60] sm:$0xff]  ;;  %v3475_v4 = vld [vmem:[%s4800_s21 + $0xb0] sm:$0xff] }
 0x5c5   : > { %v2114_v53 = vpop.f32.mrb[38].mxu0 }
 0x5c6   : > { %v2120_v26 = vmax.f32 %v2022_v20, %v2114_v53  ;;  %v3999_v42 = vpop.f32.mrb[39].mxu0  ;;  %v3463_v53 = vld [vmem:[%s4800_s21 + $0x68] sm:$0xff] }
 0x5c7   : > { %v4373_v42 = vpack.c.bf16 %v3463_v53, %v3462_v36 }
 0x5cd   : > { %v2199_v8 = vpop.f32.mrb[40].mxu0 }
 0x5ce   : > { %v2213_v38 = vmax.f32 %v2118_v24, %v2199_v8  ;;  %v4018_v39 = vpop.f32.mrb[41].mxu0  ;;  %v3460_v24 = vld [vmem:[%s4800_s21 + $0x50] sm:$0xff] }
 0x5cf   : > { %v3464_v8 = vld [vmem:[%s4800_s21 + $0x70] sm:$0xff] }
 0x5d0   : > { %v2217_v46 = vmul.f32 %v2216_v61, %v2213_v38 }
 0x5d1   : > { %v2204_v49 = vpop.f32.mrb[42].mxu0 }
 0x5d2   : > { %v2221_v50 = vadd.f32 %v2220_v40, %v2217_v46  ;;  %v2214_v55 = vmax.f32 %v2119_v35, %v2204_v49  ;;  %v4021_v57 = vpop.f32.mrb[43].mxu0  ;;  %v4370_v35 = vpack.c.bf16 %v3461_v16, %v3460_v24  ;;  %v3470_v46 = vld [vmem:[%s4800_s21 + $0x88] sm:$0xff] }
 0x5d4   : > { %2224 = vst.msk [vmem:[#allocation2] sm:$0xff] %vm847_vm6, %v2221_v50  ;;  %v2218_v63 = vmul.f32 %v2216_v61, %v2214_v55  ;;  %v3471_v50 = vld [vmem:[%s4800_s21 + $0x90] sm:$0xff]  ;;  %v3472_v55 = vld [vmem:[%s4800_s21 + $0x98] sm:$0xff] }
 0x5d5   : > { %v2209_v0 = vpop.f32.mrb[44].mxu0 }
 0x5d6   : > { %v2222_v3 = vadd.f32 %v2220_v40, %v2218_v63  ;;  %v2215_v14 = vmax.f32 %v2120_v26, %v2209_v0  ;;  %v4024_v15 = vpop.f32.mrb[45].mxu0  ;;  %v4382_v63 = vpack.c.bf16 %v3472_v55, %v3471_v50  ;;  %v3473_v0 = vld [vmem:[%s4800_s21 + $0xa0] sm:$0xff] }
 0x5d7   : > { %v3476_v15 = vld [vmem:[%s4800_s21 + $0xb8] sm:$0xff]  ;;  %v2541_v55 = vld [vmem:[%s5432_s6] sm:$0x1f] }
 0x5d8   : > { %2225 = vst.msk [vmem:[#allocation2 + $0x8] sm:$0xff] %vm847_vm6, %v2222_v3  ;;  %v2219_v20 = vmul.f32 %v2216_v61, %v2215_v14  ;;  %v3465_v61 = vld [vmem:[%s4800_s21 + $0x78] sm:$0xff]  ;;  %v3474_v3 = vld [vmem:[%s4800_s21 + $0xa8] sm:$0xff] }
 0x5d9   : > { %v4376_v39 = vpack.c.bf16 %v3465_v61, %v3464_v8  ;;  %v4385_v9 = vpack.c.bf16 %v3474_v3, %v3473_v0  ;;  %v2791_v0 = vld [vmem:[%s4872_s29 + $0x18] sm:$0xff]  ;;  %v2788_v3 = vld [vmem:[%s4872_s29] sm:$0xff] }
 0x5da   : > { %v2223_v23 = vadd.f32 %v2220_v40, %v2219_v20  ;;  %v3469_v40 = vld [vmem:[%s4800_s21 + $0x80] sm:$0xff] }
 0x5db   : > { %v2229_v44 = vld [vmem:[#allocation2] sm:$0xff]  ;;  %v4379_v49 = vpack.c.bf16 %v3470_v46, %v3469_v40 }
 0x5dc   : > { %2226 = vst.msk [vmem:[#allocation2 + $0x10] sm:$0x7] %vm850_vm7, %v2223_v23  ;;  %4042 = vmatmul.mubr.msk.f32.vlgmr.msra.gmra.mrb[46].mxu0 %vm847_vm6, %v2229_v44  ;;  %v2227_v44 = vld [vmem:[%s4703_s16 + $0x3] ss:$0 sm:$0xff] }
 0x5dd   : > { %4368 = vmatpush3.bf16.msra.mxu0 %v4367_v21  ;;  %4044 = vmatprep.mubr.msk.f32.mxu0 %vm4595_vm1, %v4596_v13  ;;  %v4388_v21 = vpack.c.bf16 %v3476_v15, %v3475_v4  ;;  %v3485_v4 = vld [vmem:[%s5432_s6 + $0x10] sm:$0x1f] }
 0x5de   : > { %4369 = vmatprep.subr.bf16.mxu0 %v4594_v12 }
 0x5df   : > { %v2230_v26 = vld [vmem:[#allocation2 + $0x8] sm:$0xff] }
 0x5e0   : > { %4045 = vmatmul.mubr.msk.f32.gmra.mrb[48].mxu0 %vm847_vm6, %v2230_v26  ;;  %v2332_v57 = vld [vmem:[#allocation2 + $0x1] sm:$0xff] }
 0x5e1   : > { %4371 = vmatpush3.bf16.msra.mxu0 %v4370_v35  ;;  %4047 = vmatprep.mubr.msk.f32.mxu0 %vm4595_vm1, %v4596_v13  ;;  %v2435_v23 = vld [vmem:[#allocation2 + $0x2] sm:$0xff] }
 0x5e2   : > { %4372 = vmatprep.subr.bf16.mxu0 %v4594_v12 }
 0x5e3   : > { %v2231_v38 = vld [vmem:[#allocation2 + $0x10] sm:$0x1]  ;;  %v2334_v20 = vld [vmem:[#allocation2 + $0x11] sm:$0x1]  ;;  %v2437_v16 = vld [vmem:[#allocation2 + $0x12] sm:$0x1] }
 0x5e4   : > { %4048 = vmatmul.mubr.msk.f32.gmra.mrb[50].mxu0 %vm847_vm6, %v2231_v38  ;;  %v2333_v14 = vld [vmem:[#allocation2 + $0x9] sm:$0xff] }
 0x5e5   : > { %4374 = vmatpush3.bf16.msra.mxu0 %v4373_v42  ;;  %4066 = vmatprep.mubr.msk.f32.mxu0 %vm4595_vm1, %v4596_v13  ;;  %v2436_v24 = vld [vmem:[#allocation2 + $0xa] sm:$0xff] }
 0x5e6   : > { %4375 = vmatprep.subr.bf16.mxu0 %v4594_v12 }
 0x5e9   : > { %4377 = vmatpush3.bf16.msra.mxu0 %v4376_v39 }
 0x5ea   : > { %4378 = vmatprep.subr.bf16.mxu0 %v4594_v12 }
 0x5ec   : > { %4067 = vmatmul.mubr.msk.f32.vlgmr.msra.gmra.mrb[46].mxu0 %vm847_vm6, %v2332_v57  ;;  %v3482_v57 = vld [vmem:[%s5432_s6 + $0x8] sm:$0x1f] }
 0x5ed   : > { %4380 = vmatpush3.bf16.msra.mxu0 %v4379_v49  ;;  %4069 = vmatprep.mubr.msk.f32.mxu0 %vm4595_vm1, %v4596_v13 }
 0x5ee   : > { %4381 = vmatprep.subr.bf16.mxu0 %v4594_v12 }
 0x5f0   : > { %4070 = vmatmul.mubr.msk.f32.gmra.mrb[48].mxu0 %vm847_vm6, %v2333_v14  ;;  %v2790_v14 = vld [vmem:[%s4872_s29 + $0x10] sm:$0xff] }
 0x5f1   : > { %4383 = vmatpush3.bf16.msra.mxu0 %v4382_v63  ;;  %4072 = vmatprep.mubr.msk.f32.mxu0 %vm4595_vm1, %v4596_v13  ;;  %v2789_v63 = vld [vmem:[%s4872_s29 + $0x8] sm:$0xff]  ;;  %v4401_v15 = vpack.c.bf16 %v2790_v14, %v2788_v3  ;;  %v3512_v14 = vld [vmem:[%s4872_s29 + $0x1b8] sm:$0xff] }
 0x5f2   : > { %4384 = vmatprep.subr.bf16.mxu0 %v4594_v12  ;;  %v3510_v3 = vld [vmem:[%s4872_s29 + $0x1a8] sm:$0xff] }
 0x5f4   : > { %4073 = vmatmul.mubr.msk.f32.gmra.mrb[50].mxu0 %vm847_vm6, %v2334_v20  ;;  %v3494_v20 = vld [vmem:[%s4872_s29 + $0x128] sm:$0xff] }
 0x5f5   : > { %4386 = vmatpush3.bf16.msra.mxu0 %v4385_v9  ;;  %4091 = vmatprep.mubr.msk.f32.mxu0 %vm4595_vm1, %v4596_v13  ;;  %v4399_v9 = vpack.c.bf16 %v2791_v0, %v2789_v63  ;;  %v3505_v63 = vld [vmem:[%s4872_s29 + $0x180] sm:$0xff]  ;;  %v3507_v0 = vld [vmem:[%s4872_s29 + $0x190] sm:$0xff] }
 0x5f6   : > { %4387 = vmatprep.subr.bf16.mxu0 %v4594_v12 }
 0x5f9   : > { %4389 = vmatpush3.bf16.msra.mxu0 %v4388_v21  ;;  %v3496_v21 = vld [vmem:[%s4872_s29 + $0x138] sm:$0xff] }
 0x5fc   : > { %4092 = vmatmul.mubr.msk.f32.vlgmr.msra.gmra.mrb[46].mxu0 %vm847_vm6, %v2435_v23 }
 0x5fd   : > { %4094 = vmatprep.mubr.msk.f32.mxu0 %vm4595_vm1, %v4596_v13 }
 0x600   : > { %4095 = vmatmul.mubr.msk.f32.gmra.mrb[48].mxu0 %vm847_vm6, %v2436_v24  ;;  %v4435_v24 = vpack.c.bf16 %v3496_v21, %v3494_v20 }
 0x601   : > { %4097 = vmatprep.mubr.msk.f32.mxu0 %vm4595_vm1, %v4596_v13 }
 0x604   : > { %4098 = vmatmul.mubr.msk.f32.gmra.mrb[50].mxu0 %vm847_vm6, %v2437_v16  ;;  %v3493_v16 = vld [vmem:[%s4872_s29 + $0x120] sm:$0xff] }
 0x6cf   : > { %v2521_v35 = vpop.f32.mrb[46].mxu0 }
 0x6d0   : > { %v4093_v36 = vpop.f32.mrb[47].mxu0  ;;  %v4502_v53 = vadd.f32 %v2521_v35, %v2227_v44 }
 0x6d1   : > { %v3498_v36 = vld [vmem:[%s4872_s29 + $0x148] sm:$0xff] }
 0x6d2   : > { %v2538_v61 = vmax.f32 %v4502_v53, 0.0  ;;  %v3500_v53 = vld [vmem:[%s4872_s29 + $0x158] sm:$0xff] }
 0x6d3   : > { %v2526_v26 = vpop.f32.mrb[48].mxu0 }
 0x6d4   : > { %v4503_v42 = vadd.f32 %v2526_v26, %v2227_v44  ;;  %v4096_v8 = vpop.f32.mrb[49].mxu0  ;;  %v3497_v26 = vld [vmem:[%s4872_s29 + $0x140] sm:$0xff] }
 0x6d5   : > { %v3502_v8 = vld [vmem:[%s4872_s29 + $0x168] sm:$0xff] }
 0x6d6   : > { %v2539_v38 = vmax.f32 %v4503_v42, 0.0  ;;  %v3499_v42 = vld [vmem:[%s4872_s29 + $0x150] sm:$0xff] }
 0x6d7   : > { %v2531_v39 = vpop.f32.mrb[50].mxu0 }
 0x6d8   : > { %v4391_v40 = vpack.c.bf16 %v2539_v38, %v2538_v61  ;;  %v4504_v46 = vadd.f32 %v2531_v39, %v2227_v44  ;;  %v4099_v49 = vpop.f32.mrb[51].mxu0  ;;  %v3495_v44 = vld [vmem:[%s4872_s29 + $0x130] sm:$0xff]  ;;  %v3504_v61 = vld [vmem:[%s4872_s29 + $0x178] sm:$0xff]  ;;  %v4441_v38 = vpack.c.bf16 %v3499_v42, %v3497_v26 }
 0x6d9   : > { %v4443_v39 = vpack.c.bf16 %v3504_v61, %v3502_v8  ;;  %v3506_v49 = vld [vmem:[%s4872_s29 + $0x188] sm:$0xff] }
 0x6da   : > { %4392 = vmatpush3.bf16.msra.mxu1 %v4391_v40  ;;  %v2540_v50 = vmax.f32 %v4504_v46, 0.0  ;;  %v3503_v46 = vld [vmem:[%s4872_s29 + $0x170] sm:$0xff] }
 0x6db   : > { %4104 = vmatprep.subr.mxu1 %v4596_v13 }
 0x6de   : > { %4105 = vmatpush3.msk.msra.mxu1 %vm1173_vm8, %v2540_v50 }
 0x6df   : > { %4393 = vmatprep.subr.bf16.mxu1 %v4594_v12  ;;  %4107 = vmatmul.mubr.msk.f32.vlgmr.msra.gmra.mrb[22].mxu1 %vm1169_vm9, %v2541_v55 }
 0x6e0   : > { %4395 = vmatpush3.bf16.msra.mxu1 %v4391_v40  ;;  %4115 = vmatprep.mubr.msk.f32.mxu1 %vm4595_vm1, %v4596_v13 }
 0x6e1   : > { %4113 = vmatprep.subr.mxu1 %v4596_v13 }
 0x6e4   : > { %4114 = vmatpush3.msk.msra.mxu1 %vm1173_vm8, %v2540_v50 }
 0x6e5   : > { %4116 = vmatmul.mubr.msk.f32.vlgmr.msra.gmra.mrb[24].mxu1 %vm1169_vm9, %v3482_v57  ;;  %4396 = vmatprep.subr.bf16.mxu1 %v4594_v12  ;;  %v3490_v12 = vld [vmem:[%s4872_s29 + $0x108] sm:$0xff] }
 0x6e6   : > { %4398 = vmatpush3.bf16.msra.mxu1 %v4391_v40  ;;  %4124 = vmatprep.mubr.msk.f32.mxu1 %vm4595_vm1, %v4596_v13  ;;  %v3501_v40 = vld [vmem:[%s4872_s29 + $0x160] sm:$0xff] }
 0x6e7   : > { %4122 = vmatprep.subr.mxu1 %v4596_v13  ;;  %v4445_v55 = vpack.c.bf16 %v3503_v46, %v3501_v40 }
 0x6ea   : > { %4123 = vmatpush3.msk.msra.mxu1 %vm1173_vm8, %v2540_v50  ;;  %v3508_v50 = vld [vmem:[%s4872_s29 + $0x198] sm:$0xff] }
 0x6eb   : > { %4125 = vmatmul.mubr.msk.f32.vlgmr.msra.gmra.mrb[26].mxu1 %vm1169_vm9, %v3485_v4  ;;  %4400 = vmatprep.subr.bf16.mxu1 %v4399_v9  ;;  %v4447_v57 = vpack.c.bf16 %v3508_v50, %v3506_v49  ;;  %v4449_v9 = vpack.c.bf16 %v3507_v0, %v3505_v63  ;;  %v4451_v4 = vpack.c.bf16 %v3512_v14, %v3510_v3 }
 0x6ec   : > { %4402 = vmatpush1.bf16.msra.mxu1 %v4401_v15  ;;  %2884 = vmatprep.mubr.f32.mxu1 %v4596_v13  ;;  %v3509_v15 = vld [vmem:[%s4872_s29 + $0x1a0] sm:$0xff] }
 0x6ed   : > { %4404 = vmatprep.subr.bf16.mxu1 %v4880_v22  ;;  %v3492_v22 = vld [vmem:[%s4872_s29 + $0x118] sm:$0xff] }
 0x6f0   : > { %4406 = vmatpush1.bf16.msra.mxu1 %v4884_v25  ;;  %v4431_v25 = vpack.c.bf16 %v3492_v22, %v3490_v12  ;;  %v3511_v12 = vld [vmem:[%s4872_s29 + $0x1b0] sm:$0xff]  ;;  %v3514_v22 = vld [vmem:[%s4872_s29 + $0x1c8] sm:$0xff] }
 0x6f1   : > { %4408 = vmatprep.subr.bf16.mxu1 %v4889_v28 }
 0x6f4   : > { %4410 = vmatpush1.bf16.msra.mxu1 %v4894_v31 }
 0x6f5   : > { %4412 = vmatprep.subr.bf16.mxu1 %v4939_v10 }
 0x6f8   : > { %4414 = vmatpush1.bf16.msra.mxu1 %v4944_v18 }
 0x6f9   : > { %4416 = vmatprep.subr.bf16.mxu1 %v4953_v27 }
 0x6fc   : > { %4418 = vmatpush1.bf16.msra.mxu1 %v4958_v34 }
 0x6fd   : > { %4420 = vmatprep.subr.bf16.mxu1 %v4967_v41 }
 0x700   : > { %4422 = vmatpush1.bf16.msra.mxu1 %v4972_v48 }
 0x701   : > { %4424 = vmatprep.subr.bf16.mxu1 %v4980_v54 }
 0x704   : > { %4426 = vmatpush1.bf16.msra.mxu1 %v4989_v62 }
 0x705   : > { %4428 = vmatprep.subr.bf16.mxu1 %v4995_v5  ;;  %v3489_v5 = vld [vmem:[%s4872_s29 + $0x100] sm:$0xff] }
 0x708   : > { %4430 = vmatpush1.bf16.msra.mxu1 %v5000_v11  ;;  %v3491_v11 = vld [vmem:[%s4872_s29 + $0x110] sm:$0xff] }
 0x709   : > { %4432 = vmatprep.subr.bf16.mxu1 %v4431_v25  ;;  %v4433_v23 = vpack.c.bf16 %v3491_v11, %v3489_v5  ;;  %v3516_v25 = vld [vmem:[%s4872_s29 + $0x1d8] sm:$0xff]  ;;  %v3522_v5 = vld [vmem:[%s4872_s29 + $0x208] sm:$0xff] }
 0x70a   : > { %v3524_v11 = vld [vmem:[%s4872_s29 + $0x218] sm:$0xff] }
 0x70b   : > { %v4463_v21 = vpack.c.bf16 %v3524_v11, %v3522_v5 }
 0x7b2   : > { %v2614_v28 = vpop.f32.mrb[22].mxu1 }
 0x7b3   : > { %v4108_v31 = vpop.f32.mrb[23].mxu1 }
 0x7b4   : > { %v4455_v31 = vpack.c.bf16 %v3516_v25, %v3514_v22 }
 0x7b8   : > { %v2688_v10 = vpop.f32.mrb[24].mxu1 }
 0x7b9   : > { %v2692_v18 = vmax.f32 %v2614_v28, %v2688_v10  ;;  %v4117_v27 = vpop.f32.mrb[25].mxu1  ;;  %v4453_v28 = vpack.c.bf16 %v3511_v12, %v3509_v15  ;;  %v3513_v10 = vld [vmem:[%s4872_s29 + $0x1c0] sm:$0xff] }
 0x7ba   : > { %v3518_v27 = vld [vmem:[%s4872_s29 + $0x1e8] sm:$0xff] }
 0x7be   : > { %v2763_v34 = vpop.f32.mrb[26].mxu1 }
 0x7bf   : > { %v2767_v41 = vmax.f32 %v2692_v18, %v2763_v34  ;;  %v4126_v48 = vpop.f32.mrb[27].mxu1  ;;  %v3515_v18 = vld [vmem:[%s4872_s29 + $0x1d0] sm:$0xff]  ;;  %v3520_v34 = vld [vmem:[%s4872_s29 + $0x1f8] sm:$0xff] }
 0x7c0   : > { %v4459_v48 = vpack.c.bf16 %v3520_v34, %v3518_v27 }
 0x7c1   : > { %v2769_v54 = vmul.f32 %v2767_v41, %v5010_v33  ;;  %v4437_v33 = vpack.c.bf16 %v3495_v44, %v3493_v16  ;;  %v4457_v41 = vpack.c.bf16 %v3515_v18, %v3513_v10  ;;  %v3526_v16 = vld [vmem:[%s4872_s29 + $0x228] sm:$0xff]  ;;  %v3528_v44 = vld [vmem:[%s4872_s29 + $0x238] sm:$0xff] }
 0x7c3   : > { %v2771_v62 = vadd.f32 %v2769_v54, %v5013_v37  ;;  %v4439_v37 = vpack.c.bf16 %v3500_v53, %v3498_v36  ;;  %v3517_v54 = vld [vmem:[%s4872_s29 + $0x1e0] sm:$0xff]  ;;  %v4467_v36 = vpack.c.bf16 %v3528_v44, %v3526_v16 }
 0x7c5   : > { %2772 = vst [vmem:[#allocation3] sm:$0x1f] %v2771_v62  ;;  %v3519_v62 = vld [vmem:[%s4872_s29 + $0x1f0] sm:$0xff] }
 0x7c6   : > { %v4461_v20 = vpack.c.bf16 %v3519_v62, %v3517_v54 }
 0x7cc   : > { %v2787_v35 = vld [vmem:[#allocation3] sm:$0x7] }
 0x7cd   : > { %2885 = vmatmul.mubr.f32.vlgmr.msra.gmra.mrb[28].mxu1 %v2787_v35  ;;  %v2893_v53 = vld [vmem:[#allocation3 + $0x1] sm:$0x7] }
 0x7ce   : > { %4434 = vmatpush1.bf16.msra.mxu1 %v4433_v23  ;;  %2990 = vmatprep.mubr.f32.mxu1 %v4596_v13  ;;  %v3521_v23 = vld [vmem:[%s4872_s29 + $0x200] sm:$0xff] }
 0x7cf   : > { %4436 = vmatprep.subr.bf16.mxu1 %v4435_v24  ;;  %v3523_v24 = vld [vmem:[%s4872_s29 + $0x210] sm:$0xff] }
 0x7d0   : > { %v4465_v35 = vpack.c.bf16 %v3523_v24, %v3521_v23 }
 0x7d2   : > { %4438 = vmatpush1.bf16.msra.mxu1 %v4437_v33 }
 0x7d3   : > { %4440 = vmatprep.subr.bf16.mxu1 %v4439_v37 }
 0x7d6   : > { %4442 = vmatpush1.bf16.msra.mxu1 %v4441_v38 }
 0x7d7   : > { %4444 = vmatprep.subr.bf16.mxu1 %v4443_v39 }
 0x7da   : > { %4446 = vmatpush1.bf16.msra.mxu1 %v4445_v55 }
 0x7db   : > { %4448 = vmatprep.subr.bf16.mxu1 %v4447_v57 }
 0x7de   : > { %4450 = vmatpush1.bf16.msra.mxu1 %v4449_v9 }
 0x7df   : > { %4452 = vmatprep.subr.bf16.mxu1 %v4451_v4 }
 0x7e2   : > { %4454 = vmatpush1.bf16.msra.mxu1 %v4453_v28 }
 0x7e3   : > { %4456 = vmatprep.subr.bf16.mxu1 %v4455_v31 }
 0x7e6   : > { %4458 = vmatpush1.bf16.msra.mxu1 %v4457_v41 }
 0x7e7   : > { %4460 = vmatprep.subr.bf16.mxu1 %v4459_v48 }
 0x7ea   : > { %4462 = vmatpush1.bf16.msra.mxu1 %v4461_v20 }
 0x7eb   : > { %4464 = vmatprep.subr.bf16.mxu1 %v4463_v21 }
 0x7ed   : > { %2991 = vmatmul.mubr.f32.vlgmr.msra.gmra.mrb[28].mxu1 %v2893_v53 }
 0x7ee   : > { %4466 = vmatpush1.bf16.msra.mxu1 %v4465_v35  ;;  %3096 = vmatprep.mubr.f32.mxu1 %v4596_v13  ;;  %v2999_v13 = vld [vmem:[#allocation3 + $0x2] sm:$0x7] }
 0x7ef   : > { %4468 = vmatprep.subr.bf16.mxu1 %v4467_v36 }
 0x7f2   : > { %4470 = vmatpush1.bf16.msra.mxu1 %v5027_v58  ;;  %v3488_v58 = vld [vmem:[%s4703_s16 + $0x6] ss:$8 sm:$0x3] }
 0x7f3   : > { %4472 = vmatprep.subr.bf16.mxu1 %v5030_v59  ;;  %v2778_v59 = vrot.slane %v3488_v58, %v1409_v1 }
 0x7f6   : > { %4474 = vmatpush1.bf16.msra.mxu1 %v5042_v2  ;;  %v2782_v2 = vrot.slane %v3488_v58, %v1413_v7 }
 0x7f7   : > { %4476 = vmatprep.subr.bf16.mxu1 %v5046_v6 }
 0x7fa   : > { %4478 = vmatpush1.bf16.msra.mxu1 %v5057_v17 }
 0x7fb   : > { %4480 = vmatprep.subr.bf16.mxu1 %v5061_v19 }
 0x7fe   : > { %4482 = vmatpush1.bf16.msra.mxu1 %v5071_v30 }
 0x7ff   : > { %4484 = vmatprep.subr.bf16.mxu1 %v5075_v32 }
 0x802   : > { %4486 = vmatpush1.bf16.msra.mxu1 %v5084_v43 }
 0x803   : > { %4488 = vmatprep.subr.bf16.mxu1 %v5088_v45 }
 0x806   : > { %4490 = vmatpush1.bf16.msra.mxu1 %v5097_v51 }
 0x807   : > { %4492 = vmatprep.subr.bf16.mxu1 %v5100_v52 }
 0x80a   : > { %4494 = vmatpush1.bf16.msra.mxu1 %v5105_v56 }
 0x80d   : > { %3097 = vmatmul.mubr.f32.vlgmr.msra.gmra.mrb[28].mxu1 %v2999_v13 }
 0x8e0   : > { %v3098_v6 = vpop.f32.mrb[28].mxu1 }
 0x8e1   : > { %v4505_v17 = vadd.f32 %v3098_v6, %v2778_v59  ;;  %v3100_v19 = vpop.f32.mrb[29].mxu1 }
 0x8e2   : > { %v4506_v30 = vadd.f32 %v3100_v19, %v2782_v2 }
 0x8e3   : > { %v3105_v32 = vmax.f32 %v4505_v17, 0.0 }
 0x8e4   : > { %v3106_v43 = vmax.f32 %v4506_v30, 0.0 }
 0x8e5   : > { %v3107_v45 = vsel %vm563_vm2, %v3105_v32, 0.0 }
 0x8e6   : > { %v3108_v51 = vrot.slane %v3107_v45, 4  ;;  %v3114_v52 = vsel %vm563_vm2, %v3106_v43, 0.0 }
 0x8e7   : > { %v3115_v56 = vrot.slane %v3114_v52, 4 }
 0x8e8   : > { %v3109_v33 = vadd.f32 %v3108_v51, %v3107_v45 }
 0x8e9   : > { %v3116_v37 = vadd.f32 %v3115_v56, %v3114_v52 }
 0x8ea   : > { %v3110_v26 = vrot.slane %v3109_v33, 2 }
 0x8eb   : > { %v3117_v1 = vrot.slane %v3116_v37, 2 }
 0x8ec   : > { %v3111_v42 = vadd.f32 %v3110_v26, %v3109_v33 }
 0x8ed   : > { %v3118_v47 = vadd.f32 %v3117_v1, %v3116_v37 }
 0x8ee   : > { %v3112_v7 = vrot.slane %v3111_v42, 1 }
 0x8ef   : > { %v3119_v8 = vrot.slane %v3118_v47, 1 }
 0x8f0   : > { %v3113_v61 = vadd.f32 %v3112_v7, %v3111_v42 }
 0x8f1   : > { %v3120_v38 = vadd.f32 %v3119_v8, %v3118_v47 }
 0x8f2   : > { %v3121_v39 = vmul.f32 0.33333334, %v3113_v61 }
 0x8f3   : > { %v3122_v40 = vmul.f32 0.33333334, %v3120_v38 }
 0x8f5   : > { %v3125_v46 = vcombine.low %v3121_v39, %v3122_v40 }
 0x8f7   : > { %v3132_v49 = vrot.slane %v3125_v46, %v5195_v29 }
 0x8f9   : > { %v3139_v50 = vrot.slane %v3132_v49, %v5195_v29 }
 0x8fb   : > { %3553 = vst.msk [vmem:[%s5213_s10 + $0x1] ss:$2 sm:$0x3] %vm5206_vm10, %v3139_v50 }
 0x8fc PF: > { %s17_s26 = sadd.s32 1, %s4592_s26   ;;  %s5438_s24 = smov %s4588_s25 }
 0x8fd   : > { %p14_p5 = scmp.ge.s32.totalorder %s17_s26, 4   ;;  %s5439_s25 = smov %s5441_s27 }
 0x8ff   :  { %16 = sbr.rel (!%p14_p5) target bundleno = 2 (0x2), region = 101 }

</bundles_post_ra>
